<compile_context>
chip_gen: v6e
topology: v6e:2x2x1
jax: 0.10.0
libtpu: 0.0.40
codegen_flags: <defaults>
</compile_context>

<pallas_src>
import functools
import math

import numpy as np
import jax
import jax.numpy as jnp
from jax.experimental import pallas as pl
from jax.experimental.pallas import tpu as pltpu

H_MAX = 0.05  # Euler solver max step size (from ode_solve)


def _elu(x):
    # ELU with alpha=1.0 (nn.ELU default), computed in f32.
    return jnp.where(x > 0, x, jnp.exp(x) - 1.0)


def ode_kernel(schedule, z0_ref, params_ref, out_ref):
    """schedule: static tuple of (n_steps:int, h:float) per time interval.

    params_ref: merged (3*D + 3, D) f32 slab laid out as
      rows [0:D)      -> W1 (in, out)
      rows [D:2D)     -> W2
      rows [2D:3D)    -> W3
      row  3D         -> b1
      row  3D+1       -> b2
      row  3D+2       -> b3
    """
    bs, D = z0_ref.shape

    # Static slices into the single parameter slab (sublane-aligned, loaded once).
    w1 = params_ref[0 * D:1 * D, :]
    w2 = params_ref[1 * D:2 * D, :]
    w3 = params_ref[2 * D:3 * D, :]
    b1 = jnp.broadcast_to(params_ref[3 * D + 0:3 * D + 1, :], (bs, D))
    b2 = jnp.broadcast_to(params_ref[3 * D + 1:3 * D + 2, :], (bs, D))
    b3 = jnp.broadcast_to(params_ref[3 * D + 2:3 * D + 3, :], (bs, D))

    hp = jax.lax.Precision.HIGHEST

    z = z0_ref[...]
    out_ref[0, :, :] = z

    # Fully static unroll: the schedule is baked in at trace time, so both the
    # interval loop and the Euler loop become a flat instruction stream.
    for it, (n_steps, hh) in enumerate(schedule):
        # Fold the step size into the last layer once per interval (f32, off
        # the per-step critical path): euler step becomes z += f_scaled(z).
        w3_s = w3 * hh
        b3_s = b3 * hh
        for _ in range(n_steps):
            h1 = _elu(jnp.dot(z, w1, preferred_element_type=jnp.float32,
                              precision=hp) + b1)
            h2 = _elu(jnp.dot(h1, w2, preferred_element_type=jnp.float32,
                              precision=hp) + b2)
            z = z + (jnp.dot(h2, w3_s, preferred_element_type=jnp.float32,
                             precision=hp) + b3_s)
        out_ref[it + 1, :, :] = z


def ode_forward(z0, t, params):
    """Equivalent of ODE.forward(z0, t): returns zs of shape (T, bs, D)."""
    t_np = np.asarray(t, dtype=np.float32)
    T = int(t_np.shape[0])
    bs, D = z0.shape
    w1, b1, w2, b2, w3, b3 = params  # weights pre-transposed to (in, out)

    # Host-side solver schedule (PyTorch also syncs to host via .item()).
    # Baked statically into the kernel -> recompiles only if the t grid changes.
    schedule = []
    for it in range(T - 1):
        dt = float(t_np[it + 1] - t_np[it])
        n = max(int(math.ceil(abs(dt) / H_MAX)), 1)
        schedule.append((n, dt / n))
    schedule = tuple(schedule)

    # Single merged parameter slab -> one entry DMA instead of six tiny ones.
    slab = jnp.concatenate([w1, w2, w3, b1, b2, b3], axis=0).astype(jnp.float32)

    vmem = pl.BlockSpec(memory_space=pltpu.MemorySpace.VMEM)
    kernel = functools.partial(ode_kernel, schedule)
    return pl.pallas_call(
        kernel,
        out_shape=jax.ShapeDtypeStruct((T, bs, D), jnp.float32),
        in_specs=[vmem, vmem],
        out_specs=vmem,
    )(z0.astype(jnp.float32), slab)


def init_params(key, dim):
    """Deterministic NNODEF params (in_dim = hid_dim = out_dim = dim),
    stored as (in, out) weight matrices so the kernel computes x @ W + b."""
    ks = jax.random.split(key, 6)
    bound = 1.0 / math.sqrt(dim)
    u = lambda k, shp: jax.random.uniform(k, shp, jnp.float32, -bound, bound)
    w1, b1 = u(ks[0], (dim, dim)), u(ks[1], (1, dim))
    w2, b2 = u(ks[2], (dim, dim)), u(ks[3], (1, dim))
    w3, b3 = u(ks[4], (dim, dim)), u(ks[5], (1, dim))
    return (w1, b1, w2, b2, w3, b3)


def ref_forward(z0, t, params):
    """Pure numpy (f32) reference mirroring ode_solve / ODEAdjoint.forward."""
    w1, b1, w2, b2, w3, b3 = [np.asarray(p, np.float32) for p in params]
    t = np.asarray(t, np.float32)
    z = np.asarray(z0, np.float32)

    def elu(x):
        return np.where(x > 0, x, np.exp(x) - 1.0)

    def f(z):
        h1 = elu(z @ w1 + b1)
        h2 = elu(h1 @ w2 + b2)
        return h2 @ w3 + b3

    out = [z.copy()]
    for it in range(t.shape[0] - 1):
        n = max(int(math.ceil(abs(float(t[it + 1] - t[it])) / H_MAX)), 1)
        h = (t[it + 1] - t[it]) / n
        for _ in range(n):
            z = z + h * f(z)
        out.append(z.copy())
    return np.stack(out, axis=0)


# TODO(synk): ODEAdjoint.backward (adjoint-sensitivity gradient pass) is a
# training-time autograd path, not part of the forward semantics; not ported.

if __name__ == "__main__":
    batch = 4
    output_dim = 16          # ODE(output_dim): in_dim = hid_dim = latent = 16
    time_len = 8

    key = jax.random.PRNGKey(0)
    kz, kp = jax.random.split(key)
    z0 = jax.random.normal(kz, (batch, output_dim), dtype=jnp.float32)
    t = jnp.linspace(0.0, 1.0, time_len, dtype=jnp.float32)
    params = init_params(kp, output_dim)

    zs = ode_forward(z0, t, params)
    zs = jax.block_until_ready(zs)

    ref = ref_forward(np.asarray(z0), np.asarray(t), params)
    assert zs.shape == (time_len, batch, output_dim)
    # f32 end-to-end (HIGHEST-precision dots) -> tight parity with the numpy ref.
    assert np.allclose(np.asarray(zs), ref, rtol=1e-3, atol=1e-3), \
        f"max abs err {np.max(np.abs(np.asarray(zs) - ref))}"

    print("KERNEL_OK")
</pallas_src>

<mosaic_0001>
module attributes {stable_mosaic.version = 11 : i64} {
  func.func @ode_kernel(%arg0: memref<4x16xf32, #tpu.memory_space<vmem>>, %arg1: memref<51x16xf32, #tpu.memory_space<vmem>>, %arg2: memref<8x4x16xf32, #tpu.memory_space<vmem>>) attributes {dimension_semantics = [], scalar_prefetch = 0 : i64, scratch_operands = 0 : i64, tpu.core_type = #tpu.core_type<tc>} {
    %c0 = arith.constant 0 : index
    %c0_0 = arith.constant 0 : index
    %0 = vector.load %arg1[%c0, %c0_0] : memref<51x16xf32, #tpu.memory_space<vmem>>, vector<16x16xf32>
    %c16 = arith.constant 16 : index
    %c0_1 = arith.constant 0 : index
    %1 = vector.load %arg1[%c16, %c0_1] : memref<51x16xf32, #tpu.memory_space<vmem>>, vector<16x16xf32>
    %c32 = arith.constant 32 : index
    %c0_2 = arith.constant 0 : index
    %2 = vector.load %arg1[%c32, %c0_2] : memref<51x16xf32, #tpu.memory_space<vmem>>, vector<16x16xf32>
    %c48 = arith.constant 48 : index
    %c0_3 = arith.constant 0 : index
    %3 = vector.load %arg1[%c48, %c0_3] : memref<51x16xf32, #tpu.memory_space<vmem>>, vector<1x16xf32>
    %4 = vector.shape_cast %3 : vector<1x16xf32> to vector<1x16xf32>
    %5 = vector.broadcast %4 : vector<1x16xf32> to vector<4x16xf32>
    %c49 = arith.constant 49 : index
    %c0_4 = arith.constant 0 : index
    %6 = vector.load %arg1[%c49, %c0_4] : memref<51x16xf32, #tpu.memory_space<vmem>>, vector<1x16xf32>
    %7 = vector.shape_cast %6 : vector<1x16xf32> to vector<1x16xf32>
    %8 = vector.broadcast %7 : vector<1x16xf32> to vector<4x16xf32>
    %c50 = arith.constant 50 : index
    %c0_5 = arith.constant 0 : index
    %9 = vector.load %arg1[%c50, %c0_5] : memref<51x16xf32, #tpu.memory_space<vmem>>, vector<1x16xf32>
    %10 = vector.shape_cast %9 : vector<1x16xf32> to vector<1x16xf32>
    %11 = vector.broadcast %10 : vector<1x16xf32> to vector<4x16xf32>
    %c0_6 = arith.constant 0 : index
    %c0_7 = arith.constant 0 : index
    %12 = vector.load %arg0[%c0_6, %c0_7] : memref<4x16xf32, #tpu.memory_space<vmem>>, vector<4x16xf32>
    %c0_8 = arith.constant 0 : index
    %c0_9 = arith.constant 0 : index
    %c0_10 = arith.constant 0 : index
    %13 = vector.load %arg2[%c0_8, %c0_9, %c0_10] : memref<8x4x16xf32, #tpu.memory_space<vmem>>, vector<1x4x16xf32>
    %14 = vector.shape_cast %13 : vector<1x4x16xf32> to vector<4x16xf32>
    %15 = vector.shape_cast %12 : vector<4x16xf32> to vector<1x4x16xf32>
    tpu.vector_store %arg2[%c0_8, %c0_9, %c0_10], %15 {strides = array<i32>} : memref<8x4x16xf32, #tpu.memory_space<vmem>>, vector<1x4x16xf32>,
    %cst = arith.constant 0.0476190485 : f32
    %16 = vector.broadcast %cst : f32 to vector<16x16xf32>
    %17 = arith.mulf %2, %16 : vector<16x16xf32>
    %cst_11 = arith.constant 0.0476190485 : f32
    %18 = vector.broadcast %cst_11 : f32 to vector<4x16xf32>
    %19 = arith.mulf %11, %18 : vector<4x16xf32>
    %cst_12 = arith.constant dense<0.000000e+00> : vector<4x16xf32>
    %20 = tpu.matmul %12, %0, %cst_12 {dimension_numbers = #tpu.dot_dimension_numbers<[1], [0], [0], [1], [0, 0, 1, 1], [], []>, precision = #tpu.contract_precision<fp32>} : vector<4x16xf32>, vector<16x16xf32>, vector<4x16xf32> -> vector<4x16xf32>
    %21 = arith.addf %20, %5 : vector<4x16xf32>
    %cst_13 = arith.constant 0.000000e+00 : f32
    %22 = vector.broadcast %cst_13 : f32 to vector<4x16xf32>
    %23 = arith.cmpf ogt, %21, %22 : vector<4x16xf32>
    %24 = math.exp %21 : vector<4x16xf32>
    %cst_14 = arith.constant 1.000000e+00 : f32
    %25 = vector.broadcast %cst_14 : f32 to vector<4x16xf32>
    %26 = arith.subf %24, %25 : vector<4x16xf32>
    %27 = arith.select %23, %21, %26 : vector<4x16xi1>, vector<4x16xf32>
    %cst_15 = arith.constant dense<0.000000e+00> : vector<4x16xf32>
    %28 = tpu.matmul %27, %1, %cst_15 {dimension_numbers = #tpu.dot_dimension_numbers<[1], [0], [0], [1], [0, 0, 1, 1], [], []>, precision = #tpu.contract_precision<fp32>} : vector<4x16xf32>, vector<16x16xf32>, vector<4x16xf32> -> vector<4x16xf32>
    %29 = arith.addf %28, %8 : vector<4x16xf32>
    %cst_16 = arith.constant 0.000000e+00 : f32
    %30 = vector.broadcast %cst_16 : f32 to vector<4x16xf32>
    %31 = arith.cmpf ogt, %29, %30 : vector<4x16xf32>
    %32 = math.exp %29 : vector<4x16xf32>
    %cst_17 = arith.constant 1.000000e+00 : f32
    %33 = vector.broadcast %cst_17 : f32 to vector<4x16xf32>
    %34 = arith.subf %32, %33 : vector<4x16xf32>
    %35 = arith.select %31, %29, %34 : vector<4x16xi1>, vector<4x16xf32>
    %cst_18 = arith.constant dense<0.000000e+00> : vector<4x16xf32>
    %36 = tpu.matmul %35, %17, %cst_18 {dimension_numbers = #tpu.dot_dimension_numbers<[1], [0], [0], [1], [0, 0, 1, 1], [], []>, precision = #tpu.contract_precision<fp32>} : vector<4x16xf32>, vector<16x16xf32>, vector<4x16xf32> -> vector<4x16xf32>
    %37 = arith.addf %36, %19 : vector<4x16xf32>
    %38 = arith.addf %12, %37 : vector<4x16xf32>
    %cst_19 = arith.constant dense<0.000000e+00> : vector<4x16xf32>
    %39 = tpu.matmul %38, %0, %cst_19 {dimension_numbers = #tpu.dot_dimension_numbers<[1], [0], [0], [1], [0, 0, 1, 1], [], []>, precision = #tpu.contract_precision<fp32>} : vector<4x16xf32>, vector<16x16xf32>, vector<4x16xf32> -> vector<4x16xf32>
    %40 = arith.addf %39, %5 : vector<4x16xf32>
    %cst_20 = arith.constant 0.000000e+00 : f32
    %41 = vector.broadcast %cst_20 : f32 to vector<4x16xf32>
    %42 = arith.cmpf ogt, %40, %41 : vector<4x16xf32>
    %43 = math.exp %40 : vector<4x16xf32>
    %cst_21 = arith.constant 1.000000e+00 : f32
    %44 = vector.broadcast %cst_21 : f32 to vector<4x16xf32>
    %45 = arith.subf %43, %44 : vector<4x16xf32>
    %46 = arith.select %42, %40, %45 : vector<4x16xi1>, vector<4x16xf32>
    %cst_22 = arith.constant dense<0.000000e+00> : vector<4x16xf32>
    %47 = tpu.matmul %46, %1, %cst_22 {dimension_numbers = #tpu.dot_dimension_numbers<[1], [0], [0], [1], [0, 0, 1, 1], [], []>, precision = #tpu.contract_precision<fp32>} : vector<4x16xf32>, vector<16x16xf32>, vector<4x16xf32> -> vector<4x16xf32>
    %48 = arith.addf %47, %8 : vector<4x16xf32>
    %cst_23 = arith.constant 0.000000e+00 : f32
    %49 = vector.broadcast %cst_23 : f32 to vector<4x16xf32>
    %50 = arith.cmpf ogt, %48, %49 : vector<4x16xf32>
    %51 = math.exp %48 : vector<4x16xf32>
    %cst_24 = arith.constant 1.000000e+00 : f32
    %52 = vector.broadcast %cst_24 : f32 to vector<4x16xf32>
    %53 = arith.subf %51, %52 : vector<4x16xf32>
    %54 = arith.select %50, %48, %53 : vector<4x16xi1>, vector<4x16xf32>
    %cst_25 = arith.constant dense<0.000000e+00> : vector<4x16xf32>
    %55 = tpu.matmul %54, %17, %cst_25 {dimension_numbers = #tpu.dot_dimension_numbers<[1], [0], [0], [1], [0, 0, 1, 1], [], []>, precision = #tpu.contract_precision<fp32>} : vector<4x16xf32>, vector<16x16xf32>, vector<4x16xf32> -> vector<4x16xf32>
    %56 = arith.addf %55, %19 : vector<4x16xf32>
    %57 = arith.addf %38, %56 : vector<4x16xf32>
    %cst_26 = arith.constant dense<0.000000e+00> : vector<4x16xf32>
    %58 = tpu.matmul %57, %0, %cst_26 {dimension_numbers = #tpu.dot_dimension_numbers<[1], [0], [0], [1], [0, 0, 1, 1], [], []>, precision = #tpu.contract_precision<fp32>} : vector<4x16xf32>, vector<16x16xf32>, vector<4x16xf32> -> vector<4x16xf32>
    %59 = arith.addf %58, %5 : vector<4x16xf32>
    %cst_27 = arith.constant 0.000000e+00 : f32
    %60 = vector.broadcast %cst_27 : f32 to vector<4x16xf32>
    %61 = arith.cmpf ogt, %59, %60 : vector<4x16xf32>
    %62 = math.exp %59 : vector<4x16xf32>
    %cst_28 = arith.constant 1.000000e+00 : f32
    %63 = vector.broadcast %cst_28 : f32 to vector<4x16xf32>
    %64 = arith.subf %62, %63 : vector<4x16xf32>
    %65 = arith.select %61, %59, %64 : vector<4x16xi1>, vector<4x16xf32>
    %cst_29 = arith.constant dense<0.000000e+00> : vector<4x16xf32>
    %66 = tpu.matmul %65, %1, %cst_29 {dimension_numbers = #tpu.dot_dimension_numbers<[1], [0], [0], [1], [0, 0, 1, 1], [], []>, precision = #tpu.contract_precision<fp32>} : vector<4x16xf32>, vector<16x16xf32>, vector<4x16xf32> -> vector<4x16xf32>
    %67 = arith.addf %66, %8 : vector<4x16xf32>
    %cst_30 = arith.constant 0.000000e+00 : f32
    %68 = vector.broadcast %cst_30 : f32 to vector<4x16xf32>
    %69 = arith.cmpf ogt, %67, %68 : vector<4x16xf32>
    %70 = math.exp %67 : vector<4x16xf32>
    %cst_31 = arith.constant 1.000000e+00 : f32
    %71 = vector.broadcast %cst_31 : f32 to vector<4x16xf32>
    %72 = arith.subf %70, %71 : vector<4x16xf32>
    %73 = arith.select %69, %67, %72 : vector<4x16xi1>, vector<4x16xf32>
    %cst_32 = arith.constant dense<0.000000e+00> : vector<4x16xf32>
    %74 = tpu.matmul %73, %17, %cst_32 {dimension_numbers = #tpu.dot_dimension_numbers<[1], [0], [0], [1], [0, 0, 1, 1], [], []>, precision = #tpu.contract_precision<fp32>} : vector<4x16xf32>, vector<16x16xf32>, vector<4x16xf32> -> vector<4x16xf32>
    %75 = arith.addf %74, %19 : vector<4x16xf32>
    %76 = arith.addf %57, %75 : vector<4x16xf32>
    %c1 = arith.constant 1 : index
    %c0_33 = arith.constant 0 : index
    %c0_34 = arith.constant 0 : index
    %77 = vector.load %arg2[%c1, %c0_33, %c0_34] : memref<8x4x16xf32, #tpu.memory_space<vmem>>, vector<1x4x16xf32>
    %78 = vector.shape_cast %77 : vector<1x4x16xf32> to vector<4x16xf32>
    %79 = vector.shape_cast %76 : vector<4x16xf32> to vector<1x4x16xf32>
    tpu.vector_store %arg2[%c1, %c0_33, %c0_34], %79 {strides = array<i32>} : memref<8x4x16xf32, #tpu.memory_space<vmem>>, vector<1x4x16xf32>,
    %cst_35 = arith.constant 0.0476190485 : f32
    %80 = vector.broadcast %cst_35 : f32 to vector<16x16xf32>
    %81 = arith.mulf %2, %80 : vector<16x16xf32>
    %cst_36 = arith.constant 0.0476190485 : f32
    %82 = vector.broadcast %cst_36 : f32 to vector<4x16xf32>
    %83 = arith.mulf %11, %82 : vector<4x16xf32>
    %cst_37 = arith.constant dense<0.000000e+00> : vector<4x16xf32>
    %84 = tpu.matmul %76, %0, %cst_37 {dimension_numbers = #tpu.dot_dimension_numbers<[1], [0], [0], [1], [0, 0, 1, 1], [], []>, precision = #tpu.contract_precision<fp32>} : vector<4x16xf32>, vector<16x16xf32>, vector<4x16xf32> -> vector<4x16xf32>
    %85 = arith.addf %84, %5 : vector<4x16xf32>
    %cst_38 = arith.constant 0.000000e+00 : f32
    %86 = vector.broadcast %cst_38 : f32 to vector<4x16xf32>
    %87 = arith.cmpf ogt, %85, %86 : vector<4x16xf32>
    %88 = math.exp %85 : vector<4x16xf32>
    %cst_39 = arith.constant 1.000000e+00 : f32
    %89 = vector.broadcast %cst_39 : f32 to vector<4x16xf32>
    %90 = arith.subf %88, %89 : vector<4x16xf32>
    %91 = arith.select %87, %85, %90 : vector<4x16xi1>, vector<4x16xf32>
    %cst_40 = arith.constant dense<0.000000e+00> : vector<4x16xf32>
    %92 = tpu.matmul %91, %1, %cst_40 {dimension_numbers = #tpu.dot_dimension_numbers<[1], [0], [0], [1], [0, 0, 1, 1], [], []>, precision = #tpu.contract_precision<fp32>} : vector<4x16xf32>, vector<16x16xf32>, vector<4x16xf32> -> vector<4x16xf32>
    %93 = arith.addf %92, %8 : vector<4x16xf32>
    %cst_41 = arith.constant 0.000000e+00 : f32
    %94 = vector.broadcast %cst_41 : f32 to vector<4x16xf32>
    %95 = arith.cmpf ogt, %93, %94 : vector<4x16xf32>
    %96 = math.exp %93 : vector<4x16xf32>
    %cst_42 = arith.constant 1.000000e+00 : f32
    %97 = vector.broadcast %cst_42 : f32 to vector<4x16xf32>
    %98 = arith.subf %96, %97 : vector<4x16xf32>
    %99 = arith.select %95, %93, %98 : vector<4x16xi1>, vector<4x16xf32>
    %cst_43 = arith.constant dense<0.000000e+00> : vector<4x16xf32>
    %100 = tpu.matmul %99, %81, %cst_43 {dimension_numbers = #tpu.dot_dimension_numbers<[1], [0], [0], [1], [0, 0, 1, 1], [], []>, precision = #tpu.contract_precision<fp32>} : vector<4x16xf32>, vector<16x16xf32>, vector<4x16xf32> -> vector<4x16xf32>
    %101 = arith.addf %100, %83 : vector<4x16xf32>
    %102 = arith.addf %76, %101 : vector<4x16xf32>
    %cst_44 = arith.constant dense<0.000000e+00> : vector<4x16xf32>
    %103 = tpu.matmul %102, %0, %cst_44 {dimension_numbers = #tpu.dot_dimension_numbers<[1], [0], [0], [1], [0, 0, 1, 1], [], []>, precision = #tpu.contract_precision<fp32>} : vector<4x16xf32>, vector<16x16xf32>, vector<4x16xf32> -> vector<4x16xf32>
    %104 = arith.addf %103, %5 : vector<4x16xf32>
    %cst_45 = arith.constant 0.000000e+00 : f32
    %105 = vector.broadcast %cst_45 : f32 to vector<4x16xf32>
    %106 = arith.cmpf ogt, %104, %105 : vector<4x16xf32>
    %107 = math.exp %104 : vector<4x16xf32>
    %cst_46 = arith.constant 1.000000e+00 : f32
    %108 = vector.broadcast %cst_46 : f32 to vector<4x16xf32>
    %109 = arith.subf %107, %108 : vector<4x16xf32>
    %110 = arith.select %106, %104, %109 : vector<4x16xi1>, vector<4x16xf32>
    %cst_47 = arith.constant dense<0.000000e+00> : vector<4x16xf32>
    %111 = tpu.matmul %110, %1, %cst_47 {dimension_numbers = #tpu.dot_dimension_numbers<[1], [0], [0], [1], [0, 0, 1, 1], [], []>, precision = #tpu.contract_precision<fp32>} : vector<4x16xf32>, vector<16x16xf32>, vector<4x16xf32> -> vector<4x16xf32>
    %112 = arith.addf %111, %8 : vector<4x16xf32>
    %cst_48 = arith.constant 0.000000e+00 : f32
    %113 = vector.broadcast %cst_48 : f32 to vector<4x16xf32>
    %114 = arith.cmpf ogt, %112, %113 : vector<4x16xf32>
    %115 = math.exp %112 : vector<4x16xf32>
    %cst_49 = arith.constant 1.000000e+00 : f32
    %116 = vector.broadcast %cst_49 : f32 to vector<4x16xf32>
    %117 = arith.subf %115, %116 : vector<4x16xf32>
    %118 = arith.select %114, %112, %117 : vector<4x16xi1>, vector<4x16xf32>
    %cst_50 = arith.constant dense<0.000000e+00> : vector<4x16xf32>
    %119 = tpu.matmul %118, %81, %cst_50 {dimension_numbers = #tpu.dot_dimension_numbers<[1], [0], [0], [1], [0, 0, 1, 1], [], []>, precision = #tpu.contract_precision<fp32>} : vector<4x16xf32>, vector<16x16xf32>, vector<4x16xf32> -> vector<4x16xf32>
    %120 = arith.addf %119, %83 : vector<4x16xf32>
    %121 = arith.addf %102, %120 : vector<4x16xf32>
    %cst_51 = arith.constant dense<0.000000e+00> : vector<4x16xf32>
    %122 = tpu.matmul %121, %0, %cst_51 {dimension_numbers = #tpu.dot_dimension_numbers<[1], [0], [0], [1], [0, 0, 1, 1], [], []>, precision = #tpu.contract_precision<fp32>} : vector<4x16xf32>, vector<16x16xf32>, vector<4x16xf32> -> vector<4x16xf32>
    %123 = arith.addf %122, %5 : vector<4x16xf32>
    %cst_52 = arith.constant 0.000000e+00 : f32
    %124 = vector.broadcast %cst_52 : f32 to vector<4x16xf32>
    %125 = arith.cmpf ogt, %123, %124 : vector<4x16xf32>
    %126 = math.exp %123 : vector<4x16xf32>
    %cst_53 = arith.constant 1.000000e+00 : f32
    %127 = vector.broadcast %cst_53 : f32 to vector<4x16xf32>
    %128 = arith.subf %126, %127 : vector<4x16xf32>
    %129 = arith.select %125, %123, %128 : vector<4x16xi1>, vector<4x16xf32>
    %cst_54 = arith.constant dense<0.000000e+00> : vector<4x16xf32>
    %130 = tpu.matmul %129, %1, %cst_54 {dimension_numbers = #tpu.dot_dimension_numbers<[1], [0], [0], [1], [0, 0, 1, 1], [], []>, precision = #tpu.contract_precision<fp32>} : vector<4x16xf32>, vector<16x16xf32>, vector<4x16xf32> -> vector<4x16xf32>
    %131 = arith.addf %130, %8 : vector<4x16xf32>
    %cst_55 = arith.constant 0.000000e+00 : f32
    %132 = vector.broadcast %cst_55 : f32 to vector<4x16xf32>
    %133 = arith.cmpf ogt, %131, %132 : vector<4x16xf32>
    %134 = math.exp %131 : vector<4x16xf32>
    %cst_56 = arith.constant 1.000000e+00 : f32
    %135 = vector.broadcast %cst_56 : f32 to vector<4x16xf32>
    %136 = arith.subf %134, %135 : vector<4x16xf32>
    %137 = arith.select %133, %131, %136 : vector<4x16xi1>, vector<4x16xf32>
    %cst_57 = arith.constant dense<0.000000e+00> : vector<4x16xf32>
    %138 = tpu.matmul %137, %81, %cst_57 {dimension_numbers = #tpu.dot_dimension_numbers<[1], [0], [0], [1], [0, 0, 1, 1], [], []>, precision = #tpu.contract_precision<fp32>} : vector<4x16xf32>, vector<16x16xf32>, vector<4x16xf32> -> vector<4x16xf32>
    %139 = arith.addf %138, %83 : vector<4x16xf32>
    %140 = arith.addf %121, %139 : vector<4x16xf32>
    %c2 = arith.constant 2 : index
    %c0_58 = arith.constant 0 : index
    %c0_59 = arith.constant 0 : index
    %141 = vector.load %arg2[%c2, %c0_58, %c0_59] : memref<8x4x16xf32, #tpu.memory_space<vmem>>, vector<1x4x16xf32>
    %142 = vector.shape_cast %141 : vector<1x4x16xf32> to vector<4x16xf32>
    %143 = vector.shape_cast %140 : vector<4x16xf32> to vector<1x4x16xf32>
    tpu.vector_store %arg2[%c2, %c0_58, %c0_59], %143 {strides = array<i32>} : memref<8x4x16xf32, #tpu.memory_space<vmem>>, vector<1x4x16xf32>,
    %cst_60 = arith.constant 0.047619056 : f32
    %144 = vector.broadcast %cst_60 : f32 to vector<16x16xf32>
    %145 = arith.mulf %2, %144 : vector<16x16xf32>
    %cst_61 = arith.constant 0.047619056 : f32
    %146 = vector.broadcast %cst_61 : f32 to vector<4x16xf32>
    %147 = arith.mulf %11, %146 : vector<4x16xf32>
    %cst_62 = arith.constant dense<0.000000e+00> : vector<4x16xf32>
    %148 = tpu.matmul %140, %0, %cst_62 {dimension_numbers = #tpu.dot_dimension_numbers<[1], [0], [0], [1], [0, 0, 1, 1], [], []>, precision = #tpu.contract_precision<fp32>} : vector<4x16xf32>, vector<16x16xf32>, vector<4x16xf32> -> vector<4x16xf32>
    %149 = arith.addf %148, %5 : vector<4x16xf32>
    %cst_63 = arith.constant 0.000000e+00 : f32
    %150 = vector.broadcast %cst_63 : f32 to vector<4x16xf32>
    %151 = arith.cmpf ogt, %149, %150 : vector<4x16xf32>
    %152 = math.exp %149 : vector<4x16xf32>
    %cst_64 = arith.constant 1.000000e+00 : f32
    %153 = vector.broadcast %cst_64 : f32 to vector<4x16xf32>
    %154 = arith.subf %152, %153 : vector<4x16xf32>
    %155 = arith.select %151, %149, %154 : vector<4x16xi1>, vector<4x16xf32>
    %cst_65 = arith.constant dense<0.000000e+00> : vector<4x16xf32>
    %156 = tpu.matmul %155, %1, %cst_65 {dimension_numbers = #tpu.dot_dimension_numbers<[1], [0], [0], [1], [0, 0, 1, 1], [], []>, precision = #tpu.contract_precision<fp32>} : vector<4x16xf32>, vector<16x16xf32>, vector<4x16xf32> -> vector<4x16xf32>
    %157 = arith.addf %156, %8 : vector<4x16xf32>
    %cst_66 = arith.constant 0.000000e+00 : f32
    %158 = vector.broadcast %cst_66 : f32 to vector<4x16xf32>
    %159 = arith.cmpf ogt, %157, %158 : vector<4x16xf32>
    %160 = math.exp %157 : vector<4x16xf32>
    %cst_67 = arith.constant 1.000000e+00 : f32
    %161 = vector.broadcast %cst_67 : f32 to vector<4x16xf32>
    %162 = arith.subf %160, %161 : vector<4x16xf32>
    %163 = arith.select %159, %157, %162 : vector<4x16xi1>, vector<4x16xf32>
    %cst_68 = arith.constant dense<0.000000e+00> : vector<4x16xf32>
    %164 = tpu.matmul %163, %145, %cst_68 {dimension_numbers = #tpu.dot_dimension_numbers<[1], [0], [0], [1], [0, 0, 1, 1], [], []>, precision = #tpu.contract_precision<fp32>} : vector<4x16xf32>, vector<16x16xf32>, vector<4x16xf32> -> vector<4x16xf32>
    %165 = arith.addf %164, %147 : vector<4x16xf32>
    %166 = arith.addf %140, %165 : vector<4x16xf32>
    %cst_69 = arith.constant dense<0.000000e+00> : vector<4x16xf32>
    %167 = tpu.matmul %166, %0, %cst_69 {dimension_numbers = #tpu.dot_dimension_numbers<[1], [0], [0], [1], [0, 0, 1, 1], [], []>, precision = #tpu.contract_precision<fp32>} : vector<4x16xf32>, vector<16x16xf32>, vector<4x16xf32> -> vector<4x16xf32>
    %168 = arith.addf %167, %5 : vector<4x16xf32>
    %cst_70 = arith.constant 0.000000e+00 : f32
    %169 = vector.broadcast %cst_70 : f32 to vector<4x16xf32>
    %170 = arith.cmpf ogt, %168, %169 : vector<4x16xf32>
    %171 = math.exp %168 : vector<4x16xf32>
    %cst_71 = arith.constant 1.000000e+00 : f32
    %172 = vector.broadcast %cst_71 : f32 to vector<4x16xf32>
    %173 = arith.subf %171, %172 : vector<4x16xf32>
    %174 = arith.select %170, %168, %173 : vector<4x16xi1>, vector<4x16xf32>
    %cst_72 = arith.constant dense<0.000000e+00> : vector<4x16xf32>
    %175 = tpu.matmul %174, %1, %cst_72 {dimension_numbers = #tpu.dot_dimension_numbers<[1], [0], [0], [1], [0, 0, 1, 1], [], []>, precision = #tpu.contract_precision<fp32>} : vector<4x16xf32>, vector<16x16xf32>, vector<4x16xf32> -> vector<4x16xf32>
    %176 = arith.addf %175, %8 : vector<4x16xf32>
    %cst_73 = arith.constant 0.000000e+00 : f32
    %177 = vector.broadcast %cst_73 : f32 to vector<4x16xf32>
    %178 = arith.cmpf ogt, %176, %177 : vector<4x16xf32>
    %179 = math.exp %176 : vector<4x16xf32>
    %cst_74 = arith.constant 1.000000e+00 : f32
    %180 = vector.broadcast %cst_74 : f32 to vector<4x16xf32>
    %181 = arith.subf %179, %180 : vector<4x16xf32>
    %182 = arith.select %178, %176, %181 : vector<4x16xi1>, vector<4x16xf32>
    %cst_75 = arith.constant dense<0.000000e+00> : vector<4x16xf32>
    %183 = tpu.matmul %182, %145, %cst_75 {dimension_numbers = #tpu.dot_dimension_numbers<[1], [0], [0], [1], [0, 0, 1, 1], [], []>, precision = #tpu.contract_precision<fp32>} : vector<4x16xf32>, vector<16x16xf32>, vector<4x16xf32> -> vector<4x16xf32>
    %184 = arith.addf %183, %147 : vector<4x16xf32>
    %185 = arith.addf %166, %184 : vector<4x16xf32>
    %cst_76 = arith.constant dense<0.000000e+00> : vector<4x16xf32>
    %186 = tpu.matmul %185, %0, %cst_76 {dimension_numbers = #tpu.dot_dimension_numbers<[1], [0], [0], [1], [0, 0, 1, 1], [], []>, precision = #tpu.contract_precision<fp32>} : vector<4x16xf32>, vector<16x16xf32>, vector<4x16xf32> -> vector<4x16xf32>
    %187 = arith.addf %186, %5 : vector<4x16xf32>
    %cst_77 = arith.constant 0.000000e+00 : f32
    %188 = vector.broadcast %cst_77 : f32 to vector<4x16xf32>
    %189 = arith.cmpf ogt, %187, %188 : vector<4x16xf32>
    %190 = math.exp %187 : vector<4x16xf32>
    %cst_78 = arith.constant 1.000000e+00 : f32
    %191 = vector.broadcast %cst_78 : f32 to vector<4x16xf32>
    %192 = arith.subf %190, %191 : vector<4x16xf32>
    %193 = arith.select %189, %187, %192 : vector<4x16xi1>, vector<4x16xf32>
    %cst_79 = arith.constant dense<0.000000e+00> : vector<4x16xf32>
    %194 = tpu.matmul %193, %1, %cst_79 {dimension_numbers = #tpu.dot_dimension_numbers<[1], [0], [0], [1], [0, 0, 1, 1], [], []>, precision = #tpu.contract_precision<fp32>} : vector<4x16xf32>, vector<16x16xf32>, vector<4x16xf32> -> vector<4x16xf32>
    %195 = arith.addf %194, %8 : vector<4x16xf32>
    %cst_80 = arith.constant 0.000000e+00 : f32
    %196 = vector.broadcast %cst_80 : f32 to vector<4x16xf32>
    %197 = arith.cmpf ogt, %195, %196 : vector<4x16xf32>
    %198 = math.exp %195 : vector<4x16xf32>
    %cst_81 = arith.constant 1.000000e+00 : f32
    %199 = vector.broadcast %cst_81 : f32 to vector<4x16xf32>
    %200 = arith.subf %198, %199 : vector<4x16xf32>
    %201 = arith.select %197, %195, %200 : vector<4x16xi1>, vector<4x16xf32>
    %cst_82 = arith.constant dense<0.000000e+00> : vector<4x16xf32>
    %202 = tpu.matmul %201, %145, %cst_82 {dimension_numbers = #tpu.dot_dimension_numbers<[1], [0], [0], [1], [0, 0, 1, 1], [], []>, precision = #tpu.contract_precision<fp32>} : vector<4x16xf32>, vector<16x16xf32>, vector<4x16xf32> -> vector<4x16xf32>
    %203 = arith.addf %202, %147 : vector<4x16xf32>
    %204 = arith.addf %185, %203 : vector<4x16xf32>
    %c3 = arith.constant 3 : index
    %c0_83 = arith.constant 0 : index
    %c0_84 = arith.constant 0 : index
    %205 = vector.load %arg2[%c3, %c0_83, %c0_84] : memref<8x4x16xf32, #tpu.memory_space<vmem>>, vector<1x4x16xf32>
    %206 = vector.shape_cast %205 : vector<1x4x16xf32> to vector<4x16xf32>
    %207 = vector.shape_cast %204 : vector<4x16xf32> to vector<1x4x16xf32>
    tpu.vector_store %arg2[%c3, %c0_83, %c0_84], %207 {strides = array<i32>} : memref<8x4x16xf32, #tpu.memory_space<vmem>>, vector<1x4x16xf32>,
    %cst_85 = arith.constant 0.0476190448 : f32
    %208 = vector.broadcast %cst_85 : f32 to vector<16x16xf32>
    %209 = arith.mulf %2, %208 : vector<16x16xf32>
    %cst_86 = arith.constant 0.0476190448 : f32
    %210 = vector.broadcast %cst_86 : f32 to vector<4x16xf32>
    %211 = arith.mulf %11, %210 : vector<4x16xf32>
    %cst_87 = arith.constant dense<0.000000e+00> : vector<4x16xf32>
    %212 = tpu.matmul %204, %0, %cst_87 {dimension_numbers = #tpu.dot_dimension_numbers<[1], [0], [0], [1], [0, 0, 1, 1], [], []>, precision = #tpu.contract_precision<fp32>} : vector<4x16xf32>, vector<16x16xf32>, vector<4x16xf32> -> vector<4x16xf32>
    %213 = arith.addf %212, %5 : vector<4x16xf32>
    %cst_88 = arith.constant 0.000000e+00 : f32
    %214 = vector.broadcast %cst_88 : f32 to vector<4x16xf32>
    %215 = arith.cmpf ogt, %213, %214 : vector<4x16xf32>
    %216 = math.exp %213 : vector<4x16xf32>
    %cst_89 = arith.constant 1.000000e+00 : f32
    %217 = vector.broadcast %cst_89 : f32 to vector<4x16xf32>
    %218 = arith.subf %216, %217 : vector<4x16xf32>
    %219 = arith.select %215, %213, %218 : vector<4x16xi1>, vector<4x16xf32>
    %cst_90 = arith.constant dense<0.000000e+00> : vector<4x16xf32>
    %220 = tpu.matmul %219, %1, %cst_90 {dimension_numbers = #tpu.dot_dimension_numbers<[1], [0], [0], [1], [0, 0, 1, 1], [], []>, precision = #tpu.contract_precision<fp32>} : vector<4x16xf32>, vector<16x16xf32>, vector<4x16xf32> -> vector<4x16xf32>
    %221 = arith.addf %220, %8 : vector<4x16xf32>
    %cst_91 = arith.constant 0.000000e+00 : f32
    %222 = vector.broadcast %cst_91 : f32 to vector<4x16xf32>
    %223 = arith.cmpf ogt, %221, %222 : vector<4x16xf32>
    %224 = math.exp %221 : vector<4x16xf32>
    %cst_92 = arith.constant 1.000000e+00 : f32
    %225 = vector.broadcast %cst_92 : f32 to vector<4x16xf32>
    %226 = arith.subf %224, %225 : vector<4x16xf32>
    %227 = arith.select %223, %221, %226 : vector<4x16xi1>, vector<4x16xf32>
    %cst_93 = arith.constant dense<0.000000e+00> : vector<4x16xf32>
    %228 = tpu.matmul %227, %209, %cst_93 {dimension_numbers = #tpu.dot_dimension_numbers<[1], [0], [0], [1], [0, 0, 1, 1], [], []>, precision = #tpu.contract_precision<fp32>} : vector<4x16xf32>, vector<16x16xf32>, vector<4x16xf32> -> vector<4x16xf32>
    %229 = arith.addf %228, %211 : vector<4x16xf32>
    %230 = arith.addf %204, %229 : vector<4x16xf32>
    %cst_94 = arith.constant dense<0.000000e+00> : vector<4x16xf32>
    %231 = tpu.matmul %230, %0, %cst_94 {dimension_numbers = #tpu.dot_dimension_numbers<[1], [0], [0], [1], [0, 0, 1, 1], [], []>, precision = #tpu.contract_precision<fp32>} : vector<4x16xf32>, vector<16x16xf32>, vector<4x16xf32> -> vector<4x16xf32>
    %232 = arith.addf %231, %5 : vector<4x16xf32>
    %cst_95 = arith.constant 0.000000e+00 : f32
    %233 = vector.broadcast %cst_95 : f32 to vector<4x16xf32>
    %234 = arith.cmpf ogt, %232, %233 : vector<4x16xf32>
    %235 = math.exp %232 : vector<4x16xf32>
    %cst_96 = arith.constant 1.000000e+00 : f32
    %236 = vector.broadcast %cst_96 : f32 to vector<4x16xf32>
    %237 = arith.subf %235, %236 : vector<4x16xf32>
    %238 = arith.select %234, %232, %237 : vector<4x16xi1>, vector<4x16xf32>
    %cst_97 = arith.constant dense<0.000000e+00> : vector<4x16xf32>
    %239 = tpu.matmul %238, %1, %cst_97 {dimension_numbers = #tpu.dot_dimension_numbers<[1], [0], [0], [1], [0, 0, 1, 1], [], []>, precision = #tpu.contract_precision<fp32>} : vector<4x16xf32>, vector<16x16xf32>, vector<4x16xf32> -> vector<4x16xf32>
    %240 = arith.addf %239, %8 : vector<4x16xf32>
    %cst_98 = arith.constant 0.000000e+00 : f32
    %241 = vector.broadcast %cst_98 : f32 to vector<4x16xf32>
    %242 = arith.cmpf ogt, %240, %241 : vector<4x16xf32>
    %243 = math.exp %240 : vector<4x16xf32>
    %cst_99 = arith.constant 1.000000e+00 : f32
    %244 = vector.broadcast %cst_99 : f32 to vector<4x16xf32>
    %245 = arith.subf %243, %244 : vector<4x16xf32>
    %246 = arith.select %242, %240, %245 : vector<4x16xi1>, vector<4x16xf32>
    %cst_100 = arith.constant dense<0.000000e+00> : vector<4x16xf32>
    %247 = tpu.matmul %246, %209, %cst_100 {dimension_numbers = #tpu.dot_dimension_numbers<[1], [0], [0], [1], [0, 0, 1, 1], [], []>, precision = #tpu.contract_precision<fp32>} : vector<4x16xf32>, vector<16x16xf32>, vector<4x16xf32> -> vector<4x16xf32>
    %248 = arith.addf %247, %211 : vector<4x16xf32>
    %249 = arith.addf %230, %248 : vector<4x16xf32>
    %cst_101 = arith.constant dense<0.000000e+00> : vector<4x16xf32>
    %250 = tpu.matmul %249, %0, %cst_101 {dimension_numbers = #tpu.dot_dimension_numbers<[1], [0], [0], [1], [0, 0, 1, 1], [], []>, precision = #tpu.contract_precision<fp32>} : vector<4x16xf32>, vector<16x16xf32>, vector<4x16xf32> -> vector<4x16xf32>
    %251 = arith.addf %250, %5 : vector<4x16xf32>
    %cst_102 = arith.constant 0.000000e+00 : f32
    %252 = vector.broadcast %cst_102 : f32 to vector<4x16xf32>
    %253 = arith.cmpf ogt, %251, %252 : vector<4x16xf32>
    %254 = math.exp %251 : vector<4x16xf32>
    %cst_103 = arith.constant 1.000000e+00 : f32
    %255 = vector.broadcast %cst_103 : f32 to vector<4x16xf32>
    %256 = arith.subf %254, %255 : vector<4x16xf32>
    %257 = arith.select %253, %251, %256 : vector<4x16xi1>, vector<4x16xf32>
    %cst_104 = arith.constant dense<0.000000e+00> : vector<4x16xf32>
    %258 = tpu.matmul %257, %1, %cst_104 {dimension_numbers = #tpu.dot_dimension_numbers<[1], [0], [0], [1], [0, 0, 1, 1], [], []>, precision = #tpu.contract_precision<fp32>} : vector<4x16xf32>, vector<16x16xf32>, vector<4x16xf32> -> vector<4x16xf32>
    %259 = arith.addf %258, %8 : vector<4x16xf32>
    %cst_105 = arith.constant 0.000000e+00 : f32
    %260 = vector.broadcast %cst_105 : f32 to vector<4x16xf32>
    %261 = arith.cmpf ogt, %259, %260 : vector<4x16xf32>
    %262 = math.exp %259 : vector<4x16xf32>
    %cst_106 = arith.constant 1.000000e+00 : f32
    %263 = vector.broadcast %cst_106 : f32 to vector<4x16xf32>
    %264 = arith.subf %262, %263 : vector<4x16xf32>
    %265 = arith.select %261, %259, %264 : vector<4x16xi1>, vector<4x16xf32>
    %cst_107 = arith.constant dense<0.000000e+00> : vector<4x16xf32>
    %266 = tpu.matmul %265, %209, %cst_107 {dimension_numbers = #tpu.dot_dimension_numbers<[1], [0], [0], [1], [0, 0, 1, 1], [], []>, precision = #tpu.contract_precision<fp32>} : vector<4x16xf32>, vector<16x16xf32>, vector<4x16xf32> -> vector<4x16xf32>
    %267 = arith.addf %266, %211 : vector<4x16xf32>
    %268 = arith.addf %249, %267 : vector<4x16xf32>
    %c4 = arith.constant 4 : index
    %c0_108 = arith.constant 0 : index
    %c0_109 = arith.constant 0 : index
    %269 = vector.load %arg2[%c4, %c0_108, %c0_109] : memref<8x4x16xf32, #tpu.memory_space<vmem>>, vector<1x4x16xf32>
    %270 = vector.shape_cast %269 : vector<1x4x16xf32> to vector<4x16xf32>
    %271 = vector.shape_cast %268 : vector<4x16xf32> to vector<1x4x16xf32>
    tpu.vector_store %arg2[%c4, %c0_108, %c0_109], %271 {strides = array<i32>} : memref<8x4x16xf32, #tpu.memory_space<vmem>>, vector<1x4x16xf32>,
    %cst_110 = arith.constant 0.0476190448 : f32
    %272 = vector.broadcast %cst_110 : f32 to vector<16x16xf32>
    %273 = arith.mulf %2, %272 : vector<16x16xf32>
    %cst_111 = arith.constant 0.0476190448 : f32
    %274 = vector.broadcast %cst_111 : f32 to vector<4x16xf32>
    %275 = arith.mulf %11, %274 : vector<4x16xf32>
    %cst_112 = arith.constant dense<0.000000e+00> : vector<4x16xf32>
    %276 = tpu.matmul %268, %0, %cst_112 {dimension_numbers = #tpu.dot_dimension_numbers<[1], [0], [0], [1], [0, 0, 1, 1], [], []>, precision = #tpu.contract_precision<fp32>} : vector<4x16xf32>, vector<16x16xf32>, vector<4x16xf32> -> vector<4x16xf32>
    %277 = arith.addf %276, %5 : vector<4x16xf32>
    %cst_113 = arith.constant 0.000000e+00 : f32
    %278 = vector.broadcast %cst_113 : f32 to vector<4x16xf32>
    %279 = arith.cmpf ogt, %277, %278 : vector<4x16xf32>
    %280 = math.exp %277 : vector<4x16xf32>
    %cst_114 = arith.constant 1.000000e+00 : f32
    %281 = vector.broadcast %cst_114 : f32 to vector<4x16xf32>
    %282 = arith.subf %280, %281 : vector<4x16xf32>
    %283 = arith.select %279, %277, %282 : vector<4x16xi1>, vector<4x16xf32>
    %cst_115 = arith.constant dense<0.000000e+00> : vector<4x16xf32>
    %284 = tpu.matmul %283, %1, %cst_115 {dimension_numbers = #tpu.dot_dimension_numbers<[1], [0], [0], [1], [0, 0, 1, 1], [], []>, precision = #tpu.contract_precision<fp32>} : vector<4x16xf32>, vector<16x16xf32>, vector<4x16xf32> -> vector<4x16xf32>
    %285 = arith.addf %284, %8 : vector<4x16xf32>
    %cst_116 = arith.constant 0.000000e+00 : f32
    %286 = vector.broadcast %cst_116 : f32 to vector<4x16xf32>
    %287 = arith.cmpf ogt, %285, %286 : vector<4x16xf32>
    %288 = math.exp %285 : vector<4x16xf32>
    %cst_117 = arith.constant 1.000000e+00 : f32
    %289 = vector.broadcast %cst_117 : f32 to vector<4x16xf32>
    %290 = arith.subf %288, %289 : vector<4x16xf32>
    %291 = arith.select %287, %285, %290 : vector<4x16xi1>, vector<4x16xf32>
    %cst_118 = arith.constant dense<0.000000e+00> : vector<4x16xf32>
    %292 = tpu.matmul %291, %273, %cst_118 {dimension_numbers = #tpu.dot_dimension_numbers<[1], [0], [0], [1], [0, 0, 1, 1], [], []>, precision = #tpu.contract_precision<fp32>} : vector<4x16xf32>, vector<16x16xf32>, vector<4x16xf32> -> vector<4x16xf32>
    %293 = arith.addf %292, %275 : vector<4x16xf32>
    %294 = arith.addf %268, %293 : vector<4x16xf32>
    %cst_119 = arith.constant dense<0.000000e+00> : vector<4x16xf32>
    %295 = tpu.matmul %294, %0, %cst_119 {dimension_numbers = #tpu.dot_dimension_numbers<[1], [0], [0], [1], [0, 0, 1, 1], [], []>, precision = #tpu.contract_precision<fp32>} : vector<4x16xf32>, vector<16x16xf32>, vector<4x16xf32> -> vector<4x16xf32>
    %296 = arith.addf %295, %5 : vector<4x16xf32>
    %cst_120 = arith.constant 0.000000e+00 : f32
    %297 = vector.broadcast %cst_120 : f32 to vector<4x16xf32>
    %298 = arith.cmpf ogt, %296, %297 : vector<4x16xf32>
    %299 = math.exp %296 : vector<4x16xf32>
    %cst_121 = arith.constant 1.000000e+00 : f32
    %300 = vector.broadcast %cst_121 : f32 to vector<4x16xf32>
    %301 = arith.subf %299, %300 : vector<4x16xf32>
    %302 = arith.select %298, %296, %301 : vector<4x16xi1>, vector<4x16xf32>
    %cst_122 = arith.constant dense<0.000000e+00> : vector<4x16xf32>
    %303 = tpu.matmul %302, %1, %cst_122 {dimension_numbers = #tpu.dot_dimension_numbers<[1], [0], [0], [1], [0, 0, 1, 1], [], []>, precision = #tpu.contract_precision<fp32>} : vector<4x16xf32>, vector<16x16xf32>, vector<4x16xf32> -> vector<4x16xf32>
    %304 = arith.addf %303, %8 : vector<4x16xf32>
    %cst_123 = arith.constant 0.000000e+00 : f32
    %305 = vector.broadcast %cst_123 : f32 to vector<4x16xf32>
    %306 = arith.cmpf ogt, %304, %305 : vector<4x16xf32>
    %307 = math.exp %304 : vector<4x16xf32>
    %cst_124 = arith.constant 1.000000e+00 : f32
    %308 = vector.broadcast %cst_124 : f32 to vector<4x16xf32>
    %309 = arith.subf %307, %308 : vector<4x16xf32>
    %310 = arith.select %306, %304, %309 : vector<4x16xi1>, vector<4x16xf32>
    %cst_125 = arith.constant dense<0.000000e+00> : vector<4x16xf32>
    %311 = tpu.matmul %310, %273, %cst_125 {dimension_numbers = #tpu.dot_dimension_numbers<[1], [0], [0], [1], [0, 0, 1, 1], [], []>, precision = #tpu.contract_precision<fp32>} : vector<4x16xf32>, vector<16x16xf32>, vector<4x16xf32> -> vector<4x16xf32>
    %312 = arith.addf %311, %275 : vector<4x16xf32>
    %313 = arith.addf %294, %312 : vector<4x16xf32>
    %cst_126 = arith.constant dense<0.000000e+00> : vector<4x16xf32>
    %314 = tpu.matmul %313, %0, %cst_126 {dimension_numbers = #tpu.dot_dimension_numbers<[1], [0], [0], [1], [0, 0, 1, 1], [], []>, precision = #tpu.contract_precision<fp32>} : vector<4x16xf32>, vector<16x16xf32>, vector<4x16xf32> -> vector<4x16xf32>
    %315 = arith.addf %314, %5 : vector<4x16xf32>
    %cst_127 = arith.constant 0.000000e+00 : f32
    %316 = vector.broadcast %cst_127 : f32 to vector<4x16xf32>
    %317 = arith.cmpf ogt, %315, %316 : vector<4x16xf32>
    %318 = math.exp %315 : vector<4x16xf32>
    %cst_128 = arith.constant 1.000000e+00 : f32
    %319 = vector.broadcast %cst_128 : f32 to vector<4x16xf32>
    %320 = arith.subf %318, %319 : vector<4x16xf32>
    %321 = arith.select %317, %315, %320 : vector<4x16xi1>, vector<4x16xf32>
    %cst_129 = arith.constant dense<0.000000e+00> : vector<4x16xf32>
    %322 = tpu.matmul %321, %1, %cst_129 {dimension_numbers = #tpu.dot_dimension_numbers<[1], [0], [0], [1], [0, 0, 1, 1], [], []>, precision = #tpu.contract_precision<fp32>} : vector<4x16xf32>, vector<16x16xf32>, vector<4x16xf32> -> vector<4x16xf32>
    %323 = arith.addf %322, %8 : vector<4x16xf32>
    %cst_130 = arith.constant 0.000000e+00 : f32
    %324 = vector.broadcast %cst_130 : f32 to vector<4x16xf32>
    %325 = arith.cmpf ogt, %323, %324 : vector<4x16xf32>
    %326 = math.exp %323 : vector<4x16xf32>
    %cst_131 = arith.constant 1.000000e+00 : f32
    %327 = vector.broadcast %cst_131 : f32 to vector<4x16xf32>
    %328 = arith.subf %326, %327 : vector<4x16xf32>
    %329 = arith.select %325, %323, %328 : vector<4x16xi1>, vector<4x16xf32>
    %cst_132 = arith.constant dense<0.000000e+00> : vector<4x16xf32>
    %330 = tpu.matmul %329, %273, %cst_132 {dimension_numbers = #tpu.dot_dimension_numbers<[1], [0], [0], [1], [0, 0, 1, 1], [], []>, precision = #tpu.contract_precision<fp32>} : vector<4x16xf32>, vector<16x16xf32>, vector<4x16xf32> -> vector<4x16xf32>
    %331 = arith.addf %330, %275 : vector<4x16xf32>
    %332 = arith.addf %313, %331 : vector<4x16xf32>
    %c5 = arith.constant 5 : index
    %c0_133 = arith.constant 0 : index
    %c0_134 = arith.constant 0 : index
    %333 = vector.load %arg2[%c5, %c0_133, %c0_134] : memref<8x4x16xf32, #tpu.memory_space<vmem>>, vector<1x4x16xf32>
    %334 = vector.shape_cast %333 : vector<1x4x16xf32> to vector<4x16xf32>
    %335 = vector.shape_cast %332 : vector<4x16xf32> to vector<1x4x16xf32>
    tpu.vector_store %arg2[%c5, %c0_133, %c0_134], %335 {strides = array<i32>} : memref<8x4x16xf32, #tpu.memory_space<vmem>>, vector<1x4x16xf32>,
    %cst_135 = arith.constant 0.0476190634 : f32
    %336 = vector.broadcast %cst_135 : f32 to vector<16x16xf32>
    %337 = arith.mulf %2, %336 : vector<16x16xf32>
    %cst_136 = arith.constant 0.0476190634 : f32
    %338 = vector.broadcast %cst_136 : f32 to vector<4x16xf32>
    %339 = arith.mulf %11, %338 : vector<4x16xf32>
    %cst_137 = arith.constant dense<0.000000e+00> : vector<4x16xf32>
    %340 = tpu.matmul %332, %0, %cst_137 {dimension_numbers = #tpu.dot_dimension_numbers<[1], [0], [0], [1], [0, 0, 1, 1], [], []>, precision = #tpu.contract_precision<fp32>} : vector<4x16xf32>, vector<16x16xf32>, vector<4x16xf32> -> vector<4x16xf32>
    %341 = arith.addf %340, %5 : vector<4x16xf32>
    %cst_138 = arith.constant 0.000000e+00 : f32
    %342 = vector.broadcast %cst_138 : f32 to vector<4x16xf32>
    %343 = arith.cmpf ogt, %341, %342 : vector<4x16xf32>
    %344 = math.exp %341 : vector<4x16xf32>
    %cst_139 = arith.constant 1.000000e+00 : f32
    %345 = vector.broadcast %cst_139 : f32 to vector<4x16xf32>
    %346 = arith.subf %344, %345 : vector<4x16xf32>
    %347 = arith.select %343, %341, %346 : vector<4x16xi1>, vector<4x16xf32>
    %cst_140 = arith.constant dense<0.000000e+00> : vector<4x16xf32>
    %348 = tpu.matmul %347, %1, %cst_140 {dimension_numbers = #tpu.dot_dimension_numbers<[1], [0], [0], [1], [0, 0, 1, 1], [], []>, precision = #tpu.contract_precision<fp32>} : vector<4x16xf32>, vector<16x16xf32>, vector<4x16xf32> -> vector<4x16xf32>
    %349 = arith.addf %348, %8 : vector<4x16xf32>
    %cst_141 = arith.constant 0.000000e+00 : f32
    %350 = vector.broadcast %cst_141 : f32 to vector<4x16xf32>
    %351 = arith.cmpf ogt, %349, %350 : vector<4x16xf32>
    %352 = math.exp %349 : vector<4x16xf32>
    %cst_142 = arith.constant 1.000000e+00 : f32
    %353 = vector.broadcast %cst_142 : f32 to vector<4x16xf32>
    %354 = arith.subf %352, %353 : vector<4x16xf32>
    %355 = arith.select %351, %349, %354 : vector<4x16xi1>, vector<4x16xf32>
    %cst_143 = arith.constant dense<0.000000e+00> : vector<4x16xf32>
    %356 = tpu.matmul %355, %337, %cst_143 {dimension_numbers = #tpu.dot_dimension_numbers<[1], [0], [0], [1], [0, 0, 1, 1], [], []>, precision = #tpu.contract_precision<fp32>} : vector<4x16xf32>, vector<16x16xf32>, vector<4x16xf32> -> vector<4x16xf32>
    %357 = arith.addf %356, %339 : vector<4x16xf32>
    %358 = arith.addf %332, %357 : vector<4x16xf32>
    %cst_144 = arith.constant dense<0.000000e+00> : vector<4x16xf32>
    %359 = tpu.matmul %358, %0, %cst_144 {dimension_numbers = #tpu.dot_dimension_numbers<[1], [0], [0], [1], [0, 0, 1, 1], [], []>, precision = #tpu.contract_precision<fp32>} : vector<4x16xf32>, vector<16x16xf32>, vector<4x16xf32> -> vector<4x16xf32>
    %360 = arith.addf %359, %5 : vector<4x16xf32>
    %cst_145 = arith.constant 0.000000e+00 : f32
    %361 = vector.broadcast %cst_145 : f32 to vector<4x16xf32>
    %362 = arith.cmpf ogt, %360, %361 : vector<4x16xf32>
    %363 = math.exp %360 : vector<4x16xf32>
    %cst_146 = arith.constant 1.000000e+00 : f32
    %364 = vector.broadcast %cst_146 : f32 to vector<4x16xf32>
    %365 = arith.subf %363, %364 : vector<4x16xf32>
    %366 = arith.select %362, %360, %365 : vector<4x16xi1>, vector<4x16xf32>
    %cst_147 = arith.constant dense<0.000000e+00> : vector<4x16xf32>
    %367 = tpu.matmul %366, %1, %cst_147 {dimension_numbers = #tpu.dot_dimension_numbers<[1], [0], [0], [1], [0, 0, 1, 1], [], []>, precision = #tpu.contract_precision<fp32>} : vector<4x16xf32>, vector<16x16xf32>, vector<4x16xf32> -> vector<4x16xf32>
    %368 = arith.addf %367, %8 : vector<4x16xf32>
    %cst_148 = arith.constant 0.000000e+00 : f32
    %369 = vector.broadcast %cst_148 : f32 to vector<4x16xf32>
    %370 = arith.cmpf ogt, %368, %369 : vector<4x16xf32>
    %371 = math.exp %368 : vector<4x16xf32>
    %cst_149 = arith.constant 1.000000e+00 : f32
    %372 = vector.broadcast %cst_149 : f32 to vector<4x16xf32>
    %373 = arith.subf %371, %372 : vector<4x16xf32>
    %374 = arith.select %370, %368, %373 : vector<4x16xi1>, vector<4x16xf32>
    %cst_150 = arith.constant dense<0.000000e+00> : vector<4x16xf32>
    %375 = tpu.matmul %374, %337, %cst_150 {dimension_numbers = #tpu.dot_dimension_numbers<[1], [0], [0], [1], [0, 0, 1, 1], [], []>, precision = #tpu.contract_precision<fp32>} : vector<4x16xf32>, vector<16x16xf32>, vector<4x16xf32> -> vector<4x16xf32>
    %376 = arith.addf %375, %339 : vector<4x16xf32>
    %377 = arith.addf %358, %376 : vector<4x16xf32>
    %cst_151 = arith.constant dense<0.000000e+00> : vector<4x16xf32>
    %378 = tpu.matmul %377, %0, %cst_151 {dimension_numbers = #tpu.dot_dimension_numbers<[1], [0], [0], [1], [0, 0, 1, 1], [], []>, precision = #tpu.contract_precision<fp32>} : vector<4x16xf32>, vector<16x16xf32>, vector<4x16xf32> -> vector<4x16xf32>
    %379 = arith.addf %378, %5 : vector<4x16xf32>
    %cst_152 = arith.constant 0.000000e+00 : f32
    %380 = vector.broadcast %cst_152 : f32 to vector<4x16xf32>
    %381 = arith.cmpf ogt, %379, %380 : vector<4x16xf32>
    %382 = math.exp %379 : vector<4x16xf32>
    %cst_153 = arith.constant 1.000000e+00 : f32
    %383 = vector.broadcast %cst_153 : f32 to vector<4x16xf32>
    %384 = arith.subf %382, %383 : vector<4x16xf32>
    %385 = arith.select %381, %379, %384 : vector<4x16xi1>, vector<4x16xf32>
    %cst_154 = arith.constant dense<0.000000e+00> : vector<4x16xf32>
    %386 = tpu.matmul %385, %1, %cst_154 {dimension_numbers = #tpu.dot_dimension_numbers<[1], [0], [0], [1], [0, 0, 1, 1], [], []>, precision = #tpu.contract_precision<fp32>} : vector<4x16xf32>, vector<16x16xf32>, vector<4x16xf32> -> vector<4x16xf32>
    %387 = arith.addf %386, %8 : vector<4x16xf32>
    %cst_155 = arith.constant 0.000000e+00 : f32
    %388 = vector.broadcast %cst_155 : f32 to vector<4x16xf32>
    %389 = arith.cmpf ogt, %387, %388 : vector<4x16xf32>
    %390 = math.exp %387 : vector<4x16xf32>
    %cst_156 = arith.constant 1.000000e+00 : f32
    %391 = vector.broadcast %cst_156 : f32 to vector<4x16xf32>
    %392 = arith.subf %390, %391 : vector<4x16xf32>
    %393 = arith.select %389, %387, %392 : vector<4x16xi1>, vector<4x16xf32>
    %cst_157 = arith.constant dense<0.000000e+00> : vector<4x16xf32>
    %394 = tpu.matmul %393, %337, %cst_157 {dimension_numbers = #tpu.dot_dimension_numbers<[1], [0], [0], [1], [0, 0, 1, 1], [], []>, precision = #tpu.contract_precision<fp32>} : vector<4x16xf32>, vector<16x16xf32>, vector<4x16xf32> -> vector<4x16xf32>
    %395 = arith.addf %394, %339 : vector<4x16xf32>
    %396 = arith.addf %377, %395 : vector<4x16xf32>
    %c6 = arith.constant 6 : index
    %c0_158 = arith.constant 0 : index
    %c0_159 = arith.constant 0 : index
    %397 = vector.load %arg2[%c6, %c0_158, %c0_159] : memref<8x4x16xf32, #tpu.memory_space<vmem>>, vector<1x4x16xf32>
    %398 = vector.shape_cast %397 : vector<1x4x16xf32> to vector<4x16xf32>
    %399 = vector.shape_cast %396 : vector<4x16xf32> to vector<1x4x16xf32>
    tpu.vector_store %arg2[%c6, %c0_158, %c0_159], %399 {strides = array<i32>} : memref<8x4x16xf32, #tpu.memory_space<vmem>>, vector<1x4x16xf32>,
    %cst_160 = arith.constant 0.0476190262 : f32
    %400 = vector.broadcast %cst_160 : f32 to vector<16x16xf32>
    %401 = arith.mulf %2, %400 : vector<16x16xf32>
    %cst_161 = arith.constant 0.0476190262 : f32
    %402 = vector.broadcast %cst_161 : f32 to vector<4x16xf32>
    %403 = arith.mulf %11, %402 : vector<4x16xf32>
    %cst_162 = arith.constant dense<0.000000e+00> : vector<4x16xf32>
    %404 = tpu.matmul %396, %0, %cst_162 {dimension_numbers = #tpu.dot_dimension_numbers<[1], [0], [0], [1], [0, 0, 1, 1], [], []>, precision = #tpu.contract_precision<fp32>} : vector<4x16xf32>, vector<16x16xf32>, vector<4x16xf32> -> vector<4x16xf32>
    %405 = arith.addf %404, %5 : vector<4x16xf32>
    %cst_163 = arith.constant 0.000000e+00 : f32
    %406 = vector.broadcast %cst_163 : f32 to vector<4x16xf32>
    %407 = arith.cmpf ogt, %405, %406 : vector<4x16xf32>
    %408 = math.exp %405 : vector<4x16xf32>
    %cst_164 = arith.constant 1.000000e+00 : f32
    %409 = vector.broadcast %cst_164 : f32 to vector<4x16xf32>
    %410 = arith.subf %408, %409 : vector<4x16xf32>
    %411 = arith.select %407, %405, %410 : vector<4x16xi1>, vector<4x16xf32>
    %cst_165 = arith.constant dense<0.000000e+00> : vector<4x16xf32>
    %412 = tpu.matmul %411, %1, %cst_165 {dimension_numbers = #tpu.dot_dimension_numbers<[1], [0], [0], [1], [0, 0, 1, 1], [], []>, precision = #tpu.contract_precision<fp32>} : vector<4x16xf32>, vector<16x16xf32>, vector<4x16xf32> -> vector<4x16xf32>
    %413 = arith.addf %412, %8 : vector<4x16xf32>
    %cst_166 = arith.constant 0.000000e+00 : f32
    %414 = vector.broadcast %cst_166 : f32 to vector<4x16xf32>
    %415 = arith.cmpf ogt, %413, %414 : vector<4x16xf32>
    %416 = math.exp %413 : vector<4x16xf32>
    %cst_167 = arith.constant 1.000000e+00 : f32
    %417 = vector.broadcast %cst_167 : f32 to vector<4x16xf32>
    %418 = arith.subf %416, %417 : vector<4x16xf32>
    %419 = arith.select %415, %413, %418 : vector<4x16xi1>, vector<4x16xf32>
    %cst_168 = arith.constant dense<0.000000e+00> : vector<4x16xf32>
    %420 = tpu.matmul %419, %401, %cst_168 {dimension_numbers = #tpu.dot_dimension_numbers<[1], [0], [0], [1], [0, 0, 1, 1], [], []>, precision = #tpu.contract_precision<fp32>} : vector<4x16xf32>, vector<16x16xf32>, vector<4x16xf32> -> vector<4x16xf32>
    %421 = arith.addf %420, %403 : vector<4x16xf32>
    %422 = arith.addf %396, %421 : vector<4x16xf32>
    %cst_169 = arith.constant dense<0.000000e+00> : vector<4x16xf32>
    %423 = tpu.matmul %422, %0, %cst_169 {dimension_numbers = #tpu.dot_dimension_numbers<[1], [0], [0], [1], [0, 0, 1, 1], [], []>, precision = #tpu.contract_precision<fp32>} : vector<4x16xf32>, vector<16x16xf32>, vector<4x16xf32> -> vector<4x16xf32>
    %424 = arith.addf %423, %5 : vector<4x16xf32>
    %cst_170 = arith.constant 0.000000e+00 : f32
    %425 = vector.broadcast %cst_170 : f32 to vector<4x16xf32>
    %426 = arith.cmpf ogt, %424, %425 : vector<4x16xf32>
    %427 = math.exp %424 : vector<4x16xf32>
    %cst_171 = arith.constant 1.000000e+00 : f32
    %428 = vector.broadcast %cst_171 : f32 to vector<4x16xf32>
    %429 = arith.subf %427, %428 : vector<4x16xf32>
    %430 = arith.select %426, %424, %429 : vector<4x16xi1>, vector<4x16xf32>
    %cst_172 = arith.constant dense<0.000000e+00> : vector<4x16xf32>
    %431 = tpu.matmul %430, %1, %cst_172 {dimension_numbers = #tpu.dot_dimension_numbers<[1], [0], [0], [1], [0, 0, 1, 1], [], []>, precision = #tpu.contract_precision<fp32>} : vector<4x16xf32>, vector<16x16xf32>, vector<4x16xf32> -> vector<4x16xf32>
    %432 = arith.addf %431, %8 : vector<4x16xf32>
    %cst_173 = arith.constant 0.000000e+00 : f32
    %433 = vector.broadcast %cst_173 : f32 to vector<4x16xf32>
    %434 = arith.cmpf ogt, %432, %433 : vector<4x16xf32>
    %435 = math.exp %432 : vector<4x16xf32>
    %cst_174 = arith.constant 1.000000e+00 : f32
    %436 = vector.broadcast %cst_174 : f32 to vector<4x16xf32>
    %437 = arith.subf %435, %436 : vector<4x16xf32>
    %438 = arith.select %434, %432, %437 : vector<4x16xi1>, vector<4x16xf32>
    %cst_175 = arith.constant dense<0.000000e+00> : vector<4x16xf32>
    %439 = tpu.matmul %438, %401, %cst_175 {dimension_numbers = #tpu.dot_dimension_numbers<[1], [0], [0], [1], [0, 0, 1, 1], [], []>, precision = #tpu.contract_precision<fp32>} : vector<4x16xf32>, vector<16x16xf32>, vector<4x16xf32> -> vector<4x16xf32>
    %440 = arith.addf %439, %403 : vector<4x16xf32>
    %441 = arith.addf %422, %440 : vector<4x16xf32>
    %cst_176 = arith.constant dense<0.000000e+00> : vector<4x16xf32>
    %442 = tpu.matmul %441, %0, %cst_176 {dimension_numbers = #tpu.dot_dimension_numbers<[1], [0], [0], [1], [0, 0, 1, 1], [], []>, precision = #tpu.contract_precision<fp32>} : vector<4x16xf32>, vector<16x16xf32>, vector<4x16xf32> -> vector<4x16xf32>
    %443 = arith.addf %442, %5 : vector<4x16xf32>
    %cst_177 = arith.constant 0.000000e+00 : f32
    %444 = vector.broadcast %cst_177 : f32 to vector<4x16xf32>
    %445 = arith.cmpf ogt, %443, %444 : vector<4x16xf32>
    %446 = math.exp %443 : vector<4x16xf32>
    %cst_178 = arith.constant 1.000000e+00 : f32
    %447 = vector.broadcast %cst_178 : f32 to vector<4x16xf32>
    %448 = arith.subf %446, %447 : vector<4x16xf32>
    %449 = arith.select %445, %443, %448 : vector<4x16xi1>, vector<4x16xf32>
    %cst_179 = arith.constant dense<0.000000e+00> : vector<4x16xf32>
    %450 = tpu.matmul %449, %1, %cst_179 {dimension_numbers = #tpu.dot_dimension_numbers<[1], [0], [0], [1], [0, 0, 1, 1], [], []>, precision = #tpu.contract_precision<fp32>} : vector<4x16xf32>, vector<16x16xf32>, vector<4x16xf32> -> vector<4x16xf32>
    %451 = arith.addf %450, %8 : vector<4x16xf32>
    %cst_180 = arith.constant 0.000000e+00 : f32
    %452 = vector.broadcast %cst_180 : f32 to vector<4x16xf32>
    %453 = arith.cmpf ogt, %451, %452 : vector<4x16xf32>
    %454 = math.exp %451 : vector<4x16xf32>
    %cst_181 = arith.constant 1.000000e+00 : f32
    %455 = vector.broadcast %cst_181 : f32 to vector<4x16xf32>
    %456 = arith.subf %454, %455 : vector<4x16xf32>
    %457 = arith.select %453, %451, %456 : vector<4x16xi1>, vector<4x16xf32>
    %cst_182 = arith.constant dense<0.000000e+00> : vector<4x16xf32>
    %458 = tpu.matmul %457, %401, %cst_182 {dimension_numbers = #tpu.dot_dimension_numbers<[1], [0], [0], [1], [0, 0, 1, 1], [], []>, precision = #tpu.contract_precision<fp32>} : vector<4x16xf32>, vector<16x16xf32>, vector<4x16xf32> -> vector<4x16xf32>
    %459 = arith.addf %458, %403 : vector<4x16xf32>
    %460 = arith.addf %441, %459 : vector<4x16xf32>
    %c7 = arith.constant 7 : index
    %c0_183 = arith.constant 0 : index
    %c0_184 = arith.constant 0 : index
    %461 = vector.load %arg2[%c7, %c0_183, %c0_184] : memref<8x4x16xf32, #tpu.memory_space<vmem>>, vector<1x4x16xf32>
    %462 = vector.shape_cast %461 : vector<1x4x16xf32> to vector<4x16xf32>
    %463 = vector.shape_cast %460 : vector<4x16xf32> to vector<1x4x16xf32>
    tpu.vector_store %arg2[%c7, %c0_183, %c0_184], %463 {strides = array<i32>} : memref<8x4x16xf32, #tpu.memory_space<vmem>>, vector<1x4x16xf32>,
    return
  }
}

</mosaic_0001>

<bundles_post_ra>
// kernel: tpu_custom_call.1
= control target key start
LH: loop header
LB: loop body
LE: loop exit
PB: predicated region body
PF: predicated region fallthrough
CT: control target
= control target key end

     0   :  { %v33379_v3 = vmov 0.0   ;;  %vm34_vm0 = vcmask 125952   ;;  %vm39_vm1 = vcmask 130048   ;;  %vm33380_vm2 = vmmov 0   ;;  %s36203_s0 = inlined_call_operand.vmem [shape: f32[4,16], index: 0, kind: input, shape index: {}]   ;;  %s36204_s1 = inlined_call_operand.vmem [shape: f32[51,16], index: 1, kind: input, shape index: {}]   ;;  %s36205_s2 = inlined_call_operand.hbm [shape: f32[8,4,16], index: 2, kind: output, shape index: {}]  }
   0x1   :  { %v13_v0 = vld [vmem:[%s36204_s1 + $0x8] sm:$0xff]  ;;  %v12_v1 = vld [vmem:[%s36204_s1] sm:$0xff]  ;;  %30598 = vmatprep.subr.mxu0 %v33379_v3  ;;  %30605 = vmatprep.subr.mxu1 %v33379_v3 }
   0x2   :  { %v33408_v2 = vld [vmem:[%s36203_s0] sm:$0xf]  ;;  %v33411_v4 = vand.u32 4294901760, %v13_v0  ;;  %v33414_v5 = vand.u32 4294901760, %v12_v1  ;;  %30602 = vmatprep.mubr.msk.f32.mxu0 %vm33380_vm2, %v33379_v3  ;;  %30609 = vmatprep.mubr.msk.f32.mxu1 %vm33380_vm2, %v33379_v3 }
   0x3   :  { %35 = vst.msk [vmem:[#allocation2] sm:$0xf] %vm34_vm0, %v33408_v2  ;;  %v41_v6 = vsel %vm39_vm1, %v33408_v2, 0 }
   0x4   :  { %7 = vsyncpa [#allocation3], 0  ;;  %30599 = vmatpush3.msra.mxu0 %v33411_v4  ;;  %v33426_v7 = vsub.f32 %v13_v0, %v33411_v4  ;;  %v110_v8 = vand.u32 4294901760, %v41_v6  ;;  %v33429_v9 = vsub.f32 %v12_v1, %v33414_v5  ;;  %v15_v20 = vld [vmem:[%s36204_s1 + $0x18] sm:$0xff]  ;;  %v14_v22 = vld [vmem:[%s36204_s1 + $0x10] sm:$0xff] }
   0x5   :  { %30600 = vmatprep.subr.mxu0 %v33379_v3  ;;  %v33483_v21 = vand.u32 4294901760, %v15_v20  ;;  %v33491_v24 = vand.u32 4294901760, %v14_v22  ;;  %v33521_v32 = vld [vmem:[%s36204_s1 + $0x30] ss:$0 sm:$0xff]  ;;  %v17_v61 = vld [vmem:[%s36204_s1 + $0x28] sm:$0xff]  ;;  %v16_v63 = vld [vmem:[%s36204_s1 + $0x20] sm:$0xff] }
   0x6   :  { %30601 = vmatpush3.msra.mxu0 %v33414_v5  ;;  %v33434_v10 = vand.u32 4294901760, %v33426_v7  ;;  %v111_v11 = vsub.f32 %v41_v6, %v110_v8  ;;  %v33437_v12 = vand.u32 4294901760, %v33429_v9  ;;  %v37_v62 = vmul.f32 0.04761905, %v17_v61  ;;  %v29421_v61 = vld [vmem:[%s36204_s1 + $0x32] ss:$0 sm:$0xff] }
   0x7   :  { %30612 = vmatprep.subr.mxu0 %v33379_v3  ;;  %v33489_v23 = vsub.f32 %v15_v20, %v33483_v21  ;;  %v33499_v26 = vsub.f32 %v14_v22, %v33491_v24  ;;  %v36_v1 = vmul.f32 0.04761905, %v16_v63  ;;  %v33637_v63 = vmul.f32 0.04761905, %v29421_v61 }
   0x8   :  { %v152_v13 = vsub.f32 %v33426_v7, %v33434_v10  ;;  %v112_v14 = vand.u32 4294901760, %v111_v11  ;;  %v159_v15 = vsub.f32 %v33429_v9, %v33437_v12  ;;  %v33559_v0 = vand.u32 4294901760, %v37_v62 }
   0x9   :  { %v33496_v25 = vand.u32 4294901760, %v33489_v23  ;;  %v33506_v28 = vand.u32 4294901760, %v33499_v26 }
   0xa   :  { %v33444_v16 = vand.u32 4294901760, %v152_v13  ;;  %v113_v17 = vsub.f32 %v111_v11, %v112_v14  ;;  %v33446_v18 = vand.u32 4294901760, %v159_v15  ;;  %v33562_v6 = vsub.f32 %v37_v62, %v33559_v0 }
   0xb   :  { %v619_v27 = vsub.f32 %v33489_v23, %v33496_v25  ;;  %v626_v30 = vsub.f32 %v33499_v26, %v33506_v28 }
   0xc   :  { %30606 = vmatpush3.msra.mxu1 %v33444_v16  ;;  %v114_v19 = vand.u32 4294901760, %v113_v17 }
   0xd   :  { %30607 = vmatprep.subr.mxu1 %v33379_v3  ;;  %v33508_v29 = vand.u32 4294901760, %v619_v27  ;;  %v33513_v31 = vand.u32 4294901760, %v626_v30 }
   0xe   :  { %30603 = vmatmul.mubr.f32.vlgmr.msra.gmra.mxu0 %v114_v19  ;;  %30608 = vmatpush3.msra.mxu1 %v33446_v18 }
   0xf   :  { %30613 = vmatpush3.msra.mxu0 %v33426_v7  ;;  %30610 = vmatmul.mubr.f32.vlgmr.msra.gmra.mxu1 %v110_v8 }
  0x10   :  { %30614 = vmatprep.subr.mxu0 %v33379_v3  ;;  %30619 = vmatprep.subr.mxu1 %v33379_v3 }
  0x11   :  { %30615 = vmatpush3.msra.mxu0 %v33429_v9  ;;  %30616 = vmatprep.mubr.msk.f32.mxu0 %vm33380_vm2, %v33379_v3 }
  0x12   :  { %30620 = vmatpush3.msra.mxu1 %v33411_v4  ;;  %30617 = vmatmul.mubr.f32.vlgmr.msra.gmra.mxu0 %v111_v11  ;;  %v33569_v11 = vand.u32 4294901760, %v33562_v6 }
  0x13   :  { %30621 = vmatprep.subr.mxu1 %v33379_v3  ;;  %30626 = vmatprep.subr.mxu0 %v33379_v3 }
  0x14   :  { %30622 = vmatpush3.msra.mxu1 %v33414_v5  ;;  %30623 = vmatprep.mubr.msk.f32.mxu1 %vm33380_vm2, %v33379_v3 }
  0x15   :  { %30627 = vmatpush3.msra.mxu0 %v33434_v10  ;;  %30624 = vmatmul.mubr.f32.vlgmr.msra.gmra.mxu1 %v112_v14  ;;  %v1086_v14 = vsub.f32 %v33562_v6, %v33569_v11 }
  0x16   :  { %30628 = vmatprep.subr.mxu0 %v33379_v3  ;;  %30633 = vmatprep.subr.mxu1 %v33379_v3 }
  0x17   :  { %30629 = vmatpush3.msra.mxu0 %v33437_v12  ;;  %30630 = vmatprep.mubr.msk.f32.mxu0 %vm33380_vm2, %v33379_v3  ;;  %v33581_v17 = vand.u32 4294901760, %v1086_v14 }
  0x18   :  { %30634 = vmatpush3.msra.mxu1 %v33411_v4  ;;  %30631 = vmatmul.mubr.f32.vlgmr.msra.gmra.mxu0 %v110_v8 }
  0x19   :  { %30635 = vmatprep.subr.mxu1 %v33379_v3  ;;  %30637 = vmatprep.mubr.msk.f32.mxu1 %vm33380_vm2, %v33379_v3 }
  0x1a   :  { %30636 = vmatpush3.msra.mxu1 %v33414_v5  ;;  %30640 = vmatprep.subr.mxu0 %v33379_v3 }
  0x1b   :  { %30638 = vmatmul.mubr.f32.vlgmr.msra.gmra.mxu1 %v110_v8  ;;  %30647 = vmatprep.subr.mxu1 %v33379_v3  ;;  %v33564_v8 = vand.u32 4294901760, %v36_v1 }
  0x1c   :  { %30651 = vmatprep.mubr.msk.f32.mxu1 %vm33380_vm2, %v33379_v3  ;;  %30644 = vmatprep.mubr.msk.f32.mxu0 %vm33380_vm2, %v33379_v3 }
  0x1d   :  { %30641 = vmatpush3.msra.mxu0 %v33483_v21  ;;  %30648 = vmatpush3.msra.mxu1 %v33508_v29  ;;  %v33572_v13 = vsub.f32 %v36_v1, %v33564_v8 }
  0x1e   :  { %30642 = vmatprep.subr.mxu0 %v33379_v3  ;;  %30649 = vmatprep.subr.mxu1 %v33379_v3 }
  0x1f   :  { %30643 = vmatpush3.msra.mxu0 %v33491_v24  ;;  %30650 = vmatpush3.msra.mxu1 %v33513_v31  ;;  %v33579_v15 = vand.u32 4294901760, %v33572_v13 }
  0x20   :  { %30654 = vmatprep.subr.mxu0 %v33379_v3  ;;  %30661 = vmatprep.subr.mxu1 %v33379_v3 }
  0x21   :  { %v1093_v19 = vsub.f32 %v33572_v13, %v33579_v15 }
  0x23   :  { %v33586_v20 = vand.u32 4294901760, %v1093_v19 }
  0xce   :  { %v116_v33 = vpop.f32.mrf.mxu0 }
  0xcf   :  { %v117_v34 = vadd.f32 %v33521_v32, %v116_v33  ;;  %v197_v35 = vpop.f32.mrf.mxu1 }
  0xd0   :  { %v30604_v36 = vpop.f32.mrf.mxu0 }
  0xd1   :  { %v198_v37 = vadd.f32 %v197_v35, %v117_v34  ;;  %v30611_v38 = vpop.f32.mrf.mxu1  ;;  %v33594_v34 = vld [vmem:[%s36204_s1 + $0x31] ss:$0 sm:$0xff] }
  0xd2   :  { %v273_v39 = vpop.f32.mrf.mxu0 }
  0xd3   :  { %v274_v40 = vadd.f32 %v273_v39, %v198_v37 }
  0xd4   :  { %v30618_v41 = vpop.f32.mrf.mxu0 }
  0xd5   :  { %v348_v42 = vpop.f32.mrf.mxu1 }
  0xd6   :  { %v349_v43 = vadd.f32 %v348_v42, %v274_v40 }
  0xd7   :  { %v30625_v44 = vpop.f32.mrf.mxu1 }
  0xd8   :  { %v425_v45 = vpop.f32.mrf.mxu0 }
  0xd9   :  { %v426_v46 = vadd.f32 %v425_v45, %v349_v43 }
  0xda   :  { %v30632_v47 = vpop.f32.mrf.mxu0 }
  0xdb   :  { %v498_v48 = vpop.f32.mrf.mxu1 }
  0xdc   :  { %v499_v49 = vadd.f32 %v498_v48, %v426_v46 }
  0xdd   :  { %v30639_v50 = vpop.f32.mrf.mxu1 }
  0xde   :  { %v503_v51 = vmul.f32 1.442695, %v499_v49  ;;  %vm502_vm3 = vcmp.gt.f32.partialorder %v499_v49, 0.0 }
  0xe0   :  { %33249 = vpow2.f32 %v503_v51 }
  0xed   :  { %v33250_v52 = vpop.eup %33249 }
  0xee   :  { %v29422_v53 = vadd.f32 -1.0, %v33250_v52 }
  0xf0   :  { %v506_v54 = vsel %vm502_vm3, %v499_v49, %v29422_v53 }
  0xf1   :  { %v508_v55 = vsel %vm39_vm1, %v506_v54, 0 }
  0xf2   :  { %v577_v56 = vand.u32 4294901760, %v508_v55 }
  0xf4   :  { %v578_v57 = vsub.f32 %v508_v55, %v577_v56  ;;  %30652 = vmatmul.mubr.f32.vlgmr.msra.gmra.mxu1 %v577_v56 }
  0xf5   :  { %30662 = vmatpush3.msra.mxu1 %v33483_v21  ;;  %30665 = vmatprep.mubr.msk.f32.mxu1 %vm33380_vm2, %v33379_v3 }
  0xf6   :  { %30663 = vmatprep.subr.mxu1 %v33379_v3  ;;  %v579_v58 = vand.u32 4294901760, %v578_v57 }
  0xf7   :  { %30664 = vmatpush3.msra.mxu1 %v33491_v24 }
  0xf8   :  { %30666 = vmatmul.mubr.f32.vlgmr.msra.gmra.mxu1 %v579_v58  ;;  %30675 = vmatprep.subr.mxu1 %v33379_v3  ;;  %v580_v59 = vsub.f32 %v578_v57, %v579_v58 }
  0xf9   :  { %30676 = vmatpush3.msra.mxu1 %v33483_v21  ;;  %30679 = vmatprep.mubr.msk.f32.mxu1 %vm33380_vm2, %v33379_v3 }
  0xfa   :  { %30677 = vmatprep.subr.mxu1 %v33379_v3  ;;  %v581_v60 = vand.u32 4294901760, %v580_v59 }
  0xfb   :  { %30678 = vmatpush3.msra.mxu1 %v33491_v24 }
  0xfc   :  { %30645 = vmatmul.mubr.f32.vlgmr.msra.gmra.mxu0 %v581_v60  ;;  %30680 = vmatmul.mubr.f32.vlgmr.msra.gmra.mxu1 %v577_v56 }
  0xfd   :  { %30655 = vmatpush3.msra.mxu0 %v33489_v23  ;;  %30658 = vmatprep.mubr.msk.f32.mxu0 %vm33380_vm2, %v33379_v3 }
  0xfe   :  { %30656 = vmatprep.subr.mxu0 %v33379_v3  ;;  %30689 = vmatprep.subr.mxu1 %v33379_v3 }
  0xff   :  { %30657 = vmatpush3.msra.mxu0 %v33499_v26  ;;  %30693 = vmatprep.mubr.msk.f32.mxu1 %vm33380_vm2, %v33379_v3 }
 0x100   :  { %30659 = vmatmul.mubr.f32.vlgmr.msra.gmra.mxu0 %v578_v57  ;;  %30668 = vmatprep.subr.mxu0 %v33379_v3 }
 0x101   :  { %30669 = vmatpush3.msra.mxu0 %v33496_v25  ;;  %30672 = vmatprep.mubr.msk.f32.mxu0 %vm33380_vm2, %v33379_v3 }
 0x102   :  { %30670 = vmatprep.subr.mxu0 %v33379_v3  ;;  %30690 = vmatpush3.msra.mxu1 %v33581_v17 }
 0x103   :  { %30671 = vmatpush3.msra.mxu0 %v33506_v28  ;;  %30691 = vmatprep.subr.mxu1 %v33379_v3 }
 0x104   :  { %30673 = vmatmul.mubr.f32.vlgmr.msra.gmra.mxu0 %v577_v56  ;;  %30682 = vmatprep.subr.mxu0 %v33379_v3 }
 0x105   :  { %30686 = vmatprep.mubr.msk.f32.mxu0 %vm33380_vm2, %v33379_v3  ;;  %30683 = vmatpush3.msra.mxu0 %v33559_v0 }
 0x106   :  { %30684 = vmatprep.subr.mxu0 %v33379_v3  ;;  %30692 = vmatpush3.msra.mxu1 %v33586_v20 }
 0x107   :  { %30685 = vmatpush3.msra.mxu0 %v33564_v8  ;;  %30703 = vmatprep.subr.mxu1 %v33379_v3 }
 0x108   :  { %30696 = vmatprep.subr.mxu0 %v33379_v3 }
 0x1b4   :  { %v664_v22 = vpop.f32.mrf.mxu1 }
 0x1b6   :  { %v30653_v27 = vpop.f32.mrf.mxu1 }
 0x1b8   :  { %v815_v30 = vpop.f32.mrf.mxu1 }
 0x1ba   :  { %v30667_v33 = vpop.f32.mrf.mxu1 }
 0x1bc   :  { %v583_v35 = vpop.f32.mrf.mxu0  ;;  %v965_v36 = vpop.f32.mrf.mxu1 }
 0x1bd   :  { %v584_v37 = vadd.f32 %v33594_v34, %v583_v35 }
 0x1be   :  { %v30646_v38 = vpop.f32.mrf.mxu0  ;;  %v30681_v39 = vpop.f32.mrf.mxu1 }
 0x1bf   :  { %v665_v40 = vadd.f32 %v664_v22, %v584_v37 }
 0x1c0   :  { %v740_v41 = vpop.f32.mrf.mxu0 }
 0x1c1   :  { %v741_v42 = vadd.f32 %v740_v41, %v665_v40 }
 0x1c2   :  { %v30660_v43 = vpop.f32.mrf.mxu0 }
 0x1c3   :  { %v816_v44 = vadd.f32 %v815_v30, %v741_v42 }
 0x1c4   :  { %v892_v45 = vpop.f32.mrf.mxu0 }
 0x1c5   :  { %v893_v46 = vadd.f32 %v892_v45, %v816_v44 }
 0x1c6   :  { %v30674_v47 = vpop.f32.mrf.mxu0 }
 0x1c7   :  { %v966_v48 = vadd.f32 %v965_v36, %v893_v46 }
 0x1c9   :  { %v970_v49 = vmul.f32 1.442695, %v966_v48  ;;  %vm969_vm4 = vcmp.gt.f32.partialorder %v966_v48, 0.0 }
 0x1cb   :  { %33251 = vpow2.f32 %v970_v49 }
 0x1d8   :  { %v33252_v50 = vpop.eup %33251 }
 0x1d9   :  { %v29423_v51 = vadd.f32 -1.0, %v33252_v50 }
 0x1db   :  { %v973_v52 = vsel %vm969_vm4, %v966_v48, %v29423_v51 }
 0x1dc   :  { %v975_v53 = vsel %vm39_vm1, %v973_v52, 0 }
 0x1dd   :  { %v1044_v54 = vand.u32 4294901760, %v975_v53 }
 0x1df   :  { %30694 = vmatmul.mubr.f32.vlgmr.msra.gmra.mxu1 %v1044_v54  ;;  %v1045_v55 = vsub.f32 %v975_v53, %v1044_v54 }
 0x1e0   :  { %30704 = vmatpush3.msra.mxu1 %v33559_v0  ;;  %30707 = vmatprep.mubr.msk.f32.mxu1 %vm33380_vm2, %v33379_v3 }
 0x1e1   :  { %30705 = vmatprep.subr.mxu1 %v33379_v3  ;;  %v1046_v56 = vand.u32 4294901760, %v1045_v55 }
 0x1e2   :  { %30706 = vmatpush3.msra.mxu1 %v33564_v8 }
 0x1e3   :  { %30708 = vmatmul.mubr.f32.vlgmr.msra.gmra.mxu1 %v1046_v56  ;;  %30717 = vmatprep.subr.mxu1 %v33379_v3  ;;  %v1047_v57 = vsub.f32 %v1045_v55, %v1046_v56 }
 0x1e4   :  { %30718 = vmatpush3.msra.mxu1 %v33559_v0  ;;  %30721 = vmatprep.mubr.msk.f32.mxu1 %vm33380_vm2, %v33379_v3 }
 0x1e5   :  { %30719 = vmatprep.subr.mxu1 %v33379_v3  ;;  %v1048_v58 = vand.u32 4294901760, %v1047_v57 }
 0x1e6   :  { %30720 = vmatpush3.msra.mxu1 %v33564_v8 }
 0x1e7   :  { %30687 = vmatmul.mubr.f32.vlgmr.msra.gmra.mxu0 %v1048_v58  ;;  %30722 = vmatmul.mubr.f32.vlgmr.msra.gmra.mxu1 %v1044_v54 }
 0x1e8   :  { %30697 = vmatpush3.msra.mxu0 %v33562_v6  ;;  %30700 = vmatprep.mubr.msk.f32.mxu0 %vm33380_vm2, %v33379_v3 }
 0x1e9   :  { %30698 = vmatprep.subr.mxu0 %v33379_v3  ;;  %30731 = vmatprep.subr.mxu1 %v33379_v3 }
 0x1ea   :  { %30699 = vmatpush3.msra.mxu0 %v33572_v13  ;;  %30732 = vmatpush3.msra.mxu1 %v33444_v16 }
 0x1eb   :  { %30701 = vmatmul.mubr.f32.vlgmr.msra.gmra.mxu0 %v1045_v55  ;;  %30710 = vmatprep.subr.mxu0 %v33379_v3 }
 0x1ec   :  { %30711 = vmatpush3.msra.mxu0 %v33569_v11  ;;  %30714 = vmatprep.mubr.msk.f32.mxu0 %vm33380_vm2, %v33379_v3 }
 0x1ed   :  { %30712 = vmatprep.subr.mxu0 %v33379_v3  ;;  %30733 = vmatprep.subr.mxu1 %v33379_v3 }
 0x1ee   :  { %30713 = vmatpush3.msra.mxu0 %v33579_v15  ;;  %30734 = vmatpush3.msra.mxu1 %v33446_v18 }
 0x1ef   :  { %30715 = vmatmul.mubr.f32.vlgmr.msra.gmra.mxu0 %v1044_v54  ;;  %30735 = vmatprep.mubr.msk.f32.mxu1 %vm33380_vm2, %v33379_v3 }
 0x1f0   :  { %30745 = vmatprep.subr.mxu1 %v33379_v3  ;;  %30724 = vmatprep.subr.mxu0 %v33379_v3 }
 0x1f1   :  { %30725 = vmatpush3.msra.mxu0 %v33411_v4  ;;  %30728 = vmatprep.mubr.msk.f32.mxu0 %vm33380_vm2, %v33379_v3 }
 0x1f2   :  { %30726 = vmatprep.subr.mxu0 %v33379_v3 }
 0x1f3   :  { %30727 = vmatpush3.msra.mxu0 %v33414_v5 }
 0x1f4   :  { %30738 = vmatprep.subr.mxu0 %v33379_v3 }
 0x29f   :  { %v1131_v59 = vpop.f32.mrf.mxu1 }
 0x2a1   :  { %v30695_v60 = vpop.f32.mrf.mxu1 }
 0x2a3   :  { %v1282_v62 = vpop.f32.mrf.mxu1 }
 0x2a5   :  { %v30709_v1 = vpop.f32.mrf.mxu1 }
 0x2a7   :  { %v1050_v14 = vpop.f32.mrf.mxu0  ;;  %v1432_v19 = vpop.f32.mrf.mxu1 }
 0x2a8   :  { %v1051_v22 = vadd.f32 %v1050_v14, %v33637_v63 }
 0x2a9   :  { %v30688_v27 = vpop.f32.mrf.mxu0  ;;  %v30723_v30 = vpop.f32.mrf.mxu1 }
 0x2aa   :  { %v1132_v33 = vadd.f32 %v1131_v59, %v1051_v22 }
 0x2ab   :  { %v1207_v35 = vpop.f32.mrf.mxu0 }
 0x2ac   :  { %v1208_v36 = vadd.f32 %v1207_v35, %v1132_v33 }
 0x2ad   :  { %v30702_v37 = vpop.f32.mrf.mxu0 }
 0x2ae   :  { %v1283_v38 = vadd.f32 %v1282_v62, %v1208_v36 }
 0x2af   :  { %v1359_v39 = vpop.f32.mrf.mxu0 }
 0x2b0   :  { %v1360_v40 = vadd.f32 %v1359_v39, %v1283_v38 }
 0x2b1   :  { %v30716_v41 = vpop.f32.mrf.mxu0 }
 0x2b2   :  { %v1433_v42 = vadd.f32 %v1432_v19, %v1360_v40 }
 0x2b4   :  { %v33641_v43 = vadd.f32 %v1433_v42, %v33408_v2 }
 0x2b6   :  { %v1438_v44 = vsel %vm39_vm1, %v33641_v43, 0 }
 0x2b7   :  { %v1507_v45 = vand.u32 4294901760, %v1438_v44 }
 0x2b9   :  { %v1508_v46 = vsub.f32 %v1438_v44, %v1507_v45  ;;  %30736 = vmatmul.mubr.f32.vlgmr.msra.gmra.mxu1 %v1507_v45 }
 0x2ba   :  { %30746 = vmatpush3.msra.mxu1 %v33411_v4  ;;  %30749 = vmatprep.mubr.msk.f32.mxu1 %vm33380_vm2, %v33379_v3 }
 0x2bb   :  { %30747 = vmatprep.subr.mxu1 %v33379_v3  ;;  %v1509_v47 = vand.u32 4294901760, %v1508_v46 }
 0x2bc   :  { %30748 = vmatpush3.msra.mxu1 %v33414_v5 }
 0x2bd   :  { %30750 = vmatmul.mubr.f32.vlgmr.msra.gmra.mxu1 %v1509_v47  ;;  %30759 = vmatprep.subr.mxu1 %v33379_v3  ;;  %v1510_v2 = vsub.f32 %v1508_v46, %v1509_v47 }
 0x2be   :  { %30760 = vmatpush3.msra.mxu1 %v33411_v4  ;;  %30763 = vmatprep.mubr.msk.f32.mxu1 %vm33380_vm2, %v33379_v3 }
 0x2bf   :  { %30761 = vmatprep.subr.mxu1 %v33379_v3  ;;  %v1511_v48 = vand.u32 4294901760, %v1510_v2 }
 0x2c0   :  { %30762 = vmatpush3.msra.mxu1 %v33414_v5 }
 0x2c1   :  { %30729 = vmatmul.mubr.f32.vlgmr.msra.gmra.mxu0 %v1511_v48  ;;  %30764 = vmatmul.mubr.f32.vlgmr.msra.gmra.mxu1 %v1507_v45 }
 0x2c2   :  { %30739 = vmatpush3.msra.mxu0 %v33426_v7  ;;  %30742 = vmatprep.mubr.msk.f32.mxu0 %vm33380_vm2, %v33379_v3 }
 0x2c3   :  { %30740 = vmatprep.subr.mxu0 %v33379_v3  ;;  %30773 = vmatprep.subr.mxu1 %v33379_v3 }
 0x2c4   :  { %30741 = vmatpush3.msra.mxu0 %v33429_v9  ;;  %30774 = vmatpush3.msra.mxu1 %v33508_v29 }
 0x2c5   :  { %30743 = vmatmul.mubr.f32.vlgmr.msra.gmra.mxu0 %v1508_v46  ;;  %30752 = vmatprep.subr.mxu0 %v33379_v3 }
 0x2c6   :  { %30753 = vmatpush3.msra.mxu0 %v33434_v10  ;;  %30756 = vmatprep.mubr.msk.f32.mxu0 %vm33380_vm2, %v33379_v3 }
 0x2c7   :  { %30754 = vmatprep.subr.mxu0 %v33379_v3  ;;  %30775 = vmatprep.subr.mxu1 %v33379_v3 }
 0x2c8   :  { %30755 = vmatpush3.msra.mxu0 %v33437_v12  ;;  %30776 = vmatpush3.msra.mxu1 %v33513_v31 }
 0x2c9   :  { %30757 = vmatmul.mubr.f32.vlgmr.msra.gmra.mxu0 %v1507_v45  ;;  %30777 = vmatprep.mubr.msk.f32.mxu1 %vm33380_vm2, %v33379_v3 }
 0x2ca   :  { %30787 = vmatprep.subr.mxu1 %v33379_v3  ;;  %30766 = vmatprep.subr.mxu0 %v33379_v3 }
 0x2cb   :  { %30767 = vmatpush3.msra.mxu0 %v33483_v21  ;;  %30770 = vmatprep.mubr.msk.f32.mxu0 %vm33380_vm2, %v33379_v3 }
 0x2cc   :  { %30768 = vmatprep.subr.mxu0 %v33379_v3 }
 0x2cd   :  { %30769 = vmatpush3.msra.mxu0 %v33491_v24 }
 0x2ce   :  { %30780 = vmatprep.subr.mxu0 %v33379_v3 }
 0x379   :  { %v1594_v49 = vpop.f32.mrf.mxu1 }
 0x37b   :  { %v30737_v50 = vpop.f32.mrf.mxu1 }
 0x37d   :  { %v1745_v51 = vpop.f32.mrf.mxu1 }
 0x37f   :  { %v30751_v52 = vpop.f32.mrf.mxu1 }
 0x381   :  { %v1513_v53 = vpop.f32.mrf.mxu0  ;;  %v1895_v54 = vpop.f32.mrf.mxu1 }
 0x382   :  { %v1514_v55 = vadd.f32 %v33521_v32, %v1513_v53 }
 0x383   :  { %v30730_v56 = vpop.f32.mrf.mxu0  ;;  %v30765_v57 = vpop.f32.mrf.mxu1 }
 0x384   :  { %v1595_v58 = vadd.f32 %v1594_v49, %v1514_v55 }
 0x385   :  { %v1670_v59 = vpop.f32.mrf.mxu0 }
 0x386   :  { %v1671_v60 = vadd.f32 %v1670_v59, %v1595_v58 }
 0x387   :  { %v30744_v61 = vpop.f32.mrf.mxu0 }
 0x388   :  { %v1746_v62 = vadd.f32 %v1745_v51, %v1671_v60 }
 0x389   :  { %v1822_v1 = vpop.f32.mrf.mxu0 }
 0x38a   :  { %v1823_v14 = vadd.f32 %v1822_v1, %v1746_v62 }
 0x38b   :  { %v30758_v19 = vpop.f32.mrf.mxu0 }
 0x38c   :  { %v1896_v22 = vadd.f32 %v1895_v54, %v1823_v14 }
 0x38e   :  { %v1900_v27 = vmul.f32 1.442695, %v1896_v22  ;;  %vm1899_vm5 = vcmp.gt.f32.partialorder %v1896_v22, 0.0 }
 0x390   :  { %33253 = vpow2.f32 %v1900_v27 }
 0x39d   :  { %v33254_v30 = vpop.eup %33253 }
 0x39e   :  { %v29424_v33 = vadd.f32 -1.0, %v33254_v30 }
 0x3a0   :  { %v1903_v35 = vsel %vm1899_vm5, %v1896_v22, %v29424_v33 }
 0x3a1   :  { %v1905_v36 = vsel %vm39_vm1, %v1903_v35, 0 }
 0x3a2   :  { %v1974_v37 = vand.u32 4294901760, %v1905_v36 }
 0x3a4   :  { %30778 = vmatmul.mubr.f32.vlgmr.msra.gmra.mxu1 %v1974_v37  ;;  %v1975_v38 = vsub.f32 %v1905_v36, %v1974_v37 }
 0x3a5   :  { %30788 = vmatpush3.msra.mxu1 %v33483_v21  ;;  %30791 = vmatprep.mubr.msk.f32.mxu1 %vm33380_vm2, %v33379_v3 }
 0x3a6   :  { %30789 = vmatprep.subr.mxu1 %v33379_v3  ;;  %v1976_v39 = vand.u32 4294901760, %v1975_v38 }
 0x3a7   :  { %30790 = vmatpush3.msra.mxu1 %v33491_v24 }
 0x3a8   :  { %30792 = vmatmul.mubr.f32.vlgmr.msra.gmra.mxu1 %v1976_v39  ;;  %30801 = vmatprep.subr.mxu1 %v33379_v3  ;;  %v1977_v40 = vsub.f32 %v1975_v38, %v1976_v39 }
 0x3a9   :  { %30802 = vmatpush3.msra.mxu1 %v33483_v21  ;;  %30805 = vmatprep.mubr.msk.f32.mxu1 %vm33380_vm2, %v33379_v3 }
 0x3aa   :  { %30803 = vmatprep.subr.mxu1 %v33379_v3  ;;  %v1978_v41 = vand.u32 4294901760, %v1977_v40 }
 0x3ab   :  { %30804 = vmatpush3.msra.mxu1 %v33491_v24 }
 0x3ac   :  { %30771 = vmatmul.mubr.f32.vlgmr.msra.gmra.mxu0 %v1978_v41  ;;  %30806 = vmatmul.mubr.f32.vlgmr.msra.gmra.mxu1 %v1974_v37 }
 0x3ad   :  { %30781 = vmatpush3.msra.mxu0 %v33489_v23  ;;  %30784 = vmatprep.mubr.msk.f32.mxu0 %vm33380_vm2, %v33379_v3 }
 0x3ae   :  { %30782 = vmatprep.subr.mxu0 %v33379_v3  ;;  %30815 = vmatprep.subr.mxu1 %v33379_v3 }
 0x3af   :  { %30783 = vmatpush3.msra.mxu0 %v33499_v26  ;;  %30816 = vmatpush3.msra.mxu1 %v33581_v17 }
 0x3b0   :  { %30785 = vmatmul.mubr.f32.vlgmr.msra.gmra.mxu0 %v1975_v38  ;;  %30794 = vmatprep.subr.mxu0 %v33379_v3 }
 0x3b1   :  { %30795 = vmatpush3.msra.mxu0 %v33496_v25  ;;  %30798 = vmatprep.mubr.msk.f32.mxu0 %vm33380_vm2, %v33379_v3 }
 0x3b2   :  { %30796 = vmatprep.subr.mxu0 %v33379_v3  ;;  %30817 = vmatprep.subr.mxu1 %v33379_v3 }
 0x3b3   :  { %30797 = vmatpush3.msra.mxu0 %v33506_v28  ;;  %30818 = vmatpush3.msra.mxu1 %v33586_v20 }
 0x3b4   :  { %30799 = vmatmul.mubr.f32.vlgmr.msra.gmra.mxu0 %v1974_v37  ;;  %30819 = vmatprep.mubr.msk.f32.mxu1 %vm33380_vm2, %v33379_v3 }
 0x3b5   :  { %30829 = vmatprep.subr.mxu1 %v33379_v3  ;;  %30808 = vmatprep.subr.mxu0 %v33379_v3 }
 0x3b6   :  { %30809 = vmatpush3.msra.mxu0 %v33559_v0  ;;  %30812 = vmatprep.mubr.msk.f32.mxu0 %vm33380_vm2, %v33379_v3 }
 0x3b7   :  { %30810 = vmatprep.subr.mxu0 %v33379_v3 }
 0x3b8   :  { %30811 = vmatpush3.msra.mxu0 %v33564_v8 }
 0x3b9   :  { %30822 = vmatprep.subr.mxu0 %v33379_v3 }
 0x464   :  { %v2061_v42 = vpop.f32.mrf.mxu1 }
 0x466   :  { %v30779_v44 = vpop.f32.mrf.mxu1 }
 0x468   :  { %v2212_v45 = vpop.f32.mrf.mxu1 }
 0x46a   :  { %v30793_v46 = vpop.f32.mrf.mxu1 }
 0x46c   :  { %v1980_v47 = vpop.f32.mrf.mxu0  ;;  %v2362_v2 = vpop.f32.mrf.mxu1 }
 0x46d   :  { %v1981_v48 = vadd.f32 %v33594_v34, %v1980_v47 }
 0x46e   :  { %v30772_v49 = vpop.f32.mrf.mxu0  ;;  %v30807_v50 = vpop.f32.mrf.mxu1 }
 0x46f   :  { %v2062_v51 = vadd.f32 %v2061_v42, %v1981_v48 }
 0x470   :  { %v2137_v52 = vpop.f32.mrf.mxu0 }
 0x471   :  { %v2138_v53 = vadd.f32 %v2137_v52, %v2062_v51 }
 0x472   :  { %v30786_v54 = vpop.f32.mrf.mxu0 }
 0x473   :  { %v2213_v55 = vadd.f32 %v2212_v45, %v2138_v53 }
 0x474   :  { %v2289_v56 = vpop.f32.mrf.mxu0 }
 0x475   :  { %v2290_v57 = vadd.f32 %v2289_v56, %v2213_v55 }
 0x476   :  { %v30800_v58 = vpop.f32.mrf.mxu0 }
 0x477   :  { %v2363_v59 = vadd.f32 %v2362_v2, %v2290_v57 }
 0x479   :  { %v2367_v60 = vmul.f32 1.442695, %v2363_v59  ;;  %vm2366_vm6 = vcmp.gt.f32.partialorder %v2363_v59, 0.0 }
 0x47b   :  { %33255 = vpow2.f32 %v2367_v60 }
 0x488   :  { %v33256_v61 = vpop.eup %33255 }
 0x489   :  { %v29425_v62 = vadd.f32 -1.0, %v33256_v61 }
 0x48b   :  { %v2370_v1 = vsel %vm2366_vm6, %v2363_v59, %v29425_v62 }
 0x48c   :  { %v2372_v14 = vsel %vm39_vm1, %v2370_v1, 0 }
 0x48d   :  { %v2441_v19 = vand.u32 4294901760, %v2372_v14 }
 0x48f   :  { %30820 = vmatmul.mubr.f32.vlgmr.msra.gmra.mxu1 %v2441_v19  ;;  %v2442_v22 = vsub.f32 %v2372_v14, %v2441_v19 }
 0x490   :  { %30830 = vmatpush3.msra.mxu1 %v33559_v0  ;;  %30833 = vmatprep.mubr.msk.f32.mxu1 %vm33380_vm2, %v33379_v3 }
 0x491   :  { %30831 = vmatprep.subr.mxu1 %v33379_v3  ;;  %v2443_v27 = vand.u32 4294901760, %v2442_v22 }
 0x492   :  { %30832 = vmatpush3.msra.mxu1 %v33564_v8 }
 0x493   :  { %30834 = vmatmul.mubr.f32.vlgmr.msra.gmra.mxu1 %v2443_v27  ;;  %30843 = vmatprep.subr.mxu1 %v33379_v3  ;;  %v2444_v30 = vsub.f32 %v2442_v22, %v2443_v27 }
 0x494   :  { %30844 = vmatpush3.msra.mxu1 %v33559_v0  ;;  %30847 = vmatprep.mubr.msk.f32.mxu1 %vm33380_vm2, %v33379_v3 }
 0x495   :  { %30845 = vmatprep.subr.mxu1 %v33379_v3  ;;  %v2445_v33 = vand.u32 4294901760, %v2444_v30 }
 0x496   :  { %30846 = vmatpush3.msra.mxu1 %v33564_v8 }
 0x497   :  { %30813 = vmatmul.mubr.f32.vlgmr.msra.gmra.mxu0 %v2445_v33  ;;  %30848 = vmatmul.mubr.f32.vlgmr.msra.gmra.mxu1 %v2441_v19 }
 0x498   :  { %30823 = vmatpush3.msra.mxu0 %v33562_v6  ;;  %30826 = vmatprep.mubr.msk.f32.mxu0 %vm33380_vm2, %v33379_v3 }
 0x499   :  { %30824 = vmatprep.subr.mxu0 %v33379_v3  ;;  %30857 = vmatprep.subr.mxu1 %v33379_v3 }
 0x49a   :  { %30825 = vmatpush3.msra.mxu0 %v33572_v13  ;;  %30858 = vmatpush3.msra.mxu1 %v33444_v16 }
 0x49b   :  { %30827 = vmatmul.mubr.f32.vlgmr.msra.gmra.mxu0 %v2442_v22  ;;  %30836 = vmatprep.subr.mxu0 %v33379_v3 }
 0x49c   :  { %30837 = vmatpush3.msra.mxu0 %v33569_v11  ;;  %30840 = vmatprep.mubr.msk.f32.mxu0 %vm33380_vm2, %v33379_v3 }
 0x49d   :  { %30838 = vmatprep.subr.mxu0 %v33379_v3  ;;  %30859 = vmatprep.subr.mxu1 %v33379_v3 }
 0x49e   :  { %30839 = vmatpush3.msra.mxu0 %v33579_v15  ;;  %30860 = vmatpush3.msra.mxu1 %v33446_v18 }
 0x49f   :  { %30841 = vmatmul.mubr.f32.vlgmr.msra.gmra.mxu0 %v2441_v19  ;;  %30861 = vmatprep.mubr.msk.f32.mxu1 %vm33380_vm2, %v33379_v3 }
 0x4a0   :  { %30871 = vmatprep.subr.mxu1 %v33379_v3  ;;  %30850 = vmatprep.subr.mxu0 %v33379_v3 }
 0x4a1   :  { %30851 = vmatpush3.msra.mxu0 %v33411_v4  ;;  %30854 = vmatprep.mubr.msk.f32.mxu0 %vm33380_vm2, %v33379_v3 }
 0x4a2   :  { %30852 = vmatprep.subr.mxu0 %v33379_v3 }
 0x4a3   :  { %30853 = vmatpush3.msra.mxu0 %v33414_v5 }
 0x4a4   :  { %30864 = vmatprep.subr.mxu0 %v33379_v3 }
 0x54f   :  { %v2528_v35 = vpop.f32.mrf.mxu1 }
 0x551   :  { %v30821_v36 = vpop.f32.mrf.mxu1 }
 0x553   :  { %v2679_v37 = vpop.f32.mrf.mxu1 }
 0x555   :  { %v30835_v38 = vpop.f32.mrf.mxu1 }
 0x557   :  { %v2447_v39 = vpop.f32.mrf.mxu0  ;;  %v2829_v40 = vpop.f32.mrf.mxu1 }
 0x558   :  { %v2448_v41 = vadd.f32 %v2447_v39, %v33637_v63 }
 0x559   :  { %v30814_v42 = vpop.f32.mrf.mxu0  ;;  %v30849_v44 = vpop.f32.mrf.mxu1 }
 0x55a   :  { %v2529_v45 = vadd.f32 %v2528_v35, %v2448_v41 }
 0x55b   :  { %v2604_v46 = vpop.f32.mrf.mxu0 }
 0x55c   :  { %v2605_v47 = vadd.f32 %v2604_v46, %v2529_v45 }
 0x55d   :  { %v30828_v2 = vpop.f32.mrf.mxu0 }
 0x55e   :  { %v2680_v48 = vadd.f32 %v2679_v37, %v2605_v47 }
 0x55f   :  { %v2756_v49 = vpop.f32.mrf.mxu0 }
 0x560   :  { %v2757_v50 = vadd.f32 %v2756_v49, %v2680_v48 }
 0x561   :  { %v30842_v51 = vpop.f32.mrf.mxu0 }
 0x562   :  { %v2830_v52 = vadd.f32 %v2829_v40, %v2757_v50 }
 0x564   :  { %v33759_v53 = vadd.f32 %v2830_v52, %v33641_v43 }
 0x566   :  { %v2835_v54 = vsel %vm39_vm1, %v33759_v53, 0 }
 0x567   :  { %v2904_v55 = vand.u32 4294901760, %v2835_v54 }
 0x569   :  { %v2905_v56 = vsub.f32 %v2835_v54, %v2904_v55  ;;  %30862 = vmatmul.mubr.f32.vlgmr.msra.gmra.mxu1 %v2904_v55 }
 0x56a   :  { %30872 = vmatpush3.msra.mxu1 %v33411_v4  ;;  %30875 = vmatprep.mubr.msk.f32.mxu1 %vm33380_vm2, %v33379_v3 }
 0x56b   :  { %30873 = vmatprep.subr.mxu1 %v33379_v3  ;;  %v2906_v57 = vand.u32 4294901760, %v2905_v56 }
 0x56c   :  { %30874 = vmatpush3.msra.mxu1 %v33414_v5 }
 0x56d   :  { %30876 = vmatmul.mubr.f32.vlgmr.msra.gmra.mxu1 %v2906_v57  ;;  %30885 = vmatprep.subr.mxu1 %v33379_v3  ;;  %v2907_v43 = vsub.f32 %v2905_v56, %v2906_v57 }
 0x56e   :  { %30886 = vmatpush3.msra.mxu1 %v33411_v4  ;;  %30889 = vmatprep.mubr.msk.f32.mxu1 %vm33380_vm2, %v33379_v3 }
 0x56f   :  { %30887 = vmatprep.subr.mxu1 %v33379_v3  ;;  %v2908_v58 = vand.u32 4294901760, %v2907_v43 }
 0x570   :  { %30888 = vmatpush3.msra.mxu1 %v33414_v5 }
 0x571   :  { %30855 = vmatmul.mubr.f32.vlgmr.msra.gmra.mxu0 %v2908_v58  ;;  %30890 = vmatmul.mubr.f32.vlgmr.msra.gmra.mxu1 %v2904_v55 }
 0x572   :  { %30865 = vmatpush3.msra.mxu0 %v33426_v7  ;;  %30868 = vmatprep.mubr.msk.f32.mxu0 %vm33380_vm2, %v33379_v3 }
 0x573   :  { %30866 = vmatprep.subr.mxu0 %v33379_v3  ;;  %30899 = vmatprep.subr.mxu1 %v33379_v3 }
 0x574   :  { %30867 = vmatpush3.msra.mxu0 %v33429_v9  ;;  %30900 = vmatpush3.msra.mxu1 %v33508_v29 }
 0x575   :  { %30869 = vmatmul.mubr.f32.vlgmr.msra.gmra.mxu0 %v2905_v56  ;;  %30878 = vmatprep.subr.mxu0 %v33379_v3 }
 0x576   :  { %30879 = vmatpush3.msra.mxu0 %v33434_v10  ;;  %30882 = vmatprep.mubr.msk.f32.mxu0 %vm33380_vm2, %v33379_v3 }
 0x577   :  { %30880 = vmatprep.subr.mxu0 %v33379_v3  ;;  %30901 = vmatprep.subr.mxu1 %v33379_v3 }
 0x578   :  { %30881 = vmatpush3.msra.mxu0 %v33437_v12  ;;  %30902 = vmatpush3.msra.mxu1 %v33513_v31 }
 0x579   :  { %30883 = vmatmul.mubr.f32.vlgmr.msra.gmra.mxu0 %v2904_v55  ;;  %30903 = vmatprep.mubr.msk.f32.mxu1 %vm33380_vm2, %v33379_v3 }
 0x57a   :  { %30913 = vmatprep.subr.mxu1 %v33379_v3  ;;  %30892 = vmatprep.subr.mxu0 %v33379_v3 }
 0x57b   :  { %30893 = vmatpush3.msra.mxu0 %v33483_v21  ;;  %30896 = vmatprep.mubr.msk.f32.mxu0 %vm33380_vm2, %v33379_v3 }
 0x57c   :  { %30894 = vmatprep.subr.mxu0 %v33379_v3 }
 0x57d   :  { %30895 = vmatpush3.msra.mxu0 %v33491_v24 }
 0x57e   :  { %30906 = vmatprep.subr.mxu0 %v33379_v3 }
 0x629   :  { %v2991_v59 = vpop.f32.mrf.mxu1 }
 0x62b   :  { %v30863_v60 = vpop.f32.mrf.mxu1 }
 0x62d   :  { %v3142_v61 = vpop.f32.mrf.mxu1 }
 0x62f   :  { %v30877_v62 = vpop.f32.mrf.mxu1 }
 0x631   :  { %v2910_v1 = vpop.f32.mrf.mxu0  ;;  %v3292_v14 = vpop.f32.mrf.mxu1 }
 0x632   :  { %v2911_v19 = vadd.f32 %v33521_v32, %v2910_v1 }
 0x633   :  { %v30856_v22 = vpop.f32.mrf.mxu0  ;;  %v30891_v27 = vpop.f32.mrf.mxu1 }
 0x634   :  { %v2992_v30 = vadd.f32 %v2991_v59, %v2911_v19 }
 0x635   :  { %v3067_v33 = vpop.f32.mrf.mxu0 }
 0x636   :  { %v3068_v35 = vadd.f32 %v3067_v33, %v2992_v30 }
 0x637   :  { %v30870_v36 = vpop.f32.mrf.mxu0 }
 0x638   :  { %v3143_v37 = vadd.f32 %v3142_v61, %v3068_v35 }
 0x639   :  { %v3219_v38 = vpop.f32.mrf.mxu0 }
 0x63a   :  { %v3220_v39 = vadd.f32 %v3219_v38, %v3143_v37 }
 0x63b   :  { %v30884_v40 = vpop.f32.mrf.mxu0 }
 0x63c   :  { %v3293_v41 = vadd.f32 %v3292_v14, %v3220_v39 }
 0x63e   :  { %v3297_v42 = vmul.f32 1.442695, %v3293_v41  ;;  %vm3296_vm7 = vcmp.gt.f32.partialorder %v3293_v41, 0.0 }
 0x640   :  { %33257 = vpow2.f32 %v3297_v42 }
 0x64d   :  { %v33258_v44 = vpop.eup %33257 }
 0x64e   :  { %v29426_v45 = vadd.f32 -1.0, %v33258_v44 }
 0x650   :  { %v3300_v46 = vsel %vm3296_vm7, %v3293_v41, %v29426_v45 }
 0x651   :  { %v3302_v47 = vsel %vm39_vm1, %v3300_v46, 0 }
 0x652   :  { %v3371_v32 = vand.u32 4294901760, %v3302_v47 }
 0x654   :  { %30904 = vmatmul.mubr.f32.vlgmr.msra.gmra.mxu1 %v3371_v32  ;;  %v3372_v2 = vsub.f32 %v3302_v47, %v3371_v32 }
 0x655   :  { %30914 = vmatpush3.msra.mxu1 %v33483_v21  ;;  %30917 = vmatprep.mubr.msk.f32.mxu1 %vm33380_vm2, %v33379_v3 }
 0x656   :  { %30915 = vmatprep.subr.mxu1 %v33379_v3  ;;  %v3373_v48 = vand.u32 4294901760, %v3372_v2 }
 0x657   :  { %30916 = vmatpush3.msra.mxu1 %v33491_v24 }
 0x658   :  { %30918 = vmatmul.mubr.f32.vlgmr.msra.gmra.mxu1 %v3373_v48  ;;  %30927 = vmatprep.subr.mxu1 %v33379_v3  ;;  %v3374_v49 = vsub.f32 %v3372_v2, %v3373_v48 }
 0x659   :  { %30928 = vmatpush3.msra.mxu1 %v33483_v21  ;;  %30931 = vmatprep.mubr.msk.f32.mxu1 %vm33380_vm2, %v33379_v3 }
 0x65a   :  { %30929 = vmatprep.subr.mxu1 %v33379_v3  ;;  %v3375_v50 = vand.u32 4294901760, %v3374_v49 }
 0x65b   :  { %30930 = vmatpush3.msra.mxu1 %v33491_v24 }
 0x65c   :  { %30897 = vmatmul.mubr.f32.vlgmr.msra.gmra.mxu0 %v3375_v50  ;;  %30932 = vmatmul.mubr.f32.vlgmr.msra.gmra.mxu1 %v3371_v32 }
 0x65d   :  { %30907 = vmatpush3.msra.mxu0 %v33489_v23  ;;  %30910 = vmatprep.mubr.msk.f32.mxu0 %vm33380_vm2, %v33379_v3 }
 0x65e   :  { %30908 = vmatprep.subr.mxu0 %v33379_v3  ;;  %30941 = vmatprep.subr.mxu1 %v33379_v3 }
 0x65f   :  { %30909 = vmatpush3.msra.mxu0 %v33499_v26  ;;  %30942 = vmatpush3.msra.mxu1 %v33581_v17 }
 0x660   :  { %30911 = vmatmul.mubr.f32.vlgmr.msra.gmra.mxu0 %v3372_v2  ;;  %30920 = vmatprep.subr.mxu0 %v33379_v3 }
 0x661   :  { %30921 = vmatpush3.msra.mxu0 %v33496_v25  ;;  %30924 = vmatprep.mubr.msk.f32.mxu0 %vm33380_vm2, %v33379_v3 }
 0x662   :  { %30922 = vmatprep.subr.mxu0 %v33379_v3  ;;  %30943 = vmatprep.subr.mxu1 %v33379_v3 }
 0x663   :  { %30923 = vmatpush3.msra.mxu0 %v33506_v28  ;;  %30944 = vmatpush3.msra.mxu1 %v33586_v20 }
 0x664   :  { %30925 = vmatmul.mubr.f32.vlgmr.msra.gmra.mxu0 %v3371_v32  ;;  %30945 = vmatprep.mubr.msk.f32.mxu1 %vm33380_vm2, %v33379_v3 }
 0x665   :  { %30955 = vmatprep.subr.mxu1 %v33379_v3  ;;  %30934 = vmatprep.subr.mxu0 %v33379_v3 }
 0x666   :  { %30935 = vmatpush3.msra.mxu0 %v33559_v0  ;;  %30938 = vmatprep.mubr.msk.f32.mxu0 %vm33380_vm2, %v33379_v3 }
 0x667   :  { %30936 = vmatprep.subr.mxu0 %v33379_v3 }
 0x668   :  { %30937 = vmatpush3.msra.mxu0 %v33564_v8 }
 0x669   :  { %30948 = vmatprep.subr.mxu0 %v33379_v3 }
 0x714   :  { %v3458_v51 = vpop.f32.mrf.mxu1 }
 0x716   :  { %v30905_v52 = vpop.f32.mrf.mxu1 }
 0x718   :  { %v3609_v54 = vpop.f32.mrf.mxu1 }
 0x71a   :  { %v30919_v55 = vpop.f32.mrf.mxu1 }
 0x71c   :  { %v3377_v56 = vpop.f32.mrf.mxu0  ;;  %v3759_v57 = vpop.f32.mrf.mxu1 }
 0x71d   :  { %v3378_v43 = vadd.f32 %v33594_v34, %v3377_v56 }
 0x71e   :  { %v30898_v58 = vpop.f32.mrf.mxu0  ;;  %v30933_v59 = vpop.f32.mrf.mxu1 }
 0x71f   :  { %v3459_v60 = vadd.f32 %v3458_v51, %v3378_v43 }
 0x720   :  { %v3534_v61 = vpop.f32.mrf.mxu0 }
 0x721   :  { %v3535_v62 = vadd.f32 %v3534_v61, %v3459_v60 }
 0x722   :  { %v30912_v1 = vpop.f32.mrf.mxu0 }
 0x723   :  { %v3610_v14 = vadd.f32 %v3609_v54, %v3535_v62 }
 0x724   :  { %v3686_v19 = vpop.f32.mrf.mxu0 }
 0x725   :  { %v3687_v22 = vadd.f32 %v3686_v19, %v3610_v14 }
 0x726   :  { %v30926_v27 = vpop.f32.mrf.mxu0 }
 0x727   :  { %v3760_v30 = vadd.f32 %v3759_v57, %v3687_v22 }
 0x729   :  { %v3764_v33 = vmul.f32 1.442695, %v3760_v30  ;;  %vm3763_vm8 = vcmp.gt.f32.partialorder %v3760_v30, 0.0 }
 0x72b   :  { %33259 = vpow2.f32 %v3764_v33 }
 0x738   :  { %v33260_v35 = vpop.eup %33259 }
 0x739   :  { %v29427_v36 = vadd.f32 -1.0, %v33260_v35 }
 0x73b   :  { %v3767_v37 = vsel %vm3763_vm8, %v3760_v30, %v29427_v36 }
 0x73c   :  { %v3769_v38 = vsel %vm39_vm1, %v3767_v37, 0  ;;  %v33922_v37 = vld [vmem:[%s36204_s1 + $0x30] ss:$0 sm:$0xff] }
 0x73d   :  { %v3838_v34 = vand.u32 4294901760, %v3769_v38 }
 0x73f   :  { %30946 = vmatmul.mubr.f32.vlgmr.msra.gmra.mxu1 %v3838_v34  ;;  %v3839_v39 = vsub.f32 %v3769_v38, %v3838_v34 }
 0x740   :  { %30956 = vmatpush3.msra.mxu1 %v33559_v0  ;;  %30959 = vmatprep.mubr.msk.f32.mxu1 %vm33380_vm2, %v33379_v3 }
 0x741   :  { %30957 = vmatprep.subr.mxu1 %v33379_v3  ;;  %v3840_v40 = vand.u32 4294901760, %v3839_v39 }
 0x742   :  { %30958 = vmatpush3.msra.mxu1 %v33564_v8 }
 0x743   :  { %30960 = vmatmul.mubr.f32.vlgmr.msra.gmra.mxu1 %v3840_v40  ;;  %30969 = vmatprep.subr.mxu1 %v33379_v3  ;;  %v3841_v41 = vsub.f32 %v3839_v39, %v3840_v40 }
 0x744   :  { %30970 = vmatpush3.msra.mxu1 %v33559_v0  ;;  %30973 = vmatprep.mubr.msk.f32.mxu1 %vm33380_vm2, %v33379_v3 }
 0x745   :  { %30971 = vmatprep.subr.mxu1 %v33379_v3  ;;  %v3842_v42 = vand.u32 4294901760, %v3841_v41 }
 0x746   :  { %30972 = vmatpush3.msra.mxu1 %v33564_v8 }
 0x747   :  { %30939 = vmatmul.mubr.f32.vlgmr.msra.gmra.mxu0 %v3842_v42  ;;  %30974 = vmatmul.mubr.f32.vlgmr.msra.gmra.mxu1 %v3838_v34 }
 0x748   :  { %30949 = vmatpush3.msra.mxu0 %v33562_v6  ;;  %30952 = vmatprep.mubr.msk.f32.mxu0 %vm33380_vm2, %v33379_v3 }
 0x749   :  { %30950 = vmatprep.subr.mxu0 %v33379_v3  ;;  %30983 = vmatprep.subr.mxu1 %v33379_v3 }
 0x74a   :  { %30951 = vmatpush3.msra.mxu0 %v33572_v13  ;;  %30984 = vmatpush3.msra.mxu1 %v33444_v16 }
 0x74b   :  { %30953 = vmatmul.mubr.f32.vlgmr.msra.gmra.mxu0 %v3839_v39  ;;  %30962 = vmatprep.subr.mxu0 %v33379_v3 }
 0x74c   :  { %30963 = vmatpush3.msra.mxu0 %v33569_v11  ;;  %30966 = vmatprep.mubr.msk.f32.mxu0 %vm33380_vm2, %v33379_v3 }
 0x74d   :  { %30964 = vmatprep.subr.mxu0 %v33379_v3  ;;  %30985 = vmatprep.subr.mxu1 %v33379_v3 }
 0x74e   :  { %30965 = vmatpush3.msra.mxu0 %v33579_v15  ;;  %30986 = vmatpush3.msra.mxu1 %v33446_v18 }
 0x74f   :  { %30967 = vmatmul.mubr.f32.vlgmr.msra.gmra.mxu0 %v3838_v34  ;;  %30987 = vmatprep.mubr.msk.f32.mxu1 %vm33380_vm2, %v33379_v3 }
 0x750   :  { %30997 = vmatprep.subr.mxu1 %v33379_v3  ;;  %30976 = vmatprep.subr.mxu0 %v33379_v3 }
 0x751   :  { %30977 = vmatpush3.msra.mxu0 %v33411_v4  ;;  %30980 = vmatprep.mubr.msk.f32.mxu0 %vm33380_vm2, %v33379_v3 }
 0x752   :  { %30978 = vmatprep.subr.mxu0 %v33379_v3 }
 0x753   :  { %30979 = vmatpush3.msra.mxu0 %v33414_v5 }
 0x754   :  { %30990 = vmatprep.subr.mxu0 %v33379_v3 }
 0x7ff   :  { %v3925_v44 = vpop.f32.mrf.mxu1 }
 0x801   :  { %v30947_v45 = vpop.f32.mrf.mxu1 }
 0x803   :  { %v4076_v46 = vpop.f32.mrf.mxu1 }
 0x805   :  { %v30961_v47 = vpop.f32.mrf.mxu1 }
 0x807   :  { %v3844_v32 = vpop.f32.mrf.mxu0  ;;  %v4226_v2 = vpop.f32.mrf.mxu1 }
 0x808   :  { %v3845_v48 = vadd.f32 %v3844_v32, %v33637_v63 }
 0x809   :  { %v30940_v49 = vpop.f32.mrf.mxu0  ;;  %v30975_v50 = vpop.f32.mrf.mxu1 }
 0x80a   :  { %v3926_v51 = vadd.f32 %v3925_v44, %v3845_v48 }
 0x80b   :  { %v4001_v52 = vpop.f32.mrf.mxu0 }
 0x80c   :  { %v4002_v54 = vadd.f32 %v4001_v52, %v3926_v51 }
 0x80d   :  { %v30954_v55 = vpop.f32.mrf.mxu0 }
 0x80e   :  { %v4077_v56 = vadd.f32 %v4076_v46, %v4002_v54 }
 0x80f   :  { %v4153_v57 = vpop.f32.mrf.mxu0 }
 0x810   :  { %v4154_v43 = vadd.f32 %v4153_v57, %v4077_v56 }
 0x811   :  { %v30968_v58 = vpop.f32.mrf.mxu0 }
 0x812   :  { %v4227_v59 = vadd.f32 %v4226_v2, %v4154_v43 }
 0x814   :  { %v33877_v60 = vadd.f32 %v4227_v59, %v33759_v53 }
 0x816   :  { %4232 = vst.msk [vmem:[#allocation2 + $0x4] sm:$0xf] %vm34_vm0, %v33877_v60  ;;  %v4234_v61 = vsel %vm39_vm1, %v33877_v60, 0 }
 0x817   :  { %v4303_v62 = vand.u32 4294901760, %v4234_v61 }
 0x819   :  { %v4304_v1 = vsub.f32 %v4234_v61, %v4303_v62  ;;  %30988 = vmatmul.mubr.f32.vlgmr.msra.gmra.mxu1 %v4303_v62 }
 0x81a   :  { %30998 = vmatpush3.msra.mxu1 %v33411_v4  ;;  %31001 = vmatprep.mubr.msk.f32.mxu1 %vm33380_vm2, %v33379_v3 }
 0x81b   :  { %30999 = vmatprep.subr.mxu1 %v33379_v3  ;;  %v4305_v14 = vand.u32 4294901760, %v4304_v1 }
 0x81c   :  { %31000 = vmatpush3.msra.mxu1 %v33414_v5 }
 0x81d   :  { %31002 = vmatmul.mubr.f32.vlgmr.msra.gmra.mxu1 %v4305_v14  ;;  %31011 = vmatprep.subr.mxu1 %v33379_v3  ;;  %v4306_v53 = vsub.f32 %v4304_v1, %v4305_v14 }
 0x81e   :  { %31012 = vmatpush3.msra.mxu1 %v33411_v4  ;;  %31015 = vmatprep.mubr.msk.f32.mxu1 %vm33380_vm2, %v33379_v3 }
 0x81f   :  { %31013 = vmatprep.subr.mxu1 %v33379_v3  ;;  %v4307_v19 = vand.u32 4294901760, %v4306_v53  ;;  %v33965_v53 = vld [vmem:[%s36204_s1 + $0x31] ss:$0 sm:$0xff] }
 0x820   :  { %31014 = vmatpush3.msra.mxu1 %v33414_v5 }
 0x821   :  { %30981 = vmatmul.mubr.f32.vlgmr.msra.gmra.mxu0 %v4307_v19  ;;  %31016 = vmatmul.mubr.f32.vlgmr.msra.gmra.mxu1 %v4303_v62 }
 0x822   :  { %30991 = vmatpush3.msra.mxu0 %v33426_v7  ;;  %30994 = vmatprep.mubr.msk.f32.mxu0 %vm33380_vm2, %v33379_v3 }
 0x823   :  { %30992 = vmatprep.subr.mxu0 %v33379_v3  ;;  %31025 = vmatprep.subr.mxu1 %v33379_v3 }
 0x824   :  { %30993 = vmatpush3.msra.mxu0 %v33429_v9  ;;  %31026 = vmatpush3.msra.mxu1 %v33508_v29 }
 0x825   :  { %30995 = vmatmul.mubr.f32.vlgmr.msra.gmra.mxu0 %v4304_v1  ;;  %31004 = vmatprep.subr.mxu0 %v33379_v3 }
 0x826   :  { %31005 = vmatpush3.msra.mxu0 %v33434_v10  ;;  %31008 = vmatprep.mubr.msk.f32.mxu0 %vm33380_vm2, %v33379_v3 }
 0x827   :  { %31006 = vmatprep.subr.mxu0 %v33379_v3  ;;  %31027 = vmatprep.subr.mxu1 %v33379_v3 }
 0x828   :  { %31007 = vmatpush3.msra.mxu0 %v33437_v12  ;;  %31028 = vmatpush3.msra.mxu1 %v33513_v31 }
 0x829   :  { %31009 = vmatmul.mubr.f32.vlgmr.msra.gmra.mxu0 %v4303_v62  ;;  %31029 = vmatprep.mubr.msk.f32.mxu1 %vm33380_vm2, %v33379_v3 }
 0x82a   :  { %31039 = vmatprep.subr.mxu1 %v33379_v3  ;;  %31018 = vmatprep.subr.mxu0 %v33379_v3 }
 0x82b   :  { %31019 = vmatpush3.msra.mxu0 %v33483_v21  ;;  %31022 = vmatprep.mubr.msk.f32.mxu0 %vm33380_vm2, %v33379_v3 }
 0x82c   :  { %31020 = vmatprep.subr.mxu0 %v33379_v3 }
 0x82d   :  { %31021 = vmatpush3.msra.mxu0 %v33491_v24 }
 0x82e   :  { %31032 = vmatprep.subr.mxu0 %v33379_v3 }
 0x8d9   :  { %v4390_v22 = vpop.f32.mrf.mxu1 }
 0x8db   :  { %v30989_v27 = vpop.f32.mrf.mxu1 }
 0x8dd   :  { %v4541_v30 = vpop.f32.mrf.mxu1 }
 0x8df   :  { %v31003_v33 = vpop.f32.mrf.mxu1 }
 0x8e1   :  { %v4309_v35 = vpop.f32.mrf.mxu0  ;;  %v4691_v36 = vpop.f32.mrf.mxu1 }
 0x8e2   :  { %v4310_v38 = vadd.f32 %v33922_v37, %v4309_v35 }
 0x8e3   :  { %v30982_v34 = vpop.f32.mrf.mxu0  ;;  %v31017_v39 = vpop.f32.mrf.mxu1 }
 0x8e4   :  { %v4391_v40 = vadd.f32 %v4390_v22, %v4310_v38 }
 0x8e5   :  { %v4466_v41 = vpop.f32.mrf.mxu0 }
 0x8e6   :  { %v4467_v42 = vadd.f32 %v4466_v41, %v4391_v40 }
 0x8e7   :  { %v30996_v44 = vpop.f32.mrf.mxu0 }
 0x8e8   :  { %v4542_v45 = vadd.f32 %v4541_v30, %v4467_v42 }
 0x8e9   :  { %v4618_v46 = vpop.f32.mrf.mxu0 }
 0x8ea   :  { %v4619_v47 = vadd.f32 %v4618_v46, %v4542_v45 }
 0x8eb   :  { %v31010_v32 = vpop.f32.mrf.mxu0 }
 0x8ec   :  { %v4692_v2 = vadd.f32 %v4691_v36, %v4619_v47 }
 0x8ee   :  { %v4696_v48 = vmul.f32 1.442695, %v4692_v2  ;;  %vm4695_vm9 = vcmp.gt.f32.partialorder %v4692_v2, 0.0 }
 0x8f0   :  { %33261 = vpow2.f32 %v4696_v48 }
 0x8fd   :  { %v33262_v49 = vpop.eup %33261 }
 0x8fe   :  { %v29428_v50 = vadd.f32 -1.0, %v33262_v49 }
 0x900   :  { %v4699_v51 = vsel %vm4695_vm9, %v4692_v2, %v29428_v50 }
 0x901   :  { %v4701_v52 = vsel %vm39_vm1, %v4699_v51, 0 }
 0x902   :  { %v4770_v54 = vand.u32 4294901760, %v4701_v52 }
 0x904   :  { %31030 = vmatmul.mubr.f32.vlgmr.msra.gmra.mxu1 %v4770_v54  ;;  %v4771_v55 = vsub.f32 %v4701_v52, %v4770_v54 }
 0x905   :  { %31040 = vmatpush3.msra.mxu1 %v33483_v21  ;;  %31043 = vmatprep.mubr.msk.f32.mxu1 %vm33380_vm2, %v33379_v3 }
 0x906   :  { %31041 = vmatprep.subr.mxu1 %v33379_v3  ;;  %v4772_v56 = vand.u32 4294901760, %v4771_v55 }
 0x907   :  { %31042 = vmatpush3.msra.mxu1 %v33491_v24 }
 0x908   :  { %31044 = vmatmul.mubr.f32.vlgmr.msra.gmra.mxu1 %v4772_v56  ;;  %31053 = vmatprep.subr.mxu1 %v33379_v3  ;;  %v4773_v57 = vsub.f32 %v4771_v55, %v4772_v56 }
 0x909   :  { %31054 = vmatpush3.msra.mxu1 %v33483_v21  ;;  %31057 = vmatprep.mubr.msk.f32.mxu1 %vm33380_vm2, %v33379_v3 }
 0x90a   :  { %31055 = vmatprep.subr.mxu1 %v33379_v3  ;;  %v4774_v43 = vand.u32 4294901760, %v4773_v57 }
 0x90b   :  { %31056 = vmatpush3.msra.mxu1 %v33491_v24 }
 0x90c   :  { %31023 = vmatmul.mubr.f32.vlgmr.msra.gmra.mxu0 %v4774_v43  ;;  %31058 = vmatmul.mubr.f32.vlgmr.msra.gmra.mxu1 %v4770_v54 }
 0x90d   :  { %31033 = vmatpush3.msra.mxu0 %v33489_v23  ;;  %31036 = vmatprep.mubr.msk.f32.mxu0 %vm33380_vm2, %v33379_v3 }
 0x90e   :  { %31034 = vmatprep.subr.mxu0 %v33379_v3  ;;  %31067 = vmatprep.subr.mxu1 %v33379_v3 }
 0x90f   :  { %31035 = vmatpush3.msra.mxu0 %v33499_v26  ;;  %31068 = vmatpush3.msra.mxu1 %v33581_v17 }
 0x910   :  { %31037 = vmatmul.mubr.f32.vlgmr.msra.gmra.mxu0 %v4771_v55  ;;  %31046 = vmatprep.subr.mxu0 %v33379_v3 }
 0x911   :  { %31047 = vmatpush3.msra.mxu0 %v33496_v25  ;;  %31050 = vmatprep.mubr.msk.f32.mxu0 %vm33380_vm2, %v33379_v3 }
 0x912   :  { %31048 = vmatprep.subr.mxu0 %v33379_v3  ;;  %31069 = vmatprep.subr.mxu1 %v33379_v3 }
 0x913   :  { %31049 = vmatpush3.msra.mxu0 %v33506_v28  ;;  %31070 = vmatpush3.msra.mxu1 %v33586_v20 }
 0x914   :  { %31051 = vmatmul.mubr.f32.vlgmr.msra.gmra.mxu0 %v4770_v54  ;;  %31071 = vmatprep.mubr.msk.f32.mxu1 %vm33380_vm2, %v33379_v3 }
 0x915   :  { %31081 = vmatprep.subr.mxu1 %v33379_v3  ;;  %31060 = vmatprep.subr.mxu0 %v33379_v3 }
 0x916   :  { %31061 = vmatpush3.msra.mxu0 %v33559_v0  ;;  %31064 = vmatprep.mubr.msk.f32.mxu0 %vm33380_vm2, %v33379_v3 }
 0x917   :  { %31062 = vmatprep.subr.mxu0 %v33379_v3 }
 0x918   :  { %31063 = vmatpush3.msra.mxu0 %v33564_v8 }
 0x919   :  { %31074 = vmatprep.subr.mxu0 %v33379_v3 }
 0x9c4   :  { %v4857_v58 = vpop.f32.mrf.mxu1 }
 0x9c6   :  { %v31031_v59 = vpop.f32.mrf.mxu1 }
 0x9c8   :  { %v5008_v61 = vpop.f32.mrf.mxu1 }
 0x9ca   :  { %v31045_v62 = vpop.f32.mrf.mxu1 }
 0x9cc   :  { %v4776_v1 = vpop.f32.mrf.mxu0  ;;  %v5158_v14 = vpop.f32.mrf.mxu1 }
 0x9cd   :  { %v4777_v19 = vadd.f32 %v33965_v53, %v4776_v1 }
 0x9ce   :  { %v31024_v22 = vpop.f32.mrf.mxu0  ;;  %v31059_v27 = vpop.f32.mrf.mxu1 }
 0x9cf   :  { %v4858_v30 = vadd.f32 %v4857_v58, %v4777_v19 }
 0x9d0   :  { %v4933_v33 = vpop.f32.mrf.mxu0 }
 0x9d1   :  { %v4934_v35 = vadd.f32 %v4933_v33, %v4858_v30 }
 0x9d2   :  { %v31038_v36 = vpop.f32.mrf.mxu0 }
 0x9d3   :  { %v5009_v38 = vadd.f32 %v5008_v61, %v4934_v35 }
 0x9d4   :  { %v5085_v34 = vpop.f32.mrf.mxu0 }
 0x9d5   :  { %v5086_v39 = vadd.f32 %v5085_v34, %v5009_v38 }
 0x9d6   :  { %v31052_v40 = vpop.f32.mrf.mxu0 }
 0x9d7   :  { %v5159_v41 = vadd.f32 %v5158_v14, %v5086_v39 }
 0x9d9   :  { %v5163_v42 = vmul.f32 1.442695, %v5159_v41  ;;  %vm5162_vm10 = vcmp.gt.f32.partialorder %v5159_v41, 0.0 }
 0x9db   :  { %33263 = vpow2.f32 %v5163_v42 }
 0x9e8   :  { %v33264_v44 = vpop.eup %33263 }
 0x9e9   :  { %v29429_v45 = vadd.f32 -1.0, %v33264_v44 }
 0x9eb   :  { %v5166_v46 = vsel %vm5162_vm10, %v5159_v41, %v29429_v45 }
 0x9ec   :  { %v5168_v47 = vsel %vm39_vm1, %v5166_v46, 0 }
 0x9ed   :  { %v5237_v32 = vand.u32 4294901760, %v5168_v47 }
 0x9ef   :  { %31072 = vmatmul.mubr.f32.vlgmr.msra.gmra.mxu1 %v5237_v32  ;;  %v5238_v2 = vsub.f32 %v5168_v47, %v5237_v32 }
 0x9f0   :  { %31082 = vmatpush3.msra.mxu1 %v33559_v0  ;;  %31085 = vmatprep.mubr.msk.f32.mxu1 %vm33380_vm2, %v33379_v3 }
 0x9f1   :  { %31083 = vmatprep.subr.mxu1 %v33379_v3  ;;  %v5239_v48 = vand.u32 4294901760, %v5238_v2 }
 0x9f2   :  { %31084 = vmatpush3.msra.mxu1 %v33564_v8 }
 0x9f3   :  { %31086 = vmatmul.mubr.f32.vlgmr.msra.gmra.mxu1 %v5239_v48  ;;  %31095 = vmatprep.subr.mxu1 %v33379_v3  ;;  %v5240_v49 = vsub.f32 %v5238_v2, %v5239_v48 }
 0x9f4   :  { %31096 = vmatpush3.msra.mxu1 %v33559_v0  ;;  %31099 = vmatprep.mubr.msk.f32.mxu1 %vm33380_vm2, %v33379_v3 }
 0x9f5   :  { %31097 = vmatprep.subr.mxu1 %v33379_v3  ;;  %v5241_v50 = vand.u32 4294901760, %v5240_v49 }
 0x9f6   :  { %31098 = vmatpush3.msra.mxu1 %v33564_v8 }
 0x9f7   :  { %31065 = vmatmul.mubr.f32.vlgmr.msra.gmra.mxu0 %v5241_v50  ;;  %31100 = vmatmul.mubr.f32.vlgmr.msra.gmra.mxu1 %v5237_v32 }
 0x9f8   :  { %31075 = vmatpush3.msra.mxu0 %v33562_v6  ;;  %31078 = vmatprep.mubr.msk.f32.mxu0 %vm33380_vm2, %v33379_v3 }
 0x9f9   :  { %31076 = vmatprep.subr.mxu0 %v33379_v3  ;;  %31109 = vmatprep.subr.mxu1 %v33379_v3 }
 0x9fa   :  { %31077 = vmatpush3.msra.mxu0 %v33572_v13  ;;  %31110 = vmatpush3.msra.mxu1 %v33444_v16 }
 0x9fb   :  { %31079 = vmatmul.mubr.f32.vlgmr.msra.gmra.mxu0 %v5238_v2  ;;  %31088 = vmatprep.subr.mxu0 %v33379_v3 }
 0x9fc   :  { %31089 = vmatpush3.msra.mxu0 %v33569_v11  ;;  %31092 = vmatprep.mubr.msk.f32.mxu0 %vm33380_vm2, %v33379_v3 }
 0x9fd   :  { %31090 = vmatprep.subr.mxu0 %v33379_v3  ;;  %31111 = vmatprep.subr.mxu1 %v33379_v3 }
 0x9fe   :  { %31091 = vmatpush3.msra.mxu0 %v33579_v15  ;;  %31112 = vmatpush3.msra.mxu1 %v33446_v18 }
 0x9ff   :  { %31093 = vmatmul.mubr.f32.vlgmr.msra.gmra.mxu0 %v5237_v32  ;;  %31113 = vmatprep.mubr.msk.f32.mxu1 %vm33380_vm2, %v33379_v3 }
 0xa00   :  { %31123 = vmatprep.subr.mxu1 %v33379_v3  ;;  %31102 = vmatprep.subr.mxu0 %v33379_v3 }
 0xa01   :  { %31103 = vmatpush3.msra.mxu0 %v33411_v4  ;;  %31106 = vmatprep.mubr.msk.f32.mxu0 %vm33380_vm2, %v33379_v3 }
 0xa02   :  { %31104 = vmatprep.subr.mxu0 %v33379_v3 }
 0xa03   :  { %31105 = vmatpush3.msra.mxu0 %v33414_v5 }
 0xa04   :  { %31116 = vmatprep.subr.mxu0 %v33379_v3 }
 0xaaf   :  { %v5324_v51 = vpop.f32.mrf.mxu1 }
 0xab1   :  { %v31073_v52 = vpop.f32.mrf.mxu1 }
 0xab3   :  { %v5475_v54 = vpop.f32.mrf.mxu1 }
 0xab5   :  { %v31087_v55 = vpop.f32.mrf.mxu1 }
 0xab7   :  { %v5243_v56 = vpop.f32.mrf.mxu0  ;;  %v5625_v57 = vpop.f32.mrf.mxu1 }
 0xab8   :  { %v5244_v43 = vadd.f32 %v5243_v56, %v33637_v63 }
 0xab9   :  { %v31066_v58 = vpop.f32.mrf.mxu0  ;;  %v31101_v59 = vpop.f32.mrf.mxu1 }
 0xaba   :  { %v5325_v61 = vadd.f32 %v5324_v51, %v5244_v43 }
 0xabb   :  { %v5400_v62 = vpop.f32.mrf.mxu0 }
 0xabc   :  { %v5401_v1 = vadd.f32 %v5400_v62, %v5325_v61 }
 0xabd   :  { %v31080_v14 = vpop.f32.mrf.mxu0 }
 0xabe   :  { %v5476_v19 = vadd.f32 %v5475_v54, %v5401_v1 }
 0xabf   :  { %v5552_v22 = vpop.f32.mrf.mxu0 }
 0xac0   :  { %v5553_v27 = vadd.f32 %v5552_v22, %v5476_v19 }
 0xac1   :  { %v31094_v30 = vpop.f32.mrf.mxu0 }
 0xac2   :  { %v5626_v33 = vadd.f32 %v5625_v57, %v5553_v27 }
 0xac4   :  { %v34007_v35 = vadd.f32 %v5626_v33, %v33877_v60 }
 0xac6   :  { %v5631_v36 = vsel %vm39_vm1, %v34007_v35, 0 }
 0xac7   :  { %v5700_v38 = vand.u32 4294901760, %v5631_v36 }
 0xac9   :  { %v5701_v34 = vsub.f32 %v5631_v36, %v5700_v38  ;;  %31114 = vmatmul.mubr.f32.vlgmr.msra.gmra.mxu1 %v5700_v38 }
 0xaca   :  { %31124 = vmatpush3.msra.mxu1 %v33411_v4  ;;  %31127 = vmatprep.mubr.msk.f32.mxu1 %vm33380_vm2, %v33379_v3 }
 0xacb   :  { %31125 = vmatprep.subr.mxu1 %v33379_v3  ;;  %v5702_v39 = vand.u32 4294901760, %v5701_v34 }
 0xacc   :  { %31126 = vmatpush3.msra.mxu1 %v33414_v5 }
 0xacd   :  { %31128 = vmatmul.mubr.f32.vlgmr.msra.gmra.mxu1 %v5702_v39  ;;  %31137 = vmatprep.subr.mxu1 %v33379_v3  ;;  %v5703_v60 = vsub.f32 %v5701_v34, %v5702_v39 }
 0xace   :  { %31138 = vmatpush3.msra.mxu1 %v33411_v4  ;;  %31141 = vmatprep.mubr.msk.f32.mxu1 %vm33380_vm2, %v33379_v3 }
 0xacf   :  { %31139 = vmatprep.subr.mxu1 %v33379_v3  ;;  %v5704_v40 = vand.u32 4294901760, %v5703_v60 }
 0xad0   :  { %31140 = vmatpush3.msra.mxu1 %v33414_v5 }
 0xad1   :  { %31107 = vmatmul.mubr.f32.vlgmr.msra.gmra.mxu0 %v5704_v40  ;;  %31142 = vmatmul.mubr.f32.vlgmr.msra.gmra.mxu1 %v5700_v38 }
 0xad2   :  { %31117 = vmatpush3.msra.mxu0 %v33426_v7  ;;  %31120 = vmatprep.mubr.msk.f32.mxu0 %vm33380_vm2, %v33379_v3 }
 0xad3   :  { %31118 = vmatprep.subr.mxu0 %v33379_v3  ;;  %31151 = vmatprep.subr.mxu1 %v33379_v3 }
 0xad4   :  { %31119 = vmatpush3.msra.mxu0 %v33429_v9  ;;  %31152 = vmatpush3.msra.mxu1 %v33508_v29 }
 0xad5   :  { %31121 = vmatmul.mubr.f32.vlgmr.msra.gmra.mxu0 %v5701_v34  ;;  %31130 = vmatprep.subr.mxu0 %v33379_v3 }
 0xad6   :  { %31131 = vmatpush3.msra.mxu0 %v33434_v10  ;;  %31134 = vmatprep.mubr.msk.f32.mxu0 %vm33380_vm2, %v33379_v3 }
 0xad7   :  { %31132 = vmatprep.subr.mxu0 %v33379_v3  ;;  %31153 = vmatprep.subr.mxu1 %v33379_v3 }
 0xad8   :  { %31133 = vmatpush3.msra.mxu0 %v33437_v12  ;;  %31154 = vmatpush3.msra.mxu1 %v33513_v31 }
 0xad9   :  { %31135 = vmatmul.mubr.f32.vlgmr.msra.gmra.mxu0 %v5700_v38  ;;  %31155 = vmatprep.mubr.msk.f32.mxu1 %vm33380_vm2, %v33379_v3 }
 0xada   :  { %31165 = vmatprep.subr.mxu1 %v33379_v3  ;;  %31144 = vmatprep.subr.mxu0 %v33379_v3 }
 0xadb   :  { %31145 = vmatpush3.msra.mxu0 %v33483_v21  ;;  %31148 = vmatprep.mubr.msk.f32.mxu0 %vm33380_vm2, %v33379_v3 }
 0xadc   :  { %31146 = vmatprep.subr.mxu0 %v33379_v3 }
 0xadd   :  { %31147 = vmatpush3.msra.mxu0 %v33491_v24 }
 0xade   :  { %31158 = vmatprep.subr.mxu0 %v33379_v3 }
 0xb89   :  { %v5787_v41 = vpop.f32.mrf.mxu1 }
 0xb8b   :  { %v31115_v42 = vpop.f32.mrf.mxu1 }
 0xb8d   :  { %v5938_v44 = vpop.f32.mrf.mxu1 }
 0xb8f   :  { %v31129_v45 = vpop.f32.mrf.mxu1 }
 0xb91   :  { %v5706_v46 = vpop.f32.mrf.mxu0  ;;  %v6088_v47 = vpop.f32.mrf.mxu1 }
 0xb92   :  { %v5707_v32 = vadd.f32 %v33922_v37, %v5706_v46 }
 0xb93   :  { %v31108_v2 = vpop.f32.mrf.mxu0  ;;  %v31143_v48 = vpop.f32.mrf.mxu1 }
 0xb94   :  { %v5788_v49 = vadd.f32 %v5787_v41, %v5707_v32 }
 0xb95   :  { %v5863_v50 = vpop.f32.mrf.mxu0 }
 0xb96   :  { %v5864_v51 = vadd.f32 %v5863_v50, %v5788_v49 }
 0xb97   :  { %v31122_v52 = vpop.f32.mrf.mxu0 }
 0xb98   :  { %v5939_v54 = vadd.f32 %v5938_v44, %v5864_v51 }
 0xb99   :  { %v6015_v55 = vpop.f32.mrf.mxu0 }
 0xb9a   :  { %v6016_v56 = vadd.f32 %v6015_v55, %v5939_v54 }
 0xb9b   :  { %v31136_v57 = vpop.f32.mrf.mxu0 }
 0xb9c   :  { %v6089_v43 = vadd.f32 %v6088_v47, %v6016_v56 }
 0xb9e   :  { %v6093_v58 = vmul.f32 1.442695, %v6089_v43  ;;  %vm6092_vm11 = vcmp.gt.f32.partialorder %v6089_v43, 0.0 }
 0xba0   :  { %33265 = vpow2.f32 %v6093_v58 }
 0xbad   :  { %v33266_v59 = vpop.eup %33265 }
 0xbae   :  { %v29430_v61 = vadd.f32 -1.0, %v33266_v59 }
 0xbb0   :  { %v6096_v62 = vsel %vm6092_vm11, %v6089_v43, %v29430_v61 }
 0xbb1   :  { %v6098_v1 = vsel %vm39_vm1, %v6096_v62, 0 }
 0xbb2   :  { %v6167_v14 = vand.u32 4294901760, %v6098_v1 }
 0xbb4   :  { %31156 = vmatmul.mubr.f32.vlgmr.msra.gmra.mxu1 %v6167_v14  ;;  %v6168_v19 = vsub.f32 %v6098_v1, %v6167_v14 }
 0xbb5   :  { %31166 = vmatpush3.msra.mxu1 %v33483_v21  ;;  %31169 = vmatprep.mubr.msk.f32.mxu1 %vm33380_vm2, %v33379_v3 }
 0xbb6   :  { %31167 = vmatprep.subr.mxu1 %v33379_v3  ;;  %v6169_v22 = vand.u32 4294901760, %v6168_v19 }
 0xbb7   :  { %31168 = vmatpush3.msra.mxu1 %v33491_v24 }
 0xbb8   :  { %31170 = vmatmul.mubr.f32.vlgmr.msra.gmra.mxu1 %v6169_v22  ;;  %31179 = vmatprep.subr.mxu1 %v33379_v3  ;;  %v6170_v27 = vsub.f32 %v6168_v19, %v6169_v22 }
 0xbb9   :  { %31180 = vmatpush3.msra.mxu1 %v33483_v21  ;;  %31183 = vmatprep.mubr.msk.f32.mxu1 %vm33380_vm2, %v33379_v3 }
 0xbba   :  { %31181 = vmatprep.subr.mxu1 %v33379_v3  ;;  %v6171_v30 = vand.u32 4294901760, %v6170_v27 }
 0xbbb   :  { %31182 = vmatpush3.msra.mxu1 %v33491_v24 }
 0xbbc   :  { %31149 = vmatmul.mubr.f32.vlgmr.msra.gmra.mxu0 %v6171_v30  ;;  %31184 = vmatmul.mubr.f32.vlgmr.msra.gmra.mxu1 %v6167_v14 }
 0xbbd   :  { %31159 = vmatpush3.msra.mxu0 %v33489_v23  ;;  %31162 = vmatprep.mubr.msk.f32.mxu0 %vm33380_vm2, %v33379_v3 }
 0xbbe   :  { %31160 = vmatprep.subr.mxu0 %v33379_v3  ;;  %31193 = vmatprep.subr.mxu1 %v33379_v3 }
 0xbbf   :  { %31161 = vmatpush3.msra.mxu0 %v33499_v26  ;;  %31194 = vmatpush3.msra.mxu1 %v33581_v17 }
 0xbc0   :  { %31163 = vmatmul.mubr.f32.vlgmr.msra.gmra.mxu0 %v6168_v19  ;;  %31172 = vmatprep.subr.mxu0 %v33379_v3 }
 0xbc1   :  { %31173 = vmatpush3.msra.mxu0 %v33496_v25  ;;  %31176 = vmatprep.mubr.msk.f32.mxu0 %vm33380_vm2, %v33379_v3 }
 0xbc2   :  { %31174 = vmatprep.subr.mxu0 %v33379_v3  ;;  %31195 = vmatprep.subr.mxu1 %v33379_v3 }
 0xbc3   :  { %31175 = vmatpush3.msra.mxu0 %v33506_v28  ;;  %31196 = vmatpush3.msra.mxu1 %v33586_v20 }
 0xbc4   :  { %31177 = vmatmul.mubr.f32.vlgmr.msra.gmra.mxu0 %v6167_v14  ;;  %31197 = vmatprep.mubr.msk.f32.mxu1 %vm33380_vm2, %v33379_v3 }
 0xbc5   :  { %31207 = vmatprep.subr.mxu1 %v33379_v3  ;;  %31186 = vmatprep.subr.mxu0 %v33379_v3 }
 0xbc6   :  { %31187 = vmatpush3.msra.mxu0 %v33559_v0  ;;  %31190 = vmatprep.mubr.msk.f32.mxu0 %vm33380_vm2, %v33379_v3 }
 0xbc7   :  { %31188 = vmatprep.subr.mxu0 %v33379_v3 }
 0xbc8   :  { %31189 = vmatpush3.msra.mxu0 %v33564_v8 }
 0xbc9   :  { %31200 = vmatprep.subr.mxu0 %v33379_v3 }
 0xc74   :  { %v6254_v33 = vpop.f32.mrf.mxu1 }
 0xc76   :  { %v31157_v36 = vpop.f32.mrf.mxu1 }
 0xc78   :  { %v6405_v38 = vpop.f32.mrf.mxu1 }
 0xc7a   :  { %v31171_v34 = vpop.f32.mrf.mxu1 }
 0xc7c   :  { %v6173_v39 = vpop.f32.mrf.mxu0  ;;  %v6555_v60 = vpop.f32.mrf.mxu1 }
 0xc7d   :  { %v6174_v40 = vadd.f32 %v33965_v53, %v6173_v39 }
 0xc7e   :  { %v31150_v41 = vpop.f32.mrf.mxu0  ;;  %v31185_v42 = vpop.f32.mrf.mxu1 }
 0xc7f   :  { %v6255_v44 = vadd.f32 %v6254_v33, %v6174_v40 }
 0xc80   :  { %v6330_v45 = vpop.f32.mrf.mxu0 }
 0xc81   :  { %v6331_v46 = vadd.f32 %v6330_v45, %v6255_v44 }
 0xc82   :  { %v31164_v47 = vpop.f32.mrf.mxu0 }
 0xc83   :  { %v6406_v32 = vadd.f32 %v6405_v38, %v6331_v46 }
 0xc84   :  { %v6482_v2 = vpop.f32.mrf.mxu0 }
 0xc85   :  { %v6483_v48 = vadd.f32 %v6482_v2, %v6406_v32 }
 0xc86   :  { %v31178_v49 = vpop.f32.mrf.mxu0 }
 0xc87   :  { %v6556_v50 = vadd.f32 %v6555_v60, %v6483_v48 }
 0xc89   :  { %v6560_v51 = vmul.f32 1.442695, %v6556_v50  ;;  %vm6559_vm12 = vcmp.gt.f32.partialorder %v6556_v50, 0.0 }
 0xc8b   :  { %33267 = vpow2.f32 %v6560_v51 }
 0xc98   :  { %v33268_v52 = vpop.eup %33267 }
 0xc99   :  { %v29431_v54 = vadd.f32 -1.0, %v33268_v52 }
 0xc9b   :  { %v6563_v55 = vsel %vm6559_vm12, %v6556_v50, %v29431_v54 }
 0xc9c   :  { %v6565_v56 = vsel %vm39_vm1, %v6563_v55, 0 }
 0xc9d   :  { %v6634_v57 = vand.u32 4294901760, %v6565_v56 }
 0xc9f   :  { %31198 = vmatmul.mubr.f32.vlgmr.msra.gmra.mxu1 %v6634_v57  ;;  %v6635_v43 = vsub.f32 %v6565_v56, %v6634_v57 }
 0xca0   :  { %31208 = vmatpush3.msra.mxu1 %v33559_v0  ;;  %31211 = vmatprep.mubr.msk.f32.mxu1 %vm33380_vm2, %v33379_v3 }
 0xca1   :  { %31209 = vmatprep.subr.mxu1 %v33379_v3  ;;  %v6636_v58 = vand.u32 4294901760, %v6635_v43 }
 0xca2   :  { %31210 = vmatpush3.msra.mxu1 %v33564_v8 }
 0xca3   :  { %31212 = vmatmul.mubr.f32.vlgmr.msra.gmra.mxu1 %v6636_v58  ;;  %31221 = vmatprep.subr.mxu1 %v33379_v3  ;;  %v6637_v59 = vsub.f32 %v6635_v43, %v6636_v58 }
 0xca4   :  { %31222 = vmatpush3.msra.mxu1 %v33559_v0  ;;  %31225 = vmatprep.mubr.msk.f32.mxu1 %vm33380_vm2, %v33379_v3 }
 0xca5   :  { %31223 = vmatprep.subr.mxu1 %v33379_v3  ;;  %v6638_v61 = vand.u32 4294901760, %v6637_v59 }
 0xca6   :  { %31224 = vmatpush3.msra.mxu1 %v33564_v8 }
 0xca7   :  { %31191 = vmatmul.mubr.f32.vlgmr.msra.gmra.mxu0 %v6638_v61  ;;  %31226 = vmatmul.mubr.f32.vlgmr.msra.gmra.mxu1 %v6634_v57 }
 0xca8   :  { %31201 = vmatpush3.msra.mxu0 %v33562_v6  ;;  %31204 = vmatprep.mubr.msk.f32.mxu0 %vm33380_vm2, %v33379_v3 }
 0xca9   :  { %31202 = vmatprep.subr.mxu0 %v33379_v3  ;;  %31235 = vmatprep.subr.mxu1 %v33379_v3 }
 0xcaa   :  { %31203 = vmatpush3.msra.mxu0 %v33572_v13  ;;  %31236 = vmatpush3.msra.mxu1 %v33444_v16 }
 0xcab   :  { %31205 = vmatmul.mubr.f32.vlgmr.msra.gmra.mxu0 %v6635_v43  ;;  %31214 = vmatprep.subr.mxu0 %v33379_v3 }
 0xcac   :  { %31215 = vmatpush3.msra.mxu0 %v33569_v11  ;;  %31218 = vmatprep.mubr.msk.f32.mxu0 %vm33380_vm2, %v33379_v3 }
 0xcad   :  { %31216 = vmatprep.subr.mxu0 %v33379_v3  ;;  %31237 = vmatprep.subr.mxu1 %v33379_v3 }
 0xcae   :  { %31217 = vmatpush3.msra.mxu0 %v33579_v15  ;;  %31238 = vmatpush3.msra.mxu1 %v33446_v18 }
 0xcaf   :  { %31219 = vmatmul.mubr.f32.vlgmr.msra.gmra.mxu0 %v6634_v57  ;;  %31239 = vmatprep.mubr.msk.f32.mxu1 %vm33380_vm2, %v33379_v3 }
 0xcb0   :  { %31249 = vmatprep.subr.mxu1 %v33379_v3  ;;  %31228 = vmatprep.subr.mxu0 %v33379_v3 }
 0xcb1   :  { %31229 = vmatpush3.msra.mxu0 %v33411_v4  ;;  %31232 = vmatprep.mubr.msk.f32.mxu0 %vm33380_vm2, %v33379_v3 }
 0xcb2   :  { %31230 = vmatprep.subr.mxu0 %v33379_v3 }
 0xcb3   :  { %31231 = vmatpush3.msra.mxu0 %v33414_v5 }
 0xcb4   :  { %31242 = vmatprep.subr.mxu0 %v33379_v3 }
 0xd5f   :  { %v6721_v62 = vpop.f32.mrf.mxu1 }
 0xd61   :  { %v31199_v1 = vpop.f32.mrf.mxu1 }
 0xd63   :  { %v6872_v14 = vpop.f32.mrf.mxu1 }
 0xd65   :  { %v31213_v19 = vpop.f32.mrf.mxu1 }
 0xd67   :  { %v6640_v22 = vpop.f32.mrf.mxu0  ;;  %v7022_v27 = vpop.f32.mrf.mxu1 }
 0xd68   :  { %v6641_v30 = vadd.f32 %v6640_v22, %v33637_v63 }
 0xd69   :  { %v31192_v33 = vpop.f32.mrf.mxu0  ;;  %v31227_v36 = vpop.f32.mrf.mxu1 }
 0xd6a   :  { %v6722_v38 = vadd.f32 %v6721_v62, %v6641_v30 }
 0xd6b   :  { %v6797_v34 = vpop.f32.mrf.mxu0 }
 0xd6c   :  { %v6798_v39 = vadd.f32 %v6797_v34, %v6722_v38 }
 0xd6d   :  { %v31206_v60 = vpop.f32.mrf.mxu0 }
 0xd6e   :  { %v6873_v40 = vadd.f32 %v6872_v14, %v6798_v39 }
 0xd6f   :  { %v6949_v41 = vpop.f32.mrf.mxu0 }
 0xd70   :  { %v6950_v42 = vadd.f32 %v6949_v41, %v6873_v40 }
 0xd71   :  { %v31220_v44 = vpop.f32.mrf.mxu0 }
 0xd72   :  { %v7023_v45 = vadd.f32 %v7022_v27, %v6950_v42 }
 0xd74   :  { %v34125_v46 = vadd.f32 %v7023_v45, %v34007_v35 }
 0xd76   :  { %v7028_v47 = vsel %vm39_vm1, %v34125_v46, 0 }
 0xd77   :  { %v7097_v32 = vand.u32 4294901760, %v7028_v47 }
 0xd79   :  { %v7098_v2 = vsub.f32 %v7028_v47, %v7097_v32  ;;  %31240 = vmatmul.mubr.f32.vlgmr.msra.gmra.mxu1 %v7097_v32 }
 0xd7a   :  { %31250 = vmatpush3.msra.mxu1 %v33411_v4  ;;  %31253 = vmatprep.mubr.msk.f32.mxu1 %vm33380_vm2, %v33379_v3 }
 0xd7b   :  { %31251 = vmatprep.subr.mxu1 %v33379_v3  ;;  %v7099_v48 = vand.u32 4294901760, %v7098_v2 }
 0xd7c   :  { %31252 = vmatpush3.msra.mxu1 %v33414_v5 }
 0xd7d   :  { %31254 = vmatmul.mubr.f32.vlgmr.msra.gmra.mxu1 %v7099_v48  ;;  %31263 = vmatprep.subr.mxu1 %v33379_v3  ;;  %v7100_v35 = vsub.f32 %v7098_v2, %v7099_v48 }
 0xd7e   :  { %31264 = vmatpush3.msra.mxu1 %v33411_v4  ;;  %31267 = vmatprep.mubr.msk.f32.mxu1 %vm33380_vm2, %v33379_v3 }
 0xd7f   :  { %31265 = vmatprep.subr.mxu1 %v33379_v3  ;;  %v7101_v49 = vand.u32 4294901760, %v7100_v35 }
 0xd80   :  { %31266 = vmatpush3.msra.mxu1 %v33414_v5 }
 0xd81   :  { %31233 = vmatmul.mubr.f32.vlgmr.msra.gmra.mxu0 %v7101_v49  ;;  %31268 = vmatmul.mubr.f32.vlgmr.msra.gmra.mxu1 %v7097_v32 }
 0xd82   :  { %31243 = vmatpush3.msra.mxu0 %v33426_v7  ;;  %31246 = vmatprep.mubr.msk.f32.mxu0 %vm33380_vm2, %v33379_v3 }
 0xd83   :  { %31244 = vmatprep.subr.mxu0 %v33379_v3  ;;  %31277 = vmatprep.subr.mxu1 %v33379_v3 }
 0xd84   :  { %31245 = vmatpush3.msra.mxu0 %v33429_v9  ;;  %31278 = vmatpush3.msra.mxu1 %v33508_v29 }
 0xd85   :  { %31247 = vmatmul.mubr.f32.vlgmr.msra.gmra.mxu0 %v7098_v2  ;;  %31256 = vmatprep.subr.mxu0 %v33379_v3 }
 0xd86   :  { %31257 = vmatpush3.msra.mxu0 %v33434_v10  ;;  %31260 = vmatprep.mubr.msk.f32.mxu0 %vm33380_vm2, %v33379_v3 }
 0xd87   :  { %31258 = vmatprep.subr.mxu0 %v33379_v3  ;;  %31279 = vmatprep.subr.mxu1 %v33379_v3 }
 0xd88   :  { %31259 = vmatpush3.msra.mxu0 %v33437_v12  ;;  %31280 = vmatpush3.msra.mxu1 %v33513_v31 }
 0xd89   :  { %31261 = vmatmul.mubr.f32.vlgmr.msra.gmra.mxu0 %v7097_v32  ;;  %31281 = vmatprep.mubr.msk.f32.mxu1 %vm33380_vm2, %v33379_v3 }
 0xd8a   :  { %31291 = vmatprep.subr.mxu1 %v33379_v3  ;;  %31270 = vmatprep.subr.mxu0 %v33379_v3 }
 0xd8b   :  { %31271 = vmatpush3.msra.mxu0 %v33483_v21  ;;  %31274 = vmatprep.mubr.msk.f32.mxu0 %vm33380_vm2, %v33379_v3 }
 0xd8c   :  { %31272 = vmatprep.subr.mxu0 %v33379_v3 }
 0xd8d   :  { %31273 = vmatpush3.msra.mxu0 %v33491_v24 }
 0xd8e   :  { %31284 = vmatprep.subr.mxu0 %v33379_v3 }
 0xe39   :  { %v7184_v50 = vpop.f32.mrf.mxu1 }
 0xe3b   :  { %v31241_v51 = vpop.f32.mrf.mxu1 }
 0xe3d   :  { %v7335_v52 = vpop.f32.mrf.mxu1 }
 0xe3f   :  { %v31255_v54 = vpop.f32.mrf.mxu1 }
 0xe41   :  { %v7103_v55 = vpop.f32.mrf.mxu0  ;;  %v7485_v56 = vpop.f32.mrf.mxu1 }
 0xe42   :  { %v7104_v57 = vadd.f32 %v33922_v37, %v7103_v55 }
 0xe43   :  { %v31234_v43 = vpop.f32.mrf.mxu0  ;;  %v31269_v58 = vpop.f32.mrf.mxu1 }
 0xe44   :  { %v7185_v59 = vadd.f32 %v7184_v50, %v7104_v57 }
 0xe45   :  { %v7260_v61 = vpop.f32.mrf.mxu0 }
 0xe46   :  { %v7261_v62 = vadd.f32 %v7260_v61, %v7185_v59 }
 0xe47   :  { %v31248_v1 = vpop.f32.mrf.mxu0 }
 0xe48   :  { %v7336_v14 = vadd.f32 %v7335_v52, %v7261_v62 }
 0xe49   :  { %v7412_v19 = vpop.f32.mrf.mxu0 }
 0xe4a   :  { %v7413_v22 = vadd.f32 %v7412_v19, %v7336_v14 }
 0xe4b   :  { %v31262_v27 = vpop.f32.mrf.mxu0 }
 0xe4c   :  { %v7486_v30 = vadd.f32 %v7485_v56, %v7413_v22 }
 0xe4e   :  { %v7490_v33 = vmul.f32 1.442695, %v7486_v30  ;;  %vm7489_vm13 = vcmp.gt.f32.partialorder %v7486_v30, 0.0 }
 0xe50   :  { %33269 = vpow2.f32 %v7490_v33 }
 0xe5d   :  { %v33270_v36 = vpop.eup %33269 }
 0xe5e   :  { %v29432_v38 = vadd.f32 -1.0, %v33270_v36 }
 0xe60   :  { %v7493_v34 = vsel %vm7489_vm13, %v7486_v30, %v29432_v38 }
 0xe61   :  { %v7495_v39 = vsel %vm39_vm1, %v7493_v34, 0 }
 0xe62   :  { %v7564_v37 = vand.u32 4294901760, %v7495_v39 }
 0xe64   :  { %31282 = vmatmul.mubr.f32.vlgmr.msra.gmra.mxu1 %v7564_v37  ;;  %v7565_v60 = vsub.f32 %v7495_v39, %v7564_v37 }
 0xe65   :  { %31292 = vmatpush3.msra.mxu1 %v33483_v21  ;;  %31295 = vmatprep.mubr.msk.f32.mxu1 %vm33380_vm2, %v33379_v3 }
 0xe66   :  { %31293 = vmatprep.subr.mxu1 %v33379_v3  ;;  %v7566_v40 = vand.u32 4294901760, %v7565_v60 }
 0xe67   :  { %31294 = vmatpush3.msra.mxu1 %v33491_v24 }
 0xe68   :  { %31296 = vmatmul.mubr.f32.vlgmr.msra.gmra.mxu1 %v7566_v40  ;;  %31305 = vmatprep.subr.mxu1 %v33379_v3  ;;  %v7567_v41 = vsub.f32 %v7565_v60, %v7566_v40 }
 0xe69   :  { %31306 = vmatpush3.msra.mxu1 %v33483_v21  ;;  %31309 = vmatprep.mubr.msk.f32.mxu1 %vm33380_vm2, %v33379_v3 }
 0xe6a   :  { %31307 = vmatprep.subr.mxu1 %v33379_v3  ;;  %v7568_v42 = vand.u32 4294901760, %v7567_v41 }
 0xe6b   :  { %31308 = vmatpush3.msra.mxu1 %v33491_v24 }
 0xe6c   :  { %31275 = vmatmul.mubr.f32.vlgmr.msra.gmra.mxu0 %v7568_v42  ;;  %31310 = vmatmul.mubr.f32.vlgmr.msra.gmra.mxu1 %v7564_v37 }
 0xe6d   :  { %31285 = vmatpush3.msra.mxu0 %v33489_v23  ;;  %31288 = vmatprep.mubr.msk.f32.mxu0 %vm33380_vm2, %v33379_v3 }
 0xe6e   :  { %31286 = vmatprep.subr.mxu0 %v33379_v3  ;;  %31319 = vmatprep.subr.mxu1 %v33379_v3 }
 0xe6f   :  { %31287 = vmatpush3.msra.mxu0 %v33499_v26  ;;  %31320 = vmatpush3.msra.mxu1 %v33581_v17 }
 0xe70   :  { %31289 = vmatmul.mubr.f32.vlgmr.msra.gmra.mxu0 %v7565_v60  ;;  %31298 = vmatprep.subr.mxu0 %v33379_v3 }
 0xe71   :  { %31299 = vmatpush3.msra.mxu0 %v33496_v25  ;;  %31302 = vmatprep.mubr.msk.f32.mxu0 %vm33380_vm2, %v33379_v3 }
 0xe72   :  { %31300 = vmatprep.subr.mxu0 %v33379_v3  ;;  %31321 = vmatprep.subr.mxu1 %v33379_v3 }
 0xe73   :  { %31301 = vmatpush3.msra.mxu0 %v33506_v28  ;;  %31322 = vmatpush3.msra.mxu1 %v33586_v20 }
 0xe74   :  { %31303 = vmatmul.mubr.f32.vlgmr.msra.gmra.mxu0 %v7564_v37  ;;  %31323 = vmatprep.mubr.msk.f32.mxu1 %vm33380_vm2, %v33379_v3 }
 0xe75   :  { %31333 = vmatprep.subr.mxu1 %v33379_v3  ;;  %31312 = vmatprep.subr.mxu0 %v33379_v3 }
 0xe76   :  { %31313 = vmatpush3.msra.mxu0 %v33559_v0  ;;  %31316 = vmatprep.mubr.msk.f32.mxu0 %vm33380_vm2, %v33379_v3 }
 0xe77   :  { %31314 = vmatprep.subr.mxu0 %v33379_v3 }
 0xe78   :  { %31315 = vmatpush3.msra.mxu0 %v33564_v8 }
 0xe79   :  { %31326 = vmatprep.subr.mxu0 %v33379_v3 }
 0xf24   :  { %v7651_v17 = vpop.f32.mrf.mxu1 }
 0xf26   :  { %v31283_v20 = vpop.f32.mrf.mxu1 }
 0xf28   :  { %v7802_v44 = vpop.f32.mrf.mxu1 }
 0xf2a   :  { %v31297_v45 = vpop.f32.mrf.mxu1 }
 0xf2c   :  { %v7570_v47 = vpop.f32.mrf.mxu0  ;;  %v7952_v32 = vpop.f32.mrf.mxu1 }
 0xf2d   :  { %v7571_v2 = vadd.f32 %v33965_v53, %v7570_v47 }
 0xf2e   :  { %v31276_v48 = vpop.f32.mrf.mxu0  ;;  %v31311_v35 = vpop.f32.mrf.mxu1 }
 0xf2f   :  { %v7652_v49 = vadd.f32 %v7651_v17, %v7571_v2 }
 0xf30   :  { %v7727_v50 = vpop.f32.mrf.mxu0 }
 0xf31   :  { %v7728_v51 = vadd.f32 %v7727_v50, %v7652_v49 }
 0xf32   :  { %v31290_v52 = vpop.f32.mrf.mxu0 }
 0xf33   :  { %v7803_v54 = vadd.f32 %v7802_v44, %v7728_v51  ;;  %v34288_v52 = vld [vmem:[%s36204_s1 + $0x30] ss:$0 sm:$0xff] }
 0xf34   :  { %v7879_v55 = vpop.f32.mrf.mxu0 }
 0xf35   :  { %v7880_v56 = vadd.f32 %v7879_v55, %v7803_v54 }
 0xf36   :  { %v31304_v57 = vpop.f32.mrf.mxu0 }
 0xf37   :  { %v7953_v43 = vadd.f32 %v7952_v32, %v7880_v56 }
 0xf39   :  { %v7957_v58 = vmul.f32 1.442695, %v7953_v43  ;;  %vm7956_vm14 = vcmp.gt.f32.partialorder %v7953_v43, 0.0 }
 0xf3b   :  { %33271 = vpow2.f32 %v7957_v58 }
 0xf48   :  { %v33272_v59 = vpop.eup %33271 }
 0xf49   :  { %v29433_v61 = vadd.f32 -1.0, %v33272_v59 }
 0xf4b   :  { %v7960_v62 = vsel %vm7956_vm14, %v7953_v43, %v29433_v61 }
 0xf4c   :  { %v7962_v1 = vsel %vm39_vm1, %v7960_v62, 0 }
 0xf4d   :  { %v8031_v53 = vand.u32 4294901760, %v7962_v1 }
 0xf4f   :  { %31324 = vmatmul.mubr.f32.vlgmr.msra.gmra.mxu1 %v8031_v53  ;;  %v8032_v14 = vsub.f32 %v7962_v1, %v8031_v53 }
 0xf50   :  { %31334 = vmatpush3.msra.mxu1 %v33559_v0  ;;  %31337 = vmatprep.mubr.msk.f32.mxu1 %vm33380_vm2, %v33379_v3 }
 0xf51   :  { %31335 = vmatprep.subr.mxu1 %v33379_v3  ;;  %v8033_v19 = vand.u32 4294901760, %v8032_v14 }
 0xf52   :  { %31336 = vmatpush3.msra.mxu1 %v33564_v8 }
 0xf53   :  { %31338 = vmatmul.mubr.f32.vlgmr.msra.gmra.mxu1 %v8033_v19  ;;  %31347 = vmatprep.subr.mxu1 %v33379_v3  ;;  %v8034_v22 = vsub.f32 %v8032_v14, %v8033_v19 }
 0xf54   :  { %31348 = vmatpush3.msra.mxu1 %v33559_v0  ;;  %31351 = vmatprep.mubr.msk.f32.mxu1 %vm33380_vm2, %v33379_v3 }
 0xf55   :  { %31349 = vmatprep.subr.mxu1 %v33379_v3  ;;  %v8035_v27 = vand.u32 4294901760, %v8034_v22 }
 0xf56   :  { %31350 = vmatpush3.msra.mxu1 %v33564_v8 }
 0xf57   :  { %31317 = vmatmul.mubr.f32.vlgmr.msra.gmra.mxu0 %v8035_v27  ;;  %31352 = vmatmul.mubr.f32.vlgmr.msra.gmra.mxu1 %v8031_v53 }
 0xf58   :  { %31327 = vmatpush3.msra.mxu0 %v33562_v6  ;;  %31330 = vmatprep.mubr.msk.f32.mxu0 %vm33380_vm2, %v33379_v3 }
 0xf59   :  { %31328 = vmatprep.subr.mxu0 %v33379_v3  ;;  %31361 = vmatprep.subr.mxu1 %v33379_v3 }
 0xf5a   :  { %31329 = vmatpush3.msra.mxu0 %v33572_v13  ;;  %31362 = vmatpush3.msra.mxu1 %v33444_v16 }
 0xf5b   :  { %31331 = vmatmul.mubr.f32.vlgmr.msra.gmra.mxu0 %v8032_v14  ;;  %31340 = vmatprep.subr.mxu0 %v33379_v3 }
 0xf5c   :  { %31341 = vmatpush3.msra.mxu0 %v33569_v11  ;;  %31344 = vmatprep.mubr.msk.f32.mxu0 %vm33380_vm2, %v33379_v3 }
 0xf5d   :  { %31342 = vmatprep.subr.mxu0 %v33379_v3  ;;  %31363 = vmatprep.subr.mxu1 %v33379_v3 }
 0xf5e   :  { %31343 = vmatpush3.msra.mxu0 %v33579_v15  ;;  %31364 = vmatpush3.msra.mxu1 %v33446_v18 }
 0xf5f   :  { %31345 = vmatmul.mubr.f32.vlgmr.msra.gmra.mxu0 %v8031_v53  ;;  %31365 = vmatprep.mubr.msk.f32.mxu1 %vm33380_vm2, %v33379_v3 }
 0xf60   :  { %31375 = vmatprep.subr.mxu1 %v33379_v3  ;;  %31354 = vmatprep.subr.mxu0 %v33379_v3 }
 0xf61   :  { %31355 = vmatpush3.msra.mxu0 %v33411_v4  ;;  %31358 = vmatprep.mubr.msk.f32.mxu0 %vm33380_vm2, %v33379_v3 }
 0xf62   :  { %31356 = vmatprep.subr.mxu0 %v33379_v3 }
 0xf63   :  { %31357 = vmatpush3.msra.mxu0 %v33414_v5 }
 0xf64   :  { %31368 = vmatprep.subr.mxu0 %v33379_v3 }
0x100f   :  { %v8118_v0 = vpop.f32.mrf.mxu1 }
0x1011   :  { %v31325_v6 = vpop.f32.mrf.mxu1 }
0x1013   :  { %v8269_v8 = vpop.f32.mrf.mxu1 }
0x1015   :  { %v31339_v11 = vpop.f32.mrf.mxu1 }
0x1017   :  { %v8037_v13 = vpop.f32.mrf.mxu0  ;;  %v8419_v15 = vpop.f32.mrf.mxu1 }
0x1018   :  { %v8038_v30 = vadd.f32 %v8037_v13, %v33637_v63 }
0x1019   :  { %v31318_v33 = vpop.f32.mrf.mxu0  ;;  %v31353_v36 = vpop.f32.mrf.mxu1 }
0x101a   :  { %v8119_v38 = vadd.f32 %v8118_v0, %v8038_v30  ;;  %v33336_v33 = vld [vmem:[%s36204_s1 + $0x28] sm:$0xff] }
0x101b   :  { %v8194_v34 = vpop.f32.mrf.mxu0  ;;  %v8427_v36 = vmul.f32 0.047619056, %v33336_v33 }
0x101c   :  { %v8195_v39 = vadd.f32 %v8194_v34, %v8119_v38  ;;  %v33337_v34 = vld [vmem:[%s36204_s1 + $0x20] sm:$0xff] }
0x101d   :  { %v31332_v37 = vpop.f32.mrf.mxu0  ;;  %v34323_v38 = vand.u32 4294901760, %v8427_v36 }
0x101e   :  { %v8270_v60 = vadd.f32 %v8269_v8, %v8195_v39  ;;  %v8426_v39 = vmul.f32 0.047619056, %v33337_v34 }
0x101f   :  { %v8346_v40 = vpop.f32.mrf.mxu0  ;;  %v34329_v37 = vsub.f32 %v8427_v36, %v34323_v38  ;;  %v33339_v36 = vld [vmem:[%s36204_s1 + $0x32] ss:$0 sm:$0xff] }
0x1020   :  { %v8347_v41 = vadd.f32 %v8346_v40, %v8270_v60  ;;  %v34331_v60 = vand.u32 4294901760, %v8426_v39  ;;  %v34404_v34 = vmul.f32 0.047619056, %v33339_v36 }
0x1021   :  { %v31346_v42 = vpop.f32.mrf.mxu0  ;;  %v34336_v40 = vand.u32 4294901760, %v34329_v37 }
0x1022   :  { %v8420_v17 = vadd.f32 %v8419_v15, %v8347_v41  ;;  %v34339_v41 = vsub.f32 %v8426_v39, %v34331_v60 }
0x1023   :  { %v9475_v42 = vsub.f32 %v34329_v37, %v34336_v40 }
0x1024   :  { %v34243_v20 = vadd.f32 %v8420_v17, %v34125_v46  ;;  %v34346_v17 = vand.u32 4294901760, %v34339_v41 }
0x1026   :  { %8425 = vst.msk [vmem:[#allocation2 + $0x8] sm:$0xf] %vm34_vm0, %v34243_v20  ;;  %v8430_v63 = vsel %vm39_vm1, %v34243_v20, 0 }
0x1027   :  { %v8499_v44 = vand.u32 4294901760, %v8430_v63 }
0x1029   :  { %v8500_v45 = vsub.f32 %v8430_v63, %v8499_v44  ;;  %31366 = vmatmul.mubr.f32.vlgmr.msra.gmra.mxu1 %v8499_v44  ;;  %v34348_v63 = vand.u32 4294901760, %v9475_v42 }
0x102a   :  { %31376 = vmatpush3.msra.mxu1 %v33411_v4  ;;  %31379 = vmatprep.mubr.msk.f32.mxu1 %vm33380_vm2, %v33379_v3 }
0x102b   :  { %31377 = vmatprep.subr.mxu1 %v33379_v3  ;;  %v8501_v47 = vand.u32 4294901760, %v8500_v45 }
0x102c   :  { %31378 = vmatpush3.msra.mxu1 %v33414_v5 }
0x102d   :  { %31380 = vmatmul.mubr.f32.vlgmr.msra.gmra.mxu1 %v8501_v47  ;;  %31389 = vmatprep.subr.mxu1 %v33379_v3  ;;  %v8502_v46 = vsub.f32 %v8500_v45, %v8501_v47 }
0x102e   :  { %31390 = vmatpush3.msra.mxu1 %v33411_v4  ;;  %31393 = vmatprep.mubr.msk.f32.mxu1 %vm33380_vm2, %v33379_v3 }
0x102f   :  { %31391 = vmatprep.subr.mxu1 %v33379_v3  ;;  %v8503_v32 = vand.u32 4294901760, %v8502_v46 }
0x1030   :  { %31392 = vmatpush3.msra.mxu1 %v33414_v5 }
0x1031   :  { %31359 = vmatmul.mubr.f32.vlgmr.msra.gmra.mxu0 %v8503_v32  ;;  %31394 = vmatmul.mubr.f32.vlgmr.msra.gmra.mxu1 %v8499_v44 }
0x1032   :  { %31369 = vmatpush3.msra.mxu0 %v33426_v7  ;;  %31372 = vmatprep.mubr.msk.f32.mxu0 %vm33380_vm2, %v33379_v3 }
0x1033   :  { %31370 = vmatprep.subr.mxu0 %v33379_v3  ;;  %31403 = vmatprep.subr.mxu1 %v33379_v3 }
0x1034   :  { %31371 = vmatpush3.msra.mxu0 %v33429_v9  ;;  %31404 = vmatpush3.msra.mxu1 %v33508_v29 }
0x1035   :  { %31373 = vmatmul.mubr.f32.vlgmr.msra.gmra.mxu0 %v8500_v45  ;;  %31382 = vmatprep.subr.mxu0 %v33379_v3 }
0x1036   :  { %31383 = vmatpush3.msra.mxu0 %v33434_v10  ;;  %31386 = vmatprep.mubr.msk.f32.mxu0 %vm33380_vm2, %v33379_v3 }
0x1037   :  { %31384 = vmatprep.subr.mxu0 %v33379_v3  ;;  %31405 = vmatprep.subr.mxu1 %v33379_v3 }
0x1038   :  { %31385 = vmatpush3.msra.mxu0 %v33437_v12  ;;  %31406 = vmatpush3.msra.mxu1 %v33513_v31 }
0x1039   :  { %31387 = vmatmul.mubr.f32.vlgmr.msra.gmra.mxu0 %v8499_v44  ;;  %31407 = vmatprep.mubr.msk.f32.mxu1 %vm33380_vm2, %v33379_v3  ;;  %v9482_v44 = vsub.f32 %v34339_v41, %v34346_v17 }
0x103a   :  { %31417 = vmatprep.subr.mxu1 %v33379_v3  ;;  %31396 = vmatprep.subr.mxu0 %v33379_v3 }
0x103b   :  { %31397 = vmatpush3.msra.mxu0 %v33483_v21  ;;  %31400 = vmatprep.mubr.msk.f32.mxu0 %vm33380_vm2, %v33379_v3  ;;  %v34353_v45 = vand.u32 4294901760, %v9482_v44 }
0x103c   :  { %31398 = vmatprep.subr.mxu0 %v33379_v3 }
0x103d   :  { %31399 = vmatpush3.msra.mxu0 %v33491_v24 }
0x103e   :  { %31410 = vmatprep.subr.mxu0 %v33379_v3 }
0x10e9   :  { %v8586_v2 = vpop.f32.mrf.mxu1 }
0x10eb   :  { %v31367_v48 = vpop.f32.mrf.mxu1 }
0x10ed   :  { %v8737_v35 = vpop.f32.mrf.mxu1 }
0x10ef   :  { %v31381_v49 = vpop.f32.mrf.mxu1 }
0x10f0   :  { %v34361_v49 = vld [vmem:[%s36204_s1 + $0x31] ss:$0 sm:$0xff] }
0x10f1   :  { %v8505_v50 = vpop.f32.mrf.mxu0  ;;  %v8887_v51 = vpop.f32.mrf.mxu1 }
0x10f2   :  { %v8506_v54 = vadd.f32 %v34288_v52, %v8505_v50 }
0x10f3   :  { %v31360_v55 = vpop.f32.mrf.mxu0  ;;  %v31395_v56 = vpop.f32.mrf.mxu1 }
0x10f4   :  { %v8587_v57 = vadd.f32 %v8586_v2, %v8506_v54 }
0x10f5   :  { %v8662_v43 = vpop.f32.mrf.mxu0 }
0x10f6   :  { %v8663_v58 = vadd.f32 %v8662_v43, %v8587_v57 }
0x10f7   :  { %v31374_v59 = vpop.f32.mrf.mxu0 }
0x10f8   :  { %v8738_v61 = vadd.f32 %v8737_v35, %v8663_v58 }
0x10f9   :  { %v8814_v62 = vpop.f32.mrf.mxu0 }
0x10fa   :  { %v8815_v1 = vadd.f32 %v8814_v62, %v8738_v61 }
0x10fb   :  { %v31388_v53 = vpop.f32.mrf.mxu0 }
0x10fc   :  { %v8888_v14 = vadd.f32 %v8887_v51, %v8815_v1 }
0x10fe   :  { %v8892_v19 = vmul.f32 1.442695, %v8888_v14  ;;  %vm8891_vm15 = vcmp.gt.f32.partialorder %v8888_v14, 0.0 }
0x1100   :  { %33273 = vpow2.f32 %v8892_v19 }
0x110d   :  { %v33274_v22 = vpop.eup %33273 }
0x110e   :  { %v29434_v27 = vadd.f32 -1.0, %v33274_v22 }
0x1110   :  { %v8895_v0 = vsel %vm8891_vm15, %v8888_v14, %v29434_v27 }
0x1111   :  { %v8897_v6 = vsel %vm39_vm1, %v8895_v0, 0 }
0x1112   :  { %v8966_v8 = vand.u32 4294901760, %v8897_v6 }
0x1114   :  { %v8967_v11 = vsub.f32 %v8897_v6, %v8966_v8  ;;  %31408 = vmatmul.mubr.f32.vlgmr.msra.gmra.mxu1 %v8966_v8 }
0x1115   :  { %31418 = vmatpush3.msra.mxu1 %v33483_v21  ;;  %31421 = vmatprep.mubr.msk.f32.mxu1 %vm33380_vm2, %v33379_v3 }
0x1116   :  { %31419 = vmatprep.subr.mxu1 %v33379_v3  ;;  %v8968_v13 = vand.u32 4294901760, %v8967_v11 }
0x1117   :  { %31420 = vmatpush3.msra.mxu1 %v33491_v24 }
0x1118   :  { %31422 = vmatmul.mubr.f32.vlgmr.msra.gmra.mxu1 %v8968_v13  ;;  %31431 = vmatprep.subr.mxu1 %v33379_v3  ;;  %v8969_v15 = vsub.f32 %v8967_v11, %v8968_v13 }
0x1119   :  { %31432 = vmatpush3.msra.mxu1 %v33483_v21  ;;  %31435 = vmatprep.mubr.msk.f32.mxu1 %vm33380_vm2, %v33379_v3 }
0x111a   :  { %31433 = vmatprep.subr.mxu1 %v33379_v3  ;;  %v8970_v30 = vand.u32 4294901760, %v8969_v15 }
0x111b   :  { %31434 = vmatpush3.msra.mxu1 %v33491_v24 }
0x111c   :  { %31401 = vmatmul.mubr.f32.vlgmr.msra.gmra.mxu0 %v8970_v30  ;;  %31436 = vmatmul.mubr.f32.vlgmr.msra.gmra.mxu1 %v8966_v8 }
0x111d   :  { %31411 = vmatpush3.msra.mxu0 %v33489_v23  ;;  %31414 = vmatprep.mubr.msk.f32.mxu0 %vm33380_vm2, %v33379_v3 }
0x111e   :  { %31412 = vmatprep.subr.mxu0 %v33379_v3  ;;  %31445 = vmatprep.subr.mxu1 %v33379_v3 }
0x111f   :  { %31413 = vmatpush3.msra.mxu0 %v33499_v26  ;;  %31449 = vmatprep.mubr.msk.f32.mxu1 %vm33380_vm2, %v33379_v3 }
0x1120   :  { %31415 = vmatmul.mubr.f32.vlgmr.msra.gmra.mxu0 %v8967_v11  ;;  %31424 = vmatprep.subr.mxu0 %v33379_v3 }
0x1121   :  { %31425 = vmatpush3.msra.mxu0 %v33496_v25  ;;  %31428 = vmatprep.mubr.msk.f32.mxu0 %vm33380_vm2, %v33379_v3 }
0x1122   :  { %31426 = vmatprep.subr.mxu0 %v33379_v3  ;;  %31446 = vmatpush3.msra.mxu1 %v34348_v63 }
0x1123   :  { %31427 = vmatpush3.msra.mxu0 %v33506_v28  ;;  %31447 = vmatprep.subr.mxu1 %v33379_v3 }
0x1124   :  { %31429 = vmatmul.mubr.f32.vlgmr.msra.gmra.mxu0 %v8966_v8  ;;  %31438 = vmatprep.subr.mxu0 %v33379_v3 }
0x1125   :  { %31442 = vmatprep.mubr.msk.f32.mxu0 %vm33380_vm2, %v33379_v3  ;;  %31439 = vmatpush3.msra.mxu0 %v34323_v38 }
0x1126   :  { %31440 = vmatprep.subr.mxu0 %v33379_v3  ;;  %31448 = vmatpush3.msra.mxu1 %v34353_v45 }
0x1127   :  { %31441 = vmatpush3.msra.mxu0 %v34331_v60  ;;  %31459 = vmatprep.subr.mxu1 %v33379_v3 }
0x1128   :  { %31452 = vmatprep.subr.mxu0 %v33379_v3 }
0x11d4   :  { %v9053_v47 = vpop.f32.mrf.mxu1 }
0x11d6   :  { %v31409_v46 = vpop.f32.mrf.mxu1 }
0x11d8   :  { %v9204_v32 = vpop.f32.mrf.mxu1 }
0x11da   :  { %v31423_v2 = vpop.f32.mrf.mxu1 }
0x11dc   :  { %v8972_v48 = vpop.f32.mrf.mxu0  ;;  %v9354_v35 = vpop.f32.mrf.mxu1 }
0x11dd   :  { %v8973_v50 = vadd.f32 %v34361_v49, %v8972_v48 }
0x11de   :  { %v31402_v51 = vpop.f32.mrf.mxu0  ;;  %v31437_v54 = vpop.f32.mrf.mxu1 }
0x11df   :  { %v9054_v55 = vadd.f32 %v9053_v47, %v8973_v50 }
0x11e0   :  { %v9129_v56 = vpop.f32.mrf.mxu0 }
0x11e1   :  { %v9130_v57 = vadd.f32 %v9129_v56, %v9054_v55 }
0x11e2   :  { %v31416_v43 = vpop.f32.mrf.mxu0 }
0x11e3   :  { %v9205_v58 = vadd.f32 %v9204_v32, %v9130_v57 }
0x11e4   :  { %v9281_v59 = vpop.f32.mrf.mxu0 }
0x11e5   :  { %v9282_v61 = vadd.f32 %v9281_v59, %v9205_v58 }
0x11e6   :  { %v31430_v62 = vpop.f32.mrf.mxu0 }
0x11e7   :  { %v9355_v1 = vadd.f32 %v9354_v35, %v9282_v61 }
0x11e9   :  { %v9359_v53 = vmul.f32 1.442695, %v9355_v1  ;;  %vm9358_vm3 = vcmp.gt.f32.partialorder %v9355_v1, 0.0 }
0x11eb   :  { %33275 = vpow2.f32 %v9359_v53 }
0x11f8   :  { %v33276_v14 = vpop.eup %33275 }
0x11f9   :  { %v29435_v19 = vadd.f32 -1.0, %v33276_v14 }
0x11fb   :  { %v9362_v22 = vsel %vm9358_vm3, %v9355_v1, %v29435_v19 }
0x11fc   :  { %v9364_v27 = vsel %vm39_vm1, %v9362_v22, 0 }
0x11fd   :  { %v9433_v0 = vand.u32 4294901760, %v9364_v27 }
0x11ff   :  { %v9434_v6 = vsub.f32 %v9364_v27, %v9433_v0  ;;  %31450 = vmatmul.mubr.f32.vlgmr.msra.gmra.mxu1 %v9433_v0 }
0x1200   :  { %31460 = vmatpush3.msra.mxu1 %v34323_v38  ;;  %31463 = vmatprep.mubr.msk.f32.mxu1 %vm33380_vm2, %v33379_v3 }
0x1201   :  { %31461 = vmatprep.subr.mxu1 %v33379_v3  ;;  %v9435_v8 = vand.u32 4294901760, %v9434_v6 }
0x1202   :  { %31462 = vmatpush3.msra.mxu1 %v34331_v60 }
0x1203   :  { %31464 = vmatmul.mubr.f32.vlgmr.msra.gmra.mxu1 %v9435_v8  ;;  %31473 = vmatprep.subr.mxu1 %v33379_v3  ;;  %v9436_v11 = vsub.f32 %v9434_v6, %v9435_v8 }
0x1204   :  { %31474 = vmatpush3.msra.mxu1 %v34323_v38  ;;  %31477 = vmatprep.mubr.msk.f32.mxu1 %vm33380_vm2, %v33379_v3 }
0x1205   :  { %31475 = vmatprep.subr.mxu1 %v33379_v3  ;;  %v9437_v13 = vand.u32 4294901760, %v9436_v11 }
0x1206   :  { %31476 = vmatpush3.msra.mxu1 %v34331_v60 }
0x1207   :  { %31443 = vmatmul.mubr.f32.vlgmr.msra.gmra.mxu0 %v9437_v13  ;;  %31478 = vmatmul.mubr.f32.vlgmr.msra.gmra.mxu1 %v9433_v0 }
0x1208   :  { %31453 = vmatpush3.msra.mxu0 %v34329_v37  ;;  %31456 = vmatprep.mubr.msk.f32.mxu0 %vm33380_vm2, %v33379_v3 }
0x1209   :  { %31454 = vmatprep.subr.mxu0 %v33379_v3  ;;  %31487 = vmatprep.subr.mxu1 %v33379_v3 }
0x120a   :  { %31455 = vmatpush3.msra.mxu0 %v34339_v41  ;;  %31488 = vmatpush3.msra.mxu1 %v33444_v16 }
0x120b   :  { %31457 = vmatmul.mubr.f32.vlgmr.msra.gmra.mxu0 %v9434_v6  ;;  %31466 = vmatprep.subr.mxu0 %v33379_v3 }
0x120c   :  { %31467 = vmatpush3.msra.mxu0 %v34336_v40  ;;  %31470 = vmatprep.mubr.msk.f32.mxu0 %vm33380_vm2, %v33379_v3 }
0x120d   :  { %31468 = vmatprep.subr.mxu0 %v33379_v3  ;;  %31489 = vmatprep.subr.mxu1 %v33379_v3 }
0x120e   :  { %31469 = vmatpush3.msra.mxu0 %v34346_v17  ;;  %31490 = vmatpush3.msra.mxu1 %v33446_v18 }
0x120f   :  { %31471 = vmatmul.mubr.f32.vlgmr.msra.gmra.mxu0 %v9433_v0  ;;  %31491 = vmatprep.mubr.msk.f32.mxu1 %vm33380_vm2, %v33379_v3 }
0x1210   :  { %31501 = vmatprep.subr.mxu1 %v33379_v3  ;;  %31480 = vmatprep.subr.mxu0 %v33379_v3 }
0x1211   :  { %31481 = vmatpush3.msra.mxu0 %v33411_v4  ;;  %31484 = vmatprep.mubr.msk.f32.mxu0 %vm33380_vm2, %v33379_v3 }
0x1212   :  { %31482 = vmatprep.subr.mxu0 %v33379_v3 }
0x1213   :  { %31483 = vmatpush3.msra.mxu0 %v33414_v5 }
0x1214   :  { %31494 = vmatprep.subr.mxu0 %v33379_v3 }
0x12bf   :  { %v9520_v15 = vpop.f32.mrf.mxu1 }
0x12c1   :  { %v31451_v30 = vpop.f32.mrf.mxu1 }
0x12c3   :  { %v9671_v33 = vpop.f32.mrf.mxu1 }
0x12c5   :  { %v31465_v39 = vpop.f32.mrf.mxu1 }
0x12c7   :  { %v9439_v42 = vpop.f32.mrf.mxu0  ;;  %v9821_v44 = vpop.f32.mrf.mxu1 }
0x12c8   :  { %v9440_v47 = vadd.f32 %v9439_v42, %v34404_v34 }
0x12c9   :  { %v31444_v46 = vpop.f32.mrf.mxu0  ;;  %v31479_v32 = vpop.f32.mrf.mxu1 }
0x12ca   :  { %v9521_v2 = vadd.f32 %v9520_v15, %v9440_v47 }
0x12cb   :  { %v9596_v48 = vpop.f32.mrf.mxu0 }
0x12cc   :  { %v9597_v35 = vadd.f32 %v9596_v48, %v9521_v2 }
0x12cd   :  { %v31458_v50 = vpop.f32.mrf.mxu0 }
0x12ce   :  { %v9672_v51 = vadd.f32 %v9671_v33, %v9597_v35 }
0x12cf   :  { %v9748_v54 = vpop.f32.mrf.mxu0 }
0x12d0   :  { %v9749_v55 = vadd.f32 %v9748_v54, %v9672_v51 }
0x12d1   :  { %v31472_v56 = vpop.f32.mrf.mxu0 }
0x12d2   :  { %v9822_v57 = vadd.f32 %v9821_v44, %v9749_v55 }
0x12d4   :  { %v34408_v43 = vadd.f32 %v9822_v57, %v34243_v20 }
0x12d6   :  { %v9827_v58 = vsel %vm39_vm1, %v34408_v43, 0 }
0x12d7   :  { %v9896_v59 = vand.u32 4294901760, %v9827_v58 }
0x12d9   :  { %v9897_v61 = vsub.f32 %v9827_v58, %v9896_v59  ;;  %31492 = vmatmul.mubr.f32.vlgmr.msra.gmra.mxu1 %v9896_v59 }
0x12da   :  { %31502 = vmatpush3.msra.mxu1 %v33411_v4  ;;  %31505 = vmatprep.mubr.msk.f32.mxu1 %vm33380_vm2, %v33379_v3 }
0x12db   :  { %v9898_v62 = vand.u32 4294901760, %v9897_v61  ;;  %31503 = vmatprep.subr.mxu1 %v33379_v3 }
0x12dc   :  { %31504 = vmatpush3.msra.mxu1 %v33414_v5 }
0x12dd   :  { %v9899_v1 = vsub.f32 %v9897_v61, %v9898_v62  ;;  %31506 = vmatmul.mubr.f32.vlgmr.msra.gmra.mxu1 %v9898_v62  ;;  %31515 = vmatprep.subr.mxu1 %v33379_v3 }
0x12de   :  { %31516 = vmatpush3.msra.mxu1 %v33411_v4  ;;  %31519 = vmatprep.mubr.msk.f32.mxu1 %vm33380_vm2, %v33379_v3 }
0x12df   :  { %31517 = vmatprep.subr.mxu1 %v33379_v3  ;;  %v9900_v20 = vand.u32 4294901760, %v9899_v1 }
0x12e0   :  { %31518 = vmatpush3.msra.mxu1 %v33414_v5 }
0x12e1   :  { %31485 = vmatmul.mubr.f32.vlgmr.msra.gmra.mxu0 %v9900_v20  ;;  %31520 = vmatmul.mubr.f32.vlgmr.msra.gmra.mxu1 %v9896_v59 }
0x12e2   :  { %31495 = vmatpush3.msra.mxu0 %v33426_v7  ;;  %31498 = vmatprep.mubr.msk.f32.mxu0 %vm33380_vm2, %v33379_v3 }
0x12e3   :  { %31496 = vmatprep.subr.mxu0 %v33379_v3  ;;  %31529 = vmatprep.subr.mxu1 %v33379_v3 }
0x12e4   :  { %31497 = vmatpush3.msra.mxu0 %v33429_v9  ;;  %31530 = vmatpush3.msra.mxu1 %v33508_v29 }
0x12e5   :  { %31499 = vmatmul.mubr.f32.vlgmr.msra.gmra.mxu0 %v9897_v61  ;;  %31508 = vmatprep.subr.mxu0 %v33379_v3 }
0x12e6   :  { %31509 = vmatpush3.msra.mxu0 %v33434_v10  ;;  %31512 = vmatprep.mubr.msk.f32.mxu0 %vm33380_vm2, %v33379_v3 }
0x12e7   :  { %31510 = vmatprep.subr.mxu0 %v33379_v3  ;;  %31531 = vmatprep.subr.mxu1 %v33379_v3 }
0x12e8   :  { %31511 = vmatpush3.msra.mxu0 %v33437_v12  ;;  %31532 = vmatpush3.msra.mxu1 %v33513_v31 }
0x12e9   :  { %31513 = vmatmul.mubr.f32.vlgmr.msra.gmra.mxu0 %v9896_v59  ;;  %31533 = vmatprep.mubr.msk.f32.mxu1 %vm33380_vm2, %v33379_v3 }
0x12ea   :  { %31543 = vmatprep.subr.mxu1 %v33379_v3  ;;  %31522 = vmatprep.subr.mxu0 %v33379_v3 }
0x12eb   :  { %31523 = vmatpush3.msra.mxu0 %v33483_v21  ;;  %31526 = vmatprep.mubr.msk.f32.mxu0 %vm33380_vm2, %v33379_v3 }
0x12ec   :  { %31524 = vmatprep.subr.mxu0 %v33379_v3 }
0x12ed   :  { %31525 = vmatpush3.msra.mxu0 %v33491_v24 }
0x12ee   :  { %31536 = vmatprep.subr.mxu0 %v33379_v3 }
0x1399   :  { %v9983_v53 = vpop.f32.mrf.mxu1 }
0x139b   :  { %v31493_v14 = vpop.f32.mrf.mxu1 }
0x139d   :  { %v10134_v19 = vpop.f32.mrf.mxu1 }
0x139f   :  { %v31507_v22 = vpop.f32.mrf.mxu1 }
0x13a1   :  { %v9902_v27 = vpop.f32.mrf.mxu0  ;;  %v10284_v0 = vpop.f32.mrf.mxu1 }
0x13a2   :  { %v9903_v6 = vadd.f32 %v34288_v52, %v9902_v27 }
0x13a3   :  { %v31486_v8 = vpop.f32.mrf.mxu0  ;;  %v31521_v11 = vpop.f32.mrf.mxu1 }
0x13a4   :  { %v9984_v13 = vadd.f32 %v9983_v53, %v9903_v6 }
0x13a5   :  { %v10059_v15 = vpop.f32.mrf.mxu0 }
0x13a6   :  { %v10060_v30 = vadd.f32 %v10059_v15, %v9984_v13 }
0x13a7   :  { %v31500_v33 = vpop.f32.mrf.mxu0 }
0x13a8   :  { %v10135_v36 = vadd.f32 %v10134_v19, %v10060_v30 }
0x13a9   :  { %v10211_v39 = vpop.f32.mrf.mxu0 }
0x13aa   :  { %v10212_v42 = vadd.f32 %v10211_v39, %v10135_v36 }
0x13ab   :  { %v31514_v44 = vpop.f32.mrf.mxu0 }
0x13ac   :  { %v10285_v47 = vadd.f32 %v10284_v0, %v10212_v42 }
0x13ae   :  { %v10289_v46 = vmul.f32 1.442695, %v10285_v47  ;;  %vm10288_vm4 = vcmp.gt.f32.partialorder %v10285_v47, 0.0 }
0x13b0   :  { %33277 = vpow2.f32 %v10289_v46 }
0x13bd   :  { %v33278_v32 = vpop.eup %33277 }
0x13be   :  { %v29436_v2 = vadd.f32 -1.0, %v33278_v32 }
0x13c0   :  { %v10292_v48 = vsel %vm10288_vm4, %v10285_v47, %v29436_v2 }
0x13c1   :  { %v10294_v35 = vsel %vm39_vm1, %v10292_v48, 0 }
0x13c2   :  { %v10363_v50 = vand.u32 4294901760, %v10294_v35 }
0x13c4   :  { %v10364_v51 = vsub.f32 %v10294_v35, %v10363_v50  ;;  %31534 = vmatmul.mubr.f32.vlgmr.msra.gmra.mxu1 %v10363_v50 }
0x13c5   :  { %31544 = vmatpush3.msra.mxu1 %v33483_v21  ;;  %31547 = vmatprep.mubr.msk.f32.mxu1 %vm33380_vm2, %v33379_v3 }
0x13c6   :  { %31545 = vmatprep.subr.mxu1 %v33379_v3  ;;  %v10365_v54 = vand.u32 4294901760, %v10364_v51 }
0x13c7   :  { %31546 = vmatpush3.msra.mxu1 %v33491_v24 }
0x13c8   :  { %31548 = vmatmul.mubr.f32.vlgmr.msra.gmra.mxu1 %v10365_v54  ;;  %31557 = vmatprep.subr.mxu1 %v33379_v3  ;;  %v10366_v55 = vsub.f32 %v10364_v51, %v10365_v54 }
0x13c9   :  { %31558 = vmatpush3.msra.mxu1 %v33483_v21  ;;  %31561 = vmatprep.mubr.msk.f32.mxu1 %vm33380_vm2, %v33379_v3 }
0x13ca   :  { %31559 = vmatprep.subr.mxu1 %v33379_v3  ;;  %v10367_v56 = vand.u32 4294901760, %v10366_v55 }
0x13cb   :  { %31560 = vmatpush3.msra.mxu1 %v33491_v24 }
0x13cc   :  { %31527 = vmatmul.mubr.f32.vlgmr.msra.gmra.mxu0 %v10367_v56  ;;  %31562 = vmatmul.mubr.f32.vlgmr.msra.gmra.mxu1 %v10363_v50 }
0x13cd   :  { %31537 = vmatpush3.msra.mxu0 %v33489_v23  ;;  %31540 = vmatprep.mubr.msk.f32.mxu0 %vm33380_vm2, %v33379_v3 }
0x13ce   :  { %31538 = vmatprep.subr.mxu0 %v33379_v3  ;;  %31571 = vmatprep.subr.mxu1 %v33379_v3 }
0x13cf   :  { %31539 = vmatpush3.msra.mxu0 %v33499_v26  ;;  %31572 = vmatpush3.msra.mxu1 %v34348_v63 }
0x13d0   :  { %31541 = vmatmul.mubr.f32.vlgmr.msra.gmra.mxu0 %v10364_v51  ;;  %31550 = vmatprep.subr.mxu0 %v33379_v3 }
0x13d1   :  { %31551 = vmatpush3.msra.mxu0 %v33496_v25  ;;  %31554 = vmatprep.mubr.msk.f32.mxu0 %vm33380_vm2, %v33379_v3 }
0x13d2   :  { %31552 = vmatprep.subr.mxu0 %v33379_v3  ;;  %31573 = vmatprep.subr.mxu1 %v33379_v3 }
0x13d3   :  { %31553 = vmatpush3.msra.mxu0 %v33506_v28  ;;  %31574 = vmatpush3.msra.mxu1 %v34353_v45 }
0x13d4   :  { %31555 = vmatmul.mubr.f32.vlgmr.msra.gmra.mxu0 %v10363_v50  ;;  %31575 = vmatprep.mubr.msk.f32.mxu1 %vm33380_vm2, %v33379_v3 }
0x13d5   :  { %31585 = vmatprep.subr.mxu1 %v33379_v3  ;;  %31564 = vmatprep.subr.mxu0 %v33379_v3 }
0x13d6   :  { %31565 = vmatpush3.msra.mxu0 %v34323_v38  ;;  %31568 = vmatprep.mubr.msk.f32.mxu0 %vm33380_vm2, %v33379_v3 }
0x13d7   :  { %31566 = vmatprep.subr.mxu0 %v33379_v3 }
0x13d8   :  { %31567 = vmatpush3.msra.mxu0 %v34331_v60 }
0x13d9   :  { %31578 = vmatprep.subr.mxu0 %v33379_v3 }
0x1484   :  { %v10450_v57 = vpop.f32.mrf.mxu1 }
0x1486   :  { %v31535_v58 = vpop.f32.mrf.mxu1 }
0x1488   :  { %v10601_v59 = vpop.f32.mrf.mxu1 }
0x148a   :  { %v31549_v61 = vpop.f32.mrf.mxu1 }
0x148c   :  { %v10369_v62 = vpop.f32.mrf.mxu0  ;;  %v10751_v1 = vpop.f32.mrf.mxu1 }
0x148d   :  { %v10370_v20 = vadd.f32 %v34361_v49, %v10369_v62 }
0x148e   :  { %v31528_v53 = vpop.f32.mrf.mxu0  ;;  %v31563_v14 = vpop.f32.mrf.mxu1 }
0x148f   :  { %v10451_v19 = vadd.f32 %v10450_v57, %v10370_v20 }
0x1490   :  { %v10526_v22 = vpop.f32.mrf.mxu0 }
0x1491   :  { %v10527_v27 = vadd.f32 %v10526_v22, %v10451_v19 }
0x1492   :  { %v31542_v0 = vpop.f32.mrf.mxu0 }
0x1493   :  { %v10602_v6 = vadd.f32 %v10601_v59, %v10527_v27 }
0x1494   :  { %v10678_v8 = vpop.f32.mrf.mxu0 }
0x1495   :  { %v10679_v11 = vadd.f32 %v10678_v8, %v10602_v6 }
0x1496   :  { %v31556_v13 = vpop.f32.mrf.mxu0 }
0x1497   :  { %v10752_v15 = vadd.f32 %v10751_v1, %v10679_v11 }
0x1499   :  { %v10756_v30 = vmul.f32 1.442695, %v10752_v15  ;;  %vm10755_vm5 = vcmp.gt.f32.partialorder %v10752_v15, 0.0 }
0x149b   :  { %33279 = vpow2.f32 %v10756_v30 }
0x14a8   :  { %v33280_v33 = vpop.eup %33279 }
0x14a9   :  { %v29437_v36 = vadd.f32 -1.0, %v33280_v33 }
0x14ab   :  { %v10759_v39 = vsel %vm10755_vm5, %v10752_v15, %v29437_v36 }
0x14ac   :  { %v10761_v42 = vsel %vm39_vm1, %v10759_v39, 0 }
0x14ad   :  { %v10830_v44 = vand.u32 4294901760, %v10761_v42 }
0x14af   :  { %v10831_v47 = vsub.f32 %v10761_v42, %v10830_v44  ;;  %31576 = vmatmul.mubr.f32.vlgmr.msra.gmra.mxu1 %v10830_v44 }
0x14b0   :  { %31586 = vmatpush3.msra.mxu1 %v34323_v38  ;;  %31589 = vmatprep.mubr.msk.f32.mxu1 %vm33380_vm2, %v33379_v3 }
0x14b1   :  { %31587 = vmatprep.subr.mxu1 %v33379_v3  ;;  %v10832_v46 = vand.u32 4294901760, %v10831_v47 }
0x14b2   :  { %31588 = vmatpush3.msra.mxu1 %v34331_v60 }
0x14b3   :  { %31590 = vmatmul.mubr.f32.vlgmr.msra.gmra.mxu1 %v10832_v46  ;;  %31599 = vmatprep.subr.mxu1 %v33379_v3  ;;  %v10833_v32 = vsub.f32 %v10831_v47, %v10832_v46 }
0x14b4   :  { %31600 = vmatpush3.msra.mxu1 %v34323_v38  ;;  %31603 = vmatprep.mubr.msk.f32.mxu1 %vm33380_vm2, %v33379_v3 }
0x14b5   :  { %31601 = vmatprep.subr.mxu1 %v33379_v3  ;;  %v10834_v2 = vand.u32 4294901760, %v10833_v32 }
0x14b6   :  { %31602 = vmatpush3.msra.mxu1 %v34331_v60 }
0x14b7   :  { %31569 = vmatmul.mubr.f32.vlgmr.msra.gmra.mxu0 %v10834_v2  ;;  %31604 = vmatmul.mubr.f32.vlgmr.msra.gmra.mxu1 %v10830_v44 }
0x14b8   :  { %31579 = vmatpush3.msra.mxu0 %v34329_v37  ;;  %31582 = vmatprep.mubr.msk.f32.mxu0 %vm33380_vm2, %v33379_v3 }
0x14b9   :  { %31580 = vmatprep.subr.mxu0 %v33379_v3  ;;  %31613 = vmatprep.subr.mxu1 %v33379_v3 }
0x14ba   :  { %31581 = vmatpush3.msra.mxu0 %v34339_v41  ;;  %31614 = vmatpush3.msra.mxu1 %v33444_v16 }
0x14bb   :  { %31583 = vmatmul.mubr.f32.vlgmr.msra.gmra.mxu0 %v10831_v47  ;;  %31592 = vmatprep.subr.mxu0 %v33379_v3 }
0x14bc   :  { %31593 = vmatpush3.msra.mxu0 %v34336_v40  ;;  %31596 = vmatprep.mubr.msk.f32.mxu0 %vm33380_vm2, %v33379_v3 }
0x14bd   :  { %31594 = vmatprep.subr.mxu0 %v33379_v3  ;;  %31615 = vmatprep.subr.mxu1 %v33379_v3 }
0x14be   :  { %31595 = vmatpush3.msra.mxu0 %v34346_v17  ;;  %31616 = vmatpush3.msra.mxu1 %v33446_v18 }
0x14bf   :  { %31597 = vmatmul.mubr.f32.vlgmr.msra.gmra.mxu0 %v10830_v44  ;;  %31617 = vmatprep.mubr.msk.f32.mxu1 %vm33380_vm2, %v33379_v3 }
0x14c0   :  { %31627 = vmatprep.subr.mxu1 %v33379_v3  ;;  %31606 = vmatprep.subr.mxu0 %v33379_v3 }
0x14c1   :  { %31607 = vmatpush3.msra.mxu0 %v33411_v4  ;;  %31610 = vmatprep.mubr.msk.f32.mxu0 %vm33380_vm2, %v33379_v3 }
0x14c2   :  { %31608 = vmatprep.subr.mxu0 %v33379_v3 }
0x14c3   :  { %31609 = vmatpush3.msra.mxu0 %v33414_v5 }
0x14c4   :  { %31620 = vmatprep.subr.mxu0 %v33379_v3 }
0x156f   :  { %v10917_v48 = vpop.f32.mrf.mxu1 }
0x1571   :  { %v31577_v35 = vpop.f32.mrf.mxu1 }
0x1573   :  { %v11068_v50 = vpop.f32.mrf.mxu1 }
0x1575   :  { %v31591_v51 = vpop.f32.mrf.mxu1 }
0x1577   :  { %v10836_v54 = vpop.f32.mrf.mxu0  ;;  %v11218_v55 = vpop.f32.mrf.mxu1 }
0x1578   :  { %v10837_v56 = vadd.f32 %v10836_v54, %v34404_v34 }
0x1579   :  { %v31570_v57 = vpop.f32.mrf.mxu0  ;;  %v31605_v58 = vpop.f32.mrf.mxu1 }
0x157a   :  { %v10918_v59 = vadd.f32 %v10917_v48, %v10837_v56 }
0x157b   :  { %v10993_v61 = vpop.f32.mrf.mxu0 }
0x157c   :  { %v10994_v62 = vadd.f32 %v10993_v61, %v10918_v59 }
0x157d   :  { %v31584_v1 = vpop.f32.mrf.mxu0 }
0x157e   :  { %v11069_v20 = vadd.f32 %v11068_v50, %v10994_v62 }
0x157f   :  { %v11145_v53 = vpop.f32.mrf.mxu0 }
0x1580   :  { %v11146_v14 = vadd.f32 %v11145_v53, %v11069_v20 }
0x1581   :  { %v31598_v19 = vpop.f32.mrf.mxu0 }
0x1582   :  { %v11219_v22 = vadd.f32 %v11218_v55, %v11146_v14 }
0x1584   :  { %v34526_v27 = vadd.f32 %v11219_v22, %v34408_v43 }
0x1586   :  { %v11224_v0 = vsel %vm39_vm1, %v34526_v27, 0 }
0x1587   :  { %v11293_v6 = vand.u32 4294901760, %v11224_v0 }
0x1589   :  { %v11294_v8 = vsub.f32 %v11224_v0, %v11293_v6  ;;  %31618 = vmatmul.mubr.f32.vlgmr.msra.gmra.mxu1 %v11293_v6 }
0x158a   :  { %31628 = vmatpush3.msra.mxu1 %v33411_v4  ;;  %31631 = vmatprep.mubr.msk.f32.mxu1 %vm33380_vm2, %v33379_v3 }
0x158b   :  { %v11295_v11 = vand.u32 4294901760, %v11294_v8  ;;  %31629 = vmatprep.subr.mxu1 %v33379_v3 }
0x158c   :  { %31630 = vmatpush3.msra.mxu1 %v33414_v5 }
0x158d   :  { %v11296_v13 = vsub.f32 %v11294_v8, %v11295_v11  ;;  %31632 = vmatmul.mubr.f32.vlgmr.msra.gmra.mxu1 %v11295_v11  ;;  %31641 = vmatprep.subr.mxu1 %v33379_v3 }
0x158e   :  { %31642 = vmatpush3.msra.mxu1 %v33411_v4  ;;  %31645 = vmatprep.mubr.msk.f32.mxu1 %vm33380_vm2, %v33379_v3 }
0x158f   :  { %31643 = vmatprep.subr.mxu1 %v33379_v3  ;;  %v11297_v43 = vand.u32 4294901760, %v11296_v13 }
0x1590   :  { %31644 = vmatpush3.msra.mxu1 %v33414_v5 }
0x1591   :  { %31611 = vmatmul.mubr.f32.vlgmr.msra.gmra.mxu0 %v11297_v43  ;;  %31646 = vmatmul.mubr.f32.vlgmr.msra.gmra.mxu1 %v11293_v6 }
0x1592   :  { %31621 = vmatpush3.msra.mxu0 %v33426_v7  ;;  %31624 = vmatprep.mubr.msk.f32.mxu0 %vm33380_vm2, %v33379_v3 }
0x1593   :  { %31622 = vmatprep.subr.mxu0 %v33379_v3  ;;  %31655 = vmatprep.subr.mxu1 %v33379_v3 }
0x1594   :  { %31623 = vmatpush3.msra.mxu0 %v33429_v9  ;;  %31656 = vmatpush3.msra.mxu1 %v33508_v29 }
0x1595   :  { %31625 = vmatmul.mubr.f32.vlgmr.msra.gmra.mxu0 %v11294_v8  ;;  %31634 = vmatprep.subr.mxu0 %v33379_v3 }
0x1596   :  { %31635 = vmatpush3.msra.mxu0 %v33434_v10  ;;  %31638 = vmatprep.mubr.msk.f32.mxu0 %vm33380_vm2, %v33379_v3 }
0x1597   :  { %31636 = vmatprep.subr.mxu0 %v33379_v3  ;;  %31657 = vmatprep.subr.mxu1 %v33379_v3 }
0x1598   :  { %31637 = vmatpush3.msra.mxu0 %v33437_v12  ;;  %31658 = vmatpush3.msra.mxu1 %v33513_v31 }
0x1599   :  { %31639 = vmatmul.mubr.f32.vlgmr.msra.gmra.mxu0 %v11293_v6  ;;  %31659 = vmatprep.mubr.msk.f32.mxu1 %vm33380_vm2, %v33379_v3 }
0x159a   :  { %31669 = vmatprep.subr.mxu1 %v33379_v3  ;;  %31648 = vmatprep.subr.mxu0 %v33379_v3 }
0x159b   :  { %31649 = vmatpush3.msra.mxu0 %v33483_v21  ;;  %31652 = vmatprep.mubr.msk.f32.mxu0 %vm33380_vm2, %v33379_v3 }
0x159c   :  { %31650 = vmatprep.subr.mxu0 %v33379_v3 }
0x159d   :  { %31651 = vmatpush3.msra.mxu0 %v33491_v24 }
0x159e   :  { %31662 = vmatprep.subr.mxu0 %v33379_v3 }
0x1649   :  { %v11380_v15 = vpop.f32.mrf.mxu1 }
0x164b   :  { %v31619_v30 = vpop.f32.mrf.mxu1 }
0x164d   :  { %v11531_v33 = vpop.f32.mrf.mxu1 }
0x164f   :  { %v31633_v36 = vpop.f32.mrf.mxu1 }
0x1651   :  { %v11299_v39 = vpop.f32.mrf.mxu0  ;;  %v11681_v42 = vpop.f32.mrf.mxu1 }
0x1652   :  { %v11300_v44 = vadd.f32 %v34288_v52, %v11299_v39 }
0x1653   :  { %v31612_v47 = vpop.f32.mrf.mxu0  ;;  %v31647_v46 = vpop.f32.mrf.mxu1 }
0x1654   :  { %v11381_v32 = vadd.f32 %v11380_v15, %v11300_v44 }
0x1655   :  { %v11456_v2 = vpop.f32.mrf.mxu0 }
0x1656   :  { %v11457_v48 = vadd.f32 %v11456_v2, %v11381_v32 }
0x1657   :  { %v31626_v35 = vpop.f32.mrf.mxu0 }
0x1658   :  { %v11532_v50 = vadd.f32 %v11531_v33, %v11457_v48 }
0x1659   :  { %v11608_v51 = vpop.f32.mrf.mxu0 }
0x165a   :  { %v11609_v54 = vadd.f32 %v11608_v51, %v11532_v50 }
0x165b   :  { %v31640_v55 = vpop.f32.mrf.mxu0 }
0x165c   :  { %v11682_v56 = vadd.f32 %v11681_v42, %v11609_v54 }
0x165e   :  { %v11686_v57 = vmul.f32 1.442695, %v11682_v56  ;;  %vm11685_vm6 = vcmp.gt.f32.partialorder %v11682_v56, 0.0 }
0x1660   :  { %33281 = vpow2.f32 %v11686_v57 }
0x166d   :  { %v33282_v58 = vpop.eup %33281 }
0x166e   :  { %v29438_v59 = vadd.f32 -1.0, %v33282_v58 }
0x1670   :  { %v11689_v61 = vsel %vm11685_vm6, %v11682_v56, %v29438_v59 }
0x1671   :  { %v11691_v62 = vsel %vm39_vm1, %v11689_v61, 0 }
0x1672   :  { %v11760_v52 = vand.u32 4294901760, %v11691_v62 }
0x1674   :  { %v11761_v1 = vsub.f32 %v11691_v62, %v11760_v52  ;;  %31660 = vmatmul.mubr.f32.vlgmr.msra.gmra.mxu1 %v11760_v52 }
0x1675   :  { %31670 = vmatpush3.msra.mxu1 %v33483_v21  ;;  %31673 = vmatprep.mubr.msk.f32.mxu1 %vm33380_vm2, %v33379_v3 }
0x1676   :  { %31671 = vmatprep.subr.mxu1 %v33379_v3  ;;  %v11762_v20 = vand.u32 4294901760, %v11761_v1 }
0x1677   :  { %31672 = vmatpush3.msra.mxu1 %v33491_v24 }
0x1678   :  { %31674 = vmatmul.mubr.f32.vlgmr.msra.gmra.mxu1 %v11762_v20  ;;  %31683 = vmatprep.subr.mxu1 %v33379_v3  ;;  %v11763_v53 = vsub.f32 %v11761_v1, %v11762_v20 }
0x1679   :  { %31684 = vmatpush3.msra.mxu1 %v33483_v21  ;;  %31687 = vmatprep.mubr.msk.f32.mxu1 %vm33380_vm2, %v33379_v3 }
0x167a   :  { %31685 = vmatprep.subr.mxu1 %v33379_v3  ;;  %v11764_v14 = vand.u32 4294901760, %v11763_v53 }
0x167b   :  { %31686 = vmatpush3.msra.mxu1 %v33491_v24 }
0x167c   :  { %31653 = vmatmul.mubr.f32.vlgmr.msra.gmra.mxu0 %v11764_v14  ;;  %31688 = vmatmul.mubr.f32.vlgmr.msra.gmra.mxu1 %v11760_v52 }
0x167d   :  { %31663 = vmatpush3.msra.mxu0 %v33489_v23  ;;  %31666 = vmatprep.mubr.msk.f32.mxu0 %vm33380_vm2, %v33379_v3 }
0x167e   :  { %31664 = vmatprep.subr.mxu0 %v33379_v3  ;;  %31697 = vmatprep.subr.mxu1 %v33379_v3 }
0x167f   :  { %31665 = vmatpush3.msra.mxu0 %v33499_v26  ;;  %31698 = vmatpush3.msra.mxu1 %v34348_v63 }
0x1680   :  { %31667 = vmatmul.mubr.f32.vlgmr.msra.gmra.mxu0 %v11761_v1  ;;  %31676 = vmatprep.subr.mxu0 %v33379_v3 }
0x1681   :  { %31677 = vmatpush3.msra.mxu0 %v33496_v25  ;;  %31680 = vmatprep.mubr.msk.f32.mxu0 %vm33380_vm2, %v33379_v3 }
0x1682   :  { %31678 = vmatprep.subr.mxu0 %v33379_v3  ;;  %31699 = vmatprep.subr.mxu1 %v33379_v3 }
0x1683   :  { %31679 = vmatpush3.msra.mxu0 %v33506_v28  ;;  %31700 = vmatpush3.msra.mxu1 %v34353_v45 }
0x1684   :  { %31681 = vmatmul.mubr.f32.vlgmr.msra.gmra.mxu0 %v11760_v52  ;;  %31701 = vmatprep.mubr.msk.f32.mxu1 %vm33380_vm2, %v33379_v3 }
0x1685   :  { %31711 = vmatprep.subr.mxu1 %v33379_v3  ;;  %31690 = vmatprep.subr.mxu0 %v33379_v3 }
0x1686   :  { %31691 = vmatpush3.msra.mxu0 %v34323_v38  ;;  %31694 = vmatprep.mubr.msk.f32.mxu0 %vm33380_vm2, %v33379_v3 }
0x1687   :  { %31692 = vmatprep.subr.mxu0 %v33379_v3 }
0x1688   :  { %31693 = vmatpush3.msra.mxu0 %v34331_v60 }
0x1689   :  { %31704 = vmatprep.subr.mxu0 %v33379_v3 }
0x1734   :  { %v11847_v63 = vpop.f32.mrf.mxu1 }
0x1736   :  { %v31661_v45 = vpop.f32.mrf.mxu1 }
0x1738   :  { %v11998_v19 = vpop.f32.mrf.mxu1 }
0x173a   :  { %v31675_v22 = vpop.f32.mrf.mxu1 }
0x173c   :  { %v11766_v0 = vpop.f32.mrf.mxu0  ;;  %v12148_v6 = vpop.f32.mrf.mxu1 }
0x173d   :  { %v11767_v8 = vadd.f32 %v34361_v49, %v11766_v0 }
0x173e   :  { %v31654_v11 = vpop.f32.mrf.mxu0  ;;  %v31689_v13 = vpop.f32.mrf.mxu1 }
0x173f   :  { %v11848_v43 = vadd.f32 %v11847_v63, %v11767_v8 }
0x1740   :  { %v11923_v15 = vpop.f32.mrf.mxu0 }
0x1741   :  { %v11924_v30 = vadd.f32 %v11923_v15, %v11848_v43 }
0x1742   :  { %v31668_v33 = vpop.f32.mrf.mxu0 }
0x1743   :  { %v11999_v36 = vadd.f32 %v11998_v19, %v11924_v30  ;;  %v34689_v33 = vld [vmem:[%s36204_s1 + $0x30] ss:$0 sm:$0xff] }
0x1744   :  { %v12075_v39 = vpop.f32.mrf.mxu0 }
0x1745   :  { %v12076_v42 = vadd.f32 %v12075_v39, %v11999_v36 }
0x1746   :  { %v31682_v44 = vpop.f32.mrf.mxu0 }
0x1747   :  { %v12149_v47 = vadd.f32 %v12148_v6, %v12076_v42 }
0x1749   :  { %v12153_v46 = vmul.f32 1.442695, %v12149_v47  ;;  %vm12152_vm7 = vcmp.gt.f32.partialorder %v12149_v47, 0.0 }
0x174b   :  { %33283 = vpow2.f32 %v12153_v46 }
0x1758   :  { %v33284_v32 = vpop.eup %33283 }
0x1759   :  { %v29439_v2 = vadd.f32 -1.0, %v33284_v32 }
0x175b   :  { %v12156_v48 = vsel %vm12152_vm7, %v12149_v47, %v29439_v2 }
0x175c   :  { %v12158_v35 = vsel %vm39_vm1, %v12156_v48, 0 }
0x175d   :  { %v12227_v49 = vand.u32 4294901760, %v12158_v35 }
0x175f   :  { %v12228_v50 = vsub.f32 %v12158_v35, %v12227_v49  ;;  %31702 = vmatmul.mubr.f32.vlgmr.msra.gmra.mxu1 %v12227_v49 }
0x1760   :  { %31712 = vmatpush3.msra.mxu1 %v34323_v38  ;;  %31715 = vmatprep.mubr.msk.f32.mxu1 %vm33380_vm2, %v33379_v3 }
0x1761   :  { %31713 = vmatprep.subr.mxu1 %v33379_v3  ;;  %v12229_v51 = vand.u32 4294901760, %v12228_v50 }
0x1762   :  { %31714 = vmatpush3.msra.mxu1 %v34331_v60 }
0x1763   :  { %31716 = vmatmul.mubr.f32.vlgmr.msra.gmra.mxu1 %v12229_v51  ;;  %31725 = vmatprep.subr.mxu1 %v33379_v3  ;;  %v12230_v54 = vsub.f32 %v12228_v50, %v12229_v51 }
0x1764   :  { %31726 = vmatpush3.msra.mxu1 %v34323_v38  ;;  %31729 = vmatprep.mubr.msk.f32.mxu1 %vm33380_vm2, %v33379_v3 }
0x1765   :  { %31727 = vmatprep.subr.mxu1 %v33379_v3  ;;  %v12231_v55 = vand.u32 4294901760, %v12230_v54 }
0x1766   :  { %31728 = vmatpush3.msra.mxu1 %v34331_v60 }
0x1767   :  { %31695 = vmatmul.mubr.f32.vlgmr.msra.gmra.mxu0 %v12231_v55  ;;  %31730 = vmatmul.mubr.f32.vlgmr.msra.gmra.mxu1 %v12227_v49 }
0x1768   :  { %31705 = vmatpush3.msra.mxu0 %v34329_v37  ;;  %31708 = vmatprep.mubr.msk.f32.mxu0 %vm33380_vm2, %v33379_v3 }
0x1769   :  { %31706 = vmatprep.subr.mxu0 %v33379_v3  ;;  %31739 = vmatprep.subr.mxu1 %v33379_v3 }
0x176a   :  { %31707 = vmatpush3.msra.mxu0 %v34339_v41  ;;  %31740 = vmatpush3.msra.mxu1 %v33444_v16 }
0x176b   :  { %31709 = vmatmul.mubr.f32.vlgmr.msra.gmra.mxu0 %v12228_v50  ;;  %31718 = vmatprep.subr.mxu0 %v33379_v3 }
0x176c   :  { %31719 = vmatpush3.msra.mxu0 %v34336_v40  ;;  %31722 = vmatprep.mubr.msk.f32.mxu0 %vm33380_vm2, %v33379_v3 }
0x176d   :  { %31720 = vmatprep.subr.mxu0 %v33379_v3  ;;  %31741 = vmatprep.subr.mxu1 %v33379_v3 }
0x176e   :  { %31721 = vmatpush3.msra.mxu0 %v34346_v17  ;;  %31742 = vmatpush3.msra.mxu1 %v33446_v18 }
0x176f   :  { %31723 = vmatmul.mubr.f32.vlgmr.msra.gmra.mxu0 %v12227_v49  ;;  %31743 = vmatprep.mubr.msk.f32.mxu1 %vm33380_vm2, %v33379_v3 }
0x1770   :  { %31753 = vmatprep.subr.mxu1 %v33379_v3  ;;  %31732 = vmatprep.subr.mxu0 %v33379_v3 }
0x1771   :  { %31733 = vmatpush3.msra.mxu0 %v33411_v4  ;;  %31736 = vmatprep.mubr.msk.f32.mxu0 %vm33380_vm2, %v33379_v3 }
0x1772   :  { %31734 = vmatprep.subr.mxu0 %v33379_v3 }
0x1773   :  { %31735 = vmatpush3.msra.mxu0 %v33414_v5 }
0x1774   :  { %31746 = vmatprep.subr.mxu0 %v33379_v3 }
0x181f   :  { %v12314_v38 = vpop.f32.mrf.mxu1 }
0x1821   :  { %v31703_v37 = vpop.f32.mrf.mxu1 }
0x1823   :  { %v12465_v60 = vpop.f32.mrf.mxu1 }
0x1825   :  { %v31717_v40 = vpop.f32.mrf.mxu1 }
0x1827   :  { %v12233_v41 = vpop.f32.mrf.mxu0  ;;  %v12615_v17 = vpop.f32.mrf.mxu1 }
0x1828   :  { %v12234_v56 = vadd.f32 %v12233_v41, %v34404_v34 }
0x1829   :  { %v31696_v57 = vpop.f32.mrf.mxu0  ;;  %v31731_v58 = vpop.f32.mrf.mxu1 }
0x182a   :  { %v12315_v59 = vadd.f32 %v12314_v38, %v12234_v56  ;;  %v33341_v57 = vld [vmem:[%s36204_s1 + $0x28] sm:$0xff] }
0x182b   :  { %v12390_v61 = vpop.f32.mrf.mxu0  ;;  %v12623_v58 = vmul.f32 0.047619045, %v33341_v57 }
0x182c   :  { %v12391_v62 = vadd.f32 %v12390_v61, %v12315_v59  ;;  %v33342_v61 = vld [vmem:[%s36204_s1 + $0x20] sm:$0xff] }
0x182d   :  { %v31710_v52 = vpop.f32.mrf.mxu0  ;;  %v34724_v59 = vand.u32 4294901760, %v12623_v58 }
0x182e   :  { %v12466_v1 = vadd.f32 %v12465_v60, %v12391_v62  ;;  %v12622_v62 = vmul.f32 0.047619045, %v33342_v61 }
0x182f   :  { %v12542_v20 = vpop.f32.mrf.mxu0  ;;  %v34730_v52 = vsub.f32 %v12623_v58, %v34724_v59  ;;  %v33344_v58 = vld [vmem:[%s36204_s1 + $0x32] ss:$0 sm:$0xff] }
0x1830   :  { %v12543_v53 = vadd.f32 %v12542_v20, %v12466_v1  ;;  %v34732_v1 = vand.u32 4294901760, %v12622_v62  ;;  %v34805_v61 = vmul.f32 0.047619045, %v33344_v58 }
0x1831   :  { %v31724_v14 = vpop.f32.mrf.mxu0  ;;  %v34737_v20 = vand.u32 4294901760, %v34730_v52 }
0x1832   :  { %v12616_v63 = vadd.f32 %v12615_v17, %v12543_v53  ;;  %v34740_v53 = vsub.f32 %v12622_v62, %v34732_v1 }
0x1833   :  { %v13671_v14 = vsub.f32 %v34730_v52, %v34737_v20 }
0x1834   :  { %v34644_v45 = vadd.f32 %v12616_v63, %v34526_v27  ;;  %v34747_v63 = vand.u32 4294901760, %v34740_v53 }
0x1836   :  { %12621 = vst.msk [vmem:[#allocation2 + $0xc] sm:$0xf] %vm34_vm0, %v34644_v45  ;;  %v12626_v34 = vsel %vm39_vm1, %v34644_v45, 0 }
0x1837   :  { %v12695_v19 = vand.u32 4294901760, %v12626_v34 }
0x1839   :  { %v12696_v22 = vsub.f32 %v12626_v34, %v12695_v19  ;;  %31744 = vmatmul.mubr.f32.vlgmr.msra.gmra.mxu1 %v12695_v19  ;;  %v34749_v34 = vand.u32 4294901760, %v13671_v14 }
0x183a   :  { %31754 = vmatpush3.msra.mxu1 %v33411_v4  ;;  %31757 = vmatprep.mubr.msk.f32.mxu1 %vm33380_vm2, %v33379_v3 }
0x183b   :  { %31755 = vmatprep.subr.mxu1 %v33379_v3  ;;  %v12697_v0 = vand.u32 4294901760, %v12696_v22 }
0x183c   :  { %31756 = vmatpush3.msra.mxu1 %v33414_v5 }
0x183d   :  { %31758 = vmatmul.mubr.f32.vlgmr.msra.gmra.mxu1 %v12697_v0  ;;  %31767 = vmatprep.subr.mxu1 %v33379_v3  ;;  %v12698_v27 = vsub.f32 %v12696_v22, %v12697_v0 }
0x183e   :  { %31768 = vmatpush3.msra.mxu1 %v33411_v4  ;;  %31771 = vmatprep.mubr.msk.f32.mxu1 %vm33380_vm2, %v33379_v3 }
0x183f   :  { %31769 = vmatprep.subr.mxu1 %v33379_v3  ;;  %v12699_v6 = vand.u32 4294901760, %v12698_v27 }
0x1840   :  { %31770 = vmatpush3.msra.mxu1 %v33414_v5 }
0x1841   :  { %31737 = vmatmul.mubr.f32.vlgmr.msra.gmra.mxu0 %v12699_v6  ;;  %31772 = vmatmul.mubr.f32.vlgmr.msra.gmra.mxu1 %v12695_v19 }
0x1842   :  { %31747 = vmatpush3.msra.mxu0 %v33426_v7  ;;  %31750 = vmatprep.mubr.msk.f32.mxu0 %vm33380_vm2, %v33379_v3 }
0x1843   :  { %31748 = vmatprep.subr.mxu0 %v33379_v3  ;;  %31781 = vmatprep.subr.mxu1 %v33379_v3 }
0x1844   :  { %31749 = vmatpush3.msra.mxu0 %v33429_v9  ;;  %31782 = vmatpush3.msra.mxu1 %v33508_v29 }
0x1845   :  { %31751 = vmatmul.mubr.f32.vlgmr.msra.gmra.mxu0 %v12696_v22  ;;  %31760 = vmatprep.subr.mxu0 %v33379_v3 }
0x1846   :  { %31761 = vmatpush3.msra.mxu0 %v33434_v10  ;;  %31764 = vmatprep.mubr.msk.f32.mxu0 %vm33380_vm2, %v33379_v3 }
0x1847   :  { %31762 = vmatprep.subr.mxu0 %v33379_v3  ;;  %31783 = vmatprep.subr.mxu1 %v33379_v3 }
0x1848   :  { %31763 = vmatpush3.msra.mxu0 %v33437_v12  ;;  %31784 = vmatpush3.msra.mxu1 %v33513_v31 }
0x1849   :  { %31765 = vmatmul.mubr.f32.vlgmr.msra.gmra.mxu0 %v12695_v19  ;;  %31785 = vmatprep.mubr.msk.f32.mxu1 %vm33380_vm2, %v33379_v3  ;;  %v13678_v19 = vsub.f32 %v34740_v53, %v34747_v63 }
0x184a   :  { %31795 = vmatprep.subr.mxu1 %v33379_v3  ;;  %31774 = vmatprep.subr.mxu0 %v33379_v3 }
0x184b   :  { %31775 = vmatpush3.msra.mxu0 %v33483_v21  ;;  %31778 = vmatprep.mubr.msk.f32.mxu0 %vm33380_vm2, %v33379_v3  ;;  %v34754_v22 = vand.u32 4294901760, %v13678_v19 }
0x184c   :  { %31776 = vmatprep.subr.mxu0 %v33379_v3 }
0x184d   :  { %31777 = vmatpush3.msra.mxu0 %v33491_v24 }
0x184e   :  { %31788 = vmatprep.subr.mxu0 %v33379_v3 }
0x18f9   :  { %v12782_v8 = vpop.f32.mrf.mxu1 }
0x18fb   :  { %v31745_v11 = vpop.f32.mrf.mxu1 }
0x18fd   :  { %v12933_v13 = vpop.f32.mrf.mxu1 }
0x18ff   :  { %v31759_v43 = vpop.f32.mrf.mxu1 }
0x1900   :  { %v34762_v43 = vld [vmem:[%s36204_s1 + $0x31] ss:$0 sm:$0xff] }
0x1901   :  { %v12701_v15 = vpop.f32.mrf.mxu0  ;;  %v13083_v30 = vpop.f32.mrf.mxu1 }
0x1902   :  { %v12702_v36 = vadd.f32 %v34689_v33, %v12701_v15 }
0x1903   :  { %v31738_v39 = vpop.f32.mrf.mxu0  ;;  %v31773_v42 = vpop.f32.mrf.mxu1 }
0x1904   :  { %v12783_v44 = vadd.f32 %v12782_v8, %v12702_v36 }
0x1905   :  { %v12858_v47 = vpop.f32.mrf.mxu0 }
0x1906   :  { %v12859_v46 = vadd.f32 %v12858_v47, %v12783_v44 }
0x1907   :  { %v31752_v32 = vpop.f32.mrf.mxu0 }
0x1908   :  { %v12934_v2 = vadd.f32 %v12933_v13, %v12859_v46 }
0x1909   :  { %v13010_v48 = vpop.f32.mrf.mxu0 }
0x190a   :  { %v13011_v35 = vadd.f32 %v13010_v48, %v12934_v2 }
0x190b   :  { %v31766_v49 = vpop.f32.mrf.mxu0 }
0x190c   :  { %v13084_v50 = vadd.f32 %v13083_v30, %v13011_v35 }
0x190e   :  { %v13088_v51 = vmul.f32 1.442695, %v13084_v50  ;;  %vm13087_vm8 = vcmp.gt.f32.partialorder %v13084_v50, 0.0 }
0x1910   :  { %33285 = vpow2.f32 %v13088_v51 }
0x191d   :  { %v33286_v54 = vpop.eup %33285 }
0x191e   :  { %v29440_v55 = vadd.f32 -1.0, %v33286_v54 }
0x1920   :  { %v13091_v38 = vsel %vm13087_vm8, %v13084_v50, %v29440_v55 }
0x1921   :  { %v13093_v37 = vsel %vm39_vm1, %v13091_v38, 0 }
0x1922   :  { %v13162_v60 = vand.u32 4294901760, %v13093_v37 }
0x1924   :  { %v13163_v40 = vsub.f32 %v13093_v37, %v13162_v60  ;;  %31786 = vmatmul.mubr.f32.vlgmr.msra.gmra.mxu1 %v13162_v60 }
0x1925   :  { %31796 = vmatpush3.msra.mxu1 %v33483_v21  ;;  %31799 = vmatprep.mubr.msk.f32.mxu1 %vm33380_vm2, %v33379_v3 }
0x1926   :  { %31797 = vmatprep.subr.mxu1 %v33379_v3  ;;  %v13164_v41 = vand.u32 4294901760, %v13163_v40 }
0x1927   :  { %31798 = vmatpush3.msra.mxu1 %v33491_v24 }
0x1928   :  { %31800 = vmatmul.mubr.f32.vlgmr.msra.gmra.mxu1 %v13164_v41  ;;  %31809 = vmatprep.subr.mxu1 %v33379_v3  ;;  %v13165_v17 = vsub.f32 %v13163_v40, %v13164_v41 }
0x1929   :  { %31810 = vmatpush3.msra.mxu1 %v33483_v21  ;;  %31813 = vmatprep.mubr.msk.f32.mxu1 %vm33380_vm2, %v33379_v3 }
0x192a   :  { %31811 = vmatprep.subr.mxu1 %v33379_v3  ;;  %v13166_v56 = vand.u32 4294901760, %v13165_v17 }
0x192b   :  { %31812 = vmatpush3.msra.mxu1 %v33491_v24 }
0x192c   :  { %31779 = vmatmul.mubr.f32.vlgmr.msra.gmra.mxu0 %v13166_v56  ;;  %31814 = vmatmul.mubr.f32.vlgmr.msra.gmra.mxu1 %v13162_v60 }
0x192d   :  { %31789 = vmatpush3.msra.mxu0 %v33489_v23  ;;  %31792 = vmatprep.mubr.msk.f32.mxu0 %vm33380_vm2, %v33379_v3 }
0x192e   :  { %31790 = vmatprep.subr.mxu0 %v33379_v3  ;;  %31823 = vmatprep.subr.mxu1 %v33379_v3 }
0x192f   :  { %31791 = vmatpush3.msra.mxu0 %v33499_v26  ;;  %31827 = vmatprep.mubr.msk.f32.mxu1 %vm33380_vm2, %v33379_v3 }
0x1930   :  { %31793 = vmatmul.mubr.f32.vlgmr.msra.gmra.mxu0 %v13163_v40  ;;  %31802 = vmatprep.subr.mxu0 %v33379_v3 }
0x1931   :  { %31803 = vmatpush3.msra.mxu0 %v33496_v25  ;;  %31806 = vmatprep.mubr.msk.f32.mxu0 %vm33380_vm2, %v33379_v3 }
0x1932   :  { %31804 = vmatprep.subr.mxu0 %v33379_v3  ;;  %31824 = vmatpush3.msra.mxu1 %v34749_v34 }
0x1933   :  { %31805 = vmatpush3.msra.mxu0 %v33506_v28  ;;  %31825 = vmatprep.subr.mxu1 %v33379_v3 }
0x1934   :  { %31807 = vmatmul.mubr.f32.vlgmr.msra.gmra.mxu0 %v13162_v60  ;;  %31816 = vmatprep.subr.mxu0 %v33379_v3 }
0x1935   :  { %31820 = vmatprep.mubr.msk.f32.mxu0 %vm33380_vm2, %v33379_v3  ;;  %31817 = vmatpush3.msra.mxu0 %v34724_v59 }
0x1936   :  { %31818 = vmatprep.subr.mxu0 %v33379_v3  ;;  %31826 = vmatpush3.msra.mxu1 %v34754_v22 }
0x1937   :  { %31819 = vmatpush3.msra.mxu0 %v34732_v1  ;;  %31837 = vmatprep.subr.mxu1 %v33379_v3 }
0x1938   :  { %31830 = vmatprep.subr.mxu0 %v33379_v3 }
0x19e4   :  { %v13249_v0 = vpop.f32.mrf.mxu1 }
0x19e6   :  { %v31787_v27 = vpop.f32.mrf.mxu1 }
0x19e8   :  { %v13400_v6 = vpop.f32.mrf.mxu1 }
0x19ea   :  { %v31801_v8 = vpop.f32.mrf.mxu1 }
0x19ec   :  { %v13168_v11 = vpop.f32.mrf.mxu0  ;;  %v13550_v13 = vpop.f32.mrf.mxu1 }
0x19ed   :  { %v13169_v15 = vadd.f32 %v34762_v43, %v13168_v11 }
0x19ee   :  { %v31780_v30 = vpop.f32.mrf.mxu0  ;;  %v31815_v36 = vpop.f32.mrf.mxu1 }
0x19ef   :  { %v13250_v39 = vadd.f32 %v13249_v0, %v13169_v15 }
0x19f0   :  { %v13325_v42 = vpop.f32.mrf.mxu0 }
0x19f1   :  { %v13326_v44 = vadd.f32 %v13325_v42, %v13250_v39 }
0x19f2   :  { %v31794_v47 = vpop.f32.mrf.mxu0 }
0x19f3   :  { %v13401_v46 = vadd.f32 %v13400_v6, %v13326_v44 }
0x19f4   :  { %v13477_v32 = vpop.f32.mrf.mxu0 }
0x19f5   :  { %v13478_v2 = vadd.f32 %v13477_v32, %v13401_v46 }
0x19f6   :  { %v31808_v48 = vpop.f32.mrf.mxu0 }
0x19f7   :  { %v13551_v35 = vadd.f32 %v13550_v13, %v13478_v2 }
0x19f9   :  { %v13555_v49 = vmul.f32 1.442695, %v13551_v35  ;;  %vm13554_vm9 = vcmp.gt.f32.partialorder %v13551_v35, 0.0 }
0x19fb   :  { %33287 = vpow2.f32 %v13555_v49 }
0x1a08   :  { %v33288_v50 = vpop.eup %33287 }
0x1a09   :  { %v29441_v51 = vadd.f32 -1.0, %v33288_v50 }
0x1a0b   :  { %v13558_v54 = vsel %vm13554_vm9, %v13551_v35, %v29441_v51 }
0x1a0c   :  { %v13560_v55 = vsel %vm39_vm1, %v13558_v54, 0 }
0x1a0d   :  { %v13629_v38 = vand.u32 4294901760, %v13560_v55 }
0x1a0f   :  { %v13630_v37 = vsub.f32 %v13560_v55, %v13629_v38  ;;  %31828 = vmatmul.mubr.f32.vlgmr.msra.gmra.mxu1 %v13629_v38 }
0x1a10   :  { %31838 = vmatpush3.msra.mxu1 %v34724_v59  ;;  %31841 = vmatprep.mubr.msk.f32.mxu1 %vm33380_vm2, %v33379_v3 }
0x1a11   :  { %31839 = vmatprep.subr.mxu1 %v33379_v3  ;;  %v13631_v60 = vand.u32 4294901760, %v13630_v37 }
0x1a12   :  { %31840 = vmatpush3.msra.mxu1 %v34732_v1 }
0x1a13   :  { %31842 = vmatmul.mubr.f32.vlgmr.msra.gmra.mxu1 %v13631_v60  ;;  %31851 = vmatprep.subr.mxu1 %v33379_v3  ;;  %v13632_v40 = vsub.f32 %v13630_v37, %v13631_v60 }
0x1a14   :  { %31852 = vmatpush3.msra.mxu1 %v34724_v59  ;;  %31855 = vmatprep.mubr.msk.f32.mxu1 %vm33380_vm2, %v33379_v3 }
0x1a15   :  { %31853 = vmatprep.subr.mxu1 %v33379_v3  ;;  %v13633_v41 = vand.u32 4294901760, %v13632_v40 }
0x1a16   :  { %31854 = vmatpush3.msra.mxu1 %v34732_v1 }
0x1a17   :  { %31821 = vmatmul.mubr.f32.vlgmr.msra.gmra.mxu0 %v13633_v41  ;;  %31856 = vmatmul.mubr.f32.vlgmr.msra.gmra.mxu1 %v13629_v38 }
0x1a18   :  { %31831 = vmatpush3.msra.mxu0 %v34730_v52  ;;  %31834 = vmatprep.mubr.msk.f32.mxu0 %vm33380_vm2, %v33379_v3 }
0x1a19   :  { %31832 = vmatprep.subr.mxu0 %v33379_v3  ;;  %31865 = vmatprep.subr.mxu1 %v33379_v3 }
0x1a1a   :  { %31833 = vmatpush3.msra.mxu0 %v34740_v53  ;;  %31866 = vmatpush3.msra.mxu1 %v33444_v16 }
0x1a1b   :  { %31835 = vmatmul.mubr.f32.vlgmr.msra.gmra.mxu0 %v13630_v37  ;;  %31844 = vmatprep.subr.mxu0 %v33379_v3 }
0x1a1c   :  { %31845 = vmatpush3.msra.mxu0 %v34737_v20  ;;  %31848 = vmatprep.mubr.msk.f32.mxu0 %vm33380_vm2, %v33379_v3 }
0x1a1d   :  { %31846 = vmatprep.subr.mxu0 %v33379_v3  ;;  %31867 = vmatprep.subr.mxu1 %v33379_v3 }
0x1a1e   :  { %31847 = vmatpush3.msra.mxu0 %v34747_v63  ;;  %31868 = vmatpush3.msra.mxu1 %v33446_v18 }
0x1a1f   :  { %31849 = vmatmul.mubr.f32.vlgmr.msra.gmra.mxu0 %v13629_v38  ;;  %31869 = vmatprep.mubr.msk.f32.mxu1 %vm33380_vm2, %v33379_v3 }
0x1a20   :  { %31879 = vmatprep.subr.mxu1 %v33379_v3  ;;  %31858 = vmatprep.subr.mxu0 %v33379_v3 }
0x1a21   :  { %31859 = vmatpush3.msra.mxu0 %v33411_v4  ;;  %31862 = vmatprep.mubr.msk.f32.mxu0 %vm33380_vm2, %v33379_v3 }
0x1a22   :  { %31860 = vmatprep.subr.mxu0 %v33379_v3 }
0x1a23   :  { %31861 = vmatpush3.msra.mxu0 %v33414_v5 }
0x1a24   :  { %31872 = vmatprep.subr.mxu0 %v33379_v3 }
0x1acf   :  { %v13716_v17 = vpop.f32.mrf.mxu1 }
0x1ad1   :  { %v31829_v56 = vpop.f32.mrf.mxu1 }
0x1ad3   :  { %v13867_v57 = vpop.f32.mrf.mxu1 }
0x1ad5   :  { %v31843_v62 = vpop.f32.mrf.mxu1 }
0x1ad7   :  { %v13635_v14 = vpop.f32.mrf.mxu0  ;;  %v14017_v19 = vpop.f32.mrf.mxu1 }
0x1ad8   :  { %v13636_v0 = vadd.f32 %v13635_v14, %v34805_v61 }
0x1ad9   :  { %v31822_v27 = vpop.f32.mrf.mxu0  ;;  %v31857_v6 = vpop.f32.mrf.mxu1 }
0x1ada   :  { %v13717_v8 = vadd.f32 %v13716_v17, %v13636_v0 }
0x1adb   :  { %v13792_v11 = vpop.f32.mrf.mxu0 }
0x1adc   :  { %v13793_v13 = vadd.f32 %v13792_v11, %v13717_v8 }
0x1add   :  { %v31836_v15 = vpop.f32.mrf.mxu0 }
0x1ade   :  { %v13868_v30 = vadd.f32 %v13867_v57, %v13793_v13 }
0x1adf   :  { %v13944_v36 = vpop.f32.mrf.mxu0 }
0x1ae0   :  { %v13945_v39 = vadd.f32 %v13944_v36, %v13868_v30 }
0x1ae1   :  { %v31850_v42 = vpop.f32.mrf.mxu0 }
0x1ae2   :  { %v14018_v44 = vadd.f32 %v14017_v19, %v13945_v39 }
0x1ae4   :  { %v34809_v47 = vadd.f32 %v14018_v44, %v34644_v45 }
0x1ae6   :  { %v14023_v46 = vsel %vm39_vm1, %v34809_v47, 0 }
0x1ae7   :  { %v14092_v32 = vand.u32 4294901760, %v14023_v46 }
0x1ae9   :  { %v14093_v2 = vsub.f32 %v14023_v46, %v14092_v32  ;;  %31870 = vmatmul.mubr.f32.vlgmr.msra.gmra.mxu1 %v14092_v32 }
0x1aea   :  { %31880 = vmatpush3.msra.mxu1 %v33411_v4  ;;  %31883 = vmatprep.mubr.msk.f32.mxu1 %vm33380_vm2, %v33379_v3 }
0x1aeb   :  { %v14094_v48 = vand.u32 4294901760, %v14093_v2  ;;  %31881 = vmatprep.subr.mxu1 %v33379_v3 }
0x1aec   :  { %31882 = vmatpush3.msra.mxu1 %v33414_v5 }
0x1aed   :  { %v14095_v35 = vsub.f32 %v14093_v2, %v14094_v48  ;;  %31884 = vmatmul.mubr.f32.vlgmr.msra.gmra.mxu1 %v14094_v48  ;;  %31893 = vmatprep.subr.mxu1 %v33379_v3 }
0x1aee   :  { %31894 = vmatpush3.msra.mxu1 %v33411_v4  ;;  %31897 = vmatprep.mubr.msk.f32.mxu1 %vm33380_vm2, %v33379_v3 }
0x1aef   :  { %31895 = vmatprep.subr.mxu1 %v33379_v3  ;;  %v14096_v45 = vand.u32 4294901760, %v14095_v35 }
0x1af0   :  { %31896 = vmatpush3.msra.mxu1 %v33414_v5 }
0x1af1   :  { %31863 = vmatmul.mubr.f32.vlgmr.msra.gmra.mxu0 %v14096_v45  ;;  %31898 = vmatmul.mubr.f32.vlgmr.msra.gmra.mxu1 %v14092_v32 }
0x1af2   :  { %31873 = vmatpush3.msra.mxu0 %v33426_v7  ;;  %31876 = vmatprep.mubr.msk.f32.mxu0 %vm33380_vm2, %v33379_v3 }
0x1af3   :  { %31874 = vmatprep.subr.mxu0 %v33379_v3  ;;  %31907 = vmatprep.subr.mxu1 %v33379_v3 }
0x1af4   :  { %31875 = vmatpush3.msra.mxu0 %v33429_v9  ;;  %31908 = vmatpush3.msra.mxu1 %v33508_v29 }
0x1af5   :  { %31877 = vmatmul.mubr.f32.vlgmr.msra.gmra.mxu0 %v14093_v2  ;;  %31886 = vmatprep.subr.mxu0 %v33379_v3 }
0x1af6   :  { %31887 = vmatpush3.msra.mxu0 %v33434_v10  ;;  %31890 = vmatprep.mubr.msk.f32.mxu0 %vm33380_vm2, %v33379_v3 }
0x1af7   :  { %31888 = vmatprep.subr.mxu0 %v33379_v3  ;;  %31909 = vmatprep.subr.mxu1 %v33379_v3 }
0x1af8   :  { %31889 = vmatpush3.msra.mxu0 %v33437_v12  ;;  %31910 = vmatpush3.msra.mxu1 %v33513_v31 }
0x1af9   :  { %31891 = vmatmul.mubr.f32.vlgmr.msra.gmra.mxu0 %v14092_v32  ;;  %31911 = vmatprep.mubr.msk.f32.mxu1 %vm33380_vm2, %v33379_v3 }
0x1afa   :  { %31921 = vmatprep.subr.mxu1 %v33379_v3  ;;  %31900 = vmatprep.subr.mxu0 %v33379_v3 }
0x1afb   :  { %31901 = vmatpush3.msra.mxu0 %v33483_v21  ;;  %31904 = vmatprep.mubr.msk.f32.mxu0 %vm33380_vm2, %v33379_v3 }
0x1afc   :  { %31902 = vmatprep.subr.mxu0 %v33379_v3 }
0x1afd   :  { %31903 = vmatpush3.msra.mxu0 %v33491_v24 }
0x1afe   :  { %31914 = vmatprep.subr.mxu0 %v33379_v3 }
0x1ba9   :  { %v14179_v49 = vpop.f32.mrf.mxu1 }
0x1bab   :  { %v31871_v50 = vpop.f32.mrf.mxu1 }
0x1bad   :  { %v14330_v51 = vpop.f32.mrf.mxu1 }
0x1baf   :  { %v31885_v54 = vpop.f32.mrf.mxu1 }
0x1bb1   :  { %v14098_v55 = vpop.f32.mrf.mxu0  ;;  %v14480_v38 = vpop.f32.mrf.mxu1 }
0x1bb2   :  { %v14099_v37 = vadd.f32 %v34689_v33, %v14098_v55 }
0x1bb3   :  { %v31864_v60 = vpop.f32.mrf.mxu0  ;;  %v31899_v40 = vpop.f32.mrf.mxu1 }
0x1bb4   :  { %v14180_v41 = vadd.f32 %v14179_v49, %v14099_v37 }
0x1bb5   :  { %v14255_v17 = vpop.f32.mrf.mxu0 }
0x1bb6   :  { %v14256_v56 = vadd.f32 %v14255_v17, %v14180_v41 }
0x1bb7   :  { %v31878_v57 = vpop.f32.mrf.mxu0 }
0x1bb8   :  { %v14331_v58 = vadd.f32 %v14330_v51, %v14256_v56 }
0x1bb9   :  { %v14407_v62 = vpop.f32.mrf.mxu0 }
0x1bba   :  { %v14408_v14 = vadd.f32 %v14407_v62, %v14331_v58 }
0x1bbb   :  { %v31892_v19 = vpop.f32.mrf.mxu0 }
0x1bbc   :  { %v14481_v0 = vadd.f32 %v14480_v38, %v14408_v14 }
0x1bbe   :  { %v14485_v27 = vmul.f32 1.442695, %v14481_v0  ;;  %vm14484_vm10 = vcmp.gt.f32.partialorder %v14481_v0, 0.0 }
0x1bc0   :  { %33289 = vpow2.f32 %v14485_v27 }
0x1bcd   :  { %v33290_v6 = vpop.eup %33289 }
0x1bce   :  { %v29442_v8 = vadd.f32 -1.0, %v33290_v6 }
0x1bd0   :  { %v14488_v11 = vsel %vm14484_vm10, %v14481_v0, %v29442_v8 }
0x1bd1   :  { %v14490_v13 = vsel %vm39_vm1, %v14488_v11, 0 }
0x1bd2   :  { %v14559_v15 = vand.u32 4294901760, %v14490_v13 }
0x1bd4   :  { %v14560_v30 = vsub.f32 %v14490_v13, %v14559_v15  ;;  %31912 = vmatmul.mubr.f32.vlgmr.msra.gmra.mxu1 %v14559_v15 }
0x1bd5   :  { %31922 = vmatpush3.msra.mxu1 %v33483_v21  ;;  %31925 = vmatprep.mubr.msk.f32.mxu1 %vm33380_vm2, %v33379_v3 }
0x1bd6   :  { %31923 = vmatprep.subr.mxu1 %v33379_v3  ;;  %v14561_v36 = vand.u32 4294901760, %v14560_v30 }
0x1bd7   :  { %31924 = vmatpush3.msra.mxu1 %v33491_v24 }
0x1bd8   :  { %31926 = vmatmul.mubr.f32.vlgmr.msra.gmra.mxu1 %v14561_v36  ;;  %31935 = vmatprep.subr.mxu1 %v33379_v3  ;;  %v14562_v39 = vsub.f32 %v14560_v30, %v14561_v36 }
0x1bd9   :  { %31936 = vmatpush3.msra.mxu1 %v33483_v21  ;;  %31939 = vmatprep.mubr.msk.f32.mxu1 %vm33380_vm2, %v33379_v3 }
0x1bda   :  { %31937 = vmatprep.subr.mxu1 %v33379_v3  ;;  %v14563_v42 = vand.u32 4294901760, %v14562_v39 }
0x1bdb   :  { %31938 = vmatpush3.msra.mxu1 %v33491_v24 }
0x1bdc   :  { %31905 = vmatmul.mubr.f32.vlgmr.msra.gmra.mxu0 %v14563_v42  ;;  %31940 = vmatmul.mubr.f32.vlgmr.msra.gmra.mxu1 %v14559_v15 }
0x1bdd   :  { %31915 = vmatpush3.msra.mxu0 %v33489_v23  ;;  %31918 = vmatprep.mubr.msk.f32.mxu0 %vm33380_vm2, %v33379_v3 }
0x1bde   :  { %31916 = vmatprep.subr.mxu0 %v33379_v3  ;;  %31949 = vmatprep.subr.mxu1 %v33379_v3 }
0x1bdf   :  { %31917 = vmatpush3.msra.mxu0 %v33499_v26  ;;  %31950 = vmatpush3.msra.mxu1 %v34749_v34 }
0x1be0   :  { %31919 = vmatmul.mubr.f32.vlgmr.msra.gmra.mxu0 %v14560_v30  ;;  %31928 = vmatprep.subr.mxu0 %v33379_v3 }
0x1be1   :  { %31929 = vmatpush3.msra.mxu0 %v33496_v25  ;;  %31932 = vmatprep.mubr.msk.f32.mxu0 %vm33380_vm2, %v33379_v3 }
0x1be2   :  { %31930 = vmatprep.subr.mxu0 %v33379_v3  ;;  %31951 = vmatprep.subr.mxu1 %v33379_v3 }
0x1be3   :  { %31931 = vmatpush3.msra.mxu0 %v33506_v28  ;;  %31952 = vmatpush3.msra.mxu1 %v34754_v22 }
0x1be4   :  { %31933 = vmatmul.mubr.f32.vlgmr.msra.gmra.mxu0 %v14559_v15  ;;  %31953 = vmatprep.mubr.msk.f32.mxu1 %vm33380_vm2, %v33379_v3 }
0x1be5   :  { %31963 = vmatprep.subr.mxu1 %v33379_v3  ;;  %31942 = vmatprep.subr.mxu0 %v33379_v3 }
0x1be6   :  { %31943 = vmatpush3.msra.mxu0 %v34724_v59  ;;  %31946 = vmatprep.mubr.msk.f32.mxu0 %vm33380_vm2, %v33379_v3 }
0x1be7   :  { %31944 = vmatprep.subr.mxu0 %v33379_v3 }
0x1be8   :  { %31945 = vmatpush3.msra.mxu0 %v34732_v1 }
0x1be9   :  { %31956 = vmatprep.subr.mxu0 %v33379_v3 }
0x1c94   :  { %v14646_v44 = vpop.f32.mrf.mxu1 }
0x1c96   :  { %v31913_v46 = vpop.f32.mrf.mxu1 }
0x1c98   :  { %v14797_v32 = vpop.f32.mrf.mxu1 }
0x1c9a   :  { %v31927_v2 = vpop.f32.mrf.mxu1 }
0x1c9c   :  { %v14565_v48 = vpop.f32.mrf.mxu0  ;;  %v14947_v35 = vpop.f32.mrf.mxu1 }
0x1c9d   :  { %v14566_v45 = vadd.f32 %v34762_v43, %v14565_v48 }
0x1c9e   :  { %v31906_v49 = vpop.f32.mrf.mxu0  ;;  %v31941_v50 = vpop.f32.mrf.mxu1 }
0x1c9f   :  { %v14647_v51 = vadd.f32 %v14646_v44, %v14566_v45 }
0x1ca0   :  { %v14722_v54 = vpop.f32.mrf.mxu0 }
0x1ca1   :  { %v14723_v55 = vadd.f32 %v14722_v54, %v14647_v51 }
0x1ca2   :  { %v31920_v38 = vpop.f32.mrf.mxu0 }
0x1ca3   :  { %v14798_v37 = vadd.f32 %v14797_v32, %v14723_v55 }
0x1ca4   :  { %v14874_v60 = vpop.f32.mrf.mxu0 }
0x1ca5   :  { %v14875_v40 = vadd.f32 %v14874_v60, %v14798_v37 }
0x1ca6   :  { %v31934_v41 = vpop.f32.mrf.mxu0 }
0x1ca7   :  { %v14948_v17 = vadd.f32 %v14947_v35, %v14875_v40 }
0x1ca9   :  { %v14952_v56 = vmul.f32 1.442695, %v14948_v17  ;;  %vm14951_vm11 = vcmp.gt.f32.partialorder %v14948_v17, 0.0 }
0x1cab   :  { %33291 = vpow2.f32 %v14952_v56 }
0x1cb8   :  { %v33292_v57 = vpop.eup %33291 }
0x1cb9   :  { %v29443_v58 = vadd.f32 -1.0, %v33292_v57 }
0x1cbb   :  { %v14955_v62 = vsel %vm14951_vm11, %v14948_v17, %v29443_v58 }
0x1cbc   :  { %v14957_v14 = vsel %vm39_vm1, %v14955_v62, 0 }
0x1cbd   :  { %v15026_v19 = vand.u32 4294901760, %v14957_v14 }
0x1cbf   :  { %v15027_v0 = vsub.f32 %v14957_v14, %v15026_v19  ;;  %31954 = vmatmul.mubr.f32.vlgmr.msra.gmra.mxu1 %v15026_v19 }
0x1cc0   :  { %31964 = vmatpush3.msra.mxu1 %v34724_v59  ;;  %31967 = vmatprep.mubr.msk.f32.mxu1 %vm33380_vm2, %v33379_v3 }
0x1cc1   :  { %31965 = vmatprep.subr.mxu1 %v33379_v3  ;;  %v15028_v27 = vand.u32 4294901760, %v15027_v0 }
0x1cc2   :  { %31966 = vmatpush3.msra.mxu1 %v34732_v1 }
0x1cc3   :  { %31968 = vmatmul.mubr.f32.vlgmr.msra.gmra.mxu1 %v15028_v27  ;;  %31977 = vmatprep.subr.mxu1 %v33379_v3  ;;  %v15029_v6 = vsub.f32 %v15027_v0, %v15028_v27 }
0x1cc4   :  { %31978 = vmatpush3.msra.mxu1 %v34724_v59  ;;  %31981 = vmatprep.mubr.msk.f32.mxu1 %vm33380_vm2, %v33379_v3 }
0x1cc5   :  { %31979 = vmatprep.subr.mxu1 %v33379_v3  ;;  %v15030_v8 = vand.u32 4294901760, %v15029_v6 }
0x1cc6   :  { %31980 = vmatpush3.msra.mxu1 %v34732_v1 }
0x1cc7   :  { %31947 = vmatmul.mubr.f32.vlgmr.msra.gmra.mxu0 %v15030_v8  ;;  %31982 = vmatmul.mubr.f32.vlgmr.msra.gmra.mxu1 %v15026_v19 }
0x1cc8   :  { %31957 = vmatpush3.msra.mxu0 %v34730_v52  ;;  %31960 = vmatprep.mubr.msk.f32.mxu0 %vm33380_vm2, %v33379_v3 }
0x1cc9   :  { %31958 = vmatprep.subr.mxu0 %v33379_v3  ;;  %31991 = vmatprep.subr.mxu1 %v33379_v3 }
0x1cca   :  { %31959 = vmatpush3.msra.mxu0 %v34740_v53  ;;  %31992 = vmatpush3.msra.mxu1 %v33444_v16 }
0x1ccb   :  { %31961 = vmatmul.mubr.f32.vlgmr.msra.gmra.mxu0 %v15027_v0  ;;  %31970 = vmatprep.subr.mxu0 %v33379_v3 }
0x1ccc   :  { %31971 = vmatpush3.msra.mxu0 %v34737_v20  ;;  %31974 = vmatprep.mubr.msk.f32.mxu0 %vm33380_vm2, %v33379_v3 }
0x1ccd   :  { %31972 = vmatprep.subr.mxu0 %v33379_v3  ;;  %31993 = vmatprep.subr.mxu1 %v33379_v3 }
0x1cce   :  { %31973 = vmatpush3.msra.mxu0 %v34747_v63  ;;  %31994 = vmatpush3.msra.mxu1 %v33446_v18 }
0x1ccf   :  { %31975 = vmatmul.mubr.f32.vlgmr.msra.gmra.mxu0 %v15026_v19  ;;  %31995 = vmatprep.mubr.msk.f32.mxu1 %vm33380_vm2, %v33379_v3 }
0x1cd0   :  { %32005 = vmatprep.subr.mxu1 %v33379_v3  ;;  %31984 = vmatprep.subr.mxu0 %v33379_v3 }
0x1cd1   :  { %31985 = vmatpush3.msra.mxu0 %v33411_v4  ;;  %31988 = vmatprep.mubr.msk.f32.mxu0 %vm33380_vm2, %v33379_v3 }
0x1cd2   :  { %31986 = vmatprep.subr.mxu0 %v33379_v3 }
0x1cd3   :  { %31987 = vmatpush3.msra.mxu0 %v33414_v5 }
0x1cd4   :  { %31998 = vmatprep.subr.mxu0 %v33379_v3 }
0x1d7f   :  { %v15113_v11 = vpop.f32.mrf.mxu1 }
0x1d81   :  { %v31955_v13 = vpop.f32.mrf.mxu1 }
0x1d83   :  { %v15264_v15 = vpop.f32.mrf.mxu1 }
0x1d85   :  { %v31969_v30 = vpop.f32.mrf.mxu1 }
0x1d87   :  { %v15032_v36 = vpop.f32.mrf.mxu0  ;;  %v15414_v39 = vpop.f32.mrf.mxu1 }
0x1d88   :  { %v15033_v42 = vadd.f32 %v15032_v36, %v34805_v61 }
0x1d89   :  { %v31948_v44 = vpop.f32.mrf.mxu0  ;;  %v31983_v46 = vpop.f32.mrf.mxu1 }
0x1d8a   :  { %v15114_v32 = vadd.f32 %v15113_v11, %v15033_v42 }
0x1d8b   :  { %v15189_v2 = vpop.f32.mrf.mxu0 }
0x1d8c   :  { %v15190_v48 = vadd.f32 %v15189_v2, %v15114_v32 }
0x1d8d   :  { %v31962_v35 = vpop.f32.mrf.mxu0 }
0x1d8e   :  { %v15265_v45 = vadd.f32 %v15264_v15, %v15190_v48 }
0x1d8f   :  { %v15341_v49 = vpop.f32.mrf.mxu0 }
0x1d90   :  { %v15342_v50 = vadd.f32 %v15341_v49, %v15265_v45 }
0x1d91   :  { %v31976_v51 = vpop.f32.mrf.mxu0 }
0x1d92   :  { %v15415_v54 = vadd.f32 %v15414_v39, %v15342_v50 }
0x1d94   :  { %v34927_v55 = vadd.f32 %v15415_v54, %v34809_v47 }
0x1d96   :  { %v15420_v38 = vsel %vm39_vm1, %v34927_v55, 0 }
0x1d97   :  { %v15489_v37 = vand.u32 4294901760, %v15420_v38 }
0x1d99   :  { %v15490_v60 = vsub.f32 %v15420_v38, %v15489_v37  ;;  %31996 = vmatmul.mubr.f32.vlgmr.msra.gmra.mxu1 %v15489_v37 }
0x1d9a   :  { %32006 = vmatpush3.msra.mxu1 %v33411_v4  ;;  %32009 = vmatprep.mubr.msk.f32.mxu1 %vm33380_vm2, %v33379_v3 }
0x1d9b   :  { %v15491_v40 = vand.u32 4294901760, %v15490_v60  ;;  %32007 = vmatprep.subr.mxu1 %v33379_v3 }
0x1d9c   :  { %32008 = vmatpush3.msra.mxu1 %v33414_v5 }
0x1d9d   :  { %v15492_v41 = vsub.f32 %v15490_v60, %v15491_v40  ;;  %32010 = vmatmul.mubr.f32.vlgmr.msra.gmra.mxu1 %v15491_v40  ;;  %32019 = vmatprep.subr.mxu1 %v33379_v3 }
0x1d9e   :  { %32020 = vmatpush3.msra.mxu1 %v33411_v4  ;;  %32023 = vmatprep.mubr.msk.f32.mxu1 %vm33380_vm2, %v33379_v3 }
0x1d9f   :  { %32021 = vmatprep.subr.mxu1 %v33379_v3  ;;  %v15493_v47 = vand.u32 4294901760, %v15492_v41 }
0x1da0   :  { %32022 = vmatpush3.msra.mxu1 %v33414_v5 }
0x1da1   :  { %31989 = vmatmul.mubr.f32.vlgmr.msra.gmra.mxu0 %v15493_v47  ;;  %32024 = vmatmul.mubr.f32.vlgmr.msra.gmra.mxu1 %v15489_v37 }
0x1da2   :  { %31999 = vmatpush3.msra.mxu0 %v33426_v7  ;;  %32002 = vmatprep.mubr.msk.f32.mxu0 %vm33380_vm2, %v33379_v3 }
0x1da3   :  { %32000 = vmatprep.subr.mxu0 %v33379_v3  ;;  %32033 = vmatprep.subr.mxu1 %v33379_v3 }
0x1da4   :  { %32001 = vmatpush3.msra.mxu0 %v33429_v9  ;;  %32034 = vmatpush3.msra.mxu1 %v33508_v29 }
0x1da5   :  { %32003 = vmatmul.mubr.f32.vlgmr.msra.gmra.mxu0 %v15490_v60  ;;  %32012 = vmatprep.subr.mxu0 %v33379_v3 }
0x1da6   :  { %32013 = vmatpush3.msra.mxu0 %v33434_v10  ;;  %32016 = vmatprep.mubr.msk.f32.mxu0 %vm33380_vm2, %v33379_v3 }
0x1da7   :  { %32014 = vmatprep.subr.mxu0 %v33379_v3  ;;  %32035 = vmatprep.subr.mxu1 %v33379_v3 }
0x1da8   :  { %32015 = vmatpush3.msra.mxu0 %v33437_v12  ;;  %32036 = vmatpush3.msra.mxu1 %v33513_v31 }
0x1da9   :  { %32017 = vmatmul.mubr.f32.vlgmr.msra.gmra.mxu0 %v15489_v37  ;;  %32037 = vmatprep.mubr.msk.f32.mxu1 %vm33380_vm2, %v33379_v3 }
0x1daa   :  { %32047 = vmatprep.subr.mxu1 %v33379_v3  ;;  %32026 = vmatprep.subr.mxu0 %v33379_v3 }
0x1dab   :  { %32027 = vmatpush3.msra.mxu0 %v33483_v21  ;;  %32030 = vmatprep.mubr.msk.f32.mxu0 %vm33380_vm2, %v33379_v3 }
0x1dac   :  { %32028 = vmatprep.subr.mxu0 %v33379_v3 }
0x1dad   :  { %32029 = vmatpush3.msra.mxu0 %v33491_v24 }
0x1dae   :  { %32040 = vmatprep.subr.mxu0 %v33379_v3 }
0x1e59   :  { %v15576_v17 = vpop.f32.mrf.mxu1 }
0x1e5b   :  { %v31997_v56 = vpop.f32.mrf.mxu1 }
0x1e5d   :  { %v15727_v57 = vpop.f32.mrf.mxu1 }
0x1e5f   :  { %v32011_v58 = vpop.f32.mrf.mxu1 }
0x1e61   :  { %v15495_v62 = vpop.f32.mrf.mxu0  ;;  %v15877_v14 = vpop.f32.mrf.mxu1 }
0x1e62   :  { %v15496_v19 = vadd.f32 %v34689_v33, %v15495_v62 }
0x1e63   :  { %v31990_v0 = vpop.f32.mrf.mxu0  ;;  %v32025_v27 = vpop.f32.mrf.mxu1 }
0x1e64   :  { %v15577_v6 = vadd.f32 %v15576_v17, %v15496_v19 }
0x1e65   :  { %v15652_v8 = vpop.f32.mrf.mxu0 }
0x1e66   :  { %v15653_v11 = vadd.f32 %v15652_v8, %v15577_v6 }
0x1e67   :  { %v32004_v13 = vpop.f32.mrf.mxu0 }
0x1e68   :  { %v15728_v15 = vadd.f32 %v15727_v57, %v15653_v11 }
0x1e69   :  { %v15804_v30 = vpop.f32.mrf.mxu0 }
0x1e6a   :  { %v15805_v36 = vadd.f32 %v15804_v30, %v15728_v15 }
0x1e6b   :  { %v32018_v39 = vpop.f32.mrf.mxu0 }
0x1e6c   :  { %v15878_v42 = vadd.f32 %v15877_v14, %v15805_v36 }
0x1e6e   :  { %v15882_v44 = vmul.f32 1.442695, %v15878_v42  ;;  %vm15881_vm12 = vcmp.gt.f32.partialorder %v15878_v42, 0.0 }
0x1e70   :  { %33293 = vpow2.f32 %v15882_v44 }
0x1e7d   :  { %v33294_v46 = vpop.eup %33293 }
0x1e7e   :  { %v29444_v32 = vadd.f32 -1.0, %v33294_v46 }
0x1e80   :  { %v15885_v2 = vsel %vm15881_vm12, %v15878_v42, %v29444_v32 }
0x1e81   :  { %v15887_v48 = vsel %vm39_vm1, %v15885_v2, 0 }
0x1e82   :  { %v15956_v33 = vand.u32 4294901760, %v15887_v48 }
0x1e84   :  { %v15957_v35 = vsub.f32 %v15887_v48, %v15956_v33  ;;  %32038 = vmatmul.mubr.f32.vlgmr.msra.gmra.mxu1 %v15956_v33 }
0x1e85   :  { %32048 = vmatpush3.msra.mxu1 %v33483_v21  ;;  %32051 = vmatprep.mubr.msk.f32.mxu1 %vm33380_vm2, %v33379_v3 }
0x1e86   :  { %32049 = vmatprep.subr.mxu1 %v33379_v3  ;;  %v15958_v45 = vand.u32 4294901760, %v15957_v35 }
0x1e87   :  { %32050 = vmatpush3.msra.mxu1 %v33491_v24 }
0x1e88   :  { %32052 = vmatmul.mubr.f32.vlgmr.msra.gmra.mxu1 %v15958_v45  ;;  %32061 = vmatprep.subr.mxu1 %v33379_v3  ;;  %v15959_v49 = vsub.f32 %v15957_v35, %v15958_v45 }
0x1e89   :  { %32062 = vmatpush3.msra.mxu1 %v33483_v21  ;;  %32065 = vmatprep.mubr.msk.f32.mxu1 %vm33380_vm2, %v33379_v3 }
0x1e8a   :  { %32063 = vmatprep.subr.mxu1 %v33379_v3  ;;  %v15960_v50 = vand.u32 4294901760, %v15959_v49 }
0x1e8b   :  { %32064 = vmatpush3.msra.mxu1 %v33491_v24 }
0x1e8c   :  { %32031 = vmatmul.mubr.f32.vlgmr.msra.gmra.mxu0 %v15960_v50  ;;  %32066 = vmatmul.mubr.f32.vlgmr.msra.gmra.mxu1 %v15956_v33 }
0x1e8d   :  { %32041 = vmatpush3.msra.mxu0 %v33489_v23  ;;  %32044 = vmatprep.mubr.msk.f32.mxu0 %vm33380_vm2, %v33379_v3 }
0x1e8e   :  { %32042 = vmatprep.subr.mxu0 %v33379_v3  ;;  %32075 = vmatprep.subr.mxu1 %v33379_v3 }
0x1e8f   :  { %32043 = vmatpush3.msra.mxu0 %v33499_v26  ;;  %32076 = vmatpush3.msra.mxu1 %v34749_v34 }
0x1e90   :  { %32045 = vmatmul.mubr.f32.vlgmr.msra.gmra.mxu0 %v15957_v35  ;;  %32054 = vmatprep.subr.mxu0 %v33379_v3 }
0x1e91   :  { %32055 = vmatpush3.msra.mxu0 %v33496_v25  ;;  %32058 = vmatprep.mubr.msk.f32.mxu0 %vm33380_vm2, %v33379_v3 }
0x1e92   :  { %32056 = vmatprep.subr.mxu0 %v33379_v3  ;;  %32077 = vmatprep.subr.mxu1 %v33379_v3 }
0x1e93   :  { %32057 = vmatpush3.msra.mxu0 %v33506_v28  ;;  %32078 = vmatpush3.msra.mxu1 %v34754_v22 }
0x1e94   :  { %32059 = vmatmul.mubr.f32.vlgmr.msra.gmra.mxu0 %v15956_v33  ;;  %32079 = vmatprep.mubr.msk.f32.mxu1 %vm33380_vm2, %v33379_v3 }
0x1e95   :  { %32089 = vmatprep.subr.mxu1 %v33379_v3  ;;  %32068 = vmatprep.subr.mxu0 %v33379_v3 }
0x1e96   :  { %32069 = vmatpush3.msra.mxu0 %v34724_v59  ;;  %32072 = vmatprep.mubr.msk.f32.mxu0 %vm33380_vm2, %v33379_v3 }
0x1e97   :  { %32070 = vmatprep.subr.mxu0 %v33379_v3 }
0x1e98   :  { %32071 = vmatpush3.msra.mxu0 %v34732_v1 }
0x1e99   :  { %32082 = vmatprep.subr.mxu0 %v33379_v3 }
0x1f44   :  { %v16043_v51 = vpop.f32.mrf.mxu1 }
0x1f46   :  { %v32039_v54 = vpop.f32.mrf.mxu1 }
0x1f48   :  { %v16194_v38 = vpop.f32.mrf.mxu1 }
0x1f4a   :  { %v32053_v37 = vpop.f32.mrf.mxu1 }
0x1f4c   :  { %v15962_v60 = vpop.f32.mrf.mxu0  ;;  %v16344_v40 = vpop.f32.mrf.mxu1 }
0x1f4d   :  { %v15963_v41 = vadd.f32 %v34762_v43, %v15962_v60 }
0x1f4e   :  { %v32032_v47 = vpop.f32.mrf.mxu0  ;;  %v32067_v17 = vpop.f32.mrf.mxu1 }
0x1f4f   :  { %v16044_v56 = vadd.f32 %v16043_v51, %v15963_v41 }
0x1f50   :  { %v16119_v57 = vpop.f32.mrf.mxu0 }
0x1f51   :  { %v16120_v58 = vadd.f32 %v16119_v57, %v16044_v56 }
0x1f52   :  { %v32046_v62 = vpop.f32.mrf.mxu0 }
0x1f53   :  { %v16195_v14 = vadd.f32 %v16194_v38, %v16120_v58 }
0x1f54   :  { %v16271_v19 = vpop.f32.mrf.mxu0 }
0x1f55   :  { %v16272_v0 = vadd.f32 %v16271_v19, %v16195_v14 }
0x1f56   :  { %v32060_v27 = vpop.f32.mrf.mxu0 }
0x1f57   :  { %v16345_v6 = vadd.f32 %v16344_v40, %v16272_v0 }
0x1f59   :  { %v16349_v8 = vmul.f32 1.442695, %v16345_v6  ;;  %vm16348_vm13 = vcmp.gt.f32.partialorder %v16345_v6, 0.0 }
0x1f5b   :  { %33295 = vpow2.f32 %v16349_v8 }
0x1f68   :  { %v33296_v11 = vpop.eup %33295 }
0x1f69   :  { %v29445_v13 = vadd.f32 -1.0, %v33296_v11 }
0x1f6b   :  { %v16352_v15 = vsel %vm16348_vm13, %v16345_v6, %v29445_v13 }
0x1f6c   :  { %v16354_v30 = vsel %vm39_vm1, %v16352_v15, 0  ;;  %v35090_v15 = vld [vmem:[%s36204_s1 + $0x30] ss:$0 sm:$0xff] }
0x1f6d   :  { %v16423_v43 = vand.u32 4294901760, %v16354_v30 }
0x1f6f   :  { %v16424_v36 = vsub.f32 %v16354_v30, %v16423_v43  ;;  %32080 = vmatmul.mubr.f32.vlgmr.msra.gmra.mxu1 %v16423_v43 }
0x1f70   :  { %32090 = vmatpush3.msra.mxu1 %v34724_v59  ;;  %32093 = vmatprep.mubr.msk.f32.mxu1 %vm33380_vm2, %v33379_v3 }
0x1f71   :  { %32091 = vmatprep.subr.mxu1 %v33379_v3  ;;  %v16425_v39 = vand.u32 4294901760, %v16424_v36 }
0x1f72   :  { %32092 = vmatpush3.msra.mxu1 %v34732_v1 }
0x1f73   :  { %32094 = vmatmul.mubr.f32.vlgmr.msra.gmra.mxu1 %v16425_v39  ;;  %32103 = vmatprep.subr.mxu1 %v33379_v3  ;;  %v16426_v42 = vsub.f32 %v16424_v36, %v16425_v39 }
0x1f74   :  { %32104 = vmatpush3.msra.mxu1 %v34724_v59  ;;  %32107 = vmatprep.mubr.msk.f32.mxu1 %vm33380_vm2, %v33379_v3 }
0x1f75   :  { %32105 = vmatprep.subr.mxu1 %v33379_v3  ;;  %v16427_v44 = vand.u32 4294901760, %v16426_v42 }
0x1f76   :  { %32106 = vmatpush3.msra.mxu1 %v34732_v1 }
0x1f77   :  { %32073 = vmatmul.mubr.f32.vlgmr.msra.gmra.mxu0 %v16427_v44  ;;  %32108 = vmatmul.mubr.f32.vlgmr.msra.gmra.mxu1 %v16423_v43 }
0x1f78   :  { %32083 = vmatpush3.msra.mxu0 %v34730_v52  ;;  %32086 = vmatprep.mubr.msk.f32.mxu0 %vm33380_vm2, %v33379_v3 }
0x1f79   :  { %32084 = vmatprep.subr.mxu0 %v33379_v3  ;;  %32117 = vmatprep.subr.mxu1 %v33379_v3 }
0x1f7a   :  { %32085 = vmatpush3.msra.mxu0 %v34740_v53  ;;  %32118 = vmatpush3.msra.mxu1 %v33444_v16 }
0x1f7b   :  { %32087 = vmatmul.mubr.f32.vlgmr.msra.gmra.mxu0 %v16424_v36  ;;  %32096 = vmatprep.subr.mxu0 %v33379_v3 }
0x1f7c   :  { %32097 = vmatpush3.msra.mxu0 %v34737_v20  ;;  %32100 = vmatprep.mubr.msk.f32.mxu0 %vm33380_vm2, %v33379_v3 }
0x1f7d   :  { %32098 = vmatprep.subr.mxu0 %v33379_v3  ;;  %32119 = vmatprep.subr.mxu1 %v33379_v3 }
0x1f7e   :  { %32099 = vmatpush3.msra.mxu0 %v34747_v63  ;;  %32120 = vmatpush3.msra.mxu1 %v33446_v18 }
0x1f7f   :  { %32101 = vmatmul.mubr.f32.vlgmr.msra.gmra.mxu0 %v16423_v43  ;;  %32121 = vmatprep.mubr.msk.f32.mxu1 %vm33380_vm2, %v33379_v3 }
0x1f80   :  { %32131 = vmatprep.subr.mxu1 %v33379_v3  ;;  %32110 = vmatprep.subr.mxu0 %v33379_v3 }
0x1f81   :  { %32111 = vmatpush3.msra.mxu0 %v33411_v4  ;;  %32114 = vmatprep.mubr.msk.f32.mxu0 %vm33380_vm2, %v33379_v3 }
0x1f82   :  { %32112 = vmatprep.subr.mxu0 %v33379_v3 }
0x1f83   :  { %32113 = vmatpush3.msra.mxu0 %v33414_v5 }
0x1f84   :  { %32124 = vmatprep.subr.mxu0 %v33379_v3 }
0x202f   :  { %v16510_v46 = vpop.f32.mrf.mxu1 }
0x2031   :  { %v32081_v32 = vpop.f32.mrf.mxu1 }
0x2033   :  { %v16661_v2 = vpop.f32.mrf.mxu1 }
0x2035   :  { %v32095_v48 = vpop.f32.mrf.mxu1 }
0x2037   :  { %v16429_v33 = vpop.f32.mrf.mxu0  ;;  %v16811_v35 = vpop.f32.mrf.mxu1 }
0x2038   :  { %v16430_v45 = vadd.f32 %v16429_v33, %v34805_v61 }
0x2039   :  { %v32074_v49 = vpop.f32.mrf.mxu0  ;;  %v32109_v50 = vpop.f32.mrf.mxu1 }
0x203a   :  { %v16511_v51 = vadd.f32 %v16510_v46, %v16430_v45 }
0x203b   :  { %v16586_v54 = vpop.f32.mrf.mxu0 }
0x203c   :  { %v16587_v38 = vadd.f32 %v16586_v54, %v16511_v51 }
0x203d   :  { %v32088_v37 = vpop.f32.mrf.mxu0 }
0x203e   :  { %v16662_v60 = vadd.f32 %v16661_v2, %v16587_v38 }
0x203f   :  { %v16738_v40 = vpop.f32.mrf.mxu0 }
0x2040   :  { %v16739_v41 = vadd.f32 %v16738_v40, %v16662_v60 }
0x2041   :  { %v32102_v47 = vpop.f32.mrf.mxu0 }
0x2042   :  { %v16812_v17 = vadd.f32 %v16811_v35, %v16739_v41 }
0x2044   :  { %v35045_v56 = vadd.f32 %v16812_v17, %v34927_v55 }
0x2046   :  { %16817 = vst.msk [vmem:[#allocation2 + $0x10] sm:$0xf] %vm34_vm0, %v35045_v56  ;;  %v16819_v57 = vsel %vm39_vm1, %v35045_v56, 0 }
0x2047   :  { %v16888_v58 = vand.u32 4294901760, %v16819_v57 }
0x2049   :  { %v16889_v62 = vsub.f32 %v16819_v57, %v16888_v58  ;;  %32122 = vmatmul.mubr.f32.vlgmr.msra.gmra.mxu1 %v16888_v58 }
0x204a   :  { %32132 = vmatpush3.msra.mxu1 %v33411_v4  ;;  %32135 = vmatprep.mubr.msk.f32.mxu1 %vm33380_vm2, %v33379_v3 }
0x204b   :  { %32133 = vmatprep.subr.mxu1 %v33379_v3  ;;  %v16890_v14 = vand.u32 4294901760, %v16889_v62 }
0x204c   :  { %32134 = vmatpush3.msra.mxu1 %v33414_v5 }
0x204d   :  { %32136 = vmatmul.mubr.f32.vlgmr.msra.gmra.mxu1 %v16890_v14  ;;  %32145 = vmatprep.subr.mxu1 %v33379_v3  ;;  %v16891_v55 = vsub.f32 %v16889_v62, %v16890_v14 }
0x204e   :  { %32146 = vmatpush3.msra.mxu1 %v33411_v4  ;;  %32149 = vmatprep.mubr.msk.f32.mxu1 %vm33380_vm2, %v33379_v3 }
0x204f   :  { %32147 = vmatprep.subr.mxu1 %v33379_v3  ;;  %v16892_v19 = vand.u32 4294901760, %v16891_v55  ;;  %v35133_v55 = vld [vmem:[%s36204_s1 + $0x31] ss:$0 sm:$0xff] }
0x2050   :  { %32148 = vmatpush3.msra.mxu1 %v33414_v5 }
0x2051   :  { %32115 = vmatmul.mubr.f32.vlgmr.msra.gmra.mxu0 %v16892_v19  ;;  %32150 = vmatmul.mubr.f32.vlgmr.msra.gmra.mxu1 %v16888_v58 }
0x2052   :  { %32125 = vmatpush3.msra.mxu0 %v33426_v7  ;;  %32128 = vmatprep.mubr.msk.f32.mxu0 %vm33380_vm2, %v33379_v3 }
0x2053   :  { %32126 = vmatprep.subr.mxu0 %v33379_v3  ;;  %32159 = vmatprep.subr.mxu1 %v33379_v3 }
0x2054   :  { %32127 = vmatpush3.msra.mxu0 %v33429_v9  ;;  %32160 = vmatpush3.msra.mxu1 %v33508_v29 }
0x2055   :  { %32129 = vmatmul.mubr.f32.vlgmr.msra.gmra.mxu0 %v16889_v62  ;;  %32138 = vmatprep.subr.mxu0 %v33379_v3 }
0x2056   :  { %32139 = vmatpush3.msra.mxu0 %v33434_v10  ;;  %32142 = vmatprep.mubr.msk.f32.mxu0 %vm33380_vm2, %v33379_v3 }
0x2057   :  { %32140 = vmatprep.subr.mxu0 %v33379_v3  ;;  %32161 = vmatprep.subr.mxu1 %v33379_v3 }
0x2058   :  { %32141 = vmatpush3.msra.mxu0 %v33437_v12  ;;  %32162 = vmatpush3.msra.mxu1 %v33513_v31 }
0x2059   :  { %32143 = vmatmul.mubr.f32.vlgmr.msra.gmra.mxu0 %v16888_v58  ;;  %32163 = vmatprep.mubr.msk.f32.mxu1 %vm33380_vm2, %v33379_v3 }
0x205a   :  { %32173 = vmatprep.subr.mxu1 %v33379_v3  ;;  %32152 = vmatprep.subr.mxu0 %v33379_v3 }
0x205b   :  { %32153 = vmatpush3.msra.mxu0 %v33483_v21  ;;  %32156 = vmatprep.mubr.msk.f32.mxu0 %vm33380_vm2, %v33379_v3 }
0x205c   :  { %32154 = vmatprep.subr.mxu0 %v33379_v3 }
0x205d   :  { %32155 = vmatpush3.msra.mxu0 %v33491_v24 }
0x205e   :  { %32166 = vmatprep.subr.mxu0 %v33379_v3 }
0x2109   :  { %v16975_v0 = vpop.f32.mrf.mxu1 }
0x210b   :  { %v32123_v27 = vpop.f32.mrf.mxu1 }
0x210d   :  { %v17126_v6 = vpop.f32.mrf.mxu1 }
0x210f   :  { %v32137_v8 = vpop.f32.mrf.mxu1 }
0x2111   :  { %v16894_v11 = vpop.f32.mrf.mxu0  ;;  %v17276_v13 = vpop.f32.mrf.mxu1 }
0x2112   :  { %v16895_v30 = vadd.f32 %v35090_v15, %v16894_v11 }
0x2113   :  { %v32116_v43 = vpop.f32.mrf.mxu0  ;;  %v32151_v36 = vpop.f32.mrf.mxu1 }
0x2114   :  { %v16976_v39 = vadd.f32 %v16975_v0, %v16895_v30 }
0x2115   :  { %v17051_v42 = vpop.f32.mrf.mxu0 }
0x2116   :  { %v17052_v44 = vadd.f32 %v17051_v42, %v16976_v39 }
0x2117   :  { %v32130_v46 = vpop.f32.mrf.mxu0 }
0x2118   :  { %v17127_v32 = vadd.f32 %v17126_v6, %v17052_v44 }
0x2119   :  { %v17203_v2 = vpop.f32.mrf.mxu0 }
0x211a   :  { %v17204_v48 = vadd.f32 %v17203_v2, %v17127_v32 }
0x211b   :  { %v32144_v33 = vpop.f32.mrf.mxu0 }
0x211c   :  { %v17277_v35 = vadd.f32 %v17276_v13, %v17204_v48 }
0x211e   :  { %v17281_v45 = vmul.f32 1.442695, %v17277_v35  ;;  %vm17280_vm14 = vcmp.gt.f32.partialorder %v17277_v35, 0.0 }
0x2120   :  { %33297 = vpow2.f32 %v17281_v45 }
0x212d   :  { %v33298_v49 = vpop.eup %33297 }
0x212e   :  { %v29446_v50 = vadd.f32 -1.0, %v33298_v49 }
0x2130   :  { %v17284_v51 = vsel %vm17280_vm14, %v17277_v35, %v29446_v50 }
0x2131   :  { %v17286_v54 = vsel %vm39_vm1, %v17284_v51, 0 }
0x2132   :  { %v17355_v38 = vand.u32 4294901760, %v17286_v54 }
0x2134   :  { %v17356_v37 = vsub.f32 %v17286_v54, %v17355_v38  ;;  %32164 = vmatmul.mubr.f32.vlgmr.msra.gmra.mxu1 %v17355_v38 }
0x2135   :  { %32174 = vmatpush3.msra.mxu1 %v33483_v21  ;;  %32177 = vmatprep.mubr.msk.f32.mxu1 %vm33380_vm2, %v33379_v3 }
0x2136   :  { %32175 = vmatprep.subr.mxu1 %v33379_v3  ;;  %v17357_v60 = vand.u32 4294901760, %v17356_v37 }
0x2137   :  { %32176 = vmatpush3.msra.mxu1 %v33491_v24 }
0x2138   :  { %32178 = vmatmul.mubr.f32.vlgmr.msra.gmra.mxu1 %v17357_v60  ;;  %32187 = vmatprep.subr.mxu1 %v33379_v3  ;;  %v17358_v40 = vsub.f32 %v17356_v37, %v17357_v60 }
0x2139   :  { %32188 = vmatpush3.msra.mxu1 %v33483_v21  ;;  %32191 = vmatprep.mubr.msk.f32.mxu1 %vm33380_vm2, %v33379_v3 }
0x213a   :  { %32189 = vmatprep.subr.mxu1 %v33379_v3  ;;  %v17359_v41 = vand.u32 4294901760, %v17358_v40 }
0x213b   :  { %32190 = vmatpush3.msra.mxu1 %v33491_v24 }
0x213c   :  { %32157 = vmatmul.mubr.f32.vlgmr.msra.gmra.mxu0 %v17359_v41  ;;  %32192 = vmatmul.mubr.f32.vlgmr.msra.gmra.mxu1 %v17355_v38 }
0x213d   :  { %32167 = vmatpush3.msra.mxu0 %v33489_v23  ;;  %32170 = vmatprep.mubr.msk.f32.mxu0 %vm33380_vm2, %v33379_v3 }
0x213e   :  { %32168 = vmatprep.subr.mxu0 %v33379_v3  ;;  %32201 = vmatprep.subr.mxu1 %v33379_v3 }
0x213f   :  { %32169 = vmatpush3.msra.mxu0 %v33499_v26  ;;  %32202 = vmatpush3.msra.mxu1 %v34749_v34 }
0x2140   :  { %32171 = vmatmul.mubr.f32.vlgmr.msra.gmra.mxu0 %v17356_v37  ;;  %32180 = vmatprep.subr.mxu0 %v33379_v3 }
0x2141   :  { %32181 = vmatpush3.msra.mxu0 %v33496_v25  ;;  %32184 = vmatprep.mubr.msk.f32.mxu0 %vm33380_vm2, %v33379_v3 }
0x2142   :  { %32182 = vmatprep.subr.mxu0 %v33379_v3  ;;  %32203 = vmatprep.subr.mxu1 %v33379_v3 }
0x2143   :  { %32183 = vmatpush3.msra.mxu0 %v33506_v28  ;;  %32204 = vmatpush3.msra.mxu1 %v34754_v22 }
0x2144   :  { %32185 = vmatmul.mubr.f32.vlgmr.msra.gmra.mxu0 %v17355_v38  ;;  %32205 = vmatprep.mubr.msk.f32.mxu1 %vm33380_vm2, %v33379_v3 }
0x2145   :  { %32215 = vmatprep.subr.mxu1 %v33379_v3  ;;  %32194 = vmatprep.subr.mxu0 %v33379_v3 }
0x2146   :  { %32195 = vmatpush3.msra.mxu0 %v34724_v59  ;;  %32198 = vmatprep.mubr.msk.f32.mxu0 %vm33380_vm2, %v33379_v3 }
0x2147   :  { %32196 = vmatprep.subr.mxu0 %v33379_v3 }
0x2148   :  { %32197 = vmatpush3.msra.mxu0 %v34732_v1 }
0x2149   :  { %32208 = vmatprep.subr.mxu0 %v33379_v3 }
0x21f4   :  { %v17442_v47 = vpop.f32.mrf.mxu1 }
0x21f6   :  { %v32165_v17 = vpop.f32.mrf.mxu1 }
0x21f8   :  { %v17593_v57 = vpop.f32.mrf.mxu1 }
0x21fa   :  { %v32179_v58 = vpop.f32.mrf.mxu1 }
0x21fc   :  { %v17361_v62 = vpop.f32.mrf.mxu0  ;;  %v17743_v14 = vpop.f32.mrf.mxu1 }
0x21fd   :  { %v17362_v19 = vadd.f32 %v35133_v55, %v17361_v62 }
0x21fe   :  { %v32158_v0 = vpop.f32.mrf.mxu0  ;;  %v32193_v27 = vpop.f32.mrf.mxu1 }
0x21ff   :  { %v17443_v6 = vadd.f32 %v17442_v47, %v17362_v19 }
0x2200   :  { %v17518_v8 = vpop.f32.mrf.mxu0 }
0x2201   :  { %v17519_v11 = vadd.f32 %v17518_v8, %v17443_v6 }
0x2202   :  { %v32172_v13 = vpop.f32.mrf.mxu0 }
0x2203   :  { %v17594_v30 = vadd.f32 %v17593_v57, %v17519_v11 }
0x2204   :  { %v17670_v43 = vpop.f32.mrf.mxu0 }
0x2205   :  { %v17671_v36 = vadd.f32 %v17670_v43, %v17594_v30 }
0x2206   :  { %v32186_v39 = vpop.f32.mrf.mxu0 }
0x2207   :  { %v17744_v42 = vadd.f32 %v17743_v14, %v17671_v36 }
0x2209   :  { %v17748_v44 = vmul.f32 1.442695, %v17744_v42  ;;  %vm17747_vm15 = vcmp.gt.f32.partialorder %v17744_v42, 0.0 }
0x220b   :  { %33299 = vpow2.f32 %v17748_v44 }
0x2218   :  { %v33300_v46 = vpop.eup %33299 }
0x2219   :  { %v29447_v32 = vadd.f32 -1.0, %v33300_v46 }
0x221b   :  { %v17751_v2 = vsel %vm17747_vm15, %v17744_v42, %v29447_v32 }
0x221c   :  { %v17753_v48 = vsel %vm39_vm1, %v17751_v2, 0 }
0x221d   :  { %v17822_v33 = vand.u32 4294901760, %v17753_v48 }
0x221f   :  { %v17823_v35 = vsub.f32 %v17753_v48, %v17822_v33  ;;  %32206 = vmatmul.mubr.f32.vlgmr.msra.gmra.mxu1 %v17822_v33 }
0x2220   :  { %32216 = vmatpush3.msra.mxu1 %v34724_v59  ;;  %32219 = vmatprep.mubr.msk.f32.mxu1 %vm33380_vm2, %v33379_v3 }
0x2221   :  { %32217 = vmatprep.subr.mxu1 %v33379_v3  ;;  %v17824_v45 = vand.u32 4294901760, %v17823_v35 }
0x2222   :  { %32218 = vmatpush3.msra.mxu1 %v34732_v1 }
0x2223   :  { %32220 = vmatmul.mubr.f32.vlgmr.msra.gmra.mxu1 %v17824_v45  ;;  %32229 = vmatprep.subr.mxu1 %v33379_v3  ;;  %v17825_v49 = vsub.f32 %v17823_v35, %v17824_v45 }
0x2224   :  { %32230 = vmatpush3.msra.mxu1 %v34724_v59  ;;  %32233 = vmatprep.mubr.msk.f32.mxu1 %vm33380_vm2, %v33379_v3 }
0x2225   :  { %32231 = vmatprep.subr.mxu1 %v33379_v3  ;;  %v17826_v50 = vand.u32 4294901760, %v17825_v49 }
0x2226   :  { %32232 = vmatpush3.msra.mxu1 %v34732_v1 }
0x2227   :  { %32199 = vmatmul.mubr.f32.vlgmr.msra.gmra.mxu0 %v17826_v50  ;;  %32234 = vmatmul.mubr.f32.vlgmr.msra.gmra.mxu1 %v17822_v33 }
0x2228   :  { %32209 = vmatpush3.msra.mxu0 %v34730_v52  ;;  %32212 = vmatprep.mubr.msk.f32.mxu0 %vm33380_vm2, %v33379_v3 }
0x2229   :  { %32210 = vmatprep.subr.mxu0 %v33379_v3  ;;  %32243 = vmatprep.subr.mxu1 %v33379_v3 }
0x222a   :  { %32211 = vmatpush3.msra.mxu0 %v34740_v53  ;;  %32244 = vmatpush3.msra.mxu1 %v33444_v16 }
0x222b   :  { %32213 = vmatmul.mubr.f32.vlgmr.msra.gmra.mxu0 %v17823_v35  ;;  %32222 = vmatprep.subr.mxu0 %v33379_v3 }
0x222c   :  { %32223 = vmatpush3.msra.mxu0 %v34737_v20  ;;  %32226 = vmatprep.mubr.msk.f32.mxu0 %vm33380_vm2, %v33379_v3 }
0x222d   :  { %32224 = vmatprep.subr.mxu0 %v33379_v3  ;;  %32245 = vmatprep.subr.mxu1 %v33379_v3 }
0x222e   :  { %32225 = vmatpush3.msra.mxu0 %v34747_v63  ;;  %32246 = vmatpush3.msra.mxu1 %v33446_v18 }
0x222f   :  { %32227 = vmatmul.mubr.f32.vlgmr.msra.gmra.mxu0 %v17822_v33  ;;  %32247 = vmatprep.mubr.msk.f32.mxu1 %vm33380_vm2, %v33379_v3 }
0x2230   :  { %32257 = vmatprep.subr.mxu1 %v33379_v3  ;;  %32236 = vmatprep.subr.mxu0 %v33379_v3 }
0x2231   :  { %32237 = vmatpush3.msra.mxu0 %v33411_v4  ;;  %32240 = vmatprep.mubr.msk.f32.mxu0 %vm33380_vm2, %v33379_v3 }
0x2232   :  { %32238 = vmatprep.subr.mxu0 %v33379_v3 }
0x2233   :  { %32239 = vmatpush3.msra.mxu0 %v33414_v5 }
0x2234   :  { %32250 = vmatprep.subr.mxu0 %v33379_v3 }
0x22df   :  { %v17909_v51 = vpop.f32.mrf.mxu1 }
0x22e1   :  { %v32207_v54 = vpop.f32.mrf.mxu1 }
0x22e3   :  { %v18060_v38 = vpop.f32.mrf.mxu1 }
0x22e5   :  { %v32221_v37 = vpop.f32.mrf.mxu1 }
0x22e7   :  { %v17828_v60 = vpop.f32.mrf.mxu0  ;;  %v18210_v40 = vpop.f32.mrf.mxu1 }
0x22e8   :  { %v17829_v41 = vadd.f32 %v17828_v60, %v34805_v61 }
0x22e9   :  { %v32200_v47 = vpop.f32.mrf.mxu0  ;;  %v32235_v17 = vpop.f32.mrf.mxu1 }
0x22ea   :  { %v17910_v57 = vadd.f32 %v17909_v51, %v17829_v41 }
0x22eb   :  { %v17985_v58 = vpop.f32.mrf.mxu0 }
0x22ec   :  { %v17986_v62 = vadd.f32 %v17985_v58, %v17910_v57 }
0x22ed   :  { %v32214_v14 = vpop.f32.mrf.mxu0 }
0x22ee   :  { %v18061_v19 = vadd.f32 %v18060_v38, %v17986_v62 }
0x22ef   :  { %v18137_v0 = vpop.f32.mrf.mxu0 }
0x22f0   :  { %v18138_v27 = vadd.f32 %v18137_v0, %v18061_v19 }
0x22f1   :  { %v32228_v6 = vpop.f32.mrf.mxu0 }
0x22f2   :  { %v18211_v8 = vadd.f32 %v18210_v40, %v18138_v27 }
0x22f4   :  { %v35175_v11 = vadd.f32 %v18211_v8, %v35045_v56 }
0x22f6   :  { %v18216_v13 = vsel %vm39_vm1, %v35175_v11, 0 }
0x22f7   :  { %v18285_v30 = vand.u32 4294901760, %v18216_v13 }
0x22f9   :  { %v18286_v43 = vsub.f32 %v18216_v13, %v18285_v30  ;;  %32248 = vmatmul.mubr.f32.vlgmr.msra.gmra.mxu1 %v18285_v30 }
0x22fa   :  { %32258 = vmatpush3.msra.mxu1 %v33411_v4  ;;  %32261 = vmatprep.mubr.msk.f32.mxu1 %vm33380_vm2, %v33379_v3 }
0x22fb   :  { %v18287_v36 = vand.u32 4294901760, %v18286_v43  ;;  %32259 = vmatprep.subr.mxu1 %v33379_v3 }
0x22fc   :  { %32260 = vmatpush3.msra.mxu1 %v33414_v5 }
0x22fd   :  { %v18288_v39 = vsub.f32 %v18286_v43, %v18287_v36  ;;  %32262 = vmatmul.mubr.f32.vlgmr.msra.gmra.mxu1 %v18287_v36  ;;  %32271 = vmatprep.subr.mxu1 %v33379_v3 }
0x22fe   :  { %32272 = vmatpush3.msra.mxu1 %v33411_v4  ;;  %32275 = vmatprep.mubr.msk.f32.mxu1 %vm33380_vm2, %v33379_v3 }
0x22ff   :  { %32273 = vmatprep.subr.mxu1 %v33379_v3  ;;  %v18289_v56 = vand.u32 4294901760, %v18288_v39 }
0x2300   :  { %32274 = vmatpush3.msra.mxu1 %v33414_v5 }
0x2301   :  { %32241 = vmatmul.mubr.f32.vlgmr.msra.gmra.mxu0 %v18289_v56  ;;  %32276 = vmatmul.mubr.f32.vlgmr.msra.gmra.mxu1 %v18285_v30 }
0x2302   :  { %32251 = vmatpush3.msra.mxu0 %v33426_v7  ;;  %32254 = vmatprep.mubr.msk.f32.mxu0 %vm33380_vm2, %v33379_v3 }
0x2303   :  { %32252 = vmatprep.subr.mxu0 %v33379_v3  ;;  %32285 = vmatprep.subr.mxu1 %v33379_v3 }
0x2304   :  { %32253 = vmatpush3.msra.mxu0 %v33429_v9  ;;  %32286 = vmatpush3.msra.mxu1 %v33508_v29 }
0x2305   :  { %32255 = vmatmul.mubr.f32.vlgmr.msra.gmra.mxu0 %v18286_v43  ;;  %32264 = vmatprep.subr.mxu0 %v33379_v3 }
0x2306   :  { %32265 = vmatpush3.msra.mxu0 %v33434_v10  ;;  %32268 = vmatprep.mubr.msk.f32.mxu0 %vm33380_vm2, %v33379_v3 }
0x2307   :  { %32266 = vmatprep.subr.mxu0 %v33379_v3  ;;  %32287 = vmatprep.subr.mxu1 %v33379_v3 }
0x2308   :  { %32267 = vmatpush3.msra.mxu0 %v33437_v12  ;;  %32288 = vmatpush3.msra.mxu1 %v33513_v31 }
0x2309   :  { %32269 = vmatmul.mubr.f32.vlgmr.msra.gmra.mxu0 %v18285_v30  ;;  %32289 = vmatprep.mubr.msk.f32.mxu1 %vm33380_vm2, %v33379_v3 }
0x230a   :  { %32299 = vmatprep.subr.mxu1 %v33379_v3  ;;  %32278 = vmatprep.subr.mxu0 %v33379_v3 }
0x230b   :  { %32279 = vmatpush3.msra.mxu0 %v33483_v21  ;;  %32282 = vmatprep.mubr.msk.f32.mxu0 %vm33380_vm2, %v33379_v3 }
0x230c   :  { %32280 = vmatprep.subr.mxu0 %v33379_v3 }
0x230d   :  { %32281 = vmatpush3.msra.mxu0 %v33491_v24 }
0x230e   :  { %32292 = vmatprep.subr.mxu0 %v33379_v3 }
0x23b9   :  { %v18372_v42 = vpop.f32.mrf.mxu1 }
0x23bb   :  { %v32249_v44 = vpop.f32.mrf.mxu1 }
0x23bd   :  { %v18523_v46 = vpop.f32.mrf.mxu1 }
0x23bf   :  { %v32263_v32 = vpop.f32.mrf.mxu1 }
0x23c1   :  { %v18291_v2 = vpop.f32.mrf.mxu0  ;;  %v18673_v48 = vpop.f32.mrf.mxu1 }
0x23c2   :  { %v18292_v33 = vadd.f32 %v35090_v15, %v18291_v2 }
0x23c3   :  { %v32242_v35 = vpop.f32.mrf.mxu0  ;;  %v32277_v45 = vpop.f32.mrf.mxu1 }
0x23c4   :  { %v18373_v49 = vadd.f32 %v18372_v42, %v18292_v33 }
0x23c5   :  { %v18448_v50 = vpop.f32.mrf.mxu0 }
0x23c6   :  { %v18449_v51 = vadd.f32 %v18448_v50, %v18373_v49 }
0x23c7   :  { %v32256_v54 = vpop.f32.mrf.mxu0 }
0x23c8   :  { %v18524_v38 = vadd.f32 %v18523_v46, %v18449_v51 }
0x23c9   :  { %v18600_v37 = vpop.f32.mrf.mxu0 }
0x23ca   :  { %v18601_v60 = vadd.f32 %v18600_v37, %v18524_v38 }
0x23cb   :  { %v32270_v40 = vpop.f32.mrf.mxu0 }
0x23cc   :  { %v18674_v41 = vadd.f32 %v18673_v48, %v18601_v60 }
0x23ce   :  { %v18678_v47 = vmul.f32 1.442695, %v18674_v41  ;;  %vm18677_vm3 = vcmp.gt.f32.partialorder %v18674_v41, 0.0 }
0x23d0   :  { %33301 = vpow2.f32 %v18678_v47 }
0x23dd   :  { %v33302_v17 = vpop.eup %33301 }
0x23de   :  { %v29448_v57 = vadd.f32 -1.0, %v33302_v17 }
0x23e0   :  { %v18681_v58 = vsel %vm18677_vm3, %v18674_v41, %v29448_v57 }
0x23e1   :  { %v18683_v62 = vsel %vm39_vm1, %v18681_v58, 0 }
0x23e2   :  { %v18752_v14 = vand.u32 4294901760, %v18683_v62 }
0x23e4   :  { %v18753_v19 = vsub.f32 %v18683_v62, %v18752_v14  ;;  %32290 = vmatmul.mubr.f32.vlgmr.msra.gmra.mxu1 %v18752_v14 }
0x23e5   :  { %32300 = vmatpush3.msra.mxu1 %v33483_v21  ;;  %32303 = vmatprep.mubr.msk.f32.mxu1 %vm33380_vm2, %v33379_v3 }
0x23e6   :  { %32301 = vmatprep.subr.mxu1 %v33379_v3  ;;  %v18754_v0 = vand.u32 4294901760, %v18753_v19 }
0x23e7   :  { %32302 = vmatpush3.msra.mxu1 %v33491_v24 }
0x23e8   :  { %32304 = vmatmul.mubr.f32.vlgmr.msra.gmra.mxu1 %v18754_v0  ;;  %32313 = vmatprep.subr.mxu1 %v33379_v3  ;;  %v18755_v27 = vsub.f32 %v18753_v19, %v18754_v0 }
0x23e9   :  { %32314 = vmatpush3.msra.mxu1 %v33483_v21  ;;  %32317 = vmatprep.mubr.msk.f32.mxu1 %vm33380_vm2, %v33379_v3 }
0x23ea   :  { %32315 = vmatprep.subr.mxu1 %v33379_v3  ;;  %v18756_v6 = vand.u32 4294901760, %v18755_v27 }
0x23eb   :  { %32316 = vmatpush3.msra.mxu1 %v33491_v24 }
0x23ec   :  { %32283 = vmatmul.mubr.f32.vlgmr.msra.gmra.mxu0 %v18756_v6  ;;  %32318 = vmatmul.mubr.f32.vlgmr.msra.gmra.mxu1 %v18752_v14 }
0x23ed   :  { %32293 = vmatpush3.msra.mxu0 %v33489_v23  ;;  %32296 = vmatprep.mubr.msk.f32.mxu0 %vm33380_vm2, %v33379_v3 }
0x23ee   :  { %32294 = vmatprep.subr.mxu0 %v33379_v3  ;;  %32327 = vmatprep.subr.mxu1 %v33379_v3 }
0x23ef   :  { %32295 = vmatpush3.msra.mxu0 %v33499_v26  ;;  %32328 = vmatpush3.msra.mxu1 %v34749_v34 }
0x23f0   :  { %32297 = vmatmul.mubr.f32.vlgmr.msra.gmra.mxu0 %v18753_v19  ;;  %32306 = vmatprep.subr.mxu0 %v33379_v3 }
0x23f1   :  { %32307 = vmatpush3.msra.mxu0 %v33496_v25  ;;  %32310 = vmatprep.mubr.msk.f32.mxu0 %vm33380_vm2, %v33379_v3 }
0x23f2   :  { %32308 = vmatprep.subr.mxu0 %v33379_v3  ;;  %32329 = vmatprep.subr.mxu1 %v33379_v3 }
0x23f3   :  { %32309 = vmatpush3.msra.mxu0 %v33506_v28  ;;  %32330 = vmatpush3.msra.mxu1 %v34754_v22 }
0x23f4   :  { %32311 = vmatmul.mubr.f32.vlgmr.msra.gmra.mxu0 %v18752_v14  ;;  %32331 = vmatprep.mubr.msk.f32.mxu1 %vm33380_vm2, %v33379_v3 }
0x23f5   :  { %32341 = vmatprep.subr.mxu1 %v33379_v3  ;;  %32320 = vmatprep.subr.mxu0 %v33379_v3 }
0x23f6   :  { %32321 = vmatpush3.msra.mxu0 %v34724_v59  ;;  %32324 = vmatprep.mubr.msk.f32.mxu0 %vm33380_vm2, %v33379_v3 }
0x23f7   :  { %32322 = vmatprep.subr.mxu0 %v33379_v3 }
0x23f8   :  { %32323 = vmatpush3.msra.mxu0 %v34732_v1 }
0x23f9   :  { %32334 = vmatprep.subr.mxu0 %v33379_v3 }
0x24a4   :  { %v18839_v8 = vpop.f32.mrf.mxu1 }
0x24a6   :  { %v32291_v13 = vpop.f32.mrf.mxu1 }
0x24a8   :  { %v18990_v30 = vpop.f32.mrf.mxu1 }
0x24aa   :  { %v32305_v43 = vpop.f32.mrf.mxu1 }
0x24ac   :  { %v18758_v36 = vpop.f32.mrf.mxu0  ;;  %v19140_v39 = vpop.f32.mrf.mxu1 }
0x24ad   :  { %v18759_v56 = vadd.f32 %v35133_v55, %v18758_v36 }
0x24ae   :  { %v32284_v42 = vpop.f32.mrf.mxu0  ;;  %v32319_v44 = vpop.f32.mrf.mxu1 }
0x24af   :  { %v18840_v46 = vadd.f32 %v18839_v8, %v18759_v56 }
0x24b0   :  { %v18915_v32 = vpop.f32.mrf.mxu0 }
0x24b1   :  { %v18916_v2 = vadd.f32 %v18915_v32, %v18840_v46 }
0x24b2   :  { %v32298_v48 = vpop.f32.mrf.mxu0 }
0x24b3   :  { %v18991_v33 = vadd.f32 %v18990_v30, %v18916_v2 }
0x24b4   :  { %v19067_v35 = vpop.f32.mrf.mxu0 }
0x24b5   :  { %v19068_v45 = vadd.f32 %v19067_v35, %v18991_v33 }
0x24b6   :  { %v32312_v49 = vpop.f32.mrf.mxu0 }
0x24b7   :  { %v19141_v50 = vadd.f32 %v19140_v39, %v19068_v45 }
0x24b9   :  { %v19145_v51 = vmul.f32 1.442695, %v19141_v50  ;;  %vm19144_vm4 = vcmp.gt.f32.partialorder %v19141_v50, 0.0 }
0x24bb   :  { %33303 = vpow2.f32 %v19145_v51 }
0x24c8   :  { %v33304_v54 = vpop.eup %33303 }
0x24c9   :  { %v29449_v38 = vadd.f32 -1.0, %v33304_v54 }
0x24cb   :  { %v19148_v37 = vsel %vm19144_vm4, %v19141_v50, %v29449_v38 }
0x24cc   :  { %v19150_v60 = vsel %vm39_vm1, %v19148_v37, 0 }
0x24cd   :  { %v19219_v40 = vand.u32 4294901760, %v19150_v60 }
0x24cf   :  { %v19220_v41 = vsub.f32 %v19150_v60, %v19219_v40  ;;  %32332 = vmatmul.mubr.f32.vlgmr.msra.gmra.mxu1 %v19219_v40 }
0x24d0   :  { %32342 = vmatpush3.msra.mxu1 %v34724_v59  ;;  %32345 = vmatprep.mubr.msk.f32.mxu1 %vm33380_vm2, %v33379_v3 }
0x24d1   :  { %32343 = vmatprep.subr.mxu1 %v33379_v3  ;;  %v19221_v47 = vand.u32 4294901760, %v19220_v41 }
0x24d2   :  { %32344 = vmatpush3.msra.mxu1 %v34732_v1 }
0x24d3   :  { %32346 = vmatmul.mubr.f32.vlgmr.msra.gmra.mxu1 %v19221_v47  ;;  %32355 = vmatprep.subr.mxu1 %v33379_v3  ;;  %v19222_v17 = vsub.f32 %v19220_v41, %v19221_v47 }
0x24d4   :  { %32356 = vmatpush3.msra.mxu1 %v34724_v59  ;;  %32359 = vmatprep.mubr.msk.f32.mxu1 %vm33380_vm2, %v33379_v3 }
0x24d5   :  { %32357 = vmatprep.subr.mxu1 %v33379_v3  ;;  %v19223_v57 = vand.u32 4294901760, %v19222_v17 }
0x24d6   :  { %32358 = vmatpush3.msra.mxu1 %v34732_v1 }
0x24d7   :  { %32325 = vmatmul.mubr.f32.vlgmr.msra.gmra.mxu0 %v19223_v57  ;;  %32360 = vmatmul.mubr.f32.vlgmr.msra.gmra.mxu1 %v19219_v40 }
0x24d8   :  { %32335 = vmatpush3.msra.mxu0 %v34730_v52  ;;  %32338 = vmatprep.mubr.msk.f32.mxu0 %vm33380_vm2, %v33379_v3 }
0x24d9   :  { %32336 = vmatprep.subr.mxu0 %v33379_v3  ;;  %32369 = vmatprep.subr.mxu1 %v33379_v3 }
0x24da   :  { %32337 = vmatpush3.msra.mxu0 %v34740_v53  ;;  %32370 = vmatpush3.msra.mxu1 %v33444_v16 }
0x24db   :  { %32339 = vmatmul.mubr.f32.vlgmr.msra.gmra.mxu0 %v19220_v41  ;;  %32348 = vmatprep.subr.mxu0 %v33379_v3 }
0x24dc   :  { %32349 = vmatpush3.msra.mxu0 %v34737_v20  ;;  %32352 = vmatprep.mubr.msk.f32.mxu0 %vm33380_vm2, %v33379_v3 }
0x24dd   :  { %32350 = vmatprep.subr.mxu0 %v33379_v3  ;;  %32371 = vmatprep.subr.mxu1 %v33379_v3 }
0x24de   :  { %32351 = vmatpush3.msra.mxu0 %v34747_v63  ;;  %32372 = vmatpush3.msra.mxu1 %v33446_v18 }
0x24df   :  { %32353 = vmatmul.mubr.f32.vlgmr.msra.gmra.mxu0 %v19219_v40  ;;  %32373 = vmatprep.mubr.msk.f32.mxu1 %vm33380_vm2, %v33379_v3 }
0x24e0   :  { %32383 = vmatprep.subr.mxu1 %v33379_v3  ;;  %32362 = vmatprep.subr.mxu0 %v33379_v3 }
0x24e1   :  { %32363 = vmatpush3.msra.mxu0 %v33411_v4  ;;  %32366 = vmatprep.mubr.msk.f32.mxu0 %vm33380_vm2, %v33379_v3 }
0x24e2   :  { %32364 = vmatprep.subr.mxu0 %v33379_v3 }
0x24e3   :  { %32365 = vmatpush3.msra.mxu0 %v33414_v5 }
0x24e4   :  { %32376 = vmatprep.subr.mxu0 %v33379_v3 }
0x258f   :  { %v19306_v58 = vpop.f32.mrf.mxu1 }
0x2591   :  { %v32333_v62 = vpop.f32.mrf.mxu1 }
0x2593   :  { %v19457_v14 = vpop.f32.mrf.mxu1 }
0x2595   :  { %v32347_v19 = vpop.f32.mrf.mxu1 }
0x2597   :  { %v19225_v0 = vpop.f32.mrf.mxu0  ;;  %v19607_v27 = vpop.f32.mrf.mxu1 }
0x2598   :  { %v19226_v6 = vadd.f32 %v19225_v0, %v34805_v61 }
0x2599   :  { %v32326_v8 = vpop.f32.mrf.mxu0  ;;  %v32361_v13 = vpop.f32.mrf.mxu1 }
0x259a   :  { %v19307_v30 = vadd.f32 %v19306_v58, %v19226_v6 }
0x259b   :  { %v19382_v43 = vpop.f32.mrf.mxu0 }
0x259c   :  { %v19383_v36 = vadd.f32 %v19382_v43, %v19307_v30 }
0x259d   :  { %v32340_v39 = vpop.f32.mrf.mxu0 }
0x259e   :  { %v19458_v56 = vadd.f32 %v19457_v14, %v19383_v36 }
0x259f   :  { %v19534_v42 = vpop.f32.mrf.mxu0 }
0x25a0   :  { %v19535_v44 = vadd.f32 %v19534_v42, %v19458_v56 }
0x25a1   :  { %v32354_v46 = vpop.f32.mrf.mxu0 }
0x25a2   :  { %v19608_v32 = vadd.f32 %v19607_v27, %v19535_v44 }
0x25a4   :  { %v35293_v2 = vadd.f32 %v19608_v32, %v35175_v11 }
0x25a6   :  { %v19613_v48 = vsel %vm39_vm1, %v35293_v2, 0 }
0x25a7   :  { %v19682_v33 = vand.u32 4294901760, %v19613_v48 }
0x25a9   :  { %v19683_v35 = vsub.f32 %v19613_v48, %v19682_v33  ;;  %32374 = vmatmul.mubr.f32.vlgmr.msra.gmra.mxu1 %v19682_v33 }
0x25aa   :  { %32384 = vmatpush3.msra.mxu1 %v33411_v4  ;;  %32387 = vmatprep.mubr.msk.f32.mxu1 %vm33380_vm2, %v33379_v3 }
0x25ab   :  { %v19684_v45 = vand.u32 4294901760, %v19683_v35  ;;  %32385 = vmatprep.subr.mxu1 %v33379_v3 }
0x25ac   :  { %32386 = vmatpush3.msra.mxu1 %v33414_v5 }
0x25ad   :  { %v19685_v49 = vsub.f32 %v19683_v35, %v19684_v45  ;;  %32388 = vmatmul.mubr.f32.vlgmr.msra.gmra.mxu1 %v19684_v45  ;;  %32397 = vmatprep.subr.mxu1 %v33379_v3 }
0x25ae   :  { %32398 = vmatpush3.msra.mxu1 %v33411_v4  ;;  %32401 = vmatprep.mubr.msk.f32.mxu1 %vm33380_vm2, %v33379_v3 }
0x25af   :  { %32399 = vmatprep.subr.mxu1 %v33379_v3  ;;  %v19686_v11 = vand.u32 4294901760, %v19685_v49 }
0x25b0   :  { %32400 = vmatpush3.msra.mxu1 %v33414_v5 }
0x25b1   :  { %32367 = vmatmul.mubr.f32.vlgmr.msra.gmra.mxu0 %v19686_v11  ;;  %32402 = vmatmul.mubr.f32.vlgmr.msra.gmra.mxu1 %v19682_v33 }
0x25b2   :  { %32377 = vmatpush3.msra.mxu0 %v33426_v7  ;;  %32380 = vmatprep.mubr.msk.f32.mxu0 %vm33380_vm2, %v33379_v3 }
0x25b3   :  { %32378 = vmatprep.subr.mxu0 %v33379_v3  ;;  %32411 = vmatprep.subr.mxu1 %v33379_v3 }
0x25b4   :  { %32379 = vmatpush3.msra.mxu0 %v33429_v9  ;;  %32412 = vmatpush3.msra.mxu1 %v33508_v29 }
0x25b5   :  { %32381 = vmatmul.mubr.f32.vlgmr.msra.gmra.mxu0 %v19683_v35  ;;  %32390 = vmatprep.subr.mxu0 %v33379_v3 }
0x25b6   :  { %32391 = vmatpush3.msra.mxu0 %v33434_v10  ;;  %32394 = vmatprep.mubr.msk.f32.mxu0 %vm33380_vm2, %v33379_v3 }
0x25b7   :  { %32392 = vmatprep.subr.mxu0 %v33379_v3  ;;  %32413 = vmatprep.subr.mxu1 %v33379_v3 }
0x25b8   :  { %32393 = vmatpush3.msra.mxu0 %v33437_v12  ;;  %32414 = vmatpush3.msra.mxu1 %v33513_v31 }
0x25b9   :  { %32395 = vmatmul.mubr.f32.vlgmr.msra.gmra.mxu0 %v19682_v33  ;;  %32415 = vmatprep.mubr.msk.f32.mxu1 %vm33380_vm2, %v33379_v3 }
0x25ba   :  { %32425 = vmatprep.subr.mxu1 %v33379_v3  ;;  %32404 = vmatprep.subr.mxu0 %v33379_v3 }
0x25bb   :  { %32405 = vmatpush3.msra.mxu0 %v33483_v21  ;;  %32408 = vmatprep.mubr.msk.f32.mxu0 %vm33380_vm2, %v33379_v3 }
0x25bc   :  { %32406 = vmatprep.subr.mxu0 %v33379_v3 }
0x25bd   :  { %32407 = vmatpush3.msra.mxu0 %v33491_v24 }
0x25be   :  { %32418 = vmatprep.subr.mxu0 %v33379_v3 }
0x2669   :  { %v19769_v50 = vpop.f32.mrf.mxu1 }
0x266b   :  { %v32375_v51 = vpop.f32.mrf.mxu1 }
0x266d   :  { %v19920_v54 = vpop.f32.mrf.mxu1 }
0x266f   :  { %v32389_v38 = vpop.f32.mrf.mxu1 }
0x2671   :  { %v19688_v37 = vpop.f32.mrf.mxu0  ;;  %v20070_v60 = vpop.f32.mrf.mxu1 }
0x2672   :  { %v19689_v40 = vadd.f32 %v35090_v15, %v19688_v37 }
0x2673   :  { %v32368_v41 = vpop.f32.mrf.mxu0  ;;  %v32403_v47 = vpop.f32.mrf.mxu1 }
0x2674   :  { %v19770_v17 = vadd.f32 %v19769_v50, %v19689_v40 }
0x2675   :  { %v19845_v57 = vpop.f32.mrf.mxu0 }
0x2676   :  { %v19846_v58 = vadd.f32 %v19845_v57, %v19770_v17 }
0x2677   :  { %v32382_v62 = vpop.f32.mrf.mxu0 }
0x2678   :  { %v19921_v14 = vadd.f32 %v19920_v54, %v19846_v58 }
0x2679   :  { %v19997_v19 = vpop.f32.mrf.mxu0 }
0x267a   :  { %v19998_v0 = vadd.f32 %v19997_v19, %v19921_v14 }
0x267b   :  { %v32396_v27 = vpop.f32.mrf.mxu0 }
0x267c   :  { %v20071_v6 = vadd.f32 %v20070_v60, %v19998_v0 }
0x267e   :  { %v20075_v8 = vmul.f32 1.442695, %v20071_v6  ;;  %vm20074_vm5 = vcmp.gt.f32.partialorder %v20071_v6, 0.0 }
0x2680   :  { %33305 = vpow2.f32 %v20075_v8 }
0x268d   :  { %v33306_v13 = vpop.eup %33305 }
0x268e   :  { %v29450_v30 = vadd.f32 -1.0, %v33306_v13 }
0x2690   :  { %v20078_v43 = vsel %vm20074_vm5, %v20071_v6, %v29450_v30 }
0x2691   :  { %v20080_v36 = vsel %vm39_vm1, %v20078_v43, 0 }
0x2692   :  { %v20149_v15 = vand.u32 4294901760, %v20080_v36 }
0x2694   :  { %v20150_v39 = vsub.f32 %v20080_v36, %v20149_v15  ;;  %32416 = vmatmul.mubr.f32.vlgmr.msra.gmra.mxu1 %v20149_v15 }
0x2695   :  { %32426 = vmatpush3.msra.mxu1 %v33483_v21  ;;  %32429 = vmatprep.mubr.msk.f32.mxu1 %vm33380_vm2, %v33379_v3 }
0x2696   :  { %32427 = vmatprep.subr.mxu1 %v33379_v3  ;;  %v20151_v56 = vand.u32 4294901760, %v20150_v39 }
0x2697   :  { %32428 = vmatpush3.msra.mxu1 %v33491_v24 }
0x2698   :  { %32430 = vmatmul.mubr.f32.vlgmr.msra.gmra.mxu1 %v20151_v56  ;;  %32439 = vmatprep.subr.mxu1 %v33379_v3  ;;  %v20152_v42 = vsub.f32 %v20150_v39, %v20151_v56 }
0x2699   :  { %32440 = vmatpush3.msra.mxu1 %v33483_v21  ;;  %32443 = vmatprep.mubr.msk.f32.mxu1 %vm33380_vm2, %v33379_v3 }
0x269a   :  { %32441 = vmatprep.subr.mxu1 %v33379_v3  ;;  %v20153_v44 = vand.u32 4294901760, %v20152_v42 }
0x269b   :  { %32442 = vmatpush3.msra.mxu1 %v33491_v24 }
0x269c   :  { %32409 = vmatmul.mubr.f32.vlgmr.msra.gmra.mxu0 %v20153_v44  ;;  %32444 = vmatmul.mubr.f32.vlgmr.msra.gmra.mxu1 %v20149_v15 }
0x269d   :  { %32419 = vmatpush3.msra.mxu0 %v33489_v23  ;;  %32422 = vmatprep.mubr.msk.f32.mxu0 %vm33380_vm2, %v33379_v3 }
0x269e   :  { %32420 = vmatprep.subr.mxu0 %v33379_v3  ;;  %32453 = vmatprep.subr.mxu1 %v33379_v3 }
0x269f   :  { %32421 = vmatpush3.msra.mxu0 %v33499_v26  ;;  %32454 = vmatpush3.msra.mxu1 %v34749_v34 }
0x26a0   :  { %32423 = vmatmul.mubr.f32.vlgmr.msra.gmra.mxu0 %v20150_v39  ;;  %32432 = vmatprep.subr.mxu0 %v33379_v3 }
0x26a1   :  { %32433 = vmatpush3.msra.mxu0 %v33496_v25  ;;  %32436 = vmatprep.mubr.msk.f32.mxu0 %vm33380_vm2, %v33379_v3 }
0x26a2   :  { %32434 = vmatprep.subr.mxu0 %v33379_v3  ;;  %32455 = vmatprep.subr.mxu1 %v33379_v3 }
0x26a3   :  { %32435 = vmatpush3.msra.mxu0 %v33506_v28  ;;  %32456 = vmatpush3.msra.mxu1 %v34754_v22 }
0x26a4   :  { %32437 = vmatmul.mubr.f32.vlgmr.msra.gmra.mxu0 %v20149_v15  ;;  %32457 = vmatprep.mubr.msk.f32.mxu1 %vm33380_vm2, %v33379_v3 }
0x26a5   :  { %32467 = vmatprep.subr.mxu1 %v33379_v3  ;;  %32446 = vmatprep.subr.mxu0 %v33379_v3 }
0x26a6   :  { %32447 = vmatpush3.msra.mxu0 %v34724_v59  ;;  %32450 = vmatprep.mubr.msk.f32.mxu0 %vm33380_vm2, %v33379_v3 }
0x26a7   :  { %32448 = vmatprep.subr.mxu0 %v33379_v3 }
0x26a8   :  { %32449 = vmatpush3.msra.mxu0 %v34732_v1 }
0x26a9   :  { %32460 = vmatprep.subr.mxu0 %v33379_v3 }
0x2754   :  { %v20236_v34 = vpop.f32.mrf.mxu1 }
0x2756   :  { %v32417_v22 = vpop.f32.mrf.mxu1 }
0x2758   :  { %v20387_v46 = vpop.f32.mrf.mxu1 }
0x275a   :  { %v32431_v32 = vpop.f32.mrf.mxu1 }
0x275c   :  { %v20155_v48 = vpop.f32.mrf.mxu0  ;;  %v20537_v33 = vpop.f32.mrf.mxu1 }
0x275d   :  { %v20156_v35 = vadd.f32 %v35133_v55, %v20155_v48 }
0x275e   :  { %v32410_v45 = vpop.f32.mrf.mxu0  ;;  %v32445_v49 = vpop.f32.mrf.mxu1 }
0x275f   :  { %v20237_v11 = vadd.f32 %v20236_v34, %v20156_v35 }
0x2760   :  { %v20312_v50 = vpop.f32.mrf.mxu0 }
0x2761   :  { %v20313_v51 = vadd.f32 %v20312_v50, %v20237_v11 }
0x2762   :  { %v32424_v54 = vpop.f32.mrf.mxu0 }
0x2763   :  { %v20388_v38 = vadd.f32 %v20387_v46, %v20313_v51  ;;  %v35456_v54 = vld [vmem:[%s36204_s1 + $0x30] ss:$0 sm:$0xff] }
0x2764   :  { %v20464_v37 = vpop.f32.mrf.mxu0 }
0x2765   :  { %v20465_v60 = vadd.f32 %v20464_v37, %v20388_v38 }
0x2766   :  { %v32438_v40 = vpop.f32.mrf.mxu0 }
0x2767   :  { %v20538_v41 = vadd.f32 %v20537_v33, %v20465_v60 }
0x2769   :  { %v20542_v47 = vmul.f32 1.442695, %v20538_v41  ;;  %vm20541_vm6 = vcmp.gt.f32.partialorder %v20538_v41, 0.0 }
0x276b   :  { %33307 = vpow2.f32 %v20542_v47 }
0x2778   :  { %v33308_v17 = vpop.eup %33307 }
0x2779   :  { %v29451_v57 = vadd.f32 -1.0, %v33308_v17 }
0x277b   :  { %v20545_v58 = vsel %vm20541_vm6, %v20538_v41, %v29451_v57 }
0x277c   :  { %v20547_v62 = vsel %vm39_vm1, %v20545_v58, 0 }
0x277d   :  { %v20616_v55 = vand.u32 4294901760, %v20547_v62 }
0x277f   :  { %v20617_v14 = vsub.f32 %v20547_v62, %v20616_v55  ;;  %32458 = vmatmul.mubr.f32.vlgmr.msra.gmra.mxu1 %v20616_v55 }
0x2780   :  { %32468 = vmatpush3.msra.mxu1 %v34724_v59  ;;  %32471 = vmatprep.mubr.msk.f32.mxu1 %vm33380_vm2, %v33379_v3 }
0x2781   :  { %32469 = vmatprep.subr.mxu1 %v33379_v3  ;;  %v20618_v19 = vand.u32 4294901760, %v20617_v14 }
0x2782   :  { %32470 = vmatpush3.msra.mxu1 %v34732_v1 }
0x2783   :  { %32472 = vmatmul.mubr.f32.vlgmr.msra.gmra.mxu1 %v20618_v19  ;;  %32481 = vmatprep.subr.mxu1 %v33379_v3  ;;  %v20619_v0 = vsub.f32 %v20617_v14, %v20618_v19 }
0x2784   :  { %32482 = vmatpush3.msra.mxu1 %v34724_v59  ;;  %32485 = vmatprep.mubr.msk.f32.mxu1 %vm33380_vm2, %v33379_v3 }
0x2785   :  { %32483 = vmatprep.subr.mxu1 %v33379_v3  ;;  %v20620_v27 = vand.u32 4294901760, %v20619_v0 }
0x2786   :  { %32484 = vmatpush3.msra.mxu1 %v34732_v1 }
0x2787   :  { %32451 = vmatmul.mubr.f32.vlgmr.msra.gmra.mxu0 %v20620_v27  ;;  %32486 = vmatmul.mubr.f32.vlgmr.msra.gmra.mxu1 %v20616_v55 }
0x2788   :  { %32461 = vmatpush3.msra.mxu0 %v34730_v52  ;;  %32464 = vmatprep.mubr.msk.f32.mxu0 %vm33380_vm2, %v33379_v3 }
0x2789   :  { %32462 = vmatprep.subr.mxu0 %v33379_v3  ;;  %32495 = vmatprep.subr.mxu1 %v33379_v3 }
0x278a   :  { %32463 = vmatpush3.msra.mxu0 %v34740_v53  ;;  %32496 = vmatpush3.msra.mxu1 %v33444_v16 }
0x278b   :  { %32465 = vmatmul.mubr.f32.vlgmr.msra.gmra.mxu0 %v20617_v14  ;;  %32474 = vmatprep.subr.mxu0 %v33379_v3 }
0x278c   :  { %32475 = vmatpush3.msra.mxu0 %v34737_v20  ;;  %32478 = vmatprep.mubr.msk.f32.mxu0 %vm33380_vm2, %v33379_v3 }
0x278d   :  { %32476 = vmatprep.subr.mxu0 %v33379_v3  ;;  %32497 = vmatprep.subr.mxu1 %v33379_v3 }
0x278e   :  { %32477 = vmatpush3.msra.mxu0 %v34747_v63  ;;  %32498 = vmatpush3.msra.mxu1 %v33446_v18 }
0x278f   :  { %32479 = vmatmul.mubr.f32.vlgmr.msra.gmra.mxu0 %v20616_v55  ;;  %32499 = vmatprep.mubr.msk.f32.mxu1 %vm33380_vm2, %v33379_v3 }
0x2790   :  { %32509 = vmatprep.subr.mxu1 %v33379_v3  ;;  %32488 = vmatprep.subr.mxu0 %v33379_v3 }
0x2791   :  { %32489 = vmatpush3.msra.mxu0 %v33411_v4  ;;  %32492 = vmatprep.mubr.msk.f32.mxu0 %vm33380_vm2, %v33379_v3 }
0x2792   :  { %32490 = vmatprep.subr.mxu0 %v33379_v3 }
0x2793   :  { %32491 = vmatpush3.msra.mxu0 %v33414_v5 }
0x2794   :  { %32502 = vmatprep.subr.mxu0 %v33379_v3 }
0x283f   :  { %v20703_v59 = vpop.f32.mrf.mxu1 }
0x2841   :  { %v32459_v52 = vpop.f32.mrf.mxu1 }
0x2843   :  { %v20854_v1 = vpop.f32.mrf.mxu1 }
0x2845   :  { %v32473_v20 = vpop.f32.mrf.mxu1 }
0x2847   :  { %v20622_v53 = vpop.f32.mrf.mxu0  ;;  %v21004_v63 = vpop.f32.mrf.mxu1 }
0x2848   :  { %v20623_v6 = vadd.f32 %v20622_v53, %v34805_v61 }
0x2849   :  { %v32452_v8 = vpop.f32.mrf.mxu0  ;;  %v32487_v13 = vpop.f32.mrf.mxu1 }
0x284a   :  { %v20704_v30 = vadd.f32 %v20703_v59, %v20623_v6  ;;  %v33348_v8 = vld [vmem:[%s36204_s1 + $0x28] sm:$0xff] }
0x284b   :  { %v20779_v43 = vpop.f32.mrf.mxu0  ;;  %v21012_v13 = vmul.f32 0.047619063, %v33348_v8 }
0x284c   :  { %v20780_v36 = vadd.f32 %v20779_v43, %v20704_v30  ;;  %v33349_v43 = vld [vmem:[%s36204_s1 + $0x20] sm:$0xff] }
0x284d   :  { %v32466_v15 = vpop.f32.mrf.mxu0  ;;  %v35491_v30 = vand.u32 4294901760, %v21012_v13 }
0x284e   :  { %v20855_v39 = vadd.f32 %v20854_v1, %v20780_v36  ;;  %v21011_v36 = vmul.f32 0.047619063, %v33349_v43 }
0x284f   :  { %v20931_v56 = vpop.f32.mrf.mxu0  ;;  %v35497_v15 = vsub.f32 %v21012_v13, %v35491_v30  ;;  %v33351_v13 = vld [vmem:[%s36204_s1 + $0x32] ss:$0 sm:$0xff] }
0x2850   :  { %v20932_v42 = vadd.f32 %v20931_v56, %v20855_v39  ;;  %v35499_v39 = vand.u32 4294901760, %v21011_v36  ;;  %v35572_v43 = vmul.f32 0.047619063, %v33351_v13 }
0x2851   :  { %v32480_v44 = vpop.f32.mrf.mxu0  ;;  %v35504_v56 = vand.u32 4294901760, %v35497_v15 }
0x2852   :  { %v21005_v34 = vadd.f32 %v21004_v63, %v20932_v42  ;;  %v35507_v42 = vsub.f32 %v21011_v36, %v35499_v39 }
0x2853   :  { %v22060_v44 = vsub.f32 %v35497_v15, %v35504_v56 }
0x2854   :  { %v35411_v22 = vadd.f32 %v21005_v34, %v35293_v2  ;;  %v35514_v34 = vand.u32 4294901760, %v35507_v42 }
0x2856   :  { %21010 = vst.msk [vmem:[#allocation2 + $0x14] sm:$0xf] %vm34_vm0, %v35411_v22  ;;  %v21015_v61 = vsel %vm39_vm1, %v35411_v22, 0 }
0x2857   :  { %v21084_v46 = vand.u32 4294901760, %v21015_v61 }
0x2859   :  { %v21085_v32 = vsub.f32 %v21015_v61, %v21084_v46  ;;  %32500 = vmatmul.mubr.f32.vlgmr.msra.gmra.mxu1 %v21084_v46  ;;  %v35516_v61 = vand.u32 4294901760, %v22060_v44 }
0x285a   :  { %32510 = vmatpush3.msra.mxu1 %v33411_v4  ;;  %32513 = vmatprep.mubr.msk.f32.mxu1 %vm33380_vm2, %v33379_v3 }
0x285b   :  { %32511 = vmatprep.subr.mxu1 %v33379_v3  ;;  %v21086_v48 = vand.u32 4294901760, %v21085_v32 }
0x285c   :  { %32512 = vmatpush3.msra.mxu1 %v33414_v5 }
0x285d   :  { %32514 = vmatmul.mubr.f32.vlgmr.msra.gmra.mxu1 %v21086_v48  ;;  %32523 = vmatprep.subr.mxu1 %v33379_v3  ;;  %v21087_v2 = vsub.f32 %v21085_v32, %v21086_v48 }
0x285e   :  { %32524 = vmatpush3.msra.mxu1 %v33411_v4  ;;  %32527 = vmatprep.mubr.msk.f32.mxu1 %vm33380_vm2, %v33379_v3 }
0x285f   :  { %32525 = vmatprep.subr.mxu1 %v33379_v3  ;;  %v21088_v33 = vand.u32 4294901760, %v21087_v2 }
0x2860   :  { %32526 = vmatpush3.msra.mxu1 %v33414_v5 }
0x2861   :  { %32493 = vmatmul.mubr.f32.vlgmr.msra.gmra.mxu0 %v21088_v33  ;;  %32528 = vmatmul.mubr.f32.vlgmr.msra.gmra.mxu1 %v21084_v46 }
0x2862   :  { %32503 = vmatpush3.msra.mxu0 %v33426_v7  ;;  %32506 = vmatprep.mubr.msk.f32.mxu0 %vm33380_vm2, %v33379_v3 }
0x2863   :  { %32504 = vmatprep.subr.mxu0 %v33379_v3  ;;  %32537 = vmatprep.subr.mxu1 %v33379_v3 }
0x2864   :  { %32505 = vmatpush3.msra.mxu0 %v33429_v9  ;;  %32538 = vmatpush3.msra.mxu1 %v33508_v29 }
0x2865   :  { %32507 = vmatmul.mubr.f32.vlgmr.msra.gmra.mxu0 %v21085_v32  ;;  %32516 = vmatprep.subr.mxu0 %v33379_v3 }
0x2866   :  { %32517 = vmatpush3.msra.mxu0 %v33434_v10  ;;  %32520 = vmatprep.mubr.msk.f32.mxu0 %vm33380_vm2, %v33379_v3 }
0x2867   :  { %32518 = vmatprep.subr.mxu0 %v33379_v3  ;;  %32539 = vmatprep.subr.mxu1 %v33379_v3 }
0x2868   :  { %32519 = vmatpush3.msra.mxu0 %v33437_v12  ;;  %32540 = vmatpush3.msra.mxu1 %v33513_v31 }
0x2869   :  { %32521 = vmatmul.mubr.f32.vlgmr.msra.gmra.mxu0 %v21084_v46  ;;  %32541 = vmatprep.mubr.msk.f32.mxu1 %vm33380_vm2, %v33379_v3  ;;  %v22067_v46 = vsub.f32 %v35507_v42, %v35514_v34 }
0x286a   :  { %32551 = vmatprep.subr.mxu1 %v33379_v3  ;;  %32530 = vmatprep.subr.mxu0 %v33379_v3 }
0x286b   :  { %32531 = vmatpush3.msra.mxu0 %v33483_v21  ;;  %32534 = vmatprep.mubr.msk.f32.mxu0 %vm33380_vm2, %v33379_v3  ;;  %v35521_v32 = vand.u32 4294901760, %v22067_v46 }
0x286c   :  { %32532 = vmatprep.subr.mxu0 %v33379_v3 }
0x286d   :  { %32533 = vmatpush3.msra.mxu0 %v33491_v24 }
0x286e   :  { %32544 = vmatprep.subr.mxu0 %v33379_v3 }
0x2919   :  { %v21171_v35 = vpop.f32.mrf.mxu1 }
0x291b   :  { %v32501_v45 = vpop.f32.mrf.mxu1 }
0x291d   :  { %v21322_v49 = vpop.f32.mrf.mxu1 }
0x291f   :  { %v32515_v11 = vpop.f32.mrf.mxu1 }
0x2920   :  { %v35529_v11 = vld [vmem:[%s36204_s1 + $0x31] ss:$0 sm:$0xff] }
0x2921   :  { %v21090_v50 = vpop.f32.mrf.mxu0  ;;  %v21472_v51 = vpop.f32.mrf.mxu1 }
0x2922   :  { %v21091_v38 = vadd.f32 %v35456_v54, %v21090_v50 }
0x2923   :  { %v32494_v37 = vpop.f32.mrf.mxu0  ;;  %v32529_v60 = vpop.f32.mrf.mxu1 }
0x2924   :  { %v21172_v40 = vadd.f32 %v21171_v35, %v21091_v38 }
0x2925   :  { %v21247_v41 = vpop.f32.mrf.mxu0 }
0x2926   :  { %v21248_v47 = vadd.f32 %v21247_v41, %v21172_v40 }
0x2927   :  { %v32508_v17 = vpop.f32.mrf.mxu0 }
0x2928   :  { %v21323_v57 = vadd.f32 %v21322_v49, %v21248_v47 }
0x2929   :  { %v21399_v58 = vpop.f32.mrf.mxu0 }
0x292a   :  { %v21400_v62 = vadd.f32 %v21399_v58, %v21323_v57 }
0x292b   :  { %v32522_v55 = vpop.f32.mrf.mxu0 }
0x292c   :  { %v21473_v14 = vadd.f32 %v21472_v51, %v21400_v62 }
0x292e   :  { %v21477_v19 = vmul.f32 1.442695, %v21473_v14  ;;  %vm21476_vm7 = vcmp.gt.f32.partialorder %v21473_v14, 0.0 }
0x2930   :  { %33309 = vpow2.f32 %v21477_v19 }
0x293d   :  { %v33310_v0 = vpop.eup %33309 }
0x293e   :  { %v29452_v27 = vadd.f32 -1.0, %v33310_v0 }
0x2940   :  { %v21480_v59 = vsel %vm21476_vm7, %v21473_v14, %v29452_v27 }
0x2941   :  { %v21482_v52 = vsel %vm39_vm1, %v21480_v59, 0 }
0x2942   :  { %v21551_v1 = vand.u32 4294901760, %v21482_v52 }
0x2944   :  { %v21552_v20 = vsub.f32 %v21482_v52, %v21551_v1  ;;  %32542 = vmatmul.mubr.f32.vlgmr.msra.gmra.mxu1 %v21551_v1 }
0x2945   :  { %32552 = vmatpush3.msra.mxu1 %v33483_v21  ;;  %32555 = vmatprep.mubr.msk.f32.mxu1 %vm33380_vm2, %v33379_v3 }
0x2946   :  { %32553 = vmatprep.subr.mxu1 %v33379_v3  ;;  %v21553_v53 = vand.u32 4294901760, %v21552_v20 }
0x2947   :  { %32554 = vmatpush3.msra.mxu1 %v33491_v24 }
0x2948   :  { %32556 = vmatmul.mubr.f32.vlgmr.msra.gmra.mxu1 %v21553_v53  ;;  %32565 = vmatprep.subr.mxu1 %v33379_v3  ;;  %v21554_v63 = vsub.f32 %v21552_v20, %v21553_v53 }
0x2949   :  { %32566 = vmatpush3.msra.mxu1 %v33483_v21  ;;  %32569 = vmatprep.mubr.msk.f32.mxu1 %vm33380_vm2, %v33379_v3 }
0x294a   :  { %32567 = vmatprep.subr.mxu1 %v33379_v3  ;;  %v21555_v6 = vand.u32 4294901760, %v21554_v63 }
0x294b   :  { %32568 = vmatpush3.msra.mxu1 %v33491_v24 }
0x294c   :  { %32535 = vmatmul.mubr.f32.vlgmr.msra.gmra.mxu0 %v21555_v6  ;;  %32570 = vmatmul.mubr.f32.vlgmr.msra.gmra.mxu1 %v21551_v1 }
0x294d   :  { %32545 = vmatpush3.msra.mxu0 %v33489_v23  ;;  %32548 = vmatprep.mubr.msk.f32.mxu0 %vm33380_vm2, %v33379_v3 }
0x294e   :  { %32546 = vmatprep.subr.mxu0 %v33379_v3  ;;  %32579 = vmatprep.subr.mxu1 %v33379_v3 }
0x294f   :  { %32547 = vmatpush3.msra.mxu0 %v33499_v26  ;;  %32583 = vmatprep.mubr.msk.f32.mxu1 %vm33380_vm2, %v33379_v3 }
0x2950   :  { %32549 = vmatmul.mubr.f32.vlgmr.msra.gmra.mxu0 %v21552_v20  ;;  %32558 = vmatprep.subr.mxu0 %v33379_v3 }
0x2951   :  { %32559 = vmatpush3.msra.mxu0 %v33496_v25  ;;  %32562 = vmatprep.mubr.msk.f32.mxu0 %vm33380_vm2, %v33379_v3 }
0x2952   :  { %32560 = vmatprep.subr.mxu0 %v33379_v3  ;;  %32580 = vmatpush3.msra.mxu1 %v35516_v61 }
0x2953   :  { %32561 = vmatpush3.msra.mxu0 %v33506_v28  ;;  %32581 = vmatprep.subr.mxu1 %v33379_v3 }
0x2954   :  { %32563 = vmatmul.mubr.f32.vlgmr.msra.gmra.mxu0 %v21551_v1  ;;  %32572 = vmatprep.subr.mxu0 %v33379_v3 }
0x2955   :  { %32576 = vmatprep.mubr.msk.f32.mxu0 %vm33380_vm2, %v33379_v3  ;;  %32573 = vmatpush3.msra.mxu0 %v35491_v30 }
0x2956   :  { %32574 = vmatprep.subr.mxu0 %v33379_v3  ;;  %32582 = vmatpush3.msra.mxu1 %v35521_v32 }
0x2957   :  { %32575 = vmatpush3.msra.mxu0 %v35499_v39  ;;  %32593 = vmatprep.subr.mxu1 %v33379_v3 }
0x2958   :  { %32586 = vmatprep.subr.mxu0 %v33379_v3 }
0x2a04   :  { %v21638_v48 = vpop.f32.mrf.mxu1 }
0x2a06   :  { %v32543_v2 = vpop.f32.mrf.mxu1 }
0x2a08   :  { %v21789_v33 = vpop.f32.mrf.mxu1 }
0x2a0a   :  { %v32557_v35 = vpop.f32.mrf.mxu1 }
0x2a0c   :  { %v21557_v45 = vpop.f32.mrf.mxu0  ;;  %v21939_v49 = vpop.f32.mrf.mxu1 }
0x2a0d   :  { %v21558_v50 = vadd.f32 %v35529_v11, %v21557_v45 }
0x2a0e   :  { %v32536_v51 = vpop.f32.mrf.mxu0  ;;  %v32571_v38 = vpop.f32.mrf.mxu1 }
0x2a0f   :  { %v21639_v37 = vadd.f32 %v21638_v48, %v21558_v50 }
0x2a10   :  { %v21714_v60 = vpop.f32.mrf.mxu0 }
0x2a11   :  { %v21715_v40 = vadd.f32 %v21714_v60, %v21639_v37 }
0x2a12   :  { %v32550_v41 = vpop.f32.mrf.mxu0 }
0x2a13   :  { %v21790_v47 = vadd.f32 %v21789_v33, %v21715_v40 }
0x2a14   :  { %v21866_v17 = vpop.f32.mrf.mxu0 }
0x2a15   :  { %v21867_v57 = vadd.f32 %v21866_v17, %v21790_v47 }
0x2a16   :  { %v32564_v58 = vpop.f32.mrf.mxu0 }
0x2a17   :  { %v21940_v62 = vadd.f32 %v21939_v49, %v21867_v57 }
0x2a19   :  { %v21944_v55 = vmul.f32 1.442695, %v21940_v62  ;;  %vm21943_vm8 = vcmp.gt.f32.partialorder %v21940_v62, 0.0 }
0x2a1b   :  { %33311 = vpow2.f32 %v21944_v55 }
0x2a28   :  { %v33312_v14 = vpop.eup %33311 }
0x2a29   :  { %v29453_v19 = vadd.f32 -1.0, %v33312_v14 }
0x2a2b   :  { %v21947_v0 = vsel %vm21943_vm8, %v21940_v62, %v29453_v19 }
0x2a2c   :  { %v21949_v27 = vsel %vm39_vm1, %v21947_v0, 0 }
0x2a2d   :  { %v22018_v59 = vand.u32 4294901760, %v21949_v27 }
0x2a2f   :  { %v22019_v52 = vsub.f32 %v21949_v27, %v22018_v59  ;;  %32584 = vmatmul.mubr.f32.vlgmr.msra.gmra.mxu1 %v22018_v59 }
0x2a30   :  { %32594 = vmatpush3.msra.mxu1 %v35491_v30  ;;  %32597 = vmatprep.mubr.msk.f32.mxu1 %vm33380_vm2, %v33379_v3 }
0x2a31   :  { %32595 = vmatprep.subr.mxu1 %v33379_v3  ;;  %v22020_v1 = vand.u32 4294901760, %v22019_v52 }
0x2a32   :  { %32596 = vmatpush3.msra.mxu1 %v35499_v39 }
0x2a33   :  { %32598 = vmatmul.mubr.f32.vlgmr.msra.gmra.mxu1 %v22020_v1  ;;  %32607 = vmatprep.subr.mxu1 %v33379_v3  ;;  %v22021_v20 = vsub.f32 %v22019_v52, %v22020_v1 }
0x2a34   :  { %32608 = vmatpush3.msra.mxu1 %v35491_v30  ;;  %32611 = vmatprep.mubr.msk.f32.mxu1 %vm33380_vm2, %v33379_v3 }
0x2a35   :  { %32609 = vmatprep.subr.mxu1 %v33379_v3  ;;  %v22022_v53 = vand.u32 4294901760, %v22021_v20 }
0x2a36   :  { %32610 = vmatpush3.msra.mxu1 %v35499_v39 }
0x2a37   :  { %32577 = vmatmul.mubr.f32.vlgmr.msra.gmra.mxu0 %v22022_v53  ;;  %32612 = vmatmul.mubr.f32.vlgmr.msra.gmra.mxu1 %v22018_v59 }
0x2a38   :  { %32587 = vmatpush3.msra.mxu0 %v35497_v15  ;;  %32590 = vmatprep.mubr.msk.f32.mxu0 %vm33380_vm2, %v33379_v3 }
0x2a39   :  { %32588 = vmatprep.subr.mxu0 %v33379_v3  ;;  %32621 = vmatprep.subr.mxu1 %v33379_v3 }
0x2a3a   :  { %32589 = vmatpush3.msra.mxu0 %v35507_v42  ;;  %32622 = vmatpush3.msra.mxu1 %v33444_v16 }
0x2a3b   :  { %32591 = vmatmul.mubr.f32.vlgmr.msra.gmra.mxu0 %v22019_v52  ;;  %32600 = vmatprep.subr.mxu0 %v33379_v3 }
0x2a3c   :  { %32601 = vmatpush3.msra.mxu0 %v35504_v56  ;;  %32604 = vmatprep.mubr.msk.f32.mxu0 %vm33380_vm2, %v33379_v3 }
0x2a3d   :  { %32602 = vmatprep.subr.mxu0 %v33379_v3  ;;  %32623 = vmatprep.subr.mxu1 %v33379_v3 }
0x2a3e   :  { %32603 = vmatpush3.msra.mxu0 %v35514_v34  ;;  %32624 = vmatpush3.msra.mxu1 %v33446_v18 }
0x2a3f   :  { %32605 = vmatmul.mubr.f32.vlgmr.msra.gmra.mxu0 %v22018_v59  ;;  %32625 = vmatprep.mubr.msk.f32.mxu1 %vm33380_vm2, %v33379_v3 }
0x2a40   :  { %32635 = vmatprep.subr.mxu1 %v33379_v3  ;;  %32614 = vmatprep.subr.mxu0 %v33379_v3 }
0x2a41   :  { %32615 = vmatpush3.msra.mxu0 %v33411_v4  ;;  %32618 = vmatprep.mubr.msk.f32.mxu0 %vm33380_vm2, %v33379_v3 }
0x2a42   :  { %32616 = vmatprep.subr.mxu0 %v33379_v3 }
0x2a43   :  { %32617 = vmatpush3.msra.mxu0 %v33414_v5 }
0x2a44   :  { %32628 = vmatprep.subr.mxu0 %v33379_v3 }
0x2aef   :  { %v22105_v63 = vpop.f32.mrf.mxu1 }
0x2af1   :  { %v32585_v6 = vpop.f32.mrf.mxu1 }
0x2af3   :  { %v22256_v8 = vpop.f32.mrf.mxu1 }
0x2af5   :  { %v32599_v36 = vpop.f32.mrf.mxu1 }
0x2af7   :  { %v22024_v44 = vpop.f32.mrf.mxu0  ;;  %v22406_v46 = vpop.f32.mrf.mxu1 }
0x2af8   :  { %v22025_v48 = vadd.f32 %v22024_v44, %v35572_v43 }
0x2af9   :  { %v32578_v2 = vpop.f32.mrf.mxu0  ;;  %v32613_v33 = vpop.f32.mrf.mxu1 }
0x2afa   :  { %v22106_v35 = vadd.f32 %v22105_v63, %v22025_v48 }
0x2afb   :  { %v22181_v45 = vpop.f32.mrf.mxu0 }
0x2afc   :  { %v22182_v49 = vadd.f32 %v22181_v45, %v22106_v35 }
0x2afd   :  { %v32592_v50 = vpop.f32.mrf.mxu0 }
0x2afe   :  { %v22257_v51 = vadd.f32 %v22256_v8, %v22182_v49 }
0x2aff   :  { %v22333_v38 = vpop.f32.mrf.mxu0 }
0x2b00   :  { %v22334_v37 = vadd.f32 %v22333_v38, %v22257_v51 }
0x2b01   :  { %v32606_v60 = vpop.f32.mrf.mxu0 }
0x2b02   :  { %v22407_v40 = vadd.f32 %v22406_v46, %v22334_v37 }
0x2b04   :  { %v35576_v41 = vadd.f32 %v22407_v40, %v35411_v22 }
0x2b06   :  { %v22412_v47 = vsel %vm39_vm1, %v35576_v41, 0 }
0x2b07   :  { %v22481_v17 = vand.u32 4294901760, %v22412_v47 }
0x2b09   :  { %v22482_v57 = vsub.f32 %v22412_v47, %v22481_v17  ;;  %32626 = vmatmul.mubr.f32.vlgmr.msra.gmra.mxu1 %v22481_v17 }
0x2b0a   :  { %32636 = vmatpush3.msra.mxu1 %v33411_v4  ;;  %32639 = vmatprep.mubr.msk.f32.mxu1 %vm33380_vm2, %v33379_v3 }
0x2b0b   :  { %v22483_v58 = vand.u32 4294901760, %v22482_v57  ;;  %32637 = vmatprep.subr.mxu1 %v33379_v3 }
0x2b0c   :  { %32638 = vmatpush3.msra.mxu1 %v33414_v5 }
0x2b0d   :  { %v22484_v62 = vsub.f32 %v22482_v57, %v22483_v58  ;;  %32640 = vmatmul.mubr.f32.vlgmr.msra.gmra.mxu1 %v22483_v58  ;;  %32649 = vmatprep.subr.mxu1 %v33379_v3 }
0x2b0e   :  { %32650 = vmatpush3.msra.mxu1 %v33411_v4  ;;  %32653 = vmatprep.mubr.msk.f32.mxu1 %vm33380_vm2, %v33379_v3 }
0x2b0f   :  { %32651 = vmatprep.subr.mxu1 %v33379_v3  ;;  %v22485_v22 = vand.u32 4294901760, %v22484_v62 }
0x2b10   :  { %32652 = vmatpush3.msra.mxu1 %v33414_v5 }
0x2b11   :  { %32619 = vmatmul.mubr.f32.vlgmr.msra.gmra.mxu0 %v22485_v22  ;;  %32654 = vmatmul.mubr.f32.vlgmr.msra.gmra.mxu1 %v22481_v17 }
0x2b12   :  { %32629 = vmatpush3.msra.mxu0 %v33426_v7  ;;  %32632 = vmatprep.mubr.msk.f32.mxu0 %vm33380_vm2, %v33379_v3 }
0x2b13   :  { %32630 = vmatprep.subr.mxu0 %v33379_v3  ;;  %32663 = vmatprep.subr.mxu1 %v33379_v3 }
0x2b14   :  { %32631 = vmatpush3.msra.mxu0 %v33429_v9  ;;  %32664 = vmatpush3.msra.mxu1 %v33508_v29 }
0x2b15   :  { %32633 = vmatmul.mubr.f32.vlgmr.msra.gmra.mxu0 %v22482_v57  ;;  %32642 = vmatprep.subr.mxu0 %v33379_v3 }
0x2b16   :  { %32643 = vmatpush3.msra.mxu0 %v33434_v10  ;;  %32646 = vmatprep.mubr.msk.f32.mxu0 %vm33380_vm2, %v33379_v3 }
0x2b17   :  { %32644 = vmatprep.subr.mxu0 %v33379_v3  ;;  %32665 = vmatprep.subr.mxu1 %v33379_v3 }
0x2b18   :  { %32645 = vmatpush3.msra.mxu0 %v33437_v12  ;;  %32666 = vmatpush3.msra.mxu1 %v33513_v31 }
0x2b19   :  { %32647 = vmatmul.mubr.f32.vlgmr.msra.gmra.mxu0 %v22481_v17  ;;  %32667 = vmatprep.mubr.msk.f32.mxu1 %vm33380_vm2, %v33379_v3 }
0x2b1a   :  { %32677 = vmatprep.subr.mxu1 %v33379_v3  ;;  %32656 = vmatprep.subr.mxu0 %v33379_v3 }
0x2b1b   :  { %32657 = vmatpush3.msra.mxu0 %v33483_v21  ;;  %32660 = vmatprep.mubr.msk.f32.mxu0 %vm33380_vm2, %v33379_v3 }
0x2b1c   :  { %32658 = vmatprep.subr.mxu0 %v33379_v3 }
0x2b1d   :  { %32659 = vmatpush3.msra.mxu0 %v33491_v24 }
0x2b1e   :  { %32670 = vmatprep.subr.mxu0 %v33379_v3 }
0x2bc9   :  { %v22568_v55 = vpop.f32.mrf.mxu1 }
0x2bcb   :  { %v32627_v14 = vpop.f32.mrf.mxu1 }
0x2bcd   :  { %v22719_v19 = vpop.f32.mrf.mxu1 }
0x2bcf   :  { %v32641_v0 = vpop.f32.mrf.mxu1 }
0x2bd1   :  { %v22487_v27 = vpop.f32.mrf.mxu0  ;;  %v22869_v59 = vpop.f32.mrf.mxu1 }
0x2bd2   :  { %v22488_v52 = vadd.f32 %v35456_v54, %v22487_v27 }
0x2bd3   :  { %v32620_v1 = vpop.f32.mrf.mxu0  ;;  %v32655_v20 = vpop.f32.mrf.mxu1 }
0x2bd4   :  { %v22569_v53 = vadd.f32 %v22568_v55, %v22488_v52 }
0x2bd5   :  { %v22644_v63 = vpop.f32.mrf.mxu0 }
0x2bd6   :  { %v22645_v6 = vadd.f32 %v22644_v63, %v22569_v53 }
0x2bd7   :  { %v32634_v8 = vpop.f32.mrf.mxu0 }
0x2bd8   :  { %v22720_v13 = vadd.f32 %v22719_v19, %v22645_v6 }
0x2bd9   :  { %v22796_v36 = vpop.f32.mrf.mxu0 }
0x2bda   :  { %v22797_v44 = vadd.f32 %v22796_v36, %v22720_v13 }
0x2bdb   :  { %v32648_v46 = vpop.f32.mrf.mxu0 }
0x2bdc   :  { %v22870_v48 = vadd.f32 %v22869_v59, %v22797_v44 }
0x2bde   :  { %v22874_v2 = vmul.f32 1.442695, %v22870_v48  ;;  %vm22873_vm9 = vcmp.gt.f32.partialorder %v22870_v48, 0.0 }
0x2be0   :  { %33313 = vpow2.f32 %v22874_v2 }
0x2bed   :  { %v33314_v33 = vpop.eup %33313 }
0x2bee   :  { %v29454_v35 = vadd.f32 -1.0, %v33314_v33 }
0x2bf0   :  { %v22877_v45 = vsel %vm22873_vm9, %v22870_v48, %v29454_v35 }
0x2bf1   :  { %v22879_v49 = vsel %vm39_vm1, %v22877_v45, 0 }
0x2bf2   :  { %v22948_v50 = vand.u32 4294901760, %v22879_v49 }
0x2bf4   :  { %v22949_v51 = vsub.f32 %v22879_v49, %v22948_v50  ;;  %32668 = vmatmul.mubr.f32.vlgmr.msra.gmra.mxu1 %v22948_v50 }
0x2bf5   :  { %32678 = vmatpush3.msra.mxu1 %v33483_v21  ;;  %32681 = vmatprep.mubr.msk.f32.mxu1 %vm33380_vm2, %v33379_v3 }
0x2bf6   :  { %32679 = vmatprep.subr.mxu1 %v33379_v3  ;;  %v22950_v38 = vand.u32 4294901760, %v22949_v51 }
0x2bf7   :  { %32680 = vmatpush3.msra.mxu1 %v33491_v24 }
0x2bf8   :  { %32682 = vmatmul.mubr.f32.vlgmr.msra.gmra.mxu1 %v22950_v38  ;;  %32691 = vmatprep.subr.mxu1 %v33379_v3  ;;  %v22951_v37 = vsub.f32 %v22949_v51, %v22950_v38 }
0x2bf9   :  { %32692 = vmatpush3.msra.mxu1 %v33483_v21  ;;  %32695 = vmatprep.mubr.msk.f32.mxu1 %vm33380_vm2, %v33379_v3 }
0x2bfa   :  { %32693 = vmatprep.subr.mxu1 %v33379_v3  ;;  %v22952_v60 = vand.u32 4294901760, %v22951_v37 }
0x2bfb   :  { %32694 = vmatpush3.msra.mxu1 %v33491_v24 }
0x2bfc   :  { %32661 = vmatmul.mubr.f32.vlgmr.msra.gmra.mxu0 %v22952_v60  ;;  %32696 = vmatmul.mubr.f32.vlgmr.msra.gmra.mxu1 %v22948_v50 }
0x2bfd   :  { %32671 = vmatpush3.msra.mxu0 %v33489_v23  ;;  %32674 = vmatprep.mubr.msk.f32.mxu0 %vm33380_vm2, %v33379_v3 }
0x2bfe   :  { %32672 = vmatprep.subr.mxu0 %v33379_v3  ;;  %32705 = vmatprep.subr.mxu1 %v33379_v3 }
0x2bff   :  { %32673 = vmatpush3.msra.mxu0 %v33499_v26  ;;  %32706 = vmatpush3.msra.mxu1 %v35516_v61 }
0x2c00   :  { %32675 = vmatmul.mubr.f32.vlgmr.msra.gmra.mxu0 %v22949_v51  ;;  %32684 = vmatprep.subr.mxu0 %v33379_v3 }
0x2c01   :  { %32685 = vmatpush3.msra.mxu0 %v33496_v25  ;;  %32688 = vmatprep.mubr.msk.f32.mxu0 %vm33380_vm2, %v33379_v3 }
0x2c02   :  { %32686 = vmatprep.subr.mxu0 %v33379_v3  ;;  %32707 = vmatprep.subr.mxu1 %v33379_v3 }
0x2c03   :  { %32687 = vmatpush3.msra.mxu0 %v33506_v28  ;;  %32708 = vmatpush3.msra.mxu1 %v35521_v32 }
0x2c04   :  { %32689 = vmatmul.mubr.f32.vlgmr.msra.gmra.mxu0 %v22948_v50  ;;  %32709 = vmatprep.mubr.msk.f32.mxu1 %vm33380_vm2, %v33379_v3 }
0x2c05   :  { %32719 = vmatprep.subr.mxu1 %v33379_v3  ;;  %32698 = vmatprep.subr.mxu0 %v33379_v3 }
0x2c06   :  { %32699 = vmatpush3.msra.mxu0 %v35491_v30  ;;  %32702 = vmatprep.mubr.msk.f32.mxu0 %vm33380_vm2, %v33379_v3 }
0x2c07   :  { %32700 = vmatprep.subr.mxu0 %v33379_v3 }
0x2c08   :  { %32701 = vmatpush3.msra.mxu0 %v35499_v39 }
0x2c09   :  { %32712 = vmatprep.subr.mxu0 %v33379_v3 }
0x2cb4   :  { %v23035_v40 = vpop.f32.mrf.mxu1 }
0x2cb6   :  { %v32669_v47 = vpop.f32.mrf.mxu1 }
0x2cb8   :  { %v23186_v17 = vpop.f32.mrf.mxu1 }
0x2cba   :  { %v32683_v57 = vpop.f32.mrf.mxu1 }
0x2cbc   :  { %v22954_v58 = vpop.f32.mrf.mxu0  ;;  %v23336_v62 = vpop.f32.mrf.mxu1 }
0x2cbd   :  { %v22955_v22 = vadd.f32 %v35529_v11, %v22954_v58 }
0x2cbe   :  { %v32662_v55 = vpop.f32.mrf.mxu0  ;;  %v32697_v14 = vpop.f32.mrf.mxu1 }
0x2cbf   :  { %v23036_v19 = vadd.f32 %v23035_v40, %v22955_v22 }
0x2cc0   :  { %v23111_v0 = vpop.f32.mrf.mxu0 }
0x2cc1   :  { %v23112_v27 = vadd.f32 %v23111_v0, %v23036_v19 }
0x2cc2   :  { %v32676_v59 = vpop.f32.mrf.mxu0 }
0x2cc3   :  { %v23187_v52 = vadd.f32 %v23186_v17, %v23112_v27 }
0x2cc4   :  { %v23263_v1 = vpop.f32.mrf.mxu0 }
0x2cc5   :  { %v23264_v20 = vadd.f32 %v23263_v1, %v23187_v52 }
0x2cc6   :  { %v32690_v53 = vpop.f32.mrf.mxu0 }
0x2cc7   :  { %v23337_v63 = vadd.f32 %v23336_v62, %v23264_v20 }
0x2cc9   :  { %v23341_v6 = vmul.f32 1.442695, %v23337_v63  ;;  %vm23340_vm10 = vcmp.gt.f32.partialorder %v23337_v63, 0.0 }
0x2ccb   :  { %33315 = vpow2.f32 %v23341_v6 }
0x2cd8   :  { %v33316_v8 = vpop.eup %33315 }
0x2cd9   :  { %v29455_v13 = vadd.f32 -1.0, %v33316_v8 }
0x2cdb   :  { %v23344_v36 = vsel %vm23340_vm10, %v23337_v63, %v29455_v13 }
0x2cdc   :  { %v23346_v44 = vsel %vm39_vm1, %v23344_v36, 0 }
0x2cdd   :  { %v23415_v46 = vand.u32 4294901760, %v23346_v44 }
0x2cdf   :  { %v23416_v48 = vsub.f32 %v23346_v44, %v23415_v46  ;;  %32710 = vmatmul.mubr.f32.vlgmr.msra.gmra.mxu1 %v23415_v46 }
0x2ce0   :  { %32720 = vmatpush3.msra.mxu1 %v35491_v30  ;;  %32723 = vmatprep.mubr.msk.f32.mxu1 %vm33380_vm2, %v33379_v3 }
0x2ce1   :  { %32721 = vmatprep.subr.mxu1 %v33379_v3  ;;  %v23417_v2 = vand.u32 4294901760, %v23416_v48 }
0x2ce2   :  { %32722 = vmatpush3.msra.mxu1 %v35499_v39 }
0x2ce3   :  { %32724 = vmatmul.mubr.f32.vlgmr.msra.gmra.mxu1 %v23417_v2  ;;  %32733 = vmatprep.subr.mxu1 %v33379_v3  ;;  %v23418_v33 = vsub.f32 %v23416_v48, %v23417_v2 }
0x2ce4   :  { %32734 = vmatpush3.msra.mxu1 %v35491_v30  ;;  %32737 = vmatprep.mubr.msk.f32.mxu1 %vm33380_vm2, %v33379_v3 }
0x2ce5   :  { %32735 = vmatprep.subr.mxu1 %v33379_v3  ;;  %v23419_v35 = vand.u32 4294901760, %v23418_v33 }
0x2ce6   :  { %32736 = vmatpush3.msra.mxu1 %v35499_v39 }
0x2ce7   :  { %32703 = vmatmul.mubr.f32.vlgmr.msra.gmra.mxu0 %v23419_v35  ;;  %32738 = vmatmul.mubr.f32.vlgmr.msra.gmra.mxu1 %v23415_v46 }
0x2ce8   :  { %32713 = vmatpush3.msra.mxu0 %v35497_v15  ;;  %32716 = vmatprep.mubr.msk.f32.mxu0 %vm33380_vm2, %v33379_v3 }
0x2ce9   :  { %32714 = vmatprep.subr.mxu0 %v33379_v3  ;;  %32747 = vmatprep.subr.mxu1 %v33379_v3 }
0x2cea   :  { %32715 = vmatpush3.msra.mxu0 %v35507_v42  ;;  %32748 = vmatpush3.msra.mxu1 %v33444_v16 }
0x2ceb   :  { %32717 = vmatmul.mubr.f32.vlgmr.msra.gmra.mxu0 %v23416_v48  ;;  %32726 = vmatprep.subr.mxu0 %v33379_v3 }
0x2cec   :  { %32727 = vmatpush3.msra.mxu0 %v35504_v56  ;;  %32730 = vmatprep.mubr.msk.f32.mxu0 %vm33380_vm2, %v33379_v3 }
0x2ced   :  { %32728 = vmatprep.subr.mxu0 %v33379_v3  ;;  %32749 = vmatprep.subr.mxu1 %v33379_v3 }
0x2cee   :  { %32729 = vmatpush3.msra.mxu0 %v35514_v34  ;;  %32750 = vmatpush3.msra.mxu1 %v33446_v18 }
0x2cef   :  { %32731 = vmatmul.mubr.f32.vlgmr.msra.gmra.mxu0 %v23415_v46  ;;  %32751 = vmatprep.mubr.msk.f32.mxu1 %vm33380_vm2, %v33379_v3 }
0x2cf0   :  { %32761 = vmatprep.subr.mxu1 %v33379_v3  ;;  %32740 = vmatprep.subr.mxu0 %v33379_v3 }
0x2cf1   :  { %32741 = vmatpush3.msra.mxu0 %v33411_v4  ;;  %32744 = vmatprep.mubr.msk.f32.mxu0 %vm33380_vm2, %v33379_v3 }
0x2cf2   :  { %32742 = vmatprep.subr.mxu0 %v33379_v3 }
0x2cf3   :  { %32743 = vmatpush3.msra.mxu0 %v33414_v5 }
0x2cf4   :  { %32754 = vmatprep.subr.mxu0 %v33379_v3 }
0x2d9f   :  { %v23502_v45 = vpop.f32.mrf.mxu1 }
0x2da1   :  { %v32711_v49 = vpop.f32.mrf.mxu1 }
0x2da3   :  { %v23653_v50 = vpop.f32.mrf.mxu1 }
0x2da5   :  { %v32725_v51 = vpop.f32.mrf.mxu1 }
0x2da7   :  { %v23421_v38 = vpop.f32.mrf.mxu0  ;;  %v23803_v37 = vpop.f32.mrf.mxu1 }
0x2da8   :  { %v23422_v60 = vadd.f32 %v23421_v38, %v35572_v43 }
0x2da9   :  { %v32704_v40 = vpop.f32.mrf.mxu0  ;;  %v32739_v47 = vpop.f32.mrf.mxu1 }
0x2daa   :  { %v23503_v17 = vadd.f32 %v23502_v45, %v23422_v60 }
0x2dab   :  { %v23578_v57 = vpop.f32.mrf.mxu0 }
0x2dac   :  { %v23579_v58 = vadd.f32 %v23578_v57, %v23503_v17 }
0x2dad   :  { %v32718_v62 = vpop.f32.mrf.mxu0 }
0x2dae   :  { %v23654_v22 = vadd.f32 %v23653_v50, %v23579_v58 }
0x2daf   :  { %v23730_v55 = vpop.f32.mrf.mxu0 }
0x2db0   :  { %v23731_v14 = vadd.f32 %v23730_v55, %v23654_v22 }
0x2db1   :  { %v32732_v19 = vpop.f32.mrf.mxu0 }
0x2db2   :  { %v23804_v0 = vadd.f32 %v23803_v37, %v23731_v14 }
0x2db4   :  { %v35694_v27 = vadd.f32 %v23804_v0, %v35576_v41 }
0x2db6   :  { %v23809_v59 = vsel %vm39_vm1, %v35694_v27, 0 }
0x2db7   :  { %v23878_v52 = vand.u32 4294901760, %v23809_v59 }
0x2db9   :  { %v23879_v1 = vsub.f32 %v23809_v59, %v23878_v52  ;;  %32752 = vmatmul.mubr.f32.vlgmr.msra.gmra.mxu1 %v23878_v52 }
0x2dba   :  { %32762 = vmatpush3.msra.mxu1 %v33411_v4  ;;  %32765 = vmatprep.mubr.msk.f32.mxu1 %vm33380_vm2, %v33379_v3 }
0x2dbb   :  { %v23880_v20 = vand.u32 4294901760, %v23879_v1  ;;  %32763 = vmatprep.subr.mxu1 %v33379_v3 }
0x2dbc   :  { %32764 = vmatpush3.msra.mxu1 %v33414_v5 }
0x2dbd   :  { %v23881_v53 = vsub.f32 %v23879_v1, %v23880_v20  ;;  %32766 = vmatmul.mubr.f32.vlgmr.msra.gmra.mxu1 %v23880_v20  ;;  %32775 = vmatprep.subr.mxu1 %v33379_v3 }
0x2dbe   :  { %32776 = vmatpush3.msra.mxu1 %v33411_v4  ;;  %32779 = vmatprep.mubr.msk.f32.mxu1 %vm33380_vm2, %v33379_v3 }
0x2dbf   :  { %32777 = vmatprep.subr.mxu1 %v33379_v3  ;;  %v23882_v41 = vand.u32 4294901760, %v23881_v53 }
0x2dc0   :  { %32778 = vmatpush3.msra.mxu1 %v33414_v5 }
0x2dc1   :  { %32745 = vmatmul.mubr.f32.vlgmr.msra.gmra.mxu0 %v23882_v41  ;;  %32780 = vmatmul.mubr.f32.vlgmr.msra.gmra.mxu1 %v23878_v52 }
0x2dc2   :  { %32755 = vmatpush3.msra.mxu0 %v33426_v7  ;;  %32758 = vmatprep.mubr.msk.f32.mxu0 %vm33380_vm2, %v33379_v3 }
0x2dc3   :  { %32756 = vmatprep.subr.mxu0 %v33379_v3  ;;  %32789 = vmatprep.subr.mxu1 %v33379_v3 }
0x2dc4   :  { %32757 = vmatpush3.msra.mxu0 %v33429_v9  ;;  %32790 = vmatpush3.msra.mxu1 %v33508_v29 }
0x2dc5   :  { %32759 = vmatmul.mubr.f32.vlgmr.msra.gmra.mxu0 %v23879_v1  ;;  %32768 = vmatprep.subr.mxu0 %v33379_v3 }
0x2dc6   :  { %32769 = vmatpush3.msra.mxu0 %v33434_v10  ;;  %32772 = vmatprep.mubr.msk.f32.mxu0 %vm33380_vm2, %v33379_v3 }
0x2dc7   :  { %32770 = vmatprep.subr.mxu0 %v33379_v3  ;;  %32791 = vmatprep.subr.mxu1 %v33379_v3 }
0x2dc8   :  { %32771 = vmatpush3.msra.mxu0 %v33437_v12  ;;  %32792 = vmatpush3.msra.mxu1 %v33513_v31 }
0x2dc9   :  { %32773 = vmatmul.mubr.f32.vlgmr.msra.gmra.mxu0 %v23878_v52  ;;  %32793 = vmatprep.mubr.msk.f32.mxu1 %vm33380_vm2, %v33379_v3 }
0x2dca   :  { %32803 = vmatprep.subr.mxu1 %v33379_v3  ;;  %32782 = vmatprep.subr.mxu0 %v33379_v3 }
0x2dcb   :  { %32783 = vmatpush3.msra.mxu0 %v33483_v21  ;;  %32786 = vmatprep.mubr.msk.f32.mxu0 %vm33380_vm2, %v33379_v3 }
0x2dcc   :  { %32784 = vmatprep.subr.mxu0 %v33379_v3 }
0x2dcd   :  { %32785 = vmatpush3.msra.mxu0 %v33491_v24 }
0x2dce   :  { %32796 = vmatprep.subr.mxu0 %v33379_v3 }
0x2e79   :  { %v23965_v63 = vpop.f32.mrf.mxu1 }
0x2e7b   :  { %v32753_v6 = vpop.f32.mrf.mxu1 }
0x2e7d   :  { %v24116_v8 = vpop.f32.mrf.mxu1 }
0x2e7f   :  { %v32767_v13 = vpop.f32.mrf.mxu1 }
0x2e81   :  { %v23884_v36 = vpop.f32.mrf.mxu0  ;;  %v24266_v44 = vpop.f32.mrf.mxu1 }
0x2e82   :  { %v23885_v46 = vadd.f32 %v35456_v54, %v23884_v36 }
0x2e83   :  { %v32746_v48 = vpop.f32.mrf.mxu0  ;;  %v32781_v2 = vpop.f32.mrf.mxu1 }
0x2e84   :  { %v23966_v33 = vadd.f32 %v23965_v63, %v23885_v46 }
0x2e85   :  { %v24041_v35 = vpop.f32.mrf.mxu0 }
0x2e86   :  { %v24042_v45 = vadd.f32 %v24041_v35, %v23966_v33 }
0x2e87   :  { %v32760_v49 = vpop.f32.mrf.mxu0 }
0x2e88   :  { %v24117_v50 = vadd.f32 %v24116_v8, %v24042_v45 }
0x2e89   :  { %v24193_v51 = vpop.f32.mrf.mxu0 }
0x2e8a   :  { %v24194_v38 = vadd.f32 %v24193_v51, %v24117_v50 }
0x2e8b   :  { %v32774_v37 = vpop.f32.mrf.mxu0 }
0x2e8c   :  { %v24267_v60 = vadd.f32 %v24266_v44, %v24194_v38 }
0x2e8e   :  { %v24271_v40 = vmul.f32 1.442695, %v24267_v60  ;;  %vm24270_vm11 = vcmp.gt.f32.partialorder %v24267_v60, 0.0 }
0x2e90   :  { %33317 = vpow2.f32 %v24271_v40 }
0x2e9d   :  { %v33318_v47 = vpop.eup %33317 }
0x2e9e   :  { %v29456_v17 = vadd.f32 -1.0, %v33318_v47 }
0x2ea0   :  { %v24274_v57 = vsel %vm24270_vm11, %v24267_v60, %v29456_v17 }
0x2ea1   :  { %v24276_v58 = vsel %vm39_vm1, %v24274_v57, 0 }
0x2ea2   :  { %v24345_v54 = vand.u32 4294901760, %v24276_v58 }
0x2ea4   :  { %v24346_v62 = vsub.f32 %v24276_v58, %v24345_v54  ;;  %32794 = vmatmul.mubr.f32.vlgmr.msra.gmra.mxu1 %v24345_v54 }
0x2ea5   :  { %32804 = vmatpush3.msra.mxu1 %v33483_v21  ;;  %32807 = vmatprep.mubr.msk.f32.mxu1 %vm33380_vm2, %v33379_v3 }
0x2ea6   :  { %32805 = vmatprep.subr.mxu1 %v33379_v3  ;;  %v24347_v22 = vand.u32 4294901760, %v24346_v62 }
0x2ea7   :  { %32806 = vmatpush3.msra.mxu1 %v33491_v24 }
0x2ea8   :  { %32808 = vmatmul.mubr.f32.vlgmr.msra.gmra.mxu1 %v24347_v22  ;;  %32817 = vmatprep.subr.mxu1 %v33379_v3  ;;  %v24348_v55 = vsub.f32 %v24346_v62, %v24347_v22 }
0x2ea9   :  { %32818 = vmatpush3.msra.mxu1 %v33483_v21  ;;  %32821 = vmatprep.mubr.msk.f32.mxu1 %vm33380_vm2, %v33379_v3 }
0x2eaa   :  { %32819 = vmatprep.subr.mxu1 %v33379_v3  ;;  %v24349_v14 = vand.u32 4294901760, %v24348_v55 }
0x2eab   :  { %32820 = vmatpush3.msra.mxu1 %v33491_v24 }
0x2eac   :  { %32787 = vmatmul.mubr.f32.vlgmr.msra.gmra.mxu0 %v24349_v14  ;;  %32822 = vmatmul.mubr.f32.vlgmr.msra.gmra.mxu1 %v24345_v54 }
0x2ead   :  { %32797 = vmatpush3.msra.mxu0 %v33489_v23  ;;  %32800 = vmatprep.mubr.msk.f32.mxu0 %vm33380_vm2, %v33379_v3 }
0x2eae   :  { %32798 = vmatprep.subr.mxu0 %v33379_v3  ;;  %32831 = vmatprep.subr.mxu1 %v33379_v3 }
0x2eaf   :  { %32799 = vmatpush3.msra.mxu0 %v33499_v26  ;;  %32832 = vmatpush3.msra.mxu1 %v35516_v61 }
0x2eb0   :  { %32801 = vmatmul.mubr.f32.vlgmr.msra.gmra.mxu0 %v24346_v62  ;;  %32810 = vmatprep.subr.mxu0 %v33379_v3 }
0x2eb1   :  { %32811 = vmatpush3.msra.mxu0 %v33496_v25  ;;  %32814 = vmatprep.mubr.msk.f32.mxu0 %vm33380_vm2, %v33379_v3 }
0x2eb2   :  { %32812 = vmatprep.subr.mxu0 %v33379_v3  ;;  %32833 = vmatprep.subr.mxu1 %v33379_v3 }
0x2eb3   :  { %32813 = vmatpush3.msra.mxu0 %v33506_v28  ;;  %32834 = vmatpush3.msra.mxu1 %v35521_v32 }
0x2eb4   :  { %32815 = vmatmul.mubr.f32.vlgmr.msra.gmra.mxu0 %v24345_v54  ;;  %32835 = vmatprep.mubr.msk.f32.mxu1 %vm33380_vm2, %v33379_v3 }
0x2eb5   :  { %32845 = vmatprep.subr.mxu1 %v33379_v3  ;;  %32824 = vmatprep.subr.mxu0 %v33379_v3 }
0x2eb6   :  { %32825 = vmatpush3.msra.mxu0 %v35491_v30  ;;  %32828 = vmatprep.mubr.msk.f32.mxu0 %vm33380_vm2, %v33379_v3 }
0x2eb7   :  { %32826 = vmatprep.subr.mxu0 %v33379_v3 }
0x2eb8   :  { %32827 = vmatpush3.msra.mxu0 %v35499_v39 }
0x2eb9   :  { %32838 = vmatprep.subr.mxu0 %v33379_v3 }
0x2f64   :  { %v24432_v61 = vpop.f32.mrf.mxu1 }
0x2f66   :  { %v32795_v32 = vpop.f32.mrf.mxu1 }
0x2f68   :  { %v24583_v19 = vpop.f32.mrf.mxu1 }
0x2f6a   :  { %v32809_v0 = vpop.f32.mrf.mxu1 }
0x2f6c   :  { %v24351_v59 = vpop.f32.mrf.mxu0  ;;  %v24733_v52 = vpop.f32.mrf.mxu1 }
0x2f6d   :  { %v24352_v1 = vadd.f32 %v35529_v11, %v24351_v59 }
0x2f6e   :  { %v32788_v20 = vpop.f32.mrf.mxu0  ;;  %v32823_v53 = vpop.f32.mrf.mxu1 }
0x2f6f   :  { %v24433_v41 = vadd.f32 %v24432_v61, %v24352_v1 }
0x2f70   :  { %v24508_v63 = vpop.f32.mrf.mxu0 }
0x2f71   :  { %v24509_v6 = vadd.f32 %v24508_v63, %v24433_v41 }
0x2f72   :  { %v32802_v8 = vpop.f32.mrf.mxu0 }
0x2f73   :  { %v24584_v13 = vadd.f32 %v24583_v19, %v24509_v6  ;;  %v35857_v8 = vld [vmem:[%s36204_s1 + $0x30] ss:$0 sm:$0xff] }
0x2f74   :  { %v24660_v36 = vpop.f32.mrf.mxu0 }
0x2f75   :  { %v24661_v44 = vadd.f32 %v24660_v36, %v24584_v13 }
0x2f76   :  { %v32816_v46 = vpop.f32.mrf.mxu0 }
0x2f77   :  { %v24734_v48 = vadd.f32 %v24733_v52, %v24661_v44 }
0x2f79   :  { %v24738_v2 = vmul.f32 1.442695, %v24734_v48  ;;  %vm24737_vm12 = vcmp.gt.f32.partialorder %v24734_v48, 0.0 }
0x2f7b   :  { %33319 = vpow2.f32 %v24738_v2 }
0x2f88   :  { %v33320_v33 = vpop.eup %33319 }
0x2f89   :  { %v29457_v35 = vadd.f32 -1.0, %v33320_v33 }
0x2f8b   :  { %v24741_v45 = vsel %vm24737_vm12, %v24734_v48, %v29457_v35 }
0x2f8c   :  { %v24743_v49 = vsel %vm39_vm1, %v24741_v45, 0 }
0x2f8d   :  { %v24812_v11 = vand.u32 4294901760, %v24743_v49 }
0x2f8f   :  { %v24813_v50 = vsub.f32 %v24743_v49, %v24812_v11  ;;  %32836 = vmatmul.mubr.f32.vlgmr.msra.gmra.mxu1 %v24812_v11 }
0x2f90   :  { %32846 = vmatpush3.msra.mxu1 %v35491_v30  ;;  %32849 = vmatprep.mubr.msk.f32.mxu1 %vm33380_vm2, %v33379_v3 }
0x2f91   :  { %32847 = vmatprep.subr.mxu1 %v33379_v3  ;;  %v24814_v51 = vand.u32 4294901760, %v24813_v50 }
0x2f92   :  { %32848 = vmatpush3.msra.mxu1 %v35499_v39 }
0x2f93   :  { %32850 = vmatmul.mubr.f32.vlgmr.msra.gmra.mxu1 %v24814_v51  ;;  %32859 = vmatprep.subr.mxu1 %v33379_v3  ;;  %v24815_v38 = vsub.f32 %v24813_v50, %v24814_v51 }
0x2f94   :  { %32860 = vmatpush3.msra.mxu1 %v35491_v30  ;;  %32863 = vmatprep.mubr.msk.f32.mxu1 %vm33380_vm2, %v33379_v3 }
0x2f95   :  { %32861 = vmatprep.subr.mxu1 %v33379_v3  ;;  %v24816_v37 = vand.u32 4294901760, %v24815_v38 }
0x2f96   :  { %32862 = vmatpush3.msra.mxu1 %v35499_v39 }
0x2f97   :  { %32829 = vmatmul.mubr.f32.vlgmr.msra.gmra.mxu0 %v24816_v37  ;;  %32864 = vmatmul.mubr.f32.vlgmr.msra.gmra.mxu1 %v24812_v11 }
0x2f98   :  { %32839 = vmatpush3.msra.mxu0 %v35497_v15  ;;  %32842 = vmatprep.mubr.msk.f32.mxu0 %vm33380_vm2, %v33379_v3 }
0x2f99   :  { %32840 = vmatprep.subr.mxu0 %v33379_v3  ;;  %32873 = vmatprep.subr.mxu1 %v33379_v3 }
0x2f9a   :  { %32841 = vmatpush3.msra.mxu0 %v35507_v42  ;;  %32874 = vmatpush3.msra.mxu1 %v33444_v16 }
0x2f9b   :  { %32843 = vmatmul.mubr.f32.vlgmr.msra.gmra.mxu0 %v24813_v50  ;;  %32852 = vmatprep.subr.mxu0 %v33379_v3 }
0x2f9c   :  { %32853 = vmatpush3.msra.mxu0 %v35504_v56  ;;  %32856 = vmatprep.mubr.msk.f32.mxu0 %vm33380_vm2, %v33379_v3 }
0x2f9d   :  { %32854 = vmatprep.subr.mxu0 %v33379_v3  ;;  %32875 = vmatprep.subr.mxu1 %v33379_v3 }
0x2f9e   :  { %32855 = vmatpush3.msra.mxu0 %v35514_v34  ;;  %32876 = vmatpush3.msra.mxu1 %v33446_v18 }
0x2f9f   :  { %32857 = vmatmul.mubr.f32.vlgmr.msra.gmra.mxu0 %v24812_v11  ;;  %32877 = vmatprep.mubr.msk.f32.mxu1 %vm33380_vm2, %v33379_v3 }
0x2fa0   :  { %32887 = vmatprep.subr.mxu1 %v33379_v3  ;;  %32866 = vmatprep.subr.mxu0 %v33379_v3 }
0x2fa1   :  { %32867 = vmatpush3.msra.mxu0 %v33411_v4  ;;  %32870 = vmatprep.mubr.msk.f32.mxu0 %vm33380_vm2, %v33379_v3 }
0x2fa2   :  { %32868 = vmatprep.subr.mxu0 %v33379_v3 }
0x2fa3   :  { %32869 = vmatpush3.msra.mxu0 %v33414_v5 }
0x2fa4   :  { %32880 = vmatprep.subr.mxu0 %v33379_v3 }
0x304f   :  { %v24899_v30 = vpop.f32.mrf.mxu1 }
0x3051   :  { %v32837_v15 = vpop.f32.mrf.mxu1 }
0x3053   :  { %v25050_v39 = vpop.f32.mrf.mxu1 }
0x3055   :  { %v32851_v56 = vpop.f32.mrf.mxu1 }
0x3057   :  { %v24818_v42 = vpop.f32.mrf.mxu0  ;;  %v25200_v34 = vpop.f32.mrf.mxu1 }
0x3058   :  { %v24819_v60 = vadd.f32 %v24818_v42, %v35572_v43 }
0x3059   :  { %v32830_v40 = vpop.f32.mrf.mxu0  ;;  %v32865_v47 = vpop.f32.mrf.mxu1 }
0x305a   :  { %v24900_v17 = vadd.f32 %v24899_v30, %v24819_v60  ;;  %v33353_v40 = vld [vmem:[%s36204_s1 + $0x28] sm:$0xff] }
0x305b   :  { %v24975_v57 = vpop.f32.mrf.mxu0  ;;  %v25208_v47 = vmul.f32 0.047619026, %v33353_v40 }
0x305c   :  { %v24976_v58 = vadd.f32 %v24975_v57, %v24900_v17  ;;  %v33354_v57 = vld [vmem:[%s36204_s1 + $0x20] sm:$0xff] }
0x305d   :  { %v32844_v54 = vpop.f32.mrf.mxu0  ;;  %v35892_v17 = vand.u32 4294901760, %v25208_v47 }
0x305e   :  { %v25051_v62 = vadd.f32 %v25050_v39, %v24976_v58  ;;  %v25207_v58 = vmul.f32 0.047619026, %v33354_v57 }
0x305f   :  { %v25127_v22 = vpop.f32.mrf.mxu0  ;;  %v35898_v54 = vsub.f32 %v25208_v47, %v35892_v17  ;;  %v33356_v47 = vld [vmem:[%s36204_s1 + $0x32] ss:$0 sm:$0xff] }
0x3060   :  { %v25128_v55 = vadd.f32 %v25127_v22, %v25051_v62  ;;  %v35900_v62 = vand.u32 4294901760, %v25207_v58  ;;  %v35973_v57 = vmul.f32 0.047619026, %v33356_v47 }
0x3061   :  { %v32858_v14 = vpop.f32.mrf.mxu0  ;;  %v35905_v22 = vand.u32 4294901760, %v35898_v54 }
0x3062   :  { %v25201_v61 = vadd.f32 %v25200_v34, %v25128_v55  ;;  %v35908_v55 = vsub.f32 %v25207_v58, %v35900_v62 }
0x3063   :  { %v26256_v14 = vsub.f32 %v35898_v54, %v35905_v22 }
0x3064   :  { %v35812_v32 = vadd.f32 %v25201_v61, %v35694_v27  ;;  %v35915_v61 = vand.u32 4294901760, %v35908_v55 }
0x3066   :  { %25206 = vst.msk [vmem:[#allocation2 + $0x18] sm:$0xf] %vm34_vm0, %v35812_v32  ;;  %v25211_v43 = vsel %vm39_vm1, %v35812_v32, 0 }
0x3067   :  { %v25280_v19 = vand.u32 4294901760, %v25211_v43 }
0x3069   :  { %v25281_v0 = vsub.f32 %v25211_v43, %v25280_v19  ;;  %32878 = vmatmul.mubr.f32.vlgmr.msra.gmra.mxu1 %v25280_v19  ;;  %v35917_v43 = vand.u32 4294901760, %v26256_v14 }
0x306a   :  { %32888 = vmatpush3.msra.mxu1 %v33411_v4  ;;  %32891 = vmatprep.mubr.msk.f32.mxu1 %vm33380_vm2, %v33379_v3 }
0x306b   :  { %32889 = vmatprep.subr.mxu1 %v33379_v3  ;;  %v25282_v59 = vand.u32 4294901760, %v25281_v0 }
0x306c   :  { %32890 = vmatpush3.msra.mxu1 %v33414_v5 }
0x306d   :  { %32892 = vmatmul.mubr.f32.vlgmr.msra.gmra.mxu1 %v25282_v59  ;;  %32901 = vmatprep.subr.mxu1 %v33379_v3  ;;  %v25283_v27 = vsub.f32 %v25281_v0, %v25282_v59 }
0x306e   :  { %32902 = vmatpush3.msra.mxu1 %v33411_v4  ;;  %32905 = vmatprep.mubr.msk.f32.mxu1 %vm33380_vm2, %v33379_v3 }
0x306f   :  { %32903 = vmatprep.subr.mxu1 %v33379_v3  ;;  %v25284_v52 = vand.u32 4294901760, %v25283_v27 }
0x3070   :  { %32904 = vmatpush3.msra.mxu1 %v33414_v5 }
0x3071   :  { %32871 = vmatmul.mubr.f32.vlgmr.msra.gmra.mxu0 %v25284_v52  ;;  %32906 = vmatmul.mubr.f32.vlgmr.msra.gmra.mxu1 %v25280_v19 }
0x3072   :  { %32881 = vmatpush3.msra.mxu0 %v33426_v7  ;;  %32884 = vmatprep.mubr.msk.f32.mxu0 %vm33380_vm2, %v33379_v3 }
0x3073   :  { %32882 = vmatprep.subr.mxu0 %v33379_v3  ;;  %32915 = vmatprep.subr.mxu1 %v33379_v3 }
0x3074   :  { %32883 = vmatpush3.msra.mxu0 %v33429_v9  ;;  %32916 = vmatpush3.msra.mxu1 %v33508_v29 }
0x3075   :  { %32885 = vmatmul.mubr.f32.vlgmr.msra.gmra.mxu0 %v25281_v0  ;;  %32894 = vmatprep.subr.mxu0 %v33379_v3 }
0x3076   :  { %32895 = vmatpush3.msra.mxu0 %v33434_v10  ;;  %32898 = vmatprep.mubr.msk.f32.mxu0 %vm33380_vm2, %v33379_v3 }
0x3077   :  { %32896 = vmatprep.subr.mxu0 %v33379_v3  ;;  %32917 = vmatprep.subr.mxu1 %v33379_v3 }
0x3078   :  { %32897 = vmatpush3.msra.mxu0 %v33437_v12  ;;  %32918 = vmatpush3.msra.mxu1 %v33513_v31 }
0x3079   :  { %32899 = vmatmul.mubr.f32.vlgmr.msra.gmra.mxu0 %v25280_v19  ;;  %32919 = vmatprep.mubr.msk.f32.mxu1 %vm33380_vm2, %v33379_v3  ;;  %v26263_v19 = vsub.f32 %v35908_v55, %v35915_v61 }
0x307a   :  { %32929 = vmatprep.subr.mxu1 %v33379_v3  ;;  %32908 = vmatprep.subr.mxu0 %v33379_v3 }
0x307b   :  { %32909 = vmatpush3.msra.mxu0 %v33483_v21  ;;  %32912 = vmatprep.mubr.msk.f32.mxu0 %vm33380_vm2, %v33379_v3  ;;  %v35922_v0 = vand.u32 4294901760, %v26263_v19 }
0x307c   :  { %32910 = vmatprep.subr.mxu0 %v33379_v3 }
0x307d   :  { %32911 = vmatpush3.msra.mxu0 %v33491_v24 }
0x307e   :  { %32922 = vmatprep.subr.mxu0 %v33379_v3 }
0x3129   :  { %v25367_v1 = vpop.f32.mrf.mxu1 }
0x312b   :  { %v32879_v20 = vpop.f32.mrf.mxu1 }
0x312d   :  { %v25518_v53 = vpop.f32.mrf.mxu1 }
0x312f   :  { %v32893_v41 = vpop.f32.mrf.mxu1 }
0x3130   :  { %v35930_v41 = vld [vmem:[%s36204_s1 + $0x31] ss:$0 sm:$0xff]  ;;  %s33381_s1 = smov [#allocation2]  }
0x3131   :  { %v25286_v63 = vpop.f32.mrf.mxu0  ;;  %v25668_v6 = vpop.f32.mrf.mxu1  ;;  %s29408_s18 = sshll.u32 %s33381_s1, 4  ;;  %s29409_s18 = int_to_ptr.vmem [resolvable:$true] %s29408_s18 }
0x3132   :  { %v25287_v13 = vadd.f32 %v35857_v8, %v25286_v63  ;;  %s33357_s19 = scalar_lea.vmem %s29409_s18, 512  ;;  %p33362_p1 = scmp.lt.s32.totalorder %s29409_s18, %s29409_s18 }
0x3133   :  { %v32872_v36 = vpop.f32.mrf.mxu0  ;;  %v32907_v44 = vpop.f32.mrf.mxu1  ;;  %p33358_p0 = scmp.ne.s32.totalorder %s29409_s18, %s33357_s19  ;;  %p33363_p2 = scmp.lt.s32.totalorder %s33357_s19, %s33357_s19 }
0x3134   :  { %v25368_v46 = vadd.f32 %v25367_v1, %v25287_v13 }
0x3135   :  { %v25443_v48 = vpop.f32.mrf.mxu0  ;;  %p33364_p3 = por %p33363_p2, %p33362_p1 }
0x3136   :  { %v25444_v2 = vadd.f32 %v25443_v48, %v25368_v46 }
0x3137   :  { %v32886_v33 = vpop.f32.mrf.mxu0  ;;  %p33365_p4 = pnand %p33364_p3, %p33358_p0 }
0x3138   :  { %v25519_v35 = vadd.f32 %v25518_v53, %v25444_v2 }
0x3139   :  { %v25595_v45 = vpop.f32.mrf.mxu0 }
0x313a   :  { %v25596_v49 = vadd.f32 %v25595_v45, %v25519_v35 }
0x313b   :  { %v32900_v11 = vpop.f32.mrf.mxu0 }
0x313c   :  { %v25669_v50 = vadd.f32 %v25668_v6, %v25596_v49 }
0x313e   :  { %v25673_v51 = vmul.f32 1.442695, %v25669_v50  ;;  %vm25672_vm13 = vcmp.gt.f32.partialorder %v25669_v50, 0.0 }
0x3140   :  { %33321 = vpow2.f32 %v25673_v51 }
0x314d   :  { %v33322_v38 = vpop.eup %33321 }
0x314e   :  { %v29458_v37 = vadd.f32 -1.0, %v33322_v38 }
0x3150   :  { %v25676_v30 = vsel %vm25672_vm13, %v25669_v50, %v29458_v37 }
0x3151   :  { %v25678_v15 = vsel %vm39_vm1, %v25676_v30, 0 }
0x3152   :  { %v25747_v39 = vand.u32 4294901760, %v25678_v15 }
0x3154   :  { %v25748_v56 = vsub.f32 %v25678_v15, %v25747_v39  ;;  %32920 = vmatmul.mubr.f32.vlgmr.msra.gmra.mxu1 %v25747_v39 }
0x3155   :  { %32930 = vmatpush3.msra.mxu1 %v33483_v21  ;;  %32933 = vmatprep.mubr.msk.f32.mxu1 %vm33380_vm2, %v33379_v3 }
0x3156   :  { %32931 = vmatprep.subr.mxu1 %v33379_v3  ;;  %v25749_v42 = vand.u32 4294901760, %v25748_v56 }
0x3157   :  { %32932 = vmatpush3.msra.mxu1 %v33491_v24 }
0x3158   :  { %32934 = vmatmul.mubr.f32.vlgmr.msra.gmra.mxu1 %v25749_v42  ;;  %32943 = vmatprep.subr.mxu1 %v33379_v3  ;;  %v25750_v34 = vsub.f32 %v25748_v56, %v25749_v42 }
0x3159   :  { %32944 = vmatpush3.msra.mxu1 %v33483_v21  ;;  %32947 = vmatprep.mubr.msk.f32.mxu1 %vm33380_vm2, %v33379_v3 }
0x315a   :  { %32945 = vmatprep.subr.mxu1 %v33379_v3  ;;  %v25751_v60 = vand.u32 4294901760, %v25750_v34 }
0x315b   :  { %32946 = vmatpush3.msra.mxu1 %v33491_v24 }
0x315c   :  { %32913 = vmatmul.mubr.f32.vlgmr.msra.gmra.mxu0 %v25751_v60  ;;  %32948 = vmatmul.mubr.f32.vlgmr.msra.gmra.mxu1 %v25747_v39 }
0x315d   :  { %32923 = vmatpush3.msra.mxu0 %v33489_v23  ;;  %32926 = vmatprep.mubr.msk.f32.mxu0 %vm33380_vm2, %v33379_v3 }
0x315e   :  { %32924 = vmatprep.subr.mxu0 %v33379_v3  ;;  %32957 = vmatprep.subr.mxu1 %v33379_v3 }
0x315f   :  { %32925 = vmatpush3.msra.mxu0 %v33499_v26  ;;  %32961 = vmatprep.mubr.msk.f32.mxu1 %vm33380_vm2, %v33379_v3 }
0x3160   :  { %32927 = vmatmul.mubr.f32.vlgmr.msra.gmra.mxu0 %v25748_v56  ;;  %32936 = vmatprep.subr.mxu0 %v33379_v3 }
0x3161   :  { %32937 = vmatpush3.msra.mxu0 %v33496_v25  ;;  %32940 = vmatprep.mubr.msk.f32.mxu0 %vm33380_vm2, %v33379_v3 }
0x3162   :  { %32938 = vmatprep.subr.mxu0 %v33379_v3  ;;  %32958 = vmatpush3.msra.mxu1 %v35917_v43 }
0x3163   :  { %32939 = vmatpush3.msra.mxu0 %v33506_v28  ;;  %32959 = vmatprep.subr.mxu1 %v33379_v3 }
0x3164   :  { %32941 = vmatmul.mubr.f32.vlgmr.msra.gmra.mxu0 %v25747_v39  ;;  %32950 = vmatprep.subr.mxu0 %v33379_v3 }
0x3165   :  { %32954 = vmatprep.mubr.msk.f32.mxu0 %vm33380_vm2, %v33379_v3  ;;  %32951 = vmatpush3.msra.mxu0 %v35892_v17 }
0x3166   :  { %32952 = vmatprep.subr.mxu0 %v33379_v3  ;;  %32960 = vmatpush3.msra.mxu1 %v35922_v0 }
0x3167   :  { %32953 = vmatpush3.msra.mxu0 %v35900_v62  ;;  %32971 = vmatprep.subr.mxu1 %v33379_v3 }
0x3168   :  { %32964 = vmatprep.subr.mxu0 %v33379_v3 }
0x3214   :  { %v25834_v59 = vpop.f32.mrf.mxu1 }
0x3216   :  { %v32921_v27 = vpop.f32.mrf.mxu1 }
0x3218   :  { %v25985_v52 = vpop.f32.mrf.mxu1 }
0x321a   :  { %v32935_v1 = vpop.f32.mrf.mxu1 }
0x321c   :  { %v25753_v20 = vpop.f32.mrf.mxu0  ;;  %v26135_v53 = vpop.f32.mrf.mxu1 }
0x321d   :  { %v25754_v63 = vadd.f32 %v35930_v41, %v25753_v20 }
0x321e   :  { %v32914_v6 = vpop.f32.mrf.mxu0  ;;  %v32949_v13 = vpop.f32.mrf.mxu1 }
0x321f   :  { %v25835_v36 = vadd.f32 %v25834_v59, %v25754_v63 }
0x3220   :  { %v25910_v44 = vpop.f32.mrf.mxu0 }
0x3221   :  { %v25911_v46 = vadd.f32 %v25910_v44, %v25835_v36 }
0x3222   :  { %v32928_v48 = vpop.f32.mrf.mxu0 }
0x3223   :  { %v25986_v2 = vadd.f32 %v25985_v52, %v25911_v46 }
0x3224   :  { %v26062_v33 = vpop.f32.mrf.mxu0 }
0x3225   :  { %v26063_v35 = vadd.f32 %v26062_v33, %v25986_v2 }
0x3226   :  { %v32942_v45 = vpop.f32.mrf.mxu0 }
0x3227   :  { %v26136_v49 = vadd.f32 %v26135_v53, %v26063_v35 }
0x3229   :  { %v26140_v11 = vmul.f32 1.442695, %v26136_v49  ;;  %vm26139_vm14 = vcmp.gt.f32.partialorder %v26136_v49, 0.0 }
0x322b   :  { %33323 = vpow2.f32 %v26140_v11 }
0x3238   :  { %v33324_v50 = vpop.eup %33323 }
0x3239   :  { %v29459_v51 = vadd.f32 -1.0, %v33324_v50 }
0x323b   :  { %v26143_v38 = vsel %vm26139_vm14, %v26136_v49, %v29459_v51 }
0x323c   :  { %v26145_v37 = vsel %vm39_vm1, %v26143_v38, 0 }
0x323d   :  { %v26214_v30 = vand.u32 4294901760, %v26145_v37 }
0x323f   :  { %v26215_v15 = vsub.f32 %v26145_v37, %v26214_v30  ;;  %32962 = vmatmul.mubr.f32.vlgmr.msra.gmra.mxu1 %v26214_v30 }
0x3240   :  { %32972 = vmatpush3.msra.mxu1 %v35892_v17  ;;  %32975 = vmatprep.mubr.msk.f32.mxu1 %vm33380_vm2, %v33379_v3 }
0x3241   :  { %32973 = vmatprep.subr.mxu1 %v33379_v3  ;;  %v26216_v39 = vand.u32 4294901760, %v26215_v15 }
0x3242   :  { %32974 = vmatpush3.msra.mxu1 %v35900_v62 }
0x3243   :  { %32976 = vmatmul.mubr.f32.vlgmr.msra.gmra.mxu1 %v26216_v39  ;;  %32985 = vmatprep.subr.mxu1 %v33379_v3  ;;  %v26217_v56 = vsub.f32 %v26215_v15, %v26216_v39 }
0x3244   :  { %32986 = vmatpush3.msra.mxu1 %v35892_v17  ;;  %32989 = vmatprep.mubr.msk.f32.mxu1 %vm33380_vm2, %v33379_v3 }
0x3245   :  { %32987 = vmatprep.subr.mxu1 %v33379_v3  ;;  %v26218_v42 = vand.u32 4294901760, %v26217_v56 }
0x3246   :  { %32988 = vmatpush3.msra.mxu1 %v35900_v62 }
0x3247   :  { %32955 = vmatmul.mubr.f32.vlgmr.msra.gmra.mxu0 %v26218_v42  ;;  %32990 = vmatmul.mubr.f32.vlgmr.msra.gmra.mxu1 %v26214_v30 }
0x3248   :  { %32965 = vmatpush3.msra.mxu0 %v35898_v54  ;;  %32968 = vmatprep.mubr.msk.f32.mxu0 %vm33380_vm2, %v33379_v3 }
0x3249   :  { %32966 = vmatprep.subr.mxu0 %v33379_v3  ;;  %32999 = vmatprep.subr.mxu1 %v33379_v3 }
0x324a   :  { %32967 = vmatpush3.msra.mxu0 %v35908_v55  ;;  %33000 = vmatpush3.msra.mxu1 %v33444_v16 }
0x324b   :  { %32969 = vmatmul.mubr.f32.vlgmr.msra.gmra.mxu0 %v26215_v15  ;;  %32978 = vmatprep.subr.mxu0 %v33379_v3 }
0x324c   :  { %32979 = vmatpush3.msra.mxu0 %v35905_v22  ;;  %32982 = vmatprep.mubr.msk.f32.mxu0 %vm33380_vm2, %v33379_v3 }
0x324d   :  { %32980 = vmatprep.subr.mxu0 %v33379_v3  ;;  %33001 = vmatprep.subr.mxu1 %v33379_v3 }
0x324e   :  { %32981 = vmatpush3.msra.mxu0 %v35915_v61  ;;  %33002 = vmatpush3.msra.mxu1 %v33446_v18 }
0x324f   :  { %32983 = vmatmul.mubr.f32.vlgmr.msra.gmra.mxu0 %v26214_v30  ;;  %33003 = vmatprep.mubr.msk.f32.mxu1 %vm33380_vm2, %v33379_v3 }
0x3250   :  { %33013 = vmatprep.subr.mxu1 %v33379_v3  ;;  %32992 = vmatprep.subr.mxu0 %v33379_v3 }
0x3251   :  { %32993 = vmatpush3.msra.mxu0 %v33411_v4  ;;  %32996 = vmatprep.mubr.msk.f32.mxu0 %vm33380_vm2, %v33379_v3 }
0x3252   :  { %32994 = vmatprep.subr.mxu0 %v33379_v3 }
0x3253   :  { %32995 = vmatpush3.msra.mxu0 %v33414_v5 }
0x3254   :  { %33006 = vmatprep.subr.mxu0 %v33379_v3 }
0x32ff   :  { %v26301_v34 = vpop.f32.mrf.mxu1 }
0x3301   :  { %v32963_v60 = vpop.f32.mrf.mxu1 }
0x3303   :  { %v26452_v40 = vpop.f32.mrf.mxu1 }
0x3305   :  { %v32977_v58 = vpop.f32.mrf.mxu1 }
0x3307   :  { %v26220_v14 = vpop.f32.mrf.mxu0  ;;  %v26602_v19 = vpop.f32.mrf.mxu1 }
0x3308   :  { %v26221_v59 = vadd.f32 %v26220_v14, %v35973_v57 }
0x3309   :  { %v32956_v27 = vpop.f32.mrf.mxu0  ;;  %v32991_v52 = vpop.f32.mrf.mxu1 }
0x330a   :  { %v26302_v1 = vadd.f32 %v26301_v34, %v26221_v59 }
0x330b   :  { %v26377_v20 = vpop.f32.mrf.mxu0 }
0x330c   :  { %v26378_v53 = vadd.f32 %v26377_v20, %v26302_v1 }
0x330d   :  { %v32970_v63 = vpop.f32.mrf.mxu0 }
0x330e   :  { %v26453_v6 = vadd.f32 %v26452_v40, %v26378_v53 }
0x330f   :  { %v26529_v13 = vpop.f32.mrf.mxu0 }
0x3310   :  { %v26530_v36 = vadd.f32 %v26529_v13, %v26453_v6 }
0x3311   :  { %v32984_v44 = vpop.f32.mrf.mxu0 }
0x3312   :  { %v26603_v46 = vadd.f32 %v26602_v19, %v26530_v36 }
0x3314   :  { %v35977_v48 = vadd.f32 %v26603_v46, %v35812_v32 }
0x3316   :  { %v26608_v2 = vsel %vm39_vm1, %v35977_v48, 0 }
0x3317   :  { %v26677_v33 = vand.u32 4294901760, %v26608_v2 }
0x3319   :  { %v26678_v35 = vsub.f32 %v26608_v2, %v26677_v33  ;;  %33004 = vmatmul.mubr.f32.vlgmr.msra.gmra.mxu1 %v26677_v33 }
0x331a   :  { %33014 = vmatpush3.msra.mxu1 %v33411_v4  ;;  %33017 = vmatprep.mubr.msk.f32.mxu1 %vm33380_vm2, %v33379_v3 }
0x331b   :  { %v26679_v45 = vand.u32 4294901760, %v26678_v35  ;;  %33015 = vmatprep.subr.mxu1 %v33379_v3 }
0x331c   :  { %33016 = vmatpush3.msra.mxu1 %v33414_v5 }
0x331d   :  { %v26680_v49 = vsub.f32 %v26678_v35, %v26679_v45  ;;  %33018 = vmatmul.mubr.f32.vlgmr.msra.gmra.mxu1 %v26679_v45  ;;  %33027 = vmatprep.subr.mxu1 %v33379_v3 }
0x331e   :  { %33028 = vmatpush3.msra.mxu1 %v33411_v4  ;;  %33031 = vmatprep.mubr.msk.f32.mxu1 %vm33380_vm2, %v33379_v3 }
0x331f   :  { %33029 = vmatprep.subr.mxu1 %v33379_v3  ;;  %v26681_v32 = vand.u32 4294901760, %v26680_v49 }
0x3320   :  { %33030 = vmatpush3.msra.mxu1 %v33414_v5 }
0x3321   :  { %32997 = vmatmul.mubr.f32.vlgmr.msra.gmra.mxu0 %v26681_v32  ;;  %33032 = vmatmul.mubr.f32.vlgmr.msra.gmra.mxu1 %v26677_v33 }
0x3322   :  { %33007 = vmatpush3.msra.mxu0 %v33426_v7  ;;  %33010 = vmatprep.mubr.msk.f32.mxu0 %vm33380_vm2, %v33379_v3 }
0x3323   :  { %33008 = vmatprep.subr.mxu0 %v33379_v3  ;;  %33041 = vmatprep.subr.mxu1 %v33379_v3 }
0x3324   :  { %33009 = vmatpush3.msra.mxu0 %v33429_v9  ;;  %33042 = vmatpush3.msra.mxu1 %v33508_v29 }
0x3325   :  { %33011 = vmatmul.mubr.f32.vlgmr.msra.gmra.mxu0 %v26678_v35  ;;  %33020 = vmatprep.subr.mxu0 %v33379_v3 }
0x3326   :  { %33021 = vmatpush3.msra.mxu0 %v33434_v10  ;;  %33024 = vmatprep.mubr.msk.f32.mxu0 %vm33380_vm2, %v33379_v3 }
0x3327   :  { %33022 = vmatprep.subr.mxu0 %v33379_v3  ;;  %33043 = vmatprep.subr.mxu1 %v33379_v3 }
0x3328   :  { %33023 = vmatpush3.msra.mxu0 %v33437_v12  ;;  %33044 = vmatpush3.msra.mxu1 %v33513_v31 }
0x3329   :  { %33025 = vmatmul.mubr.f32.vlgmr.msra.gmra.mxu0 %v26677_v33  ;;  %33045 = vmatprep.mubr.msk.f32.mxu1 %vm33380_vm2, %v33379_v3 }
0x332a   :  { %33055 = vmatprep.subr.mxu1 %v33379_v3  ;;  %33034 = vmatprep.subr.mxu0 %v33379_v3 }
0x332b   :  { %33035 = vmatpush3.msra.mxu0 %v33483_v21  ;;  %33038 = vmatprep.mubr.msk.f32.mxu0 %vm33380_vm2, %v33379_v3 }
0x332c   :  { %33036 = vmatprep.subr.mxu0 %v33379_v3 }
0x332d   :  { %33037 = vmatpush3.msra.mxu0 %v33491_v24 }
0x332e   :  { %33048 = vmatprep.subr.mxu0 %v33379_v3 }
0x33d9   :  { %v26764_v11 = vpop.f32.mrf.mxu1 }
0x33db   :  { %v33005_v50 = vpop.f32.mrf.mxu1 }
0x33dd   :  { %v26915_v51 = vpop.f32.mrf.mxu1 }
0x33df   :  { %v33019_v38 = vpop.f32.mrf.mxu1 }
0x33e1   :  { %v26683_v37 = vpop.f32.mrf.mxu0  ;;  %v27065_v30 = vpop.f32.mrf.mxu1 }
0x33e2   :  { %v26684_v15 = vadd.f32 %v35857_v8, %v26683_v37 }
0x33e3   :  { %v32998_v39 = vpop.f32.mrf.mxu0  ;;  %v33033_v56 = vpop.f32.mrf.mxu1 }
0x33e4   :  { %v26765_v42 = vadd.f32 %v26764_v11, %v26684_v15 }
0x33e5   :  { %v26840_v34 = vpop.f32.mrf.mxu0 }
0x33e6   :  { %v26841_v60 = vadd.f32 %v26840_v34, %v26765_v42 }
0x33e7   :  { %v33012_v40 = vpop.f32.mrf.mxu0 }
0x33e8   :  { %v26916_v47 = vadd.f32 %v26915_v51, %v26841_v60 }
0x33e9   :  { %v26992_v58 = vpop.f32.mrf.mxu0 }
0x33ea   :  { %v26993_v14 = vadd.f32 %v26992_v58, %v26916_v47 }
0x33eb   :  { %v33026_v19 = vpop.f32.mrf.mxu0 }
0x33ec   :  { %v27066_v59 = vadd.f32 %v27065_v30, %v26993_v14 }
0x33ee   :  { %v27070_v27 = vmul.f32 1.442695, %v27066_v59  ;;  %vm27069_vm15 = vcmp.gt.f32.partialorder %v27066_v59, 0.0 }
0x33f0   :  { %33325 = vpow2.f32 %v27070_v27 }
0x33fd   :  { %v33326_v52 = vpop.eup %33325 }
0x33fe   :  { %v29460_v1 = vadd.f32 -1.0, %v33326_v52 }
0x3400   :  { %v27073_v20 = vsel %vm27069_vm15, %v27066_v59, %v29460_v1 }
0x3401   :  { %v27075_v53 = vsel %vm39_vm1, %v27073_v20, 0 }
0x3402   :  { %v27144_v63 = vand.u32 4294901760, %v27075_v53 }
0x3404   :  { %v27145_v6 = vsub.f32 %v27075_v53, %v27144_v63  ;;  %33046 = vmatmul.mubr.f32.vlgmr.msra.gmra.mxu1 %v27144_v63 }
0x3405   :  { %33056 = vmatpush3.msra.mxu1 %v33483_v21  ;;  %33059 = vmatprep.mubr.msk.f32.mxu1 %vm33380_vm2, %v33379_v3 }
0x3406   :  { %33057 = vmatprep.subr.mxu1 %v33379_v3  ;;  %v27146_v13 = vand.u32 4294901760, %v27145_v6 }
0x3407   :  { %33058 = vmatpush3.msra.mxu1 %v33491_v24 }
0x3408   :  { %33060 = vmatmul.mubr.f32.vlgmr.msra.gmra.mxu1 %v27146_v13  ;;  %33069 = vmatprep.subr.mxu1 %v33379_v3  ;;  %v27147_v36 = vsub.f32 %v27145_v6, %v27146_v13 }
0x3409   :  { %33070 = vmatpush3.msra.mxu1 %v33483_v21  ;;  %33073 = vmatprep.mubr.msk.f32.mxu1 %vm33380_vm2, %v33379_v3 }
0x340a   :  { %33071 = vmatprep.subr.mxu1 %v33379_v3  ;;  %v27148_v44 = vand.u32 4294901760, %v27147_v36 }
0x340b   :  { %33072 = vmatpush3.msra.mxu1 %v33491_v24 }
0x340c   :  { %33039 = vmatmul.mubr.f32.vlgmr.msra.gmra.mxu0 %v27148_v44  ;;  %33074 = vmatmul.mubr.f32.vlgmr.msra.gmra.mxu1 %v27144_v63 }
0x340d   :  { %33049 = vmatpush3.msra.mxu0 %v33489_v23  ;;  %33052 = vmatprep.mubr.msk.f32.mxu0 %vm33380_vm2, %v33379_v3 }
0x340e   :  { %33050 = vmatprep.subr.mxu0 %v33379_v3  ;;  %33083 = vmatprep.subr.mxu1 %v33379_v3 }
0x340f   :  { %33051 = vmatpush3.msra.mxu0 %v33499_v26  ;;  %33084 = vmatpush3.msra.mxu1 %v35917_v43 }
0x3410   :  { %33053 = vmatmul.mubr.f32.vlgmr.msra.gmra.mxu0 %v27145_v6  ;;  %33062 = vmatprep.subr.mxu0 %v33379_v3 }
0x3411   :  { %33063 = vmatpush3.msra.mxu0 %v33496_v25  ;;  %33066 = vmatprep.mubr.msk.f32.mxu0 %vm33380_vm2, %v33379_v3 }
0x3412   :  { %33064 = vmatprep.subr.mxu0 %v33379_v3  ;;  %33085 = vmatprep.subr.mxu1 %v33379_v3 }
0x3413   :  { %33065 = vmatpush3.msra.mxu0 %v33506_v28  ;;  %33086 = vmatpush3.msra.mxu1 %v35922_v0 }
0x3414   :  { %33067 = vmatmul.mubr.f32.vlgmr.msra.gmra.mxu0 %v27144_v63  ;;  %33087 = vmatprep.mubr.msk.f32.mxu1 %vm33380_vm2, %v33379_v3 }
0x3415   :  { %33097 = vmatprep.subr.mxu1 %v33379_v3  ;;  %33076 = vmatprep.subr.mxu0 %v33379_v3 }
0x3416   :  { %33077 = vmatpush3.msra.mxu0 %v35892_v17  ;;  %33080 = vmatprep.mubr.msk.f32.mxu0 %vm33380_vm2, %v33379_v3 }
0x3417   :  { %33078 = vmatprep.subr.mxu0 %v33379_v3 }
0x3418   :  { %33079 = vmatpush3.msra.mxu0 %v35900_v62 }
0x3419   :  { %33090 = vmatprep.subr.mxu0 %v33379_v3 }
0x34c4   :  { %v27231_v46 = vpop.f32.mrf.mxu1 }
0x34c6   :  { %v33047_v2 = vpop.f32.mrf.mxu1 }
0x34c8   :  { %v27382_v33 = vpop.f32.mrf.mxu1 }
0x34ca   :  { %v33061_v35 = vpop.f32.mrf.mxu1 }
0x34cc   :  { %v27150_v45 = vpop.f32.mrf.mxu0  ;;  %v27532_v49 = vpop.f32.mrf.mxu1 }
0x34cd   :  { %v27151_v32 = vadd.f32 %v35930_v41, %v27150_v45 }
0x34ce   :  { %v33040_v11 = vpop.f32.mrf.mxu0  ;;  %v33075_v50 = vpop.f32.mrf.mxu1 }
0x34cf   :  { %v27232_v51 = vadd.f32 %v27231_v46, %v27151_v32 }
0x34d0   :  { %v27307_v38 = vpop.f32.mrf.mxu0 }
0x34d1   :  { %v27308_v37 = vadd.f32 %v27307_v38, %v27232_v51 }
0x34d2   :  { %v33054_v30 = vpop.f32.mrf.mxu0 }
0x34d3   :  { %v27383_v15 = vadd.f32 %v27382_v33, %v27308_v37 }
0x34d4   :  { %v27459_v39 = vpop.f32.mrf.mxu0 }
0x34d5   :  { %v27460_v56 = vadd.f32 %v27459_v39, %v27383_v15 }
0x34d6   :  { %v33068_v42 = vpop.f32.mrf.mxu0 }
0x34d7   :  { %v27533_v34 = vadd.f32 %v27532_v49, %v27460_v56 }
0x34d9   :  { %v27537_v60 = vmul.f32 1.442695, %v27533_v34  ;;  %vm27536_vm3 = vcmp.gt.f32.partialorder %v27533_v34, 0.0 }
0x34db   :  { %33327 = vpow2.f32 %v27537_v60 }
0x34e8   :  { %v33328_v40 = vpop.eup %33327 }
0x34e9   :  { %v29461_v47 = vadd.f32 -1.0, %v33328_v40 }
0x34eb   :  { %v27540_v58 = vsel %vm27536_vm3, %v27533_v34, %v29461_v47 }
0x34ec   :  { %v27542_v14 = vsel %vm39_vm1, %v27540_v58, 0 }
0x34ed   :  { %v27611_v19 = vand.u32 4294901760, %v27542_v14 }
0x34ef   :  { %v27612_v59 = vsub.f32 %v27542_v14, %v27611_v19  ;;  %33088 = vmatmul.mubr.f32.vlgmr.msra.gmra.mxu1 %v27611_v19 }
0x34f0   :  { %33098 = vmatpush3.msra.mxu1 %v35892_v17  ;;  %33101 = vmatprep.mubr.msk.f32.mxu1 %vm33380_vm2, %v33379_v3 }
0x34f1   :  { %33099 = vmatprep.subr.mxu1 %v33379_v3  ;;  %v27613_v27 = vand.u32 4294901760, %v27612_v59 }
0x34f2   :  { %33100 = vmatpush3.msra.mxu1 %v35900_v62 }
0x34f3   :  { %33102 = vmatmul.mubr.f32.vlgmr.msra.gmra.mxu1 %v27613_v27  ;;  %33111 = vmatprep.subr.mxu1 %v33379_v3  ;;  %v27614_v52 = vsub.f32 %v27612_v59, %v27613_v27 }
0x34f4   :  { %33112 = vmatpush3.msra.mxu1 %v35892_v17  ;;  %33115 = vmatprep.mubr.msk.f32.mxu1 %vm33380_vm2, %v33379_v3 }
0x34f5   :  { %33113 = vmatprep.subr.mxu1 %v33379_v3  ;;  %v27615_v1 = vand.u32 4294901760, %v27614_v52 }
0x34f6   :  { %33114 = vmatpush3.msra.mxu1 %v35900_v62 }
0x34f7   :  { %33081 = vmatmul.mubr.f32.vlgmr.msra.gmra.mxu0 %v27615_v1  ;;  %33116 = vmatmul.mubr.f32.vlgmr.msra.gmra.mxu1 %v27611_v19 }
0x34f8   :  { %33091 = vmatpush3.msra.mxu0 %v35898_v54  ;;  %33094 = vmatprep.mubr.msk.f32.mxu0 %vm33380_vm2, %v33379_v3 }
0x34f9   :  { %33092 = vmatprep.subr.mxu0 %v33379_v3  ;;  %33125 = vmatprep.subr.mxu1 %v33379_v3 }
0x34fa   :  { %33093 = vmatpush3.msra.mxu0 %v35908_v55  ;;  %33126 = vmatpush3.msra.mxu1 %v33444_v16 }
0x34fb   :  { %33095 = vmatmul.mubr.f32.vlgmr.msra.gmra.mxu0 %v27612_v59  ;;  %33104 = vmatprep.subr.mxu0 %v33379_v3 }
0x34fc   :  { %33105 = vmatpush3.msra.mxu0 %v35905_v22  ;;  %33108 = vmatprep.mubr.msk.f32.mxu0 %vm33380_vm2, %v33379_v3 }
0x34fd   :  { %33106 = vmatprep.subr.mxu0 %v33379_v3  ;;  %33127 = vmatprep.subr.mxu1 %v33379_v3 }
0x34fe   :  { %33107 = vmatpush3.msra.mxu0 %v35915_v61  ;;  %33128 = vmatpush3.msra.mxu1 %v33446_v18 }
0x34ff   :  { %33109 = vmatmul.mubr.f32.vlgmr.msra.gmra.mxu0 %v27611_v19  ;;  %33129 = vmatprep.mubr.msk.f32.mxu1 %vm33380_vm2, %v33379_v3 }
0x3500   :  { %33139 = vmatprep.subr.mxu1 %v33379_v3  ;;  %33118 = vmatprep.subr.mxu0 %v33379_v3 }
0x3501   :  { %33119 = vmatpush3.msra.mxu0 %v33411_v4  ;;  %33122 = vmatprep.mubr.msk.f32.mxu0 %vm33380_vm2, %v33379_v3 }
0x3502   :  { %33120 = vmatprep.subr.mxu0 %v33379_v3 }
0x3503   :  { %33121 = vmatpush3.msra.mxu0 %v33414_v5 }
0x3504   :  { %33132 = vmatprep.subr.mxu0 %v33379_v3 }
0x35af   :  { %v27698_v16 = vpop.f32.mrf.mxu1 }
0x35b1   :  { %v33089_v18 = vpop.f32.mrf.mxu1 }
0x35b3   :  { %v27849_v20 = vpop.f32.mrf.mxu1 }
0x35b5   :  { %v33103_v53 = vpop.f32.mrf.mxu1 }
0x35b7   :  { %v27617_v63 = vpop.f32.mrf.mxu0  ;;  %v27999_v6 = vpop.f32.mrf.mxu1 }
0x35b8   :  { %v27618_v13 = vadd.f32 %v27617_v63, %v35973_v57 }
0x35b9   :  { %v33082_v36 = vpop.f32.mrf.mxu0  ;;  %v33117_v44 = vpop.f32.mrf.mxu1 }
0x35ba   :  { %v27699_v46 = vadd.f32 %v27698_v16, %v27618_v13 }
0x35bb   :  { %v27774_v2 = vpop.f32.mrf.mxu0 }
0x35bc   :  { %v27775_v33 = vadd.f32 %v27774_v2, %v27699_v46 }
0x35bd   :  { %v33096_v35 = vpop.f32.mrf.mxu0 }
0x35be   :  { %v27850_v45 = vadd.f32 %v27849_v20, %v27775_v33 }
0x35bf   :  { %v27926_v49 = vpop.f32.mrf.mxu0 }
0x35c0   :  { %v27927_v32 = vadd.f32 %v27926_v49, %v27850_v45 }
0x35c1   :  { %v33110_v11 = vpop.f32.mrf.mxu0 }
0x35c2   :  { %v28000_v50 = vadd.f32 %v27999_v6, %v27927_v32 }
0x35c4   :  { %v36095_v51 = vadd.f32 %v28000_v50, %v35977_v48 }
0x35c6   :  { %v28005_v38 = vsel %vm39_vm1, %v36095_v51, 0 }
0x35c7   :  { %v28074_v37 = vand.u32 4294901760, %v28005_v38 }
0x35c9   :  { %v28075_v30 = vsub.f32 %v28005_v38, %v28074_v37  ;;  %33130 = vmatmul.mubr.f32.vlgmr.msra.gmra.mxu1 %v28074_v37 }
0x35ca   :  { %33140 = vmatpush3.msra.mxu1 %v33411_v4  ;;  %33143 = vmatprep.mubr.msk.f32.mxu1 %vm33380_vm2, %v33379_v3 }
0x35cb   :  { %v28076_v15 = vand.u32 4294901760, %v28075_v30  ;;  %33141 = vmatprep.subr.mxu1 %v33379_v3 }
0x35cc   :  { %33142 = vmatpush3.msra.mxu1 %v33414_v5 }
0x35cd   :  { %v28077_v39 = vsub.f32 %v28075_v30, %v28076_v15  ;;  %33144 = vmatmul.mubr.f32.vlgmr.msra.gmra.mxu1 %v28076_v15  ;;  %33153 = vmatprep.subr.mxu1 %v33379_v3 }
0x35ce   :  { %33154 = vmatpush3.msra.mxu1 %v33411_v4  ;;  %33157 = vmatprep.mubr.msk.f32.mxu1 %vm33380_vm2, %v33379_v3 }
0x35cf   :  { %33155 = vmatprep.subr.mxu1 %v33379_v3  ;;  %v28078_v48 = vand.u32 4294901760, %v28077_v39 }
0x35d0   :  { %33156 = vmatpush3.msra.mxu1 %v33414_v5 }
0x35d1   :  { %33123 = vmatmul.mubr.f32.vlgmr.msra.gmra.mxu0 %v28078_v48  ;;  %33158 = vmatmul.mubr.f32.vlgmr.msra.gmra.mxu1 %v28074_v37 }
0x35d2   :  { %33133 = vmatpush3.msra.mxu0 %v33426_v7  ;;  %33136 = vmatprep.mubr.msk.f32.mxu0 %vm33380_vm2, %v33379_v3 }
0x35d3   :  { %33134 = vmatprep.subr.mxu0 %v33379_v3  ;;  %33167 = vmatprep.subr.mxu1 %v33379_v3 }
0x35d4   :  { %33135 = vmatpush3.msra.mxu0 %v33429_v9  ;;  %33168 = vmatpush3.msra.mxu1 %v33508_v29 }
0x35d5   :  { %33137 = vmatmul.mubr.f32.vlgmr.msra.gmra.mxu0 %v28075_v30  ;;  %33146 = vmatprep.subr.mxu0 %v33379_v3 }
0x35d6   :  { %33147 = vmatpush3.msra.mxu0 %v33434_v10  ;;  %33150 = vmatprep.mubr.msk.f32.mxu0 %vm33380_vm2, %v33379_v3 }
0x35d7   :  { %33148 = vmatprep.subr.mxu0 %v33379_v3  ;;  %33169 = vmatprep.subr.mxu1 %v33379_v3 }
0x35d8   :  { %33149 = vmatpush3.msra.mxu0 %v33437_v12  ;;  %33170 = vmatpush3.msra.mxu1 %v33513_v31 }
0x35d9   :  { %33151 = vmatmul.mubr.f32.vlgmr.msra.gmra.mxu0 %v28074_v37  ;;  %33171 = vmatprep.mubr.msk.f32.mxu1 %vm33380_vm2, %v33379_v3 }
0x35da   :  { %33181 = vmatprep.subr.mxu1 %v33379_v3  ;;  %33160 = vmatprep.subr.mxu0 %v33379_v3 }
0x35db   :  { %33161 = vmatpush3.msra.mxu0 %v33483_v21  ;;  %33164 = vmatprep.mubr.msk.f32.mxu0 %vm33380_vm2, %v33379_v3 }
0x35dc   :  { %33162 = vmatprep.subr.mxu0 %v33379_v3 }
0x35dd   :  { %33163 = vmatpush3.msra.mxu0 %v33491_v24 }
0x35de   :  { %33174 = vmatprep.subr.mxu0 %v33379_v3 }
0x3689   :  { %v28161_v4 = vpop.f32.mrf.mxu1 }
0x368b   :  { %v33131_v5 = vpop.f32.mrf.mxu1 }
0x368d   :  { %v28312_v7 = vpop.f32.mrf.mxu1 }
0x368f   :  { %v33145_v9 = vpop.f32.mrf.mxu1 }
0x3691   :  { %v28080_v10 = vpop.f32.mrf.mxu0  ;;  %v28462_v12 = vpop.f32.mrf.mxu1 }
0x3692   :  { %v28081_v29 = vadd.f32 %v35857_v8, %v28080_v10 }
0x3693   :  { %v33124_v31 = vpop.f32.mrf.mxu0  ;;  %v33159_v56 = vpop.f32.mrf.mxu1 }
0x3694   :  { %v28162_v42 = vadd.f32 %v28161_v4, %v28081_v29 }
0x3695   :  { %v28237_v34 = vpop.f32.mrf.mxu0 }
0x3696   :  { %v28238_v60 = vadd.f32 %v28237_v34, %v28162_v42 }
0x3697   :  { %v33138_v40 = vpop.f32.mrf.mxu0 }
0x3698   :  { %v28313_v47 = vadd.f32 %v28312_v7, %v28238_v60 }
0x3699   :  { %v28389_v58 = vpop.f32.mrf.mxu0 }
0x369a   :  { %v28390_v14 = vadd.f32 %v28389_v58, %v28313_v47 }
0x369b   :  { %v33152_v19 = vpop.f32.mrf.mxu0 }
0x369c   :  { %v28463_v59 = vadd.f32 %v28462_v12, %v28390_v14 }
0x369e   :  { %v28467_v27 = vmul.f32 1.442695, %v28463_v59  ;;  %vm28466_vm4 = vcmp.gt.f32.partialorder %v28463_v59, 0.0 }
0x36a0   :  { %33329 = vpow2.f32 %v28467_v27 }
0x36ad   :  { %v33330_v52 = vpop.eup %33329 }
0x36ae   :  { %v29462_v1 = vadd.f32 -1.0, %v33330_v52 }
0x36b0   :  { %v28470_v16 = vsel %vm28466_vm4, %v28463_v59, %v29462_v1 }
0x36b1   :  { %v28472_v18 = vsel %vm39_vm1, %v28470_v16, 0 }
0x36b2   :  { %v28541_v8 = vand.u32 4294901760, %v28472_v18 }
0x36b4   :  { %v28542_v20 = vsub.f32 %v28472_v18, %v28541_v8  ;;  %33172 = vmatmul.mubr.f32.vlgmr.msra.gmra.mxu1 %v28541_v8 }
0x36b5   :  { %33182 = vmatpush3.msra.mxu1 %v33483_v21  ;;  %33185 = vmatprep.mubr.msk.f32.mxu1 %vm33380_vm2, %v33379_v3 }
0x36b6   :  { %33183 = vmatprep.subr.mxu1 %v33379_v3  ;;  %v28543_v53 = vand.u32 4294901760, %v28542_v20 }
0x36b7   :  { %33184 = vmatpush3.msra.mxu1 %v33491_v24 }
0x36b8   :  { %33186 = vmatmul.mubr.f32.vlgmr.msra.gmra.mxu1 %v28543_v53  ;;  %33195 = vmatprep.subr.mxu1 %v33379_v3  ;;  %v28544_v63 = vsub.f32 %v28542_v20, %v28543_v53 }
0x36b9   :  { %33196 = vmatpush3.msra.mxu1 %v33483_v21  ;;  %33199 = vmatprep.mubr.msk.f32.mxu1 %vm33380_vm2, %v33379_v3 }
0x36ba   :  { %33197 = vmatprep.subr.mxu1 %v33379_v3  ;;  %v28545_v6 = vand.u32 4294901760, %v28544_v63 }
0x36bb   :  { %33198 = vmatpush3.msra.mxu1 %v33491_v24 }
0x36bc   :  { %33165 = vmatmul.mubr.f32.vlgmr.msra.gmra.mxu0 %v28545_v6  ;;  %33200 = vmatmul.mubr.f32.vlgmr.msra.gmra.mxu1 %v28541_v8 }
0x36bd   :  { %33175 = vmatpush3.msra.mxu0 %v33489_v23  ;;  %33178 = vmatprep.mubr.msk.f32.mxu0 %vm33380_vm2, %v33379_v3 }
0x36be   :  { %33176 = vmatprep.subr.mxu0 %v33379_v3  ;;  %33209 = vmatprep.subr.mxu1 %v33379_v3 }
0x36bf   :  { %33177 = vmatpush3.msra.mxu0 %v33499_v26  ;;  %33210 = vmatpush3.msra.mxu1 %v35917_v43 }
0x36c0   :  { %33179 = vmatmul.mubr.f32.vlgmr.msra.gmra.mxu0 %v28542_v20  ;;  %33188 = vmatprep.subr.mxu0 %v33379_v3 }
0x36c1   :  { %33189 = vmatpush3.msra.mxu0 %v33496_v25  ;;  %33192 = vmatprep.mubr.msk.f32.mxu0 %vm33380_vm2, %v33379_v3 }
0x36c2   :  { %33190 = vmatprep.subr.mxu0 %v33379_v3  ;;  %33211 = vmatprep.subr.mxu1 %v33379_v3 }
0x36c3   :  { %33191 = vmatpush3.msra.mxu0 %v33506_v28  ;;  %33212 = vmatpush3.msra.mxu1 %v35922_v0 }
0x36c4   :  { %33193 = vmatmul.mubr.f32.vlgmr.msra.gmra.mxu0 %v28541_v8  ;;  %33213 = vmatprep.mubr.msk.f32.mxu1 %vm33380_vm2, %v33379_v3 }
0x36c5   :  { %33223 = vmatprep.subr.mxu1 %v33379_v3  ;;  %33202 = vmatprep.subr.mxu0 %v33379_v3 }
0x36c6   :  { %33203 = vmatpush3.msra.mxu0 %v35892_v17  ;;  %33206 = vmatprep.mubr.msk.f32.mxu0 %vm33380_vm2, %v33379_v3 }
0x36c7   :  { %33204 = vmatprep.subr.mxu0 %v33379_v3 }
0x36c8   :  { %33205 = vmatpush3.msra.mxu0 %v35900_v62 }
0x36c9   :  { %33216 = vmatprep.subr.mxu0 %v33379_v3 }
0x3774   :  { %v28628_v21 = vpop.f32.mrf.mxu1 }
0x3776   :  { %v33173_v23 = vpop.f32.mrf.mxu1 }
0x3778   :  { %v28779_v24 = vpop.f32.mrf.mxu1 }
0x377a   :  { %v33187_v25 = vpop.f32.mrf.mxu1 }
0x377c   :  { %v28547_v26 = vpop.f32.mrf.mxu0  ;;  %v28929_v28 = vpop.f32.mrf.mxu1 }
0x377d   :  { %v28548_v43 = vadd.f32 %v35930_v41, %v28547_v26 }
0x377e   :  { %v33166_v0 = vpop.f32.mrf.mxu0  ;;  %v33201_v13 = vpop.f32.mrf.mxu1 }
0x377f   :  { %v28629_v36 = vadd.f32 %v28628_v21, %v28548_v43 }
0x3780   :  { %v28704_v44 = vpop.f32.mrf.mxu0 }
0x3781   :  { %v28705_v46 = vadd.f32 %v28704_v44, %v28629_v36 }
0x3782   :  { %v33180_v2 = vpop.f32.mrf.mxu0 }
0x3783   :  { %v28780_v33 = vadd.f32 %v28779_v24, %v28705_v46 }
0x3784   :  { %v28856_v35 = vpop.f32.mrf.mxu0 }
0x3785   :  { %v28857_v45 = vadd.f32 %v28856_v35, %v28780_v33 }
0x3786   :  { %v33194_v49 = vpop.f32.mrf.mxu0 }
0x3787   :  { %v28930_v32 = vadd.f32 %v28929_v28, %v28857_v45 }
0x3789   :  { %v28934_v11 = vmul.f32 1.442695, %v28930_v32  ;;  %vm28933_vm5 = vcmp.gt.f32.partialorder %v28930_v32, 0.0 }
0x378b   :  { %33331 = vpow2.f32 %v28934_v11 }
0x3798   :  { %v33332_v50 = vpop.eup %33331 }
0x3799   :  { %v29463_v38 = vadd.f32 -1.0, %v33332_v50 }
0x379b   :  { %v28937_v37 = vsel %vm28933_vm5, %v28930_v32, %v29463_v38 }
0x379c   :  { %v28939_v30 = vsel %vm39_vm1, %v28937_v37, 0 }
0x379d   :  { %v29008_v41 = vand.u32 4294901760, %v28939_v30 }
0x379f   :  { %v29009_v15 = vsub.f32 %v28939_v30, %v29008_v41  ;;  %33214 = vmatmul.mubr.f32.vlgmr.msra.gmra.mxu1 %v29008_v41 }
0x37a0   :  { %33224 = vmatpush3.msra.mxu1 %v35892_v17  ;;  %33227 = vmatprep.mubr.msk.f32.mxu1 %vm33380_vm2, %v33379_v3 }
0x37a1   :  { %33225 = vmatprep.subr.mxu1 %v33379_v3  ;;  %v29010_v39 = vand.u32 4294901760, %v29009_v15 }
0x37a2   :  { %33226 = vmatpush3.msra.mxu1 %v35900_v62 }
0x37a3   :  { %33228 = vmatmul.mubr.f32.vlgmr.msra.gmra.mxu1 %v29010_v39  ;;  %33237 = vmatprep.subr.mxu1 %v33379_v3  ;;  %v29011_v48 = vsub.f32 %v29009_v15, %v29010_v39 }
0x37a4   :  { %33238 = vmatpush3.msra.mxu1 %v35892_v17  ;;  %33241 = vmatprep.mubr.msk.f32.mxu1 %vm33380_vm2, %v33379_v3 }
0x37a5   :  { %33239 = vmatprep.subr.mxu1 %v33379_v3  ;;  %v29012_v4 = vand.u32 4294901760, %v29011_v48 }
0x37a6   :  { %33240 = vmatpush3.msra.mxu1 %v35900_v62 }
0x37a7   :  { %33207 = vmatmul.mubr.f32.vlgmr.msra.gmra.mxu0 %v29012_v4  ;;  %33242 = vmatmul.mubr.f32.vlgmr.msra.gmra.mxu1 %v29008_v41 }
0x37a8   :  { %33217 = vmatpush3.msra.mxu0 %v35898_v54  ;;  %33220 = vmatprep.mubr.msk.f32.mxu0 %vm33380_vm2, %v33379_v3 }
0x37a9   :  { %33218 = vmatprep.subr.mxu0 %v33379_v3 }
0x37aa   :  { %33219 = vmatpush3.msra.mxu0 %v35908_v55 }
0x37ab   :  { %33221 = vmatmul.mubr.f32.vlgmr.msra.gmra.mxu0 %v29009_v15  ;;  %33230 = vmatprep.subr.mxu0 %v33379_v3 }
0x37ac   :  { %33231 = vmatpush3.msra.mxu0 %v35905_v22  ;;  %33234 = vmatprep.mubr.msk.f32.mxu0 %vm33380_vm2, %v33379_v3 }
0x37ad   :  { %33232 = vmatprep.subr.mxu0 %v33379_v3 }
0x37ae   :  { %33233 = vmatpush3.msra.mxu0 %v35915_v61 }
0x37af   :  { %33235 = vmatmul.mubr.f32.vlgmr.msra.gmra.mxu0 %v29008_v41 }
0x385f   :  { %v29095_v17 = vpop.f32.mrf.mxu1 }
0x3861   :  { %v33215_v54 = vpop.f32.mrf.mxu1 }
0x3863   :  { %v29246_v62 = vpop.f32.mrf.mxu1 }
0x3865   :  { %v33229_v5 = vpop.f32.mrf.mxu1 }
0x3867   :  { %v29014_v7 = vpop.f32.mrf.mxu0  ;;  %v29396_v9 = vpop.f32.mrf.mxu1 }
0x3868   :  { %v29015_v55 = vadd.f32 %v29014_v7, %v35973_v57 }
0x3869   :  { %v33208_v10 = vpop.f32.mrf.mxu0  ;;  %v33243_v12 = vpop.f32.mrf.mxu1 }
0x386a   :  { %v29096_v29 = vadd.f32 %v29095_v17, %v29015_v55 }
0x386b   :  { %v29171_v22 = vpop.f32.mrf.mxu0 }
0x386c   :  { %v29172_v31 = vadd.f32 %v29171_v22, %v29096_v29 }
0x386d   :  { %v33222_v56 = vpop.f32.mrf.mxu0 }
0x386e   :  { %v29247_v42 = vadd.f32 %v29246_v62, %v29172_v31 }
0x386f   :  { %v29323_v34 = vpop.f32.mrf.mxu0 }
0x3870   :  { %v29324_v3 = vadd.f32 %v29323_v34, %v29247_v42 }
0x3871   :  { %v33236_v61 = vpop.f32.mrf.mxu0 }
0x3872   :  { %v29397_v60 = vadd.f32 %v29396_v9, %v29324_v3 }
0x3874   :  { %v29400_v40 = vadd.f32 %v29397_v60, %v36095_v51 }
0x3876   :  { %29402 = vst.msk [vmem:[#allocation2 + $0x1c] sm:$0xf] %vm34_vm0, %v29400_v40 }
0x3877   :  { %33368 = shalt.err (!%p33365_p4)
}
0x3878   :  { %s33382_s20 = smov 64   ;;  %s33383_s21 = smov 4  }
0x3879   :  { %29414 = dma.vmem_to_hbm [thread:$0]  %s29409_s18, 512, %s36205_s2, [#allocation3], %s33382_s20, %s33382_s20, %s33383_s21  }
0x387a   :  { %33377 = dma.done.wait [#allocation3], 512  }
0x387b   :  { %33378 = vsyncadd [#allocation3], 4294966784 }
0x387c   :  { %29418 = vsyncpa [#allocation3], 1 }

</bundles_post_ra>
